<compile_context>
chip_gen: v6e
topology: v6e:2x2x1
jax: 0.10.0
libtpu: 0.0.40
codegen_flags: <defaults>
</compile_context>

<pallas_src>
import numpy as np
import jax
import jax.numpy as jnp
from jax import lax
from jax.experimental import pallas as pl
from jax.experimental.pallas import tpu as pltpu


# ---------------------------------------------------------------------------
# Static geometry for a (B, 3, 32, 32) input.
# ---------------------------------------------------------------------------
# conv1: 32x32x3, k=5, s=2, p=2 -> 16x16x16 (stride 2 via phase split)
PH_W = 18                    # phase-grid width  ((32 + 2*2) / 2)
PH_ROWS = PH_W * PH_W        # 324 flat rows per phase
PH_ROWS_PAD = 336            # padded so tap slices never run off the end
C1_HO, C1_WO = 16, 16
C1_ROWS = C1_HO * PH_W       # 288 flat conv1-output rows (width 18, 16 valid)

# conv2: 8x8x16 (after pool1), k=3, s=1, p=1 -> 8x8x32
X2_W = 10                    # padded conv2-input width
X2_ROWS = 112                # >= 10*10 + tap overrun, multiple of 8
C2_HO, C2_WO = 8, 8
C2_ROWS = C2_HO * X2_W       # 80

# conv3: 4x4x32 (after pool2), k=3, s=1, p=1 -> 4x4x64
X3_W = 6
X3_ROWS = 40                 # >= 6*6 + tap overrun, multiple of 8
C3_HO, C3_WO = 4, 4
C3_ROWS = C3_HO * X3_W       # 24

OUT_PAD = 128                # lane-dense output width (4 valid logits)


def _pool_scatter(ho, wo, w_ext, out_w, out_rows):
    """Four one-hot matrices: S[rs] @ conv_out picks 2x2-window element (r,s)
    of each pooled pixel and scatters it into the next conv's zero-padded
    flat input (rows never hit stay 0 = padding)."""
    S = np.zeros((4, out_rows, ho * w_ext), np.float32)
    for r in range(2):
        for s in range(2):
            for hp in range(ho // 2):
                for wp in range(wo // 2):
                    S[r * 2 + s,
                      (hp + 1) * out_w + (wp + 1),
                      (2 * hp + r) * w_ext + (2 * wp + s)] = 1.0
    return S


_S1 = jnp.asarray(_pool_scatter(C1_HO, C1_WO, PH_W, X2_W, X2_ROWS))   # (4,112,288)
_S2 = jnp.asarray(_pool_scatter(C2_HO, C2_WO, X2_W, X3_W, X3_ROWS))   # (4, 40, 80)

_avg_np = np.zeros((1, C3_ROWS), np.float32)
for _h in range(C3_HO):
    for _w in range(C3_WO):
        _avg_np[0, _h * X3_W + _w] = 1.0 / float(C3_HO * C3_WO)
_AVG = jnp.asarray(_avg_np)                                            # (1, 24)


# ---------------------------------------------------------------------------
# The single fused kernel (one grid step = one image).
# ---------------------------------------------------------------------------
def _fused_cnn_kernel(xph_ref, w1_ref, b1_ref, s1_ref, w2_ref, b2_ref, s2_ref,
                      w3_ref, b3_ref, avg_ref, fw1_ref, fb1_ref, fw2_ref,
                      fb2_ref, o_ref, x2_ref, x3_ref):
    f32 = jnp.float32

    def conv_taps(lhs_fn, w_ref, k, n_rows, cout):
        acc = jnp.zeros((n_rows, cout), f32)
        for i in range(k):
            for j in range(k):
                acc = acc + jnp.dot(lhs_fn(i, j), w_ref[i, j],
                                    preferred_element_type=f32)
        return acc

    def pool_scatter(s_ref, a):
        p0 = jnp.dot(s_ref[0], a, preferred_element_type=f32)
        p1 = jnp.dot(s_ref[1], a, preferred_element_type=f32)
        p2 = jnp.dot(s_ref[2], a, preferred_element_type=f32)
        p3 = jnp.dot(s_ref[3], a, preferred_element_type=f32)
        return jnp.maximum(jnp.maximum(p0, p1), jnp.maximum(p2, p3))

    # conv1 (5x5, stride 2 via phase split) + bias + ReLU       -> (288, 16)
    def c1_lhs(i, j):
        pi = (i % 2) * 2 + (j % 2)
        off = (i // 2) * PH_W + (j // 2)
        return xph_ref[0, pi, off:off + C1_ROWS, :]              # (288, 8)

    a1 = jnp.maximum(conv_taps(c1_lhs, w1_ref, 5, C1_ROWS, 16)
                     + b1_ref[...], 0.0)

    # maxpool 2x2 -> zero-padded conv2 input (kept in VMEM)     -> (112, 16)
    x2_ref[...] = pool_scatter(s1_ref, a1)

    # conv2 (3x3, stride 1) + bias + ReLU                        -> (80, 32)
    a2 = jnp.maximum(
        conv_taps(lambda i, j: x2_ref[i * X2_W + j: i * X2_W + j + C2_ROWS, :],
                  w2_ref, 3, C2_ROWS, 32) + b2_ref[...], 0.0)

    # maxpool 2x2 -> zero-padded conv3 input                     -> (40, 32)
    x3_ref[...] = pool_scatter(s2_ref, a2)

    # conv3 (3x3, stride 1) + bias + ReLU                        -> (24, 64)
    a3 = jnp.maximum(
        conv_taps(lambda i, j: x3_ref[i * X3_W + j: i * X3_W + j + C3_ROWS, :],
                  w3_ref, 3, C3_ROWS, 64) + b3_ref[...], 0.0)

    # AdaptiveAvgPool2d((1,1)) + Flatten: weighted sum over valid rows (1,64)
    feat = jnp.dot(avg_ref[...], a3, preferred_element_type=f32)

    # Linear(64,32) + ReLU + Linear(32,4)  (fc2 zero-padded to 128 lanes so
    # the final store is lane-dense / unmasked; wrapper slices [:, :4]).
    h = jnp.maximum(jnp.dot(feat, fw1_ref[...], preferred_element_type=f32)
                    + fb1_ref[...], 0.0)
    o_ref[0] = jnp.dot(h, fw2_ref[...], preferred_element_type=f32) + fb2_ref[...]


# ---------------------------------------------------------------------------
# JAX wrapper (layout prep + one pallas_call), jitted.
# ---------------------------------------------------------------------------
def _prep_phases(x_nchw):
    """NCHW -> zero-padded NHWC -> stride-2 space-to-depth phase split,
    flattened to (B, 4, PH_ROWS_PAD, 8) with channels zero-padded 3 -> 8."""
    x = jnp.transpose(x_nchw, (0, 2, 3, 1)).astype(jnp.float32)       # (B,32,32,3)
    B = x.shape[0]
    xp = jnp.pad(x, ((0, 0), (2, 2), (2, 2), (0, 0)))                 # (B,36,36,3)
    ph = xp.reshape(B, PH_W, 2, PH_W, 2, 3).transpose(0, 2, 4, 1, 3, 5)
    ph = ph.reshape(B, 4, PH_ROWS, 3)
    ph = jnp.pad(ph, ((0, 0), (0, 0), (0, PH_ROWS_PAD - PH_ROWS), (0, 5)))
    return ph                                                         # (B,4,336,8)


@jax.jit
def simple_cnn_forward(x_nchw, params):
    B = x_nchw.shape[0]
    xph = _prep_phases(x_nchw)

    # One-time (jit-fused) weight prep: taps as (kh, kw, Cin, Cout) matrices.
    w1 = jnp.pad(jnp.transpose(params["w1"], (2, 3, 1, 0)),
                 ((0, 0), (0, 0), (0, 5), (0, 0)))                    # (5,5,8,16)
    w2 = jnp.transpose(params["w2"], (2, 3, 1, 0))                    # (3,3,16,32)
    w3 = jnp.transpose(params["w3"], (2, 3, 1, 0))                    # (3,3,32,64)
    b1 = params["b1"].reshape(1, -1)
    b2 = params["b2"].reshape(1, -1)
    b3 = params["b3"].reshape(1, -1)
    fw1 = params["fc1_w"].T                                           # (64,32)
    fb1 = params["fc1_b"].reshape(1, -1)                              # (1,32)
    fw2 = jnp.pad(params["fc2_w"].T, ((0, 0), (0, OUT_PAD - 4)))      # (32,128)
    fb2 = jnp.pad(params["fc2_b"].reshape(1, -1),
                  ((0, 0), (0, OUT_PAD - 4)))                         # (1,128)

    def full(shape):
        return pl.BlockSpec(shape, lambda b, _s=shape: (0,) * len(_s))

    out = pl.pallas_call(
        _fused_cnn_kernel,
        out_shape=jax.ShapeDtypeStruct((B, 1, OUT_PAD), jnp.float32),
        grid=(B,),
        in_specs=[
            pl.BlockSpec((1, 4, PH_ROWS_PAD, 8), lambda b: (b, 0, 0, 0)),
            full((5, 5, 8, 16)), full((1, 16)), full((4, X2_ROWS, C1_ROWS)),
            full((3, 3, 16, 32)), full((1, 32)), full((4, X3_ROWS, C2_ROWS)),
            full((3, 3, 32, 64)), full((1, 64)),
            full((1, C3_ROWS)),
            full((64, 32)), full((1, 32)), full((32, OUT_PAD)),
            full((1, OUT_PAD)),
        ],
        out_specs=pl.BlockSpec((1, 1, OUT_PAD), lambda b: (b, 0, 0)),
        scratch_shapes=[pltpu.VMEM((X2_ROWS, 16), jnp.float32),
                        pltpu.VMEM((X3_ROWS, 32), jnp.float32)],
        compiler_params=pltpu.CompilerParams(
            dimension_semantics=("parallel",)),
    )(xph, w1, b1, _S1, w2, b2, _S2, w3, b3, _AVG, fw1, fb1, fw2, fb2)
    return out[:, 0, :4]                                              # (B, 4)


# ---------------------------------------------------------------------------
# Pure-JAX reference (correctness check only).
# ---------------------------------------------------------------------------
def reference_forward(x_nchw, params):
    x = jnp.transpose(x_nchw, (0, 2, 3, 1)).astype(jnp.float32)

    def conv(x, w, b, stride, pad):
        w_hwio = jnp.transpose(w, (2, 3, 1, 0))
        y = lax.conv_general_dilated(
            x, w_hwio, (stride, stride), [(pad, pad), (pad, pad)],
            dimension_numbers=("NHWC", "HWIO", "NHWC"))
        return jnp.maximum(y + b, 0.0)

    def pool(x):
        return lax.reduce_window(x, -jnp.inf, lax.max,
                                 (1, 2, 2, 1), (1, 2, 2, 1), "VALID")

    x = pool(conv(x, params["w1"], params["b1"], 2, 2))
    x = pool(conv(x, params["w2"], params["b2"], 1, 1))
    x = conv(x, params["w3"], params["b3"], 1, 1)
    feat = jnp.mean(x, axis=(1, 2))
    h = jnp.maximum(feat @ params["fc1_w"].T + params["fc1_b"], 0.0)
    return h @ params["fc2_w"].T + params["fc2_b"]


# ---------------------------------------------------------------------------
# Deterministic parameter init (shapes from SimpleCNN.__init__, PyTorch layout)
# ---------------------------------------------------------------------------
def init_params(key):
    ks = jax.random.split(key, 10)

    def w(k, shape, fan_in):
        return jax.random.normal(k, shape, jnp.float32) / jnp.sqrt(fan_in)

    return {
        "w1": w(ks[0], (16, 3, 5, 5), 3 * 25),
        "b1": w(ks[1], (16,), 3 * 25),
        "w2": w(ks[2], (32, 16, 3, 3), 16 * 9),
        "b2": w(ks[3], (32,), 16 * 9),
        "w3": w(ks[4], (64, 32, 3, 3), 32 * 9),
        "b3": w(ks[5], (64,), 32 * 9),
        "fc1_w": w(ks[6], (32, 64), 64),
        "fc1_b": w(ks[7], (32,), 64),
        "fc2_w": w(ks[8], (4, 32), 32),
        "fc2_b": w(ks[9], (4,), 32),
    }


if __name__ == "__main__":
    key = jax.random.PRNGKey(0)
    k_x, k_p = jax.random.split(key)
    x = jax.random.normal(k_x, (2, 3, 32, 32), jnp.float32)   # NCHW input
    params = init_params(k_p)

    out = jax.block_until_ready(simple_cnn_forward(x, params))
    ref = jax.block_until_ready(reference_forward(x, params))

    assert out.shape == (2, 4), out.shape
    if not bool(jnp.allclose(out, ref, rtol=1e-3, atol=1e-3)):
        raise AssertionError("Pallas output mismatch vs JAX reference")
    print("KERNEL_OK")
</pallas_src>

<mosaic_0001>
module attributes {stable_mosaic.version = 11 : i64} {
  func.func @_fused_cnn_kernel(%arg0: i32, %arg1: memref<1x4x336x8xf32, #tpu.memory_space<vmem>>, %arg2: memref<5x5x8x16xf32, #tpu.memory_space<vmem>>, %arg3: memref<1x16xf32, #tpu.memory_space<vmem>>, %arg4: memref<4x112x288xf32, #tpu.memory_space<vmem>>, %arg5: memref<3x3x16x32xf32, #tpu.memory_space<vmem>>, %arg6: memref<1x32xf32, #tpu.memory_space<vmem>>, %arg7: memref<4x40x80xf32, #tpu.memory_space<vmem>>, %arg8: memref<3x3x32x64xf32, #tpu.memory_space<vmem>>, %arg9: memref<1x64xf32, #tpu.memory_space<vmem>>, %arg10: memref<1x24xf32, #tpu.memory_space<vmem>>, %arg11: memref<64x32xf32, #tpu.memory_space<vmem>>, %arg12: memref<1x32xf32, #tpu.memory_space<vmem>>, %arg13: memref<32x128xf32, #tpu.memory_space<vmem>>, %arg14: memref<1x128xf32, #tpu.memory_space<vmem>>, %arg15: memref<1x1x128xf32, #tpu.memory_space<vmem>>, %arg16: memref<112x16xf32, #tpu.memory_space<vmem>>, %arg17: memref<40x32xf32, #tpu.memory_space<vmem>>) attributes {dimension_semantics = [#tpu.dimension_semantics<parallel>], iteration_bounds = array<i64: 2>, scalar_prefetch = 0 : i64, scratch_operands = 2 : i64, tpu.core_type = #tpu.core_type<tc>, window_params = [{transform_indices = @transform_0, window_bounds = array<i64: 1, 4, 336, 8>}, {pipeline_mode = #tpu.pipeline_mode<synchronous>, transform_indices = @transform_1, window_bounds = array<i64: 5, 5, 8, 16>}, {pipeline_mode = #tpu.pipeline_mode<synchronous>, transform_indices = @transform_2, window_bounds = array<i64: 1, 16>}, {pipeline_mode = #tpu.pipeline_mode<synchronous>, transform_indices = @transform_3, window_bounds = array<i64: 4, 112, 288>}, {pipeline_mode = #tpu.pipeline_mode<synchronous>, transform_indices = @transform_4, window_bounds = array<i64: 3, 3, 16, 32>}, {pipeline_mode = #tpu.pipeline_mode<synchronous>, transform_indices = @transform_5, window_bounds = array<i64: 1, 32>}, {pipeline_mode = #tpu.pipeline_mode<synchronous>, transform_indices = @transform_6, window_bounds = array<i64: 4, 40, 80>}, {pipeline_mode = #tpu.pipeline_mode<synchronous>, transform_indices = @transform_7, window_bounds = array<i64: 3, 3, 32, 64>}, {pipeline_mode = #tpu.pipeline_mode<synchronous>, transform_indices = @transform_8, window_bounds = array<i64: 1, 64>}, {pipeline_mode = #tpu.pipeline_mode<synchronous>, transform_indices = @transform_9, window_bounds = array<i64: 1, 24>}, {pipeline_mode = #tpu.pipeline_mode<synchronous>, transform_indices = @transform_10, window_bounds = array<i64: 64, 32>}, {pipeline_mode = #tpu.pipeline_mode<synchronous>, transform_indices = @transform_11, window_bounds = array<i64: 1, 32>}, {pipeline_mode = #tpu.pipeline_mode<synchronous>, transform_indices = @transform_12, window_bounds = array<i64: 32, 128>}, {pipeline_mode = #tpu.pipeline_mode<synchronous>, transform_indices = @transform_13, window_bounds = array<i64: 1, 128>}, {transform_indices = @transform_14, window_bounds = array<i64: 1, 1, 128>}]} {
    %cst = arith.constant 0.000000e+00 : f32
    %0 = vector.broadcast %cst : f32 to vector<288x16xf32>
    %c0 = arith.constant 0 : index
    %c0_0 = arith.constant 0 : index
    %c0_1 = arith.constant 0 : index
    %c0_2 = arith.constant 0 : index
    %1 = vector.load %arg1[%c0, %c0_0, %c0_1, %c0_2] : memref<1x4x336x8xf32, #tpu.memory_space<vmem>>, vector<1x1x288x8xf32>
    %2 = vector.shape_cast %1 : vector<1x1x288x8xf32> to vector<288x8xf32>
    %c0_3 = arith.constant 0 : index
    %c0_4 = arith.constant 0 : index
    %c0_5 = arith.constant 0 : index
    %c0_6 = arith.constant 0 : index
    %3 = vector.load %arg2[%c0_3, %c0_4, %c0_5, %c0_6] : memref<5x5x8x16xf32, #tpu.memory_space<vmem>>, vector<1x1x8x16xf32>
    %4 = vector.shape_cast %3 : vector<1x1x8x16xf32> to vector<8x16xf32>
    %cst_7 = arith.constant dense<0.000000e+00> : vector<288x16xf32>
    %5 = tpu.matmul %2, %4, %cst_7 {dimension_numbers = #tpu.dot_dimension_numbers<[1], [0], [0], [1], [0, 0, 1, 1], [], []>} : vector<288x8xf32>, vector<8x16xf32>, vector<288x16xf32> -> vector<288x16xf32>
    %6 = arith.addf %0, %5 : vector<288x16xf32>
    %c0_8 = arith.constant 0 : index
    %c1 = arith.constant 1 : index
    %c0_9 = arith.constant 0 : index
    %c0_10 = arith.constant 0 : index
    %7 = vector.load %arg1[%c0_8, %c1, %c0_9, %c0_10] : memref<1x4x336x8xf32, #tpu.memory_space<vmem>>, vector<1x1x288x8xf32>
    %8 = vector.shape_cast %7 : vector<1x1x288x8xf32> to vector<288x8xf32>
    %c0_11 = arith.constant 0 : index
    %c1_12 = arith.constant 1 : index
    %c0_13 = arith.constant 0 : index
    %c0_14 = arith.constant 0 : index
    %9 = vector.load %arg2[%c0_11, %c1_12, %c0_13, %c0_14] : memref<5x5x8x16xf32, #tpu.memory_space<vmem>>, vector<1x1x8x16xf32>
    %10 = vector.shape_cast %9 : vector<1x1x8x16xf32> to vector<8x16xf32>
    %cst_15 = arith.constant dense<0.000000e+00> : vector<288x16xf32>
    %11 = tpu.matmul %8, %10, %cst_15 {dimension_numbers = #tpu.dot_dimension_numbers<[1], [0], [0], [1], [0, 0, 1, 1], [], []>} : vector<288x8xf32>, vector<8x16xf32>, vector<288x16xf32> -> vector<288x16xf32>
    %12 = arith.addf %6, %11 : vector<288x16xf32>
    %c0_16 = arith.constant 0 : index
    %c0_17 = arith.constant 0 : index
    %c1_18 = arith.constant 1 : index
    %c0_19 = arith.constant 0 : index
    %13 = vector.load %arg1[%c0_16, %c0_17, %c1_18, %c0_19] : memref<1x4x336x8xf32, #tpu.memory_space<vmem>>, vector<1x1x288x8xf32>
    %14 = vector.shape_cast %13 : vector<1x1x288x8xf32> to vector<288x8xf32>
    %c0_20 = arith.constant 0 : index
    %c2 = arith.constant 2 : index
    %c0_21 = arith.constant 0 : index
    %c0_22 = arith.constant 0 : index
    %15 = vector.load %arg2[%c0_20, %c2, %c0_21, %c0_22] : memref<5x5x8x16xf32, #tpu.memory_space<vmem>>, vector<1x1x8x16xf32>
    %16 = vector.shape_cast %15 : vector<1x1x8x16xf32> to vector<8x16xf32>
    %cst_23 = arith.constant dense<0.000000e+00> : vector<288x16xf32>
    %17 = tpu.matmul %14, %16, %cst_23 {dimension_numbers = #tpu.dot_dimension_numbers<[1], [0], [0], [1], [0, 0, 1, 1], [], []>} : vector<288x8xf32>, vector<8x16xf32>, vector<288x16xf32> -> vector<288x16xf32>
    %18 = arith.addf %12, %17 : vector<288x16xf32>
    %c0_24 = arith.constant 0 : index
    %c1_25 = arith.constant 1 : index
    %c1_26 = arith.constant 1 : index
    %c0_27 = arith.constant 0 : index
    %19 = vector.load %arg1[%c0_24, %c1_25, %c1_26, %c0_27] : memref<1x4x336x8xf32, #tpu.memory_space<vmem>>, vector<1x1x288x8xf32>
    %20 = vector.shape_cast %19 : vector<1x1x288x8xf32> to vector<288x8xf32>
    %c0_28 = arith.constant 0 : index
    %c3 = arith.constant 3 : index
    %c0_29 = arith.constant 0 : index
    %c0_30 = arith.constant 0 : index
    %21 = vector.load %arg2[%c0_28, %c3, %c0_29, %c0_30] : memref<5x5x8x16xf32, #tpu.memory_space<vmem>>, vector<1x1x8x16xf32>
    %22 = vector.shape_cast %21 : vector<1x1x8x16xf32> to vector<8x16xf32>
    %cst_31 = arith.constant dense<0.000000e+00> : vector<288x16xf32>
    %23 = tpu.matmul %20, %22, %cst_31 {dimension_numbers = #tpu.dot_dimension_numbers<[1], [0], [0], [1], [0, 0, 1, 1], [], []>} : vector<288x8xf32>, vector<8x16xf32>, vector<288x16xf32> -> vector<288x16xf32>
    %24 = arith.addf %18, %23 : vector<288x16xf32>
    %c0_32 = arith.constant 0 : index
    %c0_33 = arith.constant 0 : index
    %c2_34 = arith.constant 2 : index
    %c0_35 = arith.constant 0 : index
    %25 = vector.load %arg1[%c0_32, %c0_33, %c2_34, %c0_35] : memref<1x4x336x8xf32, #tpu.memory_space<vmem>>, vector<1x1x288x8xf32>
    %26 = vector.shape_cast %25 : vector<1x1x288x8xf32> to vector<288x8xf32>
    %c0_36 = arith.constant 0 : index
    %c4 = arith.constant 4 : index
    %c0_37 = arith.constant 0 : index
    %c0_38 = arith.constant 0 : index
    %27 = vector.load %arg2[%c0_36, %c4, %c0_37, %c0_38] : memref<5x5x8x16xf32, #tpu.memory_space<vmem>>, vector<1x1x8x16xf32>
    %28 = vector.shape_cast %27 : vector<1x1x8x16xf32> to vector<8x16xf32>
    %cst_39 = arith.constant dense<0.000000e+00> : vector<288x16xf32>
    %29 = tpu.matmul %26, %28, %cst_39 {dimension_numbers = #tpu.dot_dimension_numbers<[1], [0], [0], [1], [0, 0, 1, 1], [], []>} : vector<288x8xf32>, vector<8x16xf32>, vector<288x16xf32> -> vector<288x16xf32>
    %30 = arith.addf %24, %29 : vector<288x16xf32>
    %c0_40 = arith.constant 0 : index
    %c2_41 = arith.constant 2 : index
    %c0_42 = arith.constant 0 : index
    %c0_43 = arith.constant 0 : index
    %31 = vector.load %arg1[%c0_40, %c2_41, %c0_42, %c0_43] : memref<1x4x336x8xf32, #tpu.memory_space<vmem>>, vector<1x1x288x8xf32>
    %32 = vector.shape_cast %31 : vector<1x1x288x8xf32> to vector<288x8xf32>
    %c1_44 = arith.constant 1 : index
    %c0_45 = arith.constant 0 : index
    %c0_46 = arith.constant 0 : index
    %c0_47 = arith.constant 0 : index
    %33 = vector.load %arg2[%c1_44, %c0_45, %c0_46, %c0_47] : memref<5x5x8x16xf32, #tpu.memory_space<vmem>>, vector<1x1x8x16xf32>
    %34 = vector.shape_cast %33 : vector<1x1x8x16xf32> to vector<8x16xf32>
    %cst_48 = arith.constant dense<0.000000e+00> : vector<288x16xf32>
    %35 = tpu.matmul %32, %34, %cst_48 {dimension_numbers = #tpu.dot_dimension_numbers<[1], [0], [0], [1], [0, 0, 1, 1], [], []>} : vector<288x8xf32>, vector<8x16xf32>, vector<288x16xf32> -> vector<288x16xf32>
    %36 = arith.addf %30, %35 : vector<288x16xf32>
    %c0_49 = arith.constant 0 : index
    %c3_50 = arith.constant 3 : index
    %c0_51 = arith.constant 0 : index
    %c0_52 = arith.constant 0 : index
    %37 = vector.load %arg1[%c0_49, %c3_50, %c0_51, %c0_52] : memref<1x4x336x8xf32, #tpu.memory_space<vmem>>, vector<1x1x288x8xf32>
    %38 = vector.shape_cast %37 : vector<1x1x288x8xf32> to vector<288x8xf32>
    %c1_53 = arith.constant 1 : index
    %c1_54 = arith.constant 1 : index
    %c0_55 = arith.constant 0 : index
    %c0_56 = arith.constant 0 : index
    %39 = vector.load %arg2[%c1_53, %c1_54, %c0_55, %c0_56] : memref<5x5x8x16xf32, #tpu.memory_space<vmem>>, vector<1x1x8x16xf32>
    %40 = vector.shape_cast %39 : vector<1x1x8x16xf32> to vector<8x16xf32>
    %cst_57 = arith.constant dense<0.000000e+00> : vector<288x16xf32>
    %41 = tpu.matmul %38, %40, %cst_57 {dimension_numbers = #tpu.dot_dimension_numbers<[1], [0], [0], [1], [0, 0, 1, 1], [], []>} : vector<288x8xf32>, vector<8x16xf32>, vector<288x16xf32> -> vector<288x16xf32>
    %42 = arith.addf %36, %41 : vector<288x16xf32>
    %c0_58 = arith.constant 0 : index
    %c2_59 = arith.constant 2 : index
    %c1_60 = arith.constant 1 : index
    %c0_61 = arith.constant 0 : index
    %43 = vector.load %arg1[%c0_58, %c2_59, %c1_60, %c0_61] : memref<1x4x336x8xf32, #tpu.memory_space<vmem>>, vector<1x1x288x8xf32>
    %44 = vector.shape_cast %43 : vector<1x1x288x8xf32> to vector<288x8xf32>
    %c1_62 = arith.constant 1 : index
    %c2_63 = arith.constant 2 : index
    %c0_64 = arith.constant 0 : index
    %c0_65 = arith.constant 0 : index
    %45 = vector.load %arg2[%c1_62, %c2_63, %c0_64, %c0_65] : memref<5x5x8x16xf32, #tpu.memory_space<vmem>>, vector<1x1x8x16xf32>
    %46 = vector.shape_cast %45 : vector<1x1x8x16xf32> to vector<8x16xf32>
    %cst_66 = arith.constant dense<0.000000e+00> : vector<288x16xf32>
    %47 = tpu.matmul %44, %46, %cst_66 {dimension_numbers = #tpu.dot_dimension_numbers<[1], [0], [0], [1], [0, 0, 1, 1], [], []>} : vector<288x8xf32>, vector<8x16xf32>, vector<288x16xf32> -> vector<288x16xf32>
    %48 = arith.addf %42, %47 : vector<288x16xf32>
    %c0_67 = arith.constant 0 : index
    %c3_68 = arith.constant 3 : index
    %c1_69 = arith.constant 1 : index
    %c0_70 = arith.constant 0 : index
    %49 = vector.load %arg1[%c0_67, %c3_68, %c1_69, %c0_70] : memref<1x4x336x8xf32, #tpu.memory_space<vmem>>, vector<1x1x288x8xf32>
    %50 = vector.shape_cast %49 : vector<1x1x288x8xf32> to vector<288x8xf32>
    %c1_71 = arith.constant 1 : index
    %c3_72 = arith.constant 3 : index
    %c0_73 = arith.constant 0 : index
    %c0_74 = arith.constant 0 : index
    %51 = vector.load %arg2[%c1_71, %c3_72, %c0_73, %c0_74] : memref<5x5x8x16xf32, #tpu.memory_space<vmem>>, vector<1x1x8x16xf32>
    %52 = vector.shape_cast %51 : vector<1x1x8x16xf32> to vector<8x16xf32>
    %cst_75 = arith.constant dense<0.000000e+00> : vector<288x16xf32>
    %53 = tpu.matmul %50, %52, %cst_75 {dimension_numbers = #tpu.dot_dimension_numbers<[1], [0], [0], [1], [0, 0, 1, 1], [], []>} : vector<288x8xf32>, vector<8x16xf32>, vector<288x16xf32> -> vector<288x16xf32>
    %54 = arith.addf %48, %53 : vector<288x16xf32>
    %c0_76 = arith.constant 0 : index
    %c2_77 = arith.constant 2 : index
    %c2_78 = arith.constant 2 : index
    %c0_79 = arith.constant 0 : index
    %55 = vector.load %arg1[%c0_76, %c2_77, %c2_78, %c0_79] : memref<1x4x336x8xf32, #tpu.memory_space<vmem>>, vector<1x1x288x8xf32>
    %56 = vector.shape_cast %55 : vector<1x1x288x8xf32> to vector<288x8xf32>
    %c1_80 = arith.constant 1 : index
    %c4_81 = arith.constant 4 : index
    %c0_82 = arith.constant 0 : index
    %c0_83 = arith.constant 0 : index
    %57 = vector.load %arg2[%c1_80, %c4_81, %c0_82, %c0_83] : memref<5x5x8x16xf32, #tpu.memory_space<vmem>>, vector<1x1x8x16xf32>
    %58 = vector.shape_cast %57 : vector<1x1x8x16xf32> to vector<8x16xf32>
    %cst_84 = arith.constant dense<0.000000e+00> : vector<288x16xf32>
    %59 = tpu.matmul %56, %58, %cst_84 {dimension_numbers = #tpu.dot_dimension_numbers<[1], [0], [0], [1], [0, 0, 1, 1], [], []>} : vector<288x8xf32>, vector<8x16xf32>, vector<288x16xf32> -> vector<288x16xf32>
    %60 = arith.addf %54, %59 : vector<288x16xf32>
    %c0_85 = arith.constant 0 : index
    %c0_86 = arith.constant 0 : index
    %c18 = arith.constant 18 : index
    %c0_87 = arith.constant 0 : index
    %61 = vector.load %arg1[%c0_85, %c0_86, %c18, %c0_87] : memref<1x4x336x8xf32, #tpu.memory_space<vmem>>, vector<1x1x288x8xf32>
    %62 = vector.shape_cast %61 : vector<1x1x288x8xf32> to vector<288x8xf32>
    %c2_88 = arith.constant 2 : index
    %c0_89 = arith.constant 0 : index
    %c0_90 = arith.constant 0 : index
    %c0_91 = arith.constant 0 : index
    %63 = vector.load %arg2[%c2_88, %c0_89, %c0_90, %c0_91] : memref<5x5x8x16xf32, #tpu.memory_space<vmem>>, vector<1x1x8x16xf32>
    %64 = vector.shape_cast %63 : vector<1x1x8x16xf32> to vector<8x16xf32>
    %cst_92 = arith.constant dense<0.000000e+00> : vector<288x16xf32>
    %65 = tpu.matmul %62, %64, %cst_92 {dimension_numbers = #tpu.dot_dimension_numbers<[1], [0], [0], [1], [0, 0, 1, 1], [], []>} : vector<288x8xf32>, vector<8x16xf32>, vector<288x16xf32> -> vector<288x16xf32>
    %66 = arith.addf %60, %65 : vector<288x16xf32>
    %c0_93 = arith.constant 0 : index
    %c1_94 = arith.constant 1 : index
    %c18_95 = arith.constant 18 : index
    %c0_96 = arith.constant 0 : index
    %67 = vector.load %arg1[%c0_93, %c1_94, %c18_95, %c0_96] : memref<1x4x336x8xf32, #tpu.memory_space<vmem>>, vector<1x1x288x8xf32>
    %68 = vector.shape_cast %67 : vector<1x1x288x8xf32> to vector<288x8xf32>
    %c2_97 = arith.constant 2 : index
    %c1_98 = arith.constant 1 : index
    %c0_99 = arith.constant 0 : index
    %c0_100 = arith.constant 0 : index
    %69 = vector.load %arg2[%c2_97, %c1_98, %c0_99, %c0_100] : memref<5x5x8x16xf32, #tpu.memory_space<vmem>>, vector<1x1x8x16xf32>
    %70 = vector.shape_cast %69 : vector<1x1x8x16xf32> to vector<8x16xf32>
    %cst_101 = arith.constant dense<0.000000e+00> : vector<288x16xf32>
    %71 = tpu.matmul %68, %70, %cst_101 {dimension_numbers = #tpu.dot_dimension_numbers<[1], [0], [0], [1], [0, 0, 1, 1], [], []>} : vector<288x8xf32>, vector<8x16xf32>, vector<288x16xf32> -> vector<288x16xf32>
    %72 = arith.addf %66, %71 : vector<288x16xf32>
    %c0_102 = arith.constant 0 : index
    %c0_103 = arith.constant 0 : index
    %c19 = arith.constant 19 : index
    %c0_104 = arith.constant 0 : index
    %73 = vector.load %arg1[%c0_102, %c0_103, %c19, %c0_104] : memref<1x4x336x8xf32, #tpu.memory_space<vmem>>, vector<1x1x288x8xf32>
    %74 = vector.shape_cast %73 : vector<1x1x288x8xf32> to vector<288x8xf32>
    %c2_105 = arith.constant 2 : index
    %c2_106 = arith.constant 2 : index
    %c0_107 = arith.constant 0 : index
    %c0_108 = arith.constant 0 : index
    %75 = vector.load %arg2[%c2_105, %c2_106, %c0_107, %c0_108] : memref<5x5x8x16xf32, #tpu.memory_space<vmem>>, vector<1x1x8x16xf32>
    %76 = vector.shape_cast %75 : vector<1x1x8x16xf32> to vector<8x16xf32>
    %cst_109 = arith.constant dense<0.000000e+00> : vector<288x16xf32>
    %77 = tpu.matmul %74, %76, %cst_109 {dimension_numbers = #tpu.dot_dimension_numbers<[1], [0], [0], [1], [0, 0, 1, 1], [], []>} : vector<288x8xf32>, vector<8x16xf32>, vector<288x16xf32> -> vector<288x16xf32>
    %78 = arith.addf %72, %77 : vector<288x16xf32>
    %c0_110 = arith.constant 0 : index
    %c1_111 = arith.constant 1 : index
    %c19_112 = arith.constant 19 : index
    %c0_113 = arith.constant 0 : index
    %79 = vector.load %arg1[%c0_110, %c1_111, %c19_112, %c0_113] : memref<1x4x336x8xf32, #tpu.memory_space<vmem>>, vector<1x1x288x8xf32>
    %80 = vector.shape_cast %79 : vector<1x1x288x8xf32> to vector<288x8xf32>
    %c2_114 = arith.constant 2 : index
    %c3_115 = arith.constant 3 : index
    %c0_116 = arith.constant 0 : index
    %c0_117 = arith.constant 0 : index
    %81 = vector.load %arg2[%c2_114, %c3_115, %c0_116, %c0_117] : memref<5x5x8x16xf32, #tpu.memory_space<vmem>>, vector<1x1x8x16xf32>
    %82 = vector.shape_cast %81 : vector<1x1x8x16xf32> to vector<8x16xf32>
    %cst_118 = arith.constant dense<0.000000e+00> : vector<288x16xf32>
    %83 = tpu.matmul %80, %82, %cst_118 {dimension_numbers = #tpu.dot_dimension_numbers<[1], [0], [0], [1], [0, 0, 1, 1], [], []>} : vector<288x8xf32>, vector<8x16xf32>, vector<288x16xf32> -> vector<288x16xf32>
    %84 = arith.addf %78, %83 : vector<288x16xf32>
    %c0_119 = arith.constant 0 : index
    %c0_120 = arith.constant 0 : index
    %c20 = arith.constant 20 : index
    %c0_121 = arith.constant 0 : index
    %85 = vector.load %arg1[%c0_119, %c0_120, %c20, %c0_121] : memref<1x4x336x8xf32, #tpu.memory_space<vmem>>, vector<1x1x288x8xf32>
    %86 = vector.shape_cast %85 : vector<1x1x288x8xf32> to vector<288x8xf32>
    %c2_122 = arith.constant 2 : index
    %c4_123 = arith.constant 4 : index
    %c0_124 = arith.constant 0 : index
    %c0_125 = arith.constant 0 : index
    %87 = vector.load %arg2[%c2_122, %c4_123, %c0_124, %c0_125] : memref<5x5x8x16xf32, #tpu.memory_space<vmem>>, vector<1x1x8x16xf32>
    %88 = vector.shape_cast %87 : vector<1x1x8x16xf32> to vector<8x16xf32>
    %cst_126 = arith.constant dense<0.000000e+00> : vector<288x16xf32>
    %89 = tpu.matmul %86, %88, %cst_126 {dimension_numbers = #tpu.dot_dimension_numbers<[1], [0], [0], [1], [0, 0, 1, 1], [], []>} : vector<288x8xf32>, vector<8x16xf32>, vector<288x16xf32> -> vector<288x16xf32>
    %90 = arith.addf %84, %89 : vector<288x16xf32>
    %c0_127 = arith.constant 0 : index
    %c2_128 = arith.constant 2 : index
    %c18_129 = arith.constant 18 : index
    %c0_130 = arith.constant 0 : index
    %91 = vector.load %arg1[%c0_127, %c2_128, %c18_129, %c0_130] : memref<1x4x336x8xf32, #tpu.memory_space<vmem>>, vector<1x1x288x8xf32>
    %92 = vector.shape_cast %91 : vector<1x1x288x8xf32> to vector<288x8xf32>
    %c3_131 = arith.constant 3 : index
    %c0_132 = arith.constant 0 : index
    %c0_133 = arith.constant 0 : index
    %c0_134 = arith.constant 0 : index
    %93 = vector.load %arg2[%c3_131, %c0_132, %c0_133, %c0_134] : memref<5x5x8x16xf32, #tpu.memory_space<vmem>>, vector<1x1x8x16xf32>
    %94 = vector.shape_cast %93 : vector<1x1x8x16xf32> to vector<8x16xf32>
    %cst_135 = arith.constant dense<0.000000e+00> : vector<288x16xf32>
    %95 = tpu.matmul %92, %94, %cst_135 {dimension_numbers = #tpu.dot_dimension_numbers<[1], [0], [0], [1], [0, 0, 1, 1], [], []>} : vector<288x8xf32>, vector<8x16xf32>, vector<288x16xf32> -> vector<288x16xf32>
    %96 = arith.addf %90, %95 : vector<288x16xf32>
    %c0_136 = arith.constant 0 : index
    %c3_137 = arith.constant 3 : index
    %c18_138 = arith.constant 18 : index
    %c0_139 = arith.constant 0 : index
    %97 = vector.load %arg1[%c0_136, %c3_137, %c18_138, %c0_139] : memref<1x4x336x8xf32, #tpu.memory_space<vmem>>, vector<1x1x288x8xf32>
    %98 = vector.shape_cast %97 : vector<1x1x288x8xf32> to vector<288x8xf32>
    %c3_140 = arith.constant 3 : index
    %c1_141 = arith.constant 1 : index
    %c0_142 = arith.constant 0 : index
    %c0_143 = arith.constant 0 : index
    %99 = vector.load %arg2[%c3_140, %c1_141, %c0_142, %c0_143] : memref<5x5x8x16xf32, #tpu.memory_space<vmem>>, vector<1x1x8x16xf32>
    %100 = vector.shape_cast %99 : vector<1x1x8x16xf32> to vector<8x16xf32>
    %cst_144 = arith.constant dense<0.000000e+00> : vector<288x16xf32>
    %101 = tpu.matmul %98, %100, %cst_144 {dimension_numbers = #tpu.dot_dimension_numbers<[1], [0], [0], [1], [0, 0, 1, 1], [], []>} : vector<288x8xf32>, vector<8x16xf32>, vector<288x16xf32> -> vector<288x16xf32>
    %102 = arith.addf %96, %101 : vector<288x16xf32>
    %c0_145 = arith.constant 0 : index
    %c2_146 = arith.constant 2 : index
    %c19_147 = arith.constant 19 : index
    %c0_148 = arith.constant 0 : index
    %103 = vector.load %arg1[%c0_145, %c2_146, %c19_147, %c0_148] : memref<1x4x336x8xf32, #tpu.memory_space<vmem>>, vector<1x1x288x8xf32>
    %104 = vector.shape_cast %103 : vector<1x1x288x8xf32> to vector<288x8xf32>
    %c3_149 = arith.constant 3 : index
    %c2_150 = arith.constant 2 : index
    %c0_151 = arith.constant 0 : index
    %c0_152 = arith.constant 0 : index
    %105 = vector.load %arg2[%c3_149, %c2_150, %c0_151, %c0_152] : memref<5x5x8x16xf32, #tpu.memory_space<vmem>>, vector<1x1x8x16xf32>
    %106 = vector.shape_cast %105 : vector<1x1x8x16xf32> to vector<8x16xf32>
    %cst_153 = arith.constant dense<0.000000e+00> : vector<288x16xf32>
    %107 = tpu.matmul %104, %106, %cst_153 {dimension_numbers = #tpu.dot_dimension_numbers<[1], [0], [0], [1], [0, 0, 1, 1], [], []>} : vector<288x8xf32>, vector<8x16xf32>, vector<288x16xf32> -> vector<288x16xf32>
    %108 = arith.addf %102, %107 : vector<288x16xf32>
    %c0_154 = arith.constant 0 : index
    %c3_155 = arith.constant 3 : index
    %c19_156 = arith.constant 19 : index
    %c0_157 = arith.constant 0 : index
    %109 = vector.load %arg1[%c0_154, %c3_155, %c19_156, %c0_157] : memref<1x4x336x8xf32, #tpu.memory_space<vmem>>, vector<1x1x288x8xf32>
    %110 = vector.shape_cast %109 : vector<1x1x288x8xf32> to vector<288x8xf32>
    %c3_158 = arith.constant 3 : index
    %c3_159 = arith.constant 3 : index
    %c0_160 = arith.constant 0 : index
    %c0_161 = arith.constant 0 : index
    %111 = vector.load %arg2[%c3_158, %c3_159, %c0_160, %c0_161] : memref<5x5x8x16xf32, #tpu.memory_space<vmem>>, vector<1x1x8x16xf32>
    %112 = vector.shape_cast %111 : vector<1x1x8x16xf32> to vector<8x16xf32>
    %cst_162 = arith.constant dense<0.000000e+00> : vector<288x16xf32>
    %113 = tpu.matmul %110, %112, %cst_162 {dimension_numbers = #tpu.dot_dimension_numbers<[1], [0], [0], [1], [0, 0, 1, 1], [], []>} : vector<288x8xf32>, vector<8x16xf32>, vector<288x16xf32> -> vector<288x16xf32>
    %114 = arith.addf %108, %113 : vector<288x16xf32>
    %c0_163 = arith.constant 0 : index
    %c2_164 = arith.constant 2 : index
    %c20_165 = arith.constant 20 : index
    %c0_166 = arith.constant 0 : index
    %115 = vector.load %arg1[%c0_163, %c2_164, %c20_165, %c0_166] : memref<1x4x336x8xf32, #tpu.memory_space<vmem>>, vector<1x1x288x8xf32>
    %116 = vector.shape_cast %115 : vector<1x1x288x8xf32> to vector<288x8xf32>
    %c3_167 = arith.constant 3 : index
    %c4_168 = arith.constant 4 : index
    %c0_169 = arith.constant 0 : index
    %c0_170 = arith.constant 0 : index
    %117 = vector.load %arg2[%c3_167, %c4_168, %c0_169, %c0_170] : memref<5x5x8x16xf32, #tpu.memory_space<vmem>>, vector<1x1x8x16xf32>
    %118 = vector.shape_cast %117 : vector<1x1x8x16xf32> to vector<8x16xf32>
    %cst_171 = arith.constant dense<0.000000e+00> : vector<288x16xf32>
    %119 = tpu.matmul %116, %118, %cst_171 {dimension_numbers = #tpu.dot_dimension_numbers<[1], [0], [0], [1], [0, 0, 1, 1], [], []>} : vector<288x8xf32>, vector<8x16xf32>, vector<288x16xf32> -> vector<288x16xf32>
    %120 = arith.addf %114, %119 : vector<288x16xf32>
    %c0_172 = arith.constant 0 : index
    %c0_173 = arith.constant 0 : index
    %c36 = arith.constant 36 : index
    %c0_174 = arith.constant 0 : index
    %121 = vector.load %arg1[%c0_172, %c0_173, %c36, %c0_174] : memref<1x4x336x8xf32, #tpu.memory_space<vmem>>, vector<1x1x288x8xf32>
    %122 = vector.shape_cast %121 : vector<1x1x288x8xf32> to vector<288x8xf32>
    %c4_175 = arith.constant 4 : index
    %c0_176 = arith.constant 0 : index
    %c0_177 = arith.constant 0 : index
    %c0_178 = arith.constant 0 : index
    %123 = vector.load %arg2[%c4_175, %c0_176, %c0_177, %c0_178] : memref<5x5x8x16xf32, #tpu.memory_space<vmem>>, vector<1x1x8x16xf32>
    %124 = vector.shape_cast %123 : vector<1x1x8x16xf32> to vector<8x16xf32>
    %cst_179 = arith.constant dense<0.000000e+00> : vector<288x16xf32>
    %125 = tpu.matmul %122, %124, %cst_179 {dimension_numbers = #tpu.dot_dimension_numbers<[1], [0], [0], [1], [0, 0, 1, 1], [], []>} : vector<288x8xf32>, vector<8x16xf32>, vector<288x16xf32> -> vector<288x16xf32>
    %126 = arith.addf %120, %125 : vector<288x16xf32>
    %c0_180 = arith.constant 0 : index
    %c1_181 = arith.constant 1 : index
    %c36_182 = arith.constant 36 : index
    %c0_183 = arith.constant 0 : index
    %127 = vector.load %arg1[%c0_180, %c1_181, %c36_182, %c0_183] : memref<1x4x336x8xf32, #tpu.memory_space<vmem>>, vector<1x1x288x8xf32>
    %128 = vector.shape_cast %127 : vector<1x1x288x8xf32> to vector<288x8xf32>
    %c4_184 = arith.constant 4 : index
    %c1_185 = arith.constant 1 : index
    %c0_186 = arith.constant 0 : index
    %c0_187 = arith.constant 0 : index
    %129 = vector.load %arg2[%c4_184, %c1_185, %c0_186, %c0_187] : memref<5x5x8x16xf32, #tpu.memory_space<vmem>>, vector<1x1x8x16xf32>
    %130 = vector.shape_cast %129 : vector<1x1x8x16xf32> to vector<8x16xf32>
    %cst_188 = arith.constant dense<0.000000e+00> : vector<288x16xf32>
    %131 = tpu.matmul %128, %130, %cst_188 {dimension_numbers = #tpu.dot_dimension_numbers<[1], [0], [0], [1], [0, 0, 1, 1], [], []>} : vector<288x8xf32>, vector<8x16xf32>, vector<288x16xf32> -> vector<288x16xf32>
    %132 = arith.addf %126, %131 : vector<288x16xf32>
    %c0_189 = arith.constant 0 : index
    %c0_190 = arith.constant 0 : index
    %c37 = arith.constant 37 : index
    %c0_191 = arith.constant 0 : index
    %133 = vector.load %arg1[%c0_189, %c0_190, %c37, %c0_191] : memref<1x4x336x8xf32, #tpu.memory_space<vmem>>, vector<1x1x288x8xf32>
    %134 = vector.shape_cast %133 : vector<1x1x288x8xf32> to vector<288x8xf32>
    %c4_192 = arith.constant 4 : index
    %c2_193 = arith.constant 2 : index
    %c0_194 = arith.constant 0 : index
    %c0_195 = arith.constant 0 : index
    %135 = vector.load %arg2[%c4_192, %c2_193, %c0_194, %c0_195] : memref<5x5x8x16xf32, #tpu.memory_space<vmem>>, vector<1x1x8x16xf32>
    %136 = vector.shape_cast %135 : vector<1x1x8x16xf32> to vector<8x16xf32>
    %cst_196 = arith.constant dense<0.000000e+00> : vector<288x16xf32>
    %137 = tpu.matmul %134, %136, %cst_196 {dimension_numbers = #tpu.dot_dimension_numbers<[1], [0], [0], [1], [0, 0, 1, 1], [], []>} : vector<288x8xf32>, vector<8x16xf32>, vector<288x16xf32> -> vector<288x16xf32>
    %138 = arith.addf %132, %137 : vector<288x16xf32>
    %c0_197 = arith.constant 0 : index
    %c1_198 = arith.constant 1 : index
    %c37_199 = arith.constant 37 : index
    %c0_200 = arith.constant 0 : index
    %139 = vector.load %arg1[%c0_197, %c1_198, %c37_199, %c0_200] : memref<1x4x336x8xf32, #tpu.memory_space<vmem>>, vector<1x1x288x8xf32>
    %140 = vector.shape_cast %139 : vector<1x1x288x8xf32> to vector<288x8xf32>
    %c4_201 = arith.constant 4 : index
    %c3_202 = arith.constant 3 : index
    %c0_203 = arith.constant 0 : index
    %c0_204 = arith.constant 0 : index
    %141 = vector.load %arg2[%c4_201, %c3_202, %c0_203, %c0_204] : memref<5x5x8x16xf32, #tpu.memory_space<vmem>>, vector<1x1x8x16xf32>
    %142 = vector.shape_cast %141 : vector<1x1x8x16xf32> to vector<8x16xf32>
    %cst_205 = arith.constant dense<0.000000e+00> : vector<288x16xf32>
    %143 = tpu.matmul %140, %142, %cst_205 {dimension_numbers = #tpu.dot_dimension_numbers<[1], [0], [0], [1], [0, 0, 1, 1], [], []>} : vector<288x8xf32>, vector<8x16xf32>, vector<288x16xf32> -> vector<288x16xf32>
    %144 = arith.addf %138, %143 : vector<288x16xf32>
    %c0_206 = arith.constant 0 : index
    %c0_207 = arith.constant 0 : index
    %c38 = arith.constant 38 : index
    %c0_208 = arith.constant 0 : index
    %145 = vector.load %arg1[%c0_206, %c0_207, %c38, %c0_208] : memref<1x4x336x8xf32, #tpu.memory_space<vmem>>, vector<1x1x288x8xf32>
    %146 = vector.shape_cast %145 : vector<1x1x288x8xf32> to vector<288x8xf32>
    %c4_209 = arith.constant 4 : index
    %c4_210 = arith.constant 4 : index
    %c0_211 = arith.constant 0 : index
    %c0_212 = arith.constant 0 : index
    %147 = vector.load %arg2[%c4_209, %c4_210, %c0_211, %c0_212] : memref<5x5x8x16xf32, #tpu.memory_space<vmem>>, vector<1x1x8x16xf32>
    %148 = vector.shape_cast %147 : vector<1x1x8x16xf32> to vector<8x16xf32>
    %cst_213 = arith.constant dense<0.000000e+00> : vector<288x16xf32>
    %149 = tpu.matmul %146, %148, %cst_213 {dimension_numbers = #tpu.dot_dimension_numbers<[1], [0], [0], [1], [0, 0, 1, 1], [], []>} : vector<288x8xf32>, vector<8x16xf32>, vector<288x16xf32> -> vector<288x16xf32>
    %150 = arith.addf %144, %149 : vector<288x16xf32>
    %c0_214 = arith.constant 0 : index
    %c0_215 = arith.constant 0 : index
    %151 = vector.load %arg3[%c0_214, %c0_215] : memref<1x16xf32, #tpu.memory_space<vmem>>, vector<1x16xf32>
    %152 = vector.broadcast %151 : vector<1x16xf32> to vector<288x16xf32>
    %153 = arith.addf %150, %152 : vector<288x16xf32>
    %cst_216 = arith.constant 0.000000e+00 : f32
    %154 = vector.broadcast %cst_216 : f32 to vector<288x16xf32>
    %155 = arith.maximumf %153, %154 : vector<288x16xf32>
    %c0_217 = arith.constant 0 : index
    %c0_218 = arith.constant 0 : index
    %c0_219 = arith.constant 0 : index
    %156 = vector.load %arg4[%c0_217, %c0_218, %c0_219] : memref<4x112x288xf32, #tpu.memory_space<vmem>>, vector<1x112x288xf32>
    %157 = vector.shape_cast %156 : vector<1x112x288xf32> to vector<112x288xf32>
    %cst_220 = arith.constant dense<0.000000e+00> : vector<112x16xf32>
    %158 = tpu.matmul %157, %155, %cst_220 {dimension_numbers = #tpu.dot_dimension_numbers<[1], [0], [0], [1], [0, 0, 1, 1], [], []>} : vector<112x288xf32>, vector<288x16xf32>, vector<112x16xf32> -> vector<112x16xf32>
    %c1_221 = arith.constant 1 : index
    %c0_222 = arith.constant 0 : index
    %c0_223 = arith.constant 0 : index
    %159 = vector.load %arg4[%c1_221, %c0_222, %c0_223] : memref<4x112x288xf32, #tpu.memory_space<vmem>>, vector<1x112x288xf32>
    %160 = vector.shape_cast %159 : vector<1x112x288xf32> to vector<112x288xf32>
    %cst_224 = arith.constant dense<0.000000e+00> : vector<112x16xf32>
    %161 = tpu.matmul %160, %155, %cst_224 {dimension_numbers = #tpu.dot_dimension_numbers<[1], [0], [0], [1], [0, 0, 1, 1], [], []>} : vector<112x288xf32>, vector<288x16xf32>, vector<112x16xf32> -> vector<112x16xf32>
    %c2_225 = arith.constant 2 : index
    %c0_226 = arith.constant 0 : index
    %c0_227 = arith.constant 0 : index
    %162 = vector.load %arg4[%c2_225, %c0_226, %c0_227] : memref<4x112x288xf32, #tpu.memory_space<vmem>>, vector<1x112x288xf32>
    %163 = vector.shape_cast %162 : vector<1x112x288xf32> to vector<112x288xf32>
    %cst_228 = arith.constant dense<0.000000e+00> : vector<112x16xf32>
    %164 = tpu.matmul %163, %155, %cst_228 {dimension_numbers = #tpu.dot_dimension_numbers<[1], [0], [0], [1], [0, 0, 1, 1], [], []>} : vector<112x288xf32>, vector<288x16xf32>, vector<112x16xf32> -> vector<112x16xf32>
    %c3_229 = arith.constant 3 : index
    %c0_230 = arith.constant 0 : index
    %c0_231 = arith.constant 0 : index
    %165 = vector.load %arg4[%c3_229, %c0_230, %c0_231] : memref<4x112x288xf32, #tpu.memory_space<vmem>>, vector<1x112x288xf32>
    %166 = vector.shape_cast %165 : vector<1x112x288xf32> to vector<112x288xf32>
    %cst_232 = arith.constant dense<0.000000e+00> : vector<112x16xf32>
    %167 = tpu.matmul %166, %155, %cst_232 {dimension_numbers = #tpu.dot_dimension_numbers<[1], [0], [0], [1], [0, 0, 1, 1], [], []>} : vector<112x288xf32>, vector<288x16xf32>, vector<112x16xf32> -> vector<112x16xf32>
    %168 = arith.maximumf %158, %161 : vector<112x16xf32>
    %169 = arith.maximumf %164, %167 : vector<112x16xf32>
    %170 = arith.maximumf %168, %169 : vector<112x16xf32>
    %c0_233 = arith.constant 0 : index
    %c0_234 = arith.constant 0 : index
    %171 = vector.load %arg16[%c0_233, %c0_234] : memref<112x16xf32, #tpu.memory_space<vmem>>, vector<112x16xf32>
    tpu.vector_store %arg16[%c0_233, %c0_234], %170 {strides = array<i32>} : memref<112x16xf32, #tpu.memory_space<vmem>>, vector<112x16xf32>,
    %cst_235 = arith.constant 0.000000e+00 : f32
    %172 = vector.broadcast %cst_235 : f32 to vector<80x32xf32>
    %c0_236 = arith.constant 0 : index
    %c0_237 = arith.constant 0 : index
    %173 = vector.load %arg16[%c0_236, %c0_237] : memref<112x16xf32, #tpu.memory_space<vmem>>, vector<80x16xf32>
    %c0_238 = arith.constant 0 : index
    %c0_239 = arith.constant 0 : index
    %c0_240 = arith.constant 0 : index
    %c0_241 = arith.constant 0 : index
    %174 = vector.load %arg5[%c0_238, %c0_239, %c0_240, %c0_241] : memref<3x3x16x32xf32, #tpu.memory_space<vmem>>, vector<1x1x16x32xf32>
    %175 = vector.shape_cast %174 : vector<1x1x16x32xf32> to vector<16x32xf32>
    %cst_242 = arith.constant dense<0.000000e+00> : vector<80x32xf32>
    %176 = tpu.matmul %173, %175, %cst_242 {dimension_numbers = #tpu.dot_dimension_numbers<[1], [0], [0], [1], [0, 0, 1, 1], [], []>} : vector<80x16xf32>, vector<16x32xf32>, vector<80x32xf32> -> vector<80x32xf32>
    %177 = arith.addf %172, %176 : vector<80x32xf32>
    %c1_243 = arith.constant 1 : index
    %c0_244 = arith.constant 0 : index
    %178 = vector.load %arg16[%c1_243, %c0_244] : memref<112x16xf32, #tpu.memory_space<vmem>>, vector<80x16xf32>
    %c0_245 = arith.constant 0 : index
    %c1_246 = arith.constant 1 : index
    %c0_247 = arith.constant 0 : index
    %c0_248 = arith.constant 0 : index
    %179 = vector.load %arg5[%c0_245, %c1_246, %c0_247, %c0_248] : memref<3x3x16x32xf32, #tpu.memory_space<vmem>>, vector<1x1x16x32xf32>
    %180 = vector.shape_cast %179 : vector<1x1x16x32xf32> to vector<16x32xf32>
    %cst_249 = arith.constant dense<0.000000e+00> : vector<80x32xf32>
    %181 = tpu.matmul %178, %180, %cst_249 {dimension_numbers = #tpu.dot_dimension_numbers<[1], [0], [0], [1], [0, 0, 1, 1], [], []>} : vector<80x16xf32>, vector<16x32xf32>, vector<80x32xf32> -> vector<80x32xf32>
    %182 = arith.addf %177, %181 : vector<80x32xf32>
    %c2_250 = arith.constant 2 : index
    %c0_251 = arith.constant 0 : index
    %183 = vector.load %arg16[%c2_250, %c0_251] : memref<112x16xf32, #tpu.memory_space<vmem>>, vector<80x16xf32>
    %c0_252 = arith.constant 0 : index
    %c2_253 = arith.constant 2 : index
    %c0_254 = arith.constant 0 : index
    %c0_255 = arith.constant 0 : index
    %184 = vector.load %arg5[%c0_252, %c2_253, %c0_254, %c0_255] : memref<3x3x16x32xf32, #tpu.memory_space<vmem>>, vector<1x1x16x32xf32>
    %185 = vector.shape_cast %184 : vector<1x1x16x32xf32> to vector<16x32xf32>
    %cst_256 = arith.constant dense<0.000000e+00> : vector<80x32xf32>
    %186 = tpu.matmul %183, %185, %cst_256 {dimension_numbers = #tpu.dot_dimension_numbers<[1], [0], [0], [1], [0, 0, 1, 1], [], []>} : vector<80x16xf32>, vector<16x32xf32>, vector<80x32xf32> -> vector<80x32xf32>
    %187 = arith.addf %182, %186 : vector<80x32xf32>
    %c10 = arith.constant 10 : index
    %c0_257 = arith.constant 0 : index
    %188 = vector.load %arg16[%c10, %c0_257] : memref<112x16xf32, #tpu.memory_space<vmem>>, vector<80x16xf32>
    %c1_258 = arith.constant 1 : index
    %c0_259 = arith.constant 0 : index
    %c0_260 = arith.constant 0 : index
    %c0_261 = arith.constant 0 : index
    %189 = vector.load %arg5[%c1_258, %c0_259, %c0_260, %c0_261] : memref<3x3x16x32xf32, #tpu.memory_space<vmem>>, vector<1x1x16x32xf32>
    %190 = vector.shape_cast %189 : vector<1x1x16x32xf32> to vector<16x32xf32>
    %cst_262 = arith.constant dense<0.000000e+00> : vector<80x32xf32>
    %191 = tpu.matmul %188, %190, %cst_262 {dimension_numbers = #tpu.dot_dimension_numbers<[1], [0], [0], [1], [0, 0, 1, 1], [], []>} : vector<80x16xf32>, vector<16x32xf32>, vector<80x32xf32> -> vector<80x32xf32>
    %192 = arith.addf %187, %191 : vector<80x32xf32>
    %c11 = arith.constant 11 : index
    %c0_263 = arith.constant 0 : index
    %193 = vector.load %arg16[%c11, %c0_263] : memref<112x16xf32, #tpu.memory_space<vmem>>, vector<80x16xf32>
    %c1_264 = arith.constant 1 : index
    %c1_265 = arith.constant 1 : index
    %c0_266 = arith.constant 0 : index
    %c0_267 = arith.constant 0 : index
    %194 = vector.load %arg5[%c1_264, %c1_265, %c0_266, %c0_267] : memref<3x3x16x32xf32, #tpu.memory_space<vmem>>, vector<1x1x16x32xf32>
    %195 = vector.shape_cast %194 : vector<1x1x16x32xf32> to vector<16x32xf32>
    %cst_268 = arith.constant dense<0.000000e+00> : vector<80x32xf32>
    %196 = tpu.matmul %193, %195, %cst_268 {dimension_numbers = #tpu.dot_dimension_numbers<[1], [0], [0], [1], [0, 0, 1, 1], [], []>} : vector<80x16xf32>, vector<16x32xf32>, vector<80x32xf32> -> vector<80x32xf32>
    %197 = arith.addf %192, %196 : vector<80x32xf32>
    %c12 = arith.constant 12 : index
    %c0_269 = arith.constant 0 : index
    %198 = vector.load %arg16[%c12, %c0_269] : memref<112x16xf32, #tpu.memory_space<vmem>>, vector<80x16xf32>
    %c1_270 = arith.constant 1 : index
    %c2_271 = arith.constant 2 : index
    %c0_272 = arith.constant 0 : index
    %c0_273 = arith.constant 0 : index
    %199 = vector.load %arg5[%c1_270, %c2_271, %c0_272, %c0_273] : memref<3x3x16x32xf32, #tpu.memory_space<vmem>>, vector<1x1x16x32xf32>
    %200 = vector.shape_cast %199 : vector<1x1x16x32xf32> to vector<16x32xf32>
    %cst_274 = arith.constant dense<0.000000e+00> : vector<80x32xf32>
    %201 = tpu.matmul %198, %200, %cst_274 {dimension_numbers = #tpu.dot_dimension_numbers<[1], [0], [0], [1], [0, 0, 1, 1], [], []>} : vector<80x16xf32>, vector<16x32xf32>, vector<80x32xf32> -> vector<80x32xf32>
    %202 = arith.addf %197, %201 : vector<80x32xf32>
    %c20_275 = arith.constant 20 : index
    %c0_276 = arith.constant 0 : index
    %203 = vector.load %arg16[%c20_275, %c0_276] : memref<112x16xf32, #tpu.memory_space<vmem>>, vector<80x16xf32>
    %c2_277 = arith.constant 2 : index
    %c0_278 = arith.constant 0 : index
    %c0_279 = arith.constant 0 : index
    %c0_280 = arith.constant 0 : index
    %204 = vector.load %arg5[%c2_277, %c0_278, %c0_279, %c0_280] : memref<3x3x16x32xf32, #tpu.memory_space<vmem>>, vector<1x1x16x32xf32>
    %205 = vector.shape_cast %204 : vector<1x1x16x32xf32> to vector<16x32xf32>
    %cst_281 = arith.constant dense<0.000000e+00> : vector<80x32xf32>
    %206 = tpu.matmul %203, %205, %cst_281 {dimension_numbers = #tpu.dot_dimension_numbers<[1], [0], [0], [1], [0, 0, 1, 1], [], []>} : vector<80x16xf32>, vector<16x32xf32>, vector<80x32xf32> -> vector<80x32xf32>
    %207 = arith.addf %202, %206 : vector<80x32xf32>
    %c21 = arith.constant 21 : index
    %c0_282 = arith.constant 0 : index
    %208 = vector.load %arg16[%c21, %c0_282] : memref<112x16xf32, #tpu.memory_space<vmem>>, vector<80x16xf32>
    %c2_283 = arith.constant 2 : index
    %c1_284 = arith.constant 1 : index
    %c0_285 = arith.constant 0 : index
    %c0_286 = arith.constant 0 : index
    %209 = vector.load %arg5[%c2_283, %c1_284, %c0_285, %c0_286] : memref<3x3x16x32xf32, #tpu.memory_space<vmem>>, vector<1x1x16x32xf32>
    %210 = vector.shape_cast %209 : vector<1x1x16x32xf32> to vector<16x32xf32>
    %cst_287 = arith.constant dense<0.000000e+00> : vector<80x32xf32>
    %211 = tpu.matmul %208, %210, %cst_287 {dimension_numbers = #tpu.dot_dimension_numbers<[1], [0], [0], [1], [0, 0, 1, 1], [], []>} : vector<80x16xf32>, vector<16x32xf32>, vector<80x32xf32> -> vector<80x32xf32>
    %212 = arith.addf %207, %211 : vector<80x32xf32>
    %c22 = arith.constant 22 : index
    %c0_288 = arith.constant 0 : index
    %213 = vector.load %arg16[%c22, %c0_288] : memref<112x16xf32, #tpu.memory_space<vmem>>, vector<80x16xf32>
    %c2_289 = arith.constant 2 : index
    %c2_290 = arith.constant 2 : index
    %c0_291 = arith.constant 0 : index
    %c0_292 = arith.constant 0 : index
    %214 = vector.load %arg5[%c2_289, %c2_290, %c0_291, %c0_292] : memref<3x3x16x32xf32, #tpu.memory_space<vmem>>, vector<1x1x16x32xf32>
    %215 = vector.shape_cast %214 : vector<1x1x16x32xf32> to vector<16x32xf32>
    %cst_293 = arith.constant dense<0.000000e+00> : vector<80x32xf32>
    %216 = tpu.matmul %213, %215, %cst_293 {dimension_numbers = #tpu.dot_dimension_numbers<[1], [0], [0], [1], [0, 0, 1, 1], [], []>} : vector<80x16xf32>, vector<16x32xf32>, vector<80x32xf32> -> vector<80x32xf32>
    %217 = arith.addf %212, %216 : vector<80x32xf32>
    %c0_294 = arith.constant 0 : index
    %c0_295 = arith.constant 0 : index
    %218 = vector.load %arg6[%c0_294, %c0_295] : memref<1x32xf32, #tpu.memory_space<vmem>>, vector<1x32xf32>
    %219 = vector.broadcast %218 : vector<1x32xf32> to vector<80x32xf32>
    %220 = arith.addf %217, %219 : vector<80x32xf32>
    %cst_296 = arith.constant 0.000000e+00 : f32
    %221 = vector.broadcast %cst_296 : f32 to vector<80x32xf32>
    %222 = arith.maximumf %220, %221 : vector<80x32xf32>
    %c0_297 = arith.constant 0 : index
    %c0_298 = arith.constant 0 : index
    %c0_299 = arith.constant 0 : index
    %223 = vector.load %arg7[%c0_297, %c0_298, %c0_299] : memref<4x40x80xf32, #tpu.memory_space<vmem>>, vector<1x40x80xf32>
    %224 = vector.shape_cast %223 : vector<1x40x80xf32> to vector<40x80xf32>
    %cst_300 = arith.constant dense<0.000000e+00> : vector<40x32xf32>
    %225 = tpu.matmul %224, %222, %cst_300 {dimension_numbers = #tpu.dot_dimension_numbers<[1], [0], [0], [1], [0, 0, 1, 1], [], []>} : vector<40x80xf32>, vector<80x32xf32>, vector<40x32xf32> -> vector<40x32xf32>
    %c1_301 = arith.constant 1 : index
    %c0_302 = arith.constant 0 : index
    %c0_303 = arith.constant 0 : index
    %226 = vector.load %arg7[%c1_301, %c0_302, %c0_303] : memref<4x40x80xf32, #tpu.memory_space<vmem>>, vector<1x40x80xf32>
    %227 = vector.shape_cast %226 : vector<1x40x80xf32> to vector<40x80xf32>
    %cst_304 = arith.constant dense<0.000000e+00> : vector<40x32xf32>
    %228 = tpu.matmul %227, %222, %cst_304 {dimension_numbers = #tpu.dot_dimension_numbers<[1], [0], [0], [1], [0, 0, 1, 1], [], []>} : vector<40x80xf32>, vector<80x32xf32>, vector<40x32xf32> -> vector<40x32xf32>
    %c2_305 = arith.constant 2 : index
    %c0_306 = arith.constant 0 : index
    %c0_307 = arith.constant 0 : index
    %229 = vector.load %arg7[%c2_305, %c0_306, %c0_307] : memref<4x40x80xf32, #tpu.memory_space<vmem>>, vector<1x40x80xf32>
    %230 = vector.shape_cast %229 : vector<1x40x80xf32> to vector<40x80xf32>
    %cst_308 = arith.constant dense<0.000000e+00> : vector<40x32xf32>
    %231 = tpu.matmul %230, %222, %cst_308 {dimension_numbers = #tpu.dot_dimension_numbers<[1], [0], [0], [1], [0, 0, 1, 1], [], []>} : vector<40x80xf32>, vector<80x32xf32>, vector<40x32xf32> -> vector<40x32xf32>
    %c3_309 = arith.constant 3 : index
    %c0_310 = arith.constant 0 : index
    %c0_311 = arith.constant 0 : index
    %232 = vector.load %arg7[%c3_309, %c0_310, %c0_311] : memref<4x40x80xf32, #tpu.memory_space<vmem>>, vector<1x40x80xf32>
    %233 = vector.shape_cast %232 : vector<1x40x80xf32> to vector<40x80xf32>
    %cst_312 = arith.constant dense<0.000000e+00> : vector<40x32xf32>
    %234 = tpu.matmul %233, %222, %cst_312 {dimension_numbers = #tpu.dot_dimension_numbers<[1], [0], [0], [1], [0, 0, 1, 1], [], []>} : vector<40x80xf32>, vector<80x32xf32>, vector<40x32xf32> -> vector<40x32xf32>
    %235 = arith.maximumf %225, %228 : vector<40x32xf32>
    %236 = arith.maximumf %231, %234 : vector<40x32xf32>
    %237 = arith.maximumf %235, %236 : vector<40x32xf32>
    %c0_313 = arith.constant 0 : index
    %c0_314 = arith.constant 0 : index
    %238 = vector.load %arg17[%c0_313, %c0_314] : memref<40x32xf32, #tpu.memory_space<vmem>>, vector<40x32xf32>
    tpu.vector_store %arg17[%c0_313, %c0_314], %237 {strides = array<i32>} : memref<40x32xf32, #tpu.memory_space<vmem>>, vector<40x32xf32>,
    %cst_315 = arith.constant 0.000000e+00 : f32
    %239 = vector.broadcast %cst_315 : f32 to vector<24x64xf32>
    %c0_316 = arith.constant 0 : index
    %c0_317 = arith.constant 0 : index
    %240 = vector.load %arg17[%c0_316, %c0_317] : memref<40x32xf32, #tpu.memory_space<vmem>>, vector<24x32xf32>
    %c0_318 = arith.constant 0 : index
    %c0_319 = arith.constant 0 : index
    %c0_320 = arith.constant 0 : index
    %c0_321 = arith.constant 0 : index
    %241 = vector.load %arg8[%c0_318, %c0_319, %c0_320, %c0_321] : memref<3x3x32x64xf32, #tpu.memory_space<vmem>>, vector<1x1x32x64xf32>
    %242 = vector.shape_cast %241 : vector<1x1x32x64xf32> to vector<32x64xf32>
    %cst_322 = arith.constant dense<0.000000e+00> : vector<24x64xf32>
    %243 = tpu.matmul %240, %242, %cst_322 {dimension_numbers = #tpu.dot_dimension_numbers<[1], [0], [0], [1], [0, 0, 1, 1], [], []>} : vector<24x32xf32>, vector<32x64xf32>, vector<24x64xf32> -> vector<24x64xf32>
    %244 = arith.addf %239, %243 : vector<24x64xf32>
    %c1_323 = arith.constant 1 : index
    %c0_324 = arith.constant 0 : index
    %245 = vector.load %arg17[%c1_323, %c0_324] : memref<40x32xf32, #tpu.memory_space<vmem>>, vector<24x32xf32>
    %c0_325 = arith.constant 0 : index
    %c1_326 = arith.constant 1 : index
    %c0_327 = arith.constant 0 : index
    %c0_328 = arith.constant 0 : index
    %246 = vector.load %arg8[%c0_325, %c1_326, %c0_327, %c0_328] : memref<3x3x32x64xf32, #tpu.memory_space<vmem>>, vector<1x1x32x64xf32>
    %247 = vector.shape_cast %246 : vector<1x1x32x64xf32> to vector<32x64xf32>
    %cst_329 = arith.constant dense<0.000000e+00> : vector<24x64xf32>
    %248 = tpu.matmul %245, %247, %cst_329 {dimension_numbers = #tpu.dot_dimension_numbers<[1], [0], [0], [1], [0, 0, 1, 1], [], []>} : vector<24x32xf32>, vector<32x64xf32>, vector<24x64xf32> -> vector<24x64xf32>
    %249 = arith.addf %244, %248 : vector<24x64xf32>
    %c2_330 = arith.constant 2 : index
    %c0_331 = arith.constant 0 : index
    %250 = vector.load %arg17[%c2_330, %c0_331] : memref<40x32xf32, #tpu.memory_space<vmem>>, vector<24x32xf32>
    %c0_332 = arith.constant 0 : index
    %c2_333 = arith.constant 2 : index
    %c0_334 = arith.constant 0 : index
    %c0_335 = arith.constant 0 : index
    %251 = vector.load %arg8[%c0_332, %c2_333, %c0_334, %c0_335] : memref<3x3x32x64xf32, #tpu.memory_space<vmem>>, vector<1x1x32x64xf32>
    %252 = vector.shape_cast %251 : vector<1x1x32x64xf32> to vector<32x64xf32>
    %cst_336 = arith.constant dense<0.000000e+00> : vector<24x64xf32>
    %253 = tpu.matmul %250, %252, %cst_336 {dimension_numbers = #tpu.dot_dimension_numbers<[1], [0], [0], [1], [0, 0, 1, 1], [], []>} : vector<24x32xf32>, vector<32x64xf32>, vector<24x64xf32> -> vector<24x64xf32>
    %254 = arith.addf %249, %253 : vector<24x64xf32>
    %c6 = arith.constant 6 : index
    %c0_337 = arith.constant 0 : index
    %255 = vector.load %arg17[%c6, %c0_337] : memref<40x32xf32, #tpu.memory_space<vmem>>, vector<24x32xf32>
    %c1_338 = arith.constant 1 : index
    %c0_339 = arith.constant 0 : index
    %c0_340 = arith.constant 0 : index
    %c0_341 = arith.constant 0 : index
    %256 = vector.load %arg8[%c1_338, %c0_339, %c0_340, %c0_341] : memref<3x3x32x64xf32, #tpu.memory_space<vmem>>, vector<1x1x32x64xf32>
    %257 = vector.shape_cast %256 : vector<1x1x32x64xf32> to vector<32x64xf32>
    %cst_342 = arith.constant dense<0.000000e+00> : vector<24x64xf32>
    %258 = tpu.matmul %255, %257, %cst_342 {dimension_numbers = #tpu.dot_dimension_numbers<[1], [0], [0], [1], [0, 0, 1, 1], [], []>} : vector<24x32xf32>, vector<32x64xf32>, vector<24x64xf32> -> vector<24x64xf32>
    %259 = arith.addf %254, %258 : vector<24x64xf32>
    %c7 = arith.constant 7 : index
    %c0_343 = arith.constant 0 : index
    %260 = vector.load %arg17[%c7, %c0_343] : memref<40x32xf32, #tpu.memory_space<vmem>>, vector<24x32xf32>
    %c1_344 = arith.constant 1 : index
    %c1_345 = arith.constant 1 : index
    %c0_346 = arith.constant 0 : index
    %c0_347 = arith.constant 0 : index
    %261 = vector.load %arg8[%c1_344, %c1_345, %c0_346, %c0_347] : memref<3x3x32x64xf32, #tpu.memory_space<vmem>>, vector<1x1x32x64xf32>
    %262 = vector.shape_cast %261 : vector<1x1x32x64xf32> to vector<32x64xf32>
    %cst_348 = arith.constant dense<0.000000e+00> : vector<24x64xf32>
    %263 = tpu.matmul %260, %262, %cst_348 {dimension_numbers = #tpu.dot_dimension_numbers<[1], [0], [0], [1], [0, 0, 1, 1], [], []>} : vector<24x32xf32>, vector<32x64xf32>, vector<24x64xf32> -> vector<24x64xf32>
    %264 = arith.addf %259, %263 : vector<24x64xf32>
    %c8 = arith.constant 8 : index
    %c0_349 = arith.constant 0 : index
    %265 = vector.load %arg17[%c8, %c0_349] : memref<40x32xf32, #tpu.memory_space<vmem>>, vector<24x32xf32>
    %c1_350 = arith.constant 1 : index
    %c2_351 = arith.constant 2 : index
    %c0_352 = arith.constant 0 : index
    %c0_353 = arith.constant 0 : index
    %266 = vector.load %arg8[%c1_350, %c2_351, %c0_352, %c0_353] : memref<3x3x32x64xf32, #tpu.memory_space<vmem>>, vector<1x1x32x64xf32>
    %267 = vector.shape_cast %266 : vector<1x1x32x64xf32> to vector<32x64xf32>
    %cst_354 = arith.constant dense<0.000000e+00> : vector<24x64xf32>
    %268 = tpu.matmul %265, %267, %cst_354 {dimension_numbers = #tpu.dot_dimension_numbers<[1], [0], [0], [1], [0, 0, 1, 1], [], []>} : vector<24x32xf32>, vector<32x64xf32>, vector<24x64xf32> -> vector<24x64xf32>
    %269 = arith.addf %264, %268 : vector<24x64xf32>
    %c12_355 = arith.constant 12 : index
    %c0_356 = arith.constant 0 : index
    %270 = vector.load %arg17[%c12_355, %c0_356] : memref<40x32xf32, #tpu.memory_space<vmem>>, vector<24x32xf32>
    %c2_357 = arith.constant 2 : index
    %c0_358 = arith.constant 0 : index
    %c0_359 = arith.constant 0 : index
    %c0_360 = arith.constant 0 : index
    %271 = vector.load %arg8[%c2_357, %c0_358, %c0_359, %c0_360] : memref<3x3x32x64xf32, #tpu.memory_space<vmem>>, vector<1x1x32x64xf32>
    %272 = vector.shape_cast %271 : vector<1x1x32x64xf32> to vector<32x64xf32>
    %cst_361 = arith.constant dense<0.000000e+00> : vector<24x64xf32>
    %273 = tpu.matmul %270, %272, %cst_361 {dimension_numbers = #tpu.dot_dimension_numbers<[1], [0], [0], [1], [0, 0, 1, 1], [], []>} : vector<24x32xf32>, vector<32x64xf32>, vector<24x64xf32> -> vector<24x64xf32>
    %274 = arith.addf %269, %273 : vector<24x64xf32>
    %c13 = arith.constant 13 : index
    %c0_362 = arith.constant 0 : index
    %275 = vector.load %arg17[%c13, %c0_362] : memref<40x32xf32, #tpu.memory_space<vmem>>, vector<24x32xf32>
    %c2_363 = arith.constant 2 : index
    %c1_364 = arith.constant 1 : index
    %c0_365 = arith.constant 0 : index
    %c0_366 = arith.constant 0 : index
    %276 = vector.load %arg8[%c2_363, %c1_364, %c0_365, %c0_366] : memref<3x3x32x64xf32, #tpu.memory_space<vmem>>, vector<1x1x32x64xf32>
    %277 = vector.shape_cast %276 : vector<1x1x32x64xf32> to vector<32x64xf32>
    %cst_367 = arith.constant dense<0.000000e+00> : vector<24x64xf32>
    %278 = tpu.matmul %275, %277, %cst_367 {dimension_numbers = #tpu.dot_dimension_numbers<[1], [0], [0], [1], [0, 0, 1, 1], [], []>} : vector<24x32xf32>, vector<32x64xf32>, vector<24x64xf32> -> vector<24x64xf32>
    %279 = arith.addf %274, %278 : vector<24x64xf32>
    %c14 = arith.constant 14 : index
    %c0_368 = arith.constant 0 : index
    %280 = vector.load %arg17[%c14, %c0_368] : memref<40x32xf32, #tpu.memory_space<vmem>>, vector<24x32xf32>
    %c2_369 = arith.constant 2 : index
    %c2_370 = arith.constant 2 : index
    %c0_371 = arith.constant 0 : index
    %c0_372 = arith.constant 0 : index
    %281 = vector.load %arg8[%c2_369, %c2_370, %c0_371, %c0_372] : memref<3x3x32x64xf32, #tpu.memory_space<vmem>>, vector<1x1x32x64xf32>
    %282 = vector.shape_cast %281 : vector<1x1x32x64xf32> to vector<32x64xf32>
    %cst_373 = arith.constant dense<0.000000e+00> : vector<24x64xf32>
    %283 = tpu.matmul %280, %282, %cst_373 {dimension_numbers = #tpu.dot_dimension_numbers<[1], [0], [0], [1], [0, 0, 1, 1], [], []>} : vector<24x32xf32>, vector<32x64xf32>, vector<24x64xf32> -> vector<24x64xf32>
    %284 = arith.addf %279, %283 : vector<24x64xf32>
    %c0_374 = arith.constant 0 : index
    %c0_375 = arith.constant 0 : index
    %285 = vector.load %arg9[%c0_374, %c0_375] : memref<1x64xf32, #tpu.memory_space<vmem>>, vector<1x64xf32>
    %286 = vector.broadcast %285 : vector<1x64xf32> to vector<24x64xf32>
    %287 = arith.addf %284, %286 : vector<24x64xf32>
    %cst_376 = arith.constant 0.000000e+00 : f32
    %288 = vector.broadcast %cst_376 : f32 to vector<24x64xf32>
    %289 = arith.maximumf %287, %288 : vector<24x64xf32>
    %c0_377 = arith.constant 0 : index
    %c0_378 = arith.constant 0 : index
    %290 = vector.load %arg10[%c0_377, %c0_378] : memref<1x24xf32, #tpu.memory_space<vmem>>, vector<1x24xf32>
    %cst_379 = arith.constant dense<0.000000e+00> : vector<1x64xf32>
    %291 = tpu.matmul %290, %289, %cst_379 {dimension_numbers = #tpu.dot_dimension_numbers<[1], [0], [0], [1], [0, 0, 1, 1], [], []>} : vector<1x24xf32>, vector<24x64xf32>, vector<1x64xf32> -> vector<1x64xf32>
    %c0_380 = arith.constant 0 : index
    %c0_381 = arith.constant 0 : index
    %292 = vector.load %arg11[%c0_380, %c0_381] : memref<64x32xf32, #tpu.memory_space<vmem>>, vector<64x32xf32>
    %cst_382 = arith.constant dense<0.000000e+00> : vector<1x32xf32>
    %293 = tpu.matmul %291, %292, %cst_382 {dimension_numbers = #tpu.dot_dimension_numbers<[1], [0], [0], [1], [0, 0, 1, 1], [], []>} : vector<1x64xf32>, vector<64x32xf32>, vector<1x32xf32> -> vector<1x32xf32>
    %c0_383 = arith.constant 0 : index
    %c0_384 = arith.constant 0 : index
    %294 = vector.load %arg12[%c0_383, %c0_384] : memref<1x32xf32, #tpu.memory_space<vmem>>, vector<1x32xf32>
    %295 = arith.addf %293, %294 : vector<1x32xf32>
    %cst_385 = arith.constant 0.000000e+00 : f32
    %296 = vector.broadcast %cst_385 : f32 to vector<1x32xf32>
    %297 = arith.maximumf %295, %296 : vector<1x32xf32>
    %c0_386 = arith.constant 0 : index
    %c0_387 = arith.constant 0 : index
    %298 = vector.load %arg13[%c0_386, %c0_387] : memref<32x128xf32, #tpu.memory_space<vmem>>, vector<32x128xf32>
    %cst_388 = arith.constant dense<0.000000e+00> : vector<1x128xf32>
    %299 = tpu.matmul %297, %298, %cst_388 {dimension_numbers = #tpu.dot_dimension_numbers<[1], [0], [0], [1], [0, 0, 1, 1], [], []>} : vector<1x32xf32>, vector<32x128xf32>, vector<1x128xf32> -> vector<1x128xf32>
    %c0_389 = arith.constant 0 : index
    %c0_390 = arith.constant 0 : index
    %300 = vector.load %arg14[%c0_389, %c0_390] : memref<1x128xf32, #tpu.memory_space<vmem>>, vector<1x128xf32>
    %301 = arith.addf %299, %300 : vector<1x128xf32>
    %c0_391 = arith.constant 0 : index
    %c0_392 = arith.constant 0 : index
    %c0_393 = arith.constant 0 : index
    %302 = vector.load %arg15[%c0_391, %c0_392, %c0_393] : memref<1x1x128xf32, #tpu.memory_space<vmem>>, vector<1x1x128xf32>
    %303 = vector.shape_cast %302 : vector<1x1x128xf32> to vector<1x128xf32>
    %304 = vector.shape_cast %301 : vector<1x128xf32> to vector<1x1x128xf32>
    tpu.vector_store %arg15[%c0_391, %c0_392, %c0_393], %304 {strides = array<i32>} : memref<1x1x128xf32, #tpu.memory_space<vmem>>, vector<1x1x128xf32>,
    return
  }
  func.func @transform_0(%arg0: i32) -> (i32, i32, i32, i32) {
    %c0_i32 = arith.constant 0 : i32
    %c0_i32_0 = arith.constant 0 : i32
    %c0_i32_1 = arith.constant 0 : i32
    %c0_i32_2 = arith.constant 0 : i32
    return %arg0, %c0_i32, %c0_i32_0, %c0_i32_1 : i32, i32, i32, i32
  }
  func.func @transform_1(%arg0: i32) -> (i32, i32, i32, i32) {
    %c0_i32 = arith.constant 0 : i32
    %c0_i32_0 = arith.constant 0 : i32
    %c0_i32_1 = arith.constant 0 : i32
    %c0_i32_2 = arith.constant 0 : i32
    %c0_i32_3 = arith.constant 0 : i32
    return %c0_i32, %c0_i32_0, %c0_i32_1, %c0_i32_2 : i32, i32, i32, i32
  }
  func.func @transform_2(%arg0: i32) -> (i32, i32) {
    %c0_i32 = arith.constant 0 : i32
    %c0_i32_0 = arith.constant 0 : i32
    %c0_i32_1 = arith.constant 0 : i32
    return %c0_i32, %c0_i32_0 : i32, i32
  }
  func.func @transform_3(%arg0: i32) -> (i32, i32, i32) {
    %c0_i32 = arith.constant 0 : i32
    %c0_i32_0 = arith.constant 0 : i32
    %c0_i32_1 = arith.constant 0 : i32
    %c0_i32_2 = arith.constant 0 : i32
    return %c0_i32, %c0_i32_0, %c0_i32_1 : i32, i32, i32
  }
  func.func @transform_4(%arg0: i32) -> (i32, i32, i32, i32) {
    %c0_i32 = arith.constant 0 : i32
    %c0_i32_0 = arith.constant 0 : i32
    %c0_i32_1 = arith.constant 0 : i32
    %c0_i32_2 = arith.constant 0 : i32
    %c0_i32_3 = arith.constant 0 : i32
    return %c0_i32, %c0_i32_0, %c0_i32_1, %c0_i32_2 : i32, i32, i32, i32
  }
  func.func @transform_5(%arg0: i32) -> (i32, i32) {
    %c0_i32 = arith.constant 0 : i32
    %c0_i32_0 = arith.constant 0 : i32
    %c0_i32_1 = arith.constant 0 : i32
    return %c0_i32, %c0_i32_0 : i32, i32
  }
  func.func @transform_6(%arg0: i32) -> (i32, i32, i32) {
    %c0_i32 = arith.constant 0 : i32
    %c0_i32_0 = arith.constant 0 : i32
    %c0_i32_1 = arith.constant 0 : i32
    %c0_i32_2 = arith.constant 0 : i32
    return %c0_i32, %c0_i32_0, %c0_i32_1 : i32, i32, i32
  }
  func.func @transform_7(%arg0: i32) -> (i32, i32, i32, i32) {
    %c0_i32 = arith.constant 0 : i32
    %c0_i32_0 = arith.constant 0 : i32
    %c0_i32_1 = arith.constant 0 : i32
    %c0_i32_2 = arith.constant 0 : i32
    %c0_i32_3 = arith.constant 0 : i32
    return %c0_i32, %c0_i32_0, %c0_i32_1, %c0_i32_2 : i32, i32, i32, i32
  }
  func.func @transform_8(%arg0: i32) -> (i32, i32) {
    %c0_i32 = arith.constant 0 : i32
    %c0_i32_0 = arith.constant 0 : i32
    %c0_i32_1 = arith.constant 0 : i32
    return %c0_i32, %c0_i32_0 : i32, i32
  }
  func.func @transform_9(%arg0: i32) -> (i32, i32) {
    %c0_i32 = arith.constant 0 : i32
    %c0_i32_0 = arith.constant 0 : i32
    %c0_i32_1 = arith.constant 0 : i32
    return %c0_i32, %c0_i32_0 : i32, i32
  }
  func.func @transform_10(%arg0: i32) -> (i32, i32) {
    %c0_i32 = arith.constant 0 : i32
    %c0_i32_0 = arith.constant 0 : i32
    %c0_i32_1 = arith.constant 0 : i32
    return %c0_i32, %c0_i32_0 : i32, i32
  }
  func.func @transform_11(%arg0: i32) -> (i32, i32) {
    %c0_i32 = arith.constant 0 : i32
    %c0_i32_0 = arith.constant 0 : i32
    %c0_i32_1 = arith.constant 0 : i32
    return %c0_i32, %c0_i32_0 : i32, i32
  }
  func.func @transform_12(%arg0: i32) -> (i32, i32) {
    %c0_i32 = arith.constant 0 : i32
    %c0_i32_0 = arith.constant 0 : i32
    %c0_i32_1 = arith.constant 0 : i32
    return %c0_i32, %c0_i32_0 : i32, i32
  }
  func.func @transform_13(%arg0: i32) -> (i32, i32) {
    %c0_i32 = arith.constant 0 : i32
    %c0_i32_0 = arith.constant 0 : i32
    %c0_i32_1 = arith.constant 0 : i32
    return %c0_i32, %c0_i32_0 : i32, i32
  }
  func.func @transform_14(%arg0: i32) -> (i32, i32, i32) {
    %c0_i32 = arith.constant 0 : i32
    %c0_i32_0 = arith.constant 0 : i32
    %c0_i32_1 = arith.constant 0 : i32
    return %arg0, %c0_i32, %c0_i32_0 : i32, i32, i32
  }
}

</mosaic_0001>

<bundles_post_ra>
// kernel: simple_cnn_forward.1
= control target key start
LH: loop header
LB: loop body
LE: loop exit
PB: predicated region body
PF: predicated region fallthrough
CT: control target
= control target key end

     0   :  { %s27151_s0 = inlined_call_operand.vmem [shape: f32[2,4,336,8], index: 0, kind: input, shape index: {}]   ;;  %s27152_s1 = inlined_call_operand.vmem [shape: f32[5,5,8,16], index: 1, kind: input, shape index: {}]   ;;  %s27153_s2 = inlined_call_operand.vmem [shape: f32[1,16], index: 2, kind: input, shape index: {}]   ;;  %s27154_s3 = inlined_call_operand.vmem [shape: f32[4,112,288], index: 3, kind: input, shape index: {}]   ;;  %s27155_s4 = inlined_call_operand.vmem [shape: f32[3,3,16,32], index: 4, kind: input, shape index: {}]   ;;  %s27156_s5 = inlined_call_operand.vmem [shape: f32[1,32], index: 5, kind: input, shape index: {}]   ;;  %s27157_s6 = inlined_call_operand.vmem [shape: f32[4,40,80], index: 6, kind: input, shape index: {}]   ;;  %s27158_s7 = inlined_call_operand.vmem [shape: f32[3,3,32,64], index: 7, kind: input, shape index: {}]   ;;  %s27159_s8 = inlined_call_operand.vmem [shape: f32[1,64], index: 8, kind: input, shape index: {}]   ;;  %s27160_s9 = inlined_call_operand.vmem [shape: f32[1,24], index: 9, kind: input, shape index: {}]   ;;  %s27161_s10 = inlined_call_operand.vmem [shape: f32[64,32], index: 10, kind: input, shape index: {}]   ;;  %s27162_s11 = inlined_call_operand.vmem [shape: f32[1,32], index: 11, kind: input, shape index: {}]   ;;  %s27163_s12 = inlined_call_operand.vmem [shape: f32[32,128], index: 12, kind: input, shape index: {}]   ;;  %s27164_s13 = inlined_call_operand.vmem [shape: f32[1,128], index: 13, kind: input, shape index: {}]   ;;  %s27165_s14 = inlined_call_operand.hbm [shape: f32[2,1,128], index: 14, kind: output, shape index: {}]  }
   0x1   :  { %27187 = sst [smem:[#allocation108_spill]] %s27151_s0 }
   0x2   :  { %27188 = sst [smem:[#allocation109_spill]] %s27152_s1 }
   0x3   :  { %19 = vsyncpa [#allocation5], 0 }
   0x4   :  { %21 = vsyncpa [#allocation5 + $0x1], 0  ;;  %s21460_s29 = smov 0   ;;  %s21462_s30 = smov 0  }
   0x5   :  { %s21464_s15 = smov 0   ;;  %s21466_s16 = smov 0  }
   0x6 LB: > { %27189 = sst [smem:[#allocation7_spill]] %s21376_s15  ;;  %s21481_s17 = sadd.s32 4294967295, %s21380_s16   ;;  %s21380_s16 = sphi %s21466_s16, %s27519_s16   ;;  %s21376_s15 = sphi %s21464_s15, %s27516_s15   ;;  %s21372_s30 = sphi %s21462_s30, %s27518_s30   ;;  %s21368_s29 = sphi %s21460_s29, %s27517_s29  }
   0x7   : > { %s15821_s18 = sadd.s32 4294967294, %s21380_s16   ;;  %s21485_s19 = sadd.s32 1, %s21380_s16  }
   0x8   : > { %s333_s20 = sadd.s32 1, %s21376_s15  ;;  %s330_s21 = ssub.s32 %s21380_s16, %s21485_s19 }
   0x9   : > { %p343_p0 = scmp.ne.s32.totalorder %s21376_s15, %s21372_s30  ;;  %p331_p1 = scmp.eq.s32.totalorder %s330_s21, 0 }
   0xa   : > { %p344_p2 = scmp.eq.s32.totalorder %s21481_s17, 1  ;;  %p349_p3 = scmp.ne.s32.totalorder %s21372_s30, %s21368_s29 }
   0xb   : > { %p350_p4 = scmp.eq.s32.totalorder %s15821_s18, 1  ;;  %p15824_p7 = scmp.ge.s32.totalorder %s21380_s16, 1 }
   0xc   : > { %s21496_s22 = scalar_select %p331_p1, %s21376_s15, %s333_s20  }
   0xd   : > { %p21498_p5 = por %p344_p2, %p343_p0  ;;  %p21502_p6 = por %p350_p4, %p349_p3 }
   0xe   : > { %27190 = sst [smem:[#allocation8_spill]] %s21496_s22  ;;  %p415_p8 = scmp.lt.s32.totalorder %s21380_s16, 3 }
  0x10   : > { %p416_p9 = pnand %p15824_p7, %p415_p8 }
  0x12   : > { %419 = sbr.rel (%p416_p9) target bundleno = 2997 (0xbb5), region = 76 }
  0x17   : > { %s27193_s1 = sld [smem:[#allocation109_spill]]  ;;  %p460_p10 = scmp.lt.s32.totalorder %s21481_s17, 1  ;;  %vm541_vm0 = vcmask 64512   ;;  %vm11192_vm1 = vcmask 261120   ;;  %vm12612_vm2 = vcmask 130048   ;;  %vm21383_vm3 = vmmov 0  }
  0x18   : > { %s27194_s0 = sld [smem:[#allocation108_spill]]  ;;  %vm14150_vm4 = vcmask 654336   ;;  %vm15516_vm5 = vcmask 195584   ;;  %vm15599_vm6 = vcmask 523264   ;;  %s458_s21 = sand.u32 1, %s21372_s30  }
  0x19   : > { %s461_s25 = scalar_select %p460_p10, %s21481_s17, 1 }
  0x1a   : > { %s17714_s27 = sshll.u32 %s21481_s17, 4  ;;  %s15754_s20 = scalar_lea.sflag [#allocation5], %s458_s21 }
  0x1b   : > { %s21278_s26 = smul.u32 1344, %s461_s25  ;;  %s21384_s25 = smov [#allocation4]  }
  0x1c   : > { %s21324_s17 = sshll.u32 %s21384_s25, 4  ;;  %s21325_s17 = int_to_ptr.vmem [resolvable:$false] %s21324_s17 }
  0x1d   : > { %v15862_v0 = vld [vmem:[%s27193_s1 + $0x8] sm:$0xff]  ;;  %v501_v1 = vld [vmem:[%s27193_s1] sm:$0xff]  ;;  %v15935_v2 = vld [vmem:[%s27193_s1 + $0x10] sm:$0xff] }
  0x1e   : > { %19259 = vmatprep.subr.mxu0 %v15862_v0  ;;  %19315 = vmatprep.subr.mxu1 %v501_v1  ;;  %v16008_v3 = vld [vmem:[%s27193_s1 + $0x18] sm:$0xff]  ;;  %s21525_s15 = scalar_lea.vmem %s27194_s0, %s21278_s26  ;;  %v21540_v10 = vld [vmem:[%s27193_s1 + $0x20] sm:$0xff]  ;;  %v16118_v59 = vld [vmem:[%s27193_s1 + $0x28] sm:$0xff]  ;;  %s459_s0 = scalar_lea.vmem [#allocation4], %s458_s21 }
  0x1f   : > { %19260 = vmatpush3.msra.mxu0 %v15862_v0  ;;  %19316 = vmatpush3.msra.mxu1 %v501_v1  ;;  %v15826_v4 = vld [vmem:[%s21525_s15 + $0x150] sm:$0xff]  ;;  %v465_v5 = vld [vmem:[%s21525_s15] sm:$0xff]  ;;  %v15827_v6 = vld [vmem:[%s21525_s15 + $0x158] sm:$0xff]  ;;  %s15766_s28 = sshll.u32 %s459_s0, 4  ;;  %s21326_s26 = scalar_lea.vmem %s21325_s17, 32  ;;  %s15767_s28 = int_to_ptr.vmem [resolvable:$true] %s15766_s28 }
  0x20   : > { %19371 = vmatprep.subr.mxu0 %v15935_v2  ;;  %19427 = vmatprep.subr.mxu1 %v16008_v3  ;;  %v466_v7 = vld [vmem:[%s21525_s15 + $0x8] sm:$0xff]  ;;  %v15828_v8 = vld [vmem:[%s21525_s15 + $0x160] sm:$0xff]  ;;  %v467_v9 = vld [vmem:[%s21525_s15 + $0x10] sm:$0xff]  ;;  %p21327_p0 = scmp.lt.s32.totalorder %s15767_s28, %s21325_s17 }
  0x21   : > { %19261 = vmatprep.mubr.msk.f32.mxu0 %vm541_vm0, %v15826_v4  ;;  %19317 = vmatprep.mubr.msk.f32.mxu1 %vm541_vm0, %v465_v5  ;;  %v15829_v11 = vld [vmem:[%s21525_s15 + $0x168] sm:$0xff]  ;;  %v468_v12 = vld [vmem:[%s21525_s15 + $0x18] sm:$0xff]  ;;  %v15830_v13 = vld [vmem:[%s21525_s15 + $0x170] sm:$0xff] }
  0x22   : > { %19262 = vmatmul.mubr.msk.f32.vlgmr.msra.gmra.mxu0 %vm541_vm0, %v15827_v6  ;;  %19318 = vmatmul.mubr.msk.f32.vlgmr.msra.gmra.mxu1 %vm541_vm0, %v466_v7  ;;  %v469_v14 = vld [vmem:[%s21525_s15 + $0x20] sm:$0xff]  ;;  %v15831_v15 = vld [vmem:[%s21525_s15 + $0x178] sm:$0xff]  ;;  %v470_v16 = vld [vmem:[%s21525_s15 + $0x28] sm:$0xff] }
  0x23   : > { %19264 = vmatprep.mubr.msk.f32.mxu0 %vm541_vm0, %v15828_v8  ;;  %19320 = vmatprep.mubr.msk.f32.mxu1 %vm541_vm0, %v467_v9  ;;  %v15832_v17 = vld [vmem:[%s21525_s15 + $0x180] sm:$0xff]  ;;  %v471_v18 = vld [vmem:[%s21525_s15 + $0x30] sm:$0xff]  ;;  %v15833_v19 = vld [vmem:[%s21525_s15 + $0x188] sm:$0xff] }
  0x24   : > { %19372 = vmatpush3.msra.mxu0 %v15935_v2  ;;  %19428 = vmatpush3.msra.mxu1 %v16008_v3  ;;  %v472_v20 = vld [vmem:[%s21525_s15 + $0x38] sm:$0xff]  ;;  %v15834_v21 = vld [vmem:[%s21525_s15 + $0x190] sm:$0xff]  ;;  %v473_v22 = vld [vmem:[%s21525_s15 + $0x40] sm:$0xff] }
  0x25   : > { %19483 = vmatprep.subr.mxu0 %v21540_v10  ;;  %v15835_v23 = vld [vmem:[%s21525_s15 + $0x198] sm:$0xff]  ;;  %v474_v24 = vld [vmem:[%s21525_s15 + $0x48] sm:$0xff]  ;;  %v15836_v25 = vld [vmem:[%s21525_s15 + $0x1a0] sm:$0xff]  ;;  %19539 = vmatprep.subr.mxu1 %v16118_v59 }
  0x26   : > { %19265 = vmatmul.mubr.msk.f32.gmra.mxu0 %vm541_vm0, %v15829_v11  ;;  %19321 = vmatmul.mubr.msk.f32.gmra.mxu1 %vm541_vm0, %v468_v12  ;;  %v475_v26 = vld [vmem:[%s21525_s15 + $0x50] sm:$0xff]  ;;  %v15837_v27 = vld [vmem:[%s21525_s15 + $0x1a8] sm:$0xff]  ;;  %v476_v28 = vld [vmem:[%s21525_s15 + $0x58] sm:$0xff] }
  0x27   : > { %19267 = vmatprep.mubr.msk.f32.mxu0 %vm541_vm0, %v15830_v13  ;;  %19323 = vmatprep.mubr.msk.f32.mxu1 %vm541_vm0, %v469_v14  ;;  %v15838_v29 = vld [vmem:[%s21525_s15 + $0x1b0] sm:$0xff]  ;;  %v477_v30 = vld [vmem:[%s21525_s15 + $0x60] sm:$0xff]  ;;  %v15839_v31 = vld [vmem:[%s21525_s15 + $0x1b8] sm:$0xff] }
  0x28   : > { %v478_v32 = vld [vmem:[%s21525_s15 + $0x68] sm:$0xff]  ;;  %v15840_v33 = vld [vmem:[%s21525_s15 + $0x1c0] sm:$0xff]  ;;  %v479_v34 = vld [vmem:[%s21525_s15 + $0x70] sm:$0xff] }
  0x29   : > { %v15841_v35 = vld [vmem:[%s21525_s15 + $0x1c8] sm:$0xff]  ;;  %v480_v36 = vld [vmem:[%s21525_s15 + $0x78] sm:$0xff]  ;;  %v15842_v37 = vld [vmem:[%s21525_s15 + $0x1d0] sm:$0xff] }
  0x2a   : > { %19268 = vmatmul.mubr.msk.f32.gmra.mxu0 %vm541_vm0, %v15831_v15  ;;  %19324 = vmatmul.mubr.msk.f32.gmra.mxu1 %vm541_vm0, %v470_v16  ;;  %v481_v38 = vld [vmem:[%s21525_s15 + $0x80] sm:$0xff]  ;;  %v15843_v39 = vld [vmem:[%s21525_s15 + $0x1d8] sm:$0xff]  ;;  %v482_v40 = vld [vmem:[%s21525_s15 + $0x88] sm:$0xff] }
  0x2b   : > { %19270 = vmatprep.mubr.msk.f32.mxu0 %vm541_vm0, %v15832_v17  ;;  %19326 = vmatprep.mubr.msk.f32.mxu1 %vm541_vm0, %v471_v18  ;;  %v15844_v41 = vld [vmem:[%s21525_s15 + $0x1e0] sm:$0xff]  ;;  %v483_v42 = vld [vmem:[%s21525_s15 + $0x90] sm:$0xff]  ;;  %v15845_v43 = vld [vmem:[%s21525_s15 + $0x1e8] sm:$0xff] }
  0x2c   : > { %v484_v44 = vld [vmem:[%s21525_s15 + $0x98] sm:$0xff]  ;;  %v15846_v45 = vld [vmem:[%s21525_s15 + $0x1f0] sm:$0xff]  ;;  %v485_v46 = vld [vmem:[%s21525_s15 + $0xa0] sm:$0xff] }
  0x2d   : > { %v15847_v47 = vld [vmem:[%s21525_s15 + $0x1f8] sm:$0xff]  ;;  %v486_v48 = vld [vmem:[%s21525_s15 + $0xa8] sm:$0xff]  ;;  %v15848_v49 = vld [vmem:[%s21525_s15 + $0x200] sm:$0xff] }
  0x2e   : > { %19271 = vmatmul.mubr.msk.f32.gmra.mxu0 %vm541_vm0, %v15833_v19  ;;  %19327 = vmatmul.mubr.msk.f32.gmra.mxu1 %vm541_vm0, %v472_v20  ;;  %v487_v50 = vld [vmem:[%s21525_s15 + $0xb0] sm:$0xff]  ;;  %v15849_v51 = vld [vmem:[%s21525_s15 + $0x208] sm:$0xff]  ;;  %v488_v52 = vld [vmem:[%s21525_s15 + $0xb8] sm:$0xff] }
  0x2f   : > { %19273 = vmatprep.mubr.msk.f32.mxu0 %vm541_vm0, %v15834_v21  ;;  %19329 = vmatprep.mubr.msk.f32.mxu1 %vm541_vm0, %v473_v22  ;;  %v15850_v53 = vld [vmem:[%s21525_s15 + $0x210] sm:$0xff]  ;;  %v489_v54 = vld [vmem:[%s21525_s15 + $0xc0] sm:$0xff]  ;;  %v15851_v55 = vld [vmem:[%s21525_s15 + $0x218] sm:$0xff] }
  0x30   : > { %v490_v56 = vld [vmem:[%s21525_s15 + $0xc8] sm:$0xff]  ;;  %v15852_v57 = vld [vmem:[%s21525_s15 + $0x220] sm:$0xff]  ;;  %v491_v58 = vld [vmem:[%s21525_s15 + $0xd0] sm:$0xff] }
  0x31   : > { %v15853_v60 = vld [vmem:[%s21525_s15 + $0x228] sm:$0xff]  ;;  %v492_v61 = vld [vmem:[%s21525_s15 + $0xd8] sm:$0xff]  ;;  %v15854_v62 = vld [vmem:[%s21525_s15 + $0x230] sm:$0xff] }
  0x32   : > { %19274 = vmatmul.mubr.msk.f32.gmra.mxu0 %vm541_vm0, %v15835_v23  ;;  %19330 = vmatmul.mubr.msk.f32.gmra.mxu1 %vm541_vm0, %v474_v24  ;;  %v493_v63 = vld [vmem:[%s21525_s15 + $0xe0] sm:$0xff]  ;;  %v15855_v0 = vld [vmem:[%s21525_s15 + $0x238] sm:$0xff]  ;;  %v494_v1 = vld [vmem:[%s21525_s15 + $0xe8] sm:$0xff] }
  0x33   : > { %19276 = vmatprep.mubr.msk.f32.mxu0 %vm541_vm0, %v15836_v25  ;;  %19332 = vmatprep.mubr.msk.f32.mxu1 %vm541_vm0, %v475_v26  ;;  %v15856_v2 = vld [vmem:[%s21525_s15 + $0x240] sm:$0xff]  ;;  %v495_v3 = vld [vmem:[%s21525_s15 + $0xf0] sm:$0xff]  ;;  %v15857_v4 = vld [vmem:[%s21525_s15 + $0x248] sm:$0xff] }
  0x34   : > { %v496_v5 = vld [vmem:[%s21525_s15 + $0xf8] sm:$0xff]  ;;  %v15858_v6 = vld [vmem:[%s21525_s15 + $0x250] sm:$0xff]  ;;  %v497_v7 = vld [vmem:[%s21525_s15 + $0x100] sm:$0xff] }
  0x35   : > { %v15859_v8 = vld [vmem:[%s21525_s15 + $0x258] sm:$0xff]  ;;  %v498_v9 = vld [vmem:[%s21525_s15 + $0x108] sm:$0xff]  ;;  %v15860_v11 = vld [vmem:[%s21525_s15 + $0x260] sm:$0xff] }
  0x36   : > { %19277 = vmatmul.mubr.msk.f32.gmra.mxu0 %vm541_vm0, %v15837_v27  ;;  %19333 = vmatmul.mubr.msk.f32.gmra.mxu1 %vm541_vm0, %v476_v28  ;;  %v499_v12 = vld [vmem:[%s21525_s15 + $0x110] sm:$0xff]  ;;  %v15861_v13 = vld [vmem:[%s21525_s15 + $0x268] sm:$0xff]  ;;  %v500_v14 = vld [vmem:[%s21525_s15 + $0x118] sm:$0xff] }
  0x37   : > { %19279 = vmatprep.mubr.msk.f32.mxu0 %vm541_vm0, %v15838_v29  ;;  %19335 = vmatprep.mubr.msk.f32.mxu1 %vm541_vm0, %v477_v30  ;;  %v1248_v15 = vld [vmem:[%s21525_s15 + $0x1] sm:$0xff]  ;;  %v15972_v16 = vld [vmem:[%s21525_s15 + $0x151] sm:$0xff]  ;;  %v1249_v17 = vld [vmem:[%s21525_s15 + $0x9] sm:$0xff] }
  0x38   : > { %v15973_v18 = vld [vmem:[%s21525_s15 + $0x159] sm:$0xff]  ;;  %v1250_v19 = vld [vmem:[%s21525_s15 + $0x11] sm:$0xff]  ;;  %v15974_v20 = vld [vmem:[%s21525_s15 + $0x161] sm:$0xff] }
  0x39   : > { %v21693_v21 = vld [vmem:[%s27193_s1 + $0x30] sm:$0xff]  ;;  %v1251_v22 = vld [vmem:[%s21525_s15 + $0x19] sm:$0xff]  ;;  %v1252_v24 = vld [vmem:[%s21525_s15 + $0x21] sm:$0xff] }
  0x3a   : > { %19280 = vmatmul.mubr.msk.f32.gmra.mxu0 %vm541_vm0, %v15839_v31  ;;  %19336 = vmatmul.mubr.msk.f32.gmra.mxu1 %vm541_vm0, %v478_v32  ;;  %v15975_v23 = vld [vmem:[%s21525_s15 + $0x169] sm:$0xff]  ;;  %v15976_v25 = vld [vmem:[%s21525_s15 + $0x171] sm:$0xff]  ;;  %v15977_v27 = vld [vmem:[%s21525_s15 + $0x179] sm:$0xff] }
  0x3b   : > { %19282 = vmatprep.mubr.msk.f32.mxu0 %vm541_vm0, %v15840_v33  ;;  %19338 = vmatprep.mubr.msk.f32.mxu1 %vm541_vm0, %v479_v34  ;;  %v1253_v26 = vld [vmem:[%s21525_s15 + $0x29] sm:$0xff]  ;;  %v1254_v28 = vld [vmem:[%s21525_s15 + $0x31] sm:$0xff]  ;;  %v1255_v29 = vld [vmem:[%s21525_s15 + $0x39] sm:$0xff] }
  0x3c   : > { %v15979_v30 = vld [vmem:[%s21525_s15 + $0x189] sm:$0xff]  ;;  %v1256_v31 = vld [vmem:[%s21525_s15 + $0x41] sm:$0xff]  ;;  %v15980_v32 = vld [vmem:[%s21525_s15 + $0x191] sm:$0xff] }
  0x3d   : > { %v1257_v33 = vld [vmem:[%s21525_s15 + $0x49] sm:$0xff]  ;;  %v15981_v34 = vld [vmem:[%s21525_s15 + $0x199] sm:$0xff] }
  0x3e   : > { %19283 = vmatmul.mubr.msk.f32.gmra.mxu0 %vm541_vm0, %v15841_v35  ;;  %19339 = vmatmul.mubr.msk.f32.gmra.mxu1 %vm541_vm0, %v480_v36  ;;  %v1258_v35 = vld [vmem:[%s21525_s15 + $0x51] sm:$0xff]  ;;  %v15982_v36 = vld [vmem:[%s21525_s15 + $0x1a1] sm:$0xff] }
  0x3f   : > { %19285 = vmatprep.mubr.msk.f32.mxu0 %vm541_vm0, %v15842_v37  ;;  %19341 = vmatprep.mubr.msk.f32.mxu1 %vm541_vm0, %v481_v38  ;;  %v21730_v37 = vld [vmem:[%s27193_s1 + $0x38] sm:$0xff] }
  0x40   : > { %v1259_v38 = vld [vmem:[%s21525_s15 + $0x59] sm:$0xff] }
  0x42   : > { %19286 = vmatmul.mubr.msk.f32.gmra.mxu0 %vm541_vm0, %v15843_v39  ;;  %19342 = vmatmul.mubr.msk.f32.gmra.mxu1 %vm541_vm0, %v482_v40  ;;  %v15983_v39 = vld [vmem:[%s21525_s15 + $0x1a9] sm:$0xff]  ;;  %v1260_v40 = vld [vmem:[%s21525_s15 + $0x61] sm:$0xff] }
  0x43   : > { %19288 = vmatprep.mubr.msk.f32.mxu0 %vm541_vm0, %v15844_v41  ;;  %19344 = vmatprep.mubr.msk.f32.mxu1 %vm541_vm0, %v483_v42  ;;  %v15984_v41 = vld [vmem:[%s21525_s15 + $0x1b1] sm:$0xff]  ;;  %v1261_v42 = vld [vmem:[%s21525_s15 + $0x69] sm:$0xff] }
  0x46   : > { %19289 = vmatmul.mubr.msk.f32.gmra.mxu0 %vm541_vm0, %v15845_v43  ;;  %19345 = vmatmul.mubr.msk.f32.gmra.mxu1 %vm541_vm0, %v484_v44  ;;  %v15985_v43 = vld [vmem:[%s21525_s15 + $0x1b9] sm:$0xff]  ;;  %v1262_v44 = vld [vmem:[%s21525_s15 + $0x71] sm:$0xff] }
  0x47   : > { %19291 = vmatprep.mubr.msk.f32.mxu0 %vm541_vm0, %v15846_v45  ;;  %19347 = vmatprep.mubr.msk.f32.mxu1 %vm541_vm0, %v485_v46  ;;  %v15986_v45 = vld [vmem:[%s21525_s15 + $0x1c1] sm:$0xff]  ;;  %v1263_v46 = vld [vmem:[%s21525_s15 + $0x79] sm:$0xff] }
  0x4a   : > { %19292 = vmatmul.mubr.msk.f32.gmra.mxu0 %vm541_vm0, %v15847_v47  ;;  %19348 = vmatmul.mubr.msk.f32.gmra.mxu1 %vm541_vm0, %v486_v48  ;;  %v15987_v47 = vld [vmem:[%s21525_s15 + $0x1c9] sm:$0xff]  ;;  %v1264_v48 = vld [vmem:[%s21525_s15 + $0x81] sm:$0xff] }
  0x4b   : > { %19294 = vmatprep.mubr.msk.f32.mxu0 %vm541_vm0, %v15848_v49  ;;  %19350 = vmatprep.mubr.msk.f32.mxu1 %vm541_vm0, %v487_v50  ;;  %v15988_v49 = vld [vmem:[%s21525_s15 + $0x1d1] sm:$0xff]  ;;  %v1265_v50 = vld [vmem:[%s21525_s15 + $0x89] sm:$0xff] }
  0x4e   : > { %19295 = vmatmul.mubr.msk.f32.gmra.mxu0 %vm541_vm0, %v15849_v51  ;;  %19351 = vmatmul.mubr.msk.f32.gmra.mxu1 %vm541_vm0, %v488_v52  ;;  %v15989_v51 = vld [vmem:[%s21525_s15 + $0x1d9] sm:$0xff]  ;;  %v1266_v52 = vld [vmem:[%s21525_s15 + $0x91] sm:$0xff] }
  0x4f   : > { %19297 = vmatprep.mubr.msk.f32.mxu0 %vm541_vm0, %v15850_v53  ;;  %19353 = vmatprep.mubr.msk.f32.mxu1 %vm541_vm0, %v489_v54  ;;  %v15990_v53 = vld [vmem:[%s21525_s15 + $0x1e1] sm:$0xff]  ;;  %v1267_v54 = vld [vmem:[%s21525_s15 + $0x99] sm:$0xff] }
  0x52   : > { %19298 = vmatmul.mubr.msk.f32.gmra.mxu0 %vm541_vm0, %v15851_v55  ;;  %19354 = vmatmul.mubr.msk.f32.gmra.mxu1 %vm541_vm0, %v490_v56  ;;  %v15991_v55 = vld [vmem:[%s21525_s15 + $0x1e9] sm:$0xff]  ;;  %v1268_v56 = vld [vmem:[%s21525_s15 + $0xa1] sm:$0xff] }
  0x53   : > { %19300 = vmatprep.mubr.msk.f32.mxu0 %vm541_vm0, %v15852_v57  ;;  %19356 = vmatprep.mubr.msk.f32.mxu1 %vm541_vm0, %v491_v58  ;;  %v15992_v57 = vld [vmem:[%s21525_s15 + $0x1f1] sm:$0xff]  ;;  %v1269_v58 = vld [vmem:[%s21525_s15 + $0xa9] sm:$0xff] }
  0x56   : > { %19301 = vmatmul.mubr.msk.f32.gmra.mxu0 %vm541_vm0, %v15853_v60  ;;  %19357 = vmatmul.mubr.msk.f32.gmra.mxu1 %vm541_vm0, %v492_v61  ;;  %v1270_v60 = vld [vmem:[%s21525_s15 + $0xb1] sm:$0xff]  ;;  %v15994_v61 = vld [vmem:[%s21525_s15 + $0x201] sm:$0xff] }
  0x57   : > { %19303 = vmatprep.mubr.msk.f32.mxu0 %vm541_vm0, %v15854_v62  ;;  %19359 = vmatprep.mubr.msk.f32.mxu1 %vm541_vm0, %v493_v63  ;;  %v1271_v62 = vld [vmem:[%s21525_s15 + $0xb9] sm:$0xff]  ;;  %v15995_v63 = vld [vmem:[%s21525_s15 + $0x209] sm:$0xff] }
  0x5a   : > { %19304 = vmatmul.mubr.msk.f32.gmra.mxu0 %vm541_vm0, %v15855_v0  ;;  %19360 = vmatmul.mubr.msk.f32.gmra.mxu1 %vm541_vm0, %v494_v1  ;;  %v1272_v0 = vld [vmem:[%s21525_s15 + $0xc1] sm:$0xff]  ;;  %v15996_v1 = vld [vmem:[%s21525_s15 + $0x211] sm:$0xff] }
  0x5b   : > { %19306 = vmatprep.mubr.msk.f32.mxu0 %vm541_vm0, %v15856_v2  ;;  %19362 = vmatprep.mubr.msk.f32.mxu1 %vm541_vm0, %v495_v3  ;;  %v1273_v2 = vld [vmem:[%s21525_s15 + $0xc9] sm:$0xff]  ;;  %v15997_v3 = vld [vmem:[%s21525_s15 + $0x219] sm:$0xff] }
  0x5e   : > { %19307 = vmatmul.mubr.msk.f32.gmra.mxu0 %vm541_vm0, %v15857_v4  ;;  %19363 = vmatmul.mubr.msk.f32.gmra.mxu1 %vm541_vm0, %v496_v5  ;;  %v1274_v4 = vld [vmem:[%s21525_s15 + $0xd1] sm:$0xff]  ;;  %v15998_v5 = vld [vmem:[%s21525_s15 + $0x221] sm:$0xff] }
  0x5f   : > { %19309 = vmatprep.mubr.msk.f32.mxu0 %vm541_vm0, %v15858_v6  ;;  %19365 = vmatprep.mubr.msk.f32.mxu1 %vm541_vm0, %v497_v7  ;;  %v1275_v6 = vld [vmem:[%s21525_s15 + $0xd9] sm:$0xff]  ;;  %v15999_v7 = vld [vmem:[%s21525_s15 + $0x229] sm:$0xff] }
  0x62   : > { %19310 = vmatmul.mubr.msk.f32.gmra.mxu0 %vm541_vm0, %v15859_v8  ;;  %19366 = vmatmul.mubr.msk.f32.gmra.mxu1 %vm541_vm0, %v498_v9  ;;  %v1276_v8 = vld [vmem:[%s21525_s15 + $0xe1] sm:$0xff]  ;;  %v16000_v9 = vld [vmem:[%s21525_s15 + $0x231] sm:$0xff] }
  0x63   : > { %19312 = vmatprep.mubr.msk.f32.mxu0 %vm541_vm0, %v15860_v11  ;;  %19368 = vmatprep.mubr.msk.f32.mxu1 %vm541_vm0, %v499_v12  ;;  %v1277_v11 = vld [vmem:[%s21525_s15 + $0xe9] sm:$0xff]  ;;  %v16001_v12 = vld [vmem:[%s21525_s15 + $0x239] sm:$0xff] }
  0x66   : > { %19313 = vmatmul.mubr.msk.f32.gmra.mxu0 %vm541_vm0, %v15861_v13  ;;  %19369 = vmatmul.mubr.msk.f32.gmra.mxu1 %vm541_vm0, %v500_v14  ;;  %v1278_v13 = vld [vmem:[%s21525_s15 + $0xf1] sm:$0xff]  ;;  %v16002_v14 = vld [vmem:[%s21525_s15 + $0x241] sm:$0xff] }
  0x67   : > { %19373 = vmatprep.mubr.msk.f32.mxu0 %vm541_vm0, %v1248_v15  ;;  %19429 = vmatprep.mubr.msk.f32.mxu1 %vm541_vm0, %v15972_v16  ;;  %v1279_v15 = vld [vmem:[%s21525_s15 + $0xf9] sm:$0xff]  ;;  %v16003_v16 = vld [vmem:[%s21525_s15 + $0x249] sm:$0xff] }
  0x6a   : > { %19374 = vmatmul.mubr.msk.f32.vlgmr.msra.gmra.mxu0 %vm541_vm0, %v1249_v17  ;;  %19430 = vmatmul.mubr.msk.f32.vlgmr.msra.gmra.mxu1 %vm541_vm0, %v15973_v18  ;;  %v1280_v17 = vld [vmem:[%s21525_s15 + $0x101] sm:$0xff]  ;;  %v16004_v18 = vld [vmem:[%s21525_s15 + $0x251] sm:$0xff] }
  0x6b   : > { %19376 = vmatprep.mubr.msk.f32.mxu0 %vm541_vm0, %v1250_v19  ;;  %19432 = vmatprep.mubr.msk.f32.mxu1 %vm541_vm0, %v15974_v20  ;;  %v1281_v19 = vld [vmem:[%s21525_s15 + $0x109] sm:$0xff]  ;;  %v16005_v20 = vld [vmem:[%s21525_s15 + $0x259] sm:$0xff] }
  0x6c   : > { %19484 = vmatpush3.msra.mxu0 %v21540_v10  ;;  %19540 = vmatpush3.msra.mxu1 %v16118_v59  ;;  %v15978_v10 = vld [vmem:[%s21525_s15 + $0x181] sm:$0xff]  ;;  %v15993_v59 = vld [vmem:[%s21525_s15 + $0x1f9] sm:$0xff] }
  0x6d   : > { %19595 = vmatprep.subr.mxu0 %v21693_v21  ;;  %19651 = vmatprep.subr.mxu1 %v21730_v37 }
  0x6e   : > { %19377 = vmatmul.mubr.msk.f32.gmra.mxu0 %vm541_vm0, %v1251_v22  ;;  %19433 = vmatmul.mubr.msk.f32.gmra.mxu1 %vm541_vm0, %v15975_v23  ;;  %v1282_v22 = vld [vmem:[%s21525_s15 + $0x111] sm:$0xff]  ;;  %v16006_v23 = vld [vmem:[%s21525_s15 + $0x261] sm:$0xff] }
  0x6f   : > { %19379 = vmatprep.mubr.msk.f32.mxu0 %vm541_vm0, %v1252_v24  ;;  %19435 = vmatprep.mubr.msk.f32.mxu1 %vm541_vm0, %v15976_v25  ;;  %v1283_v24 = vld [vmem:[%s21525_s15 + $0x119] sm:$0xff]  ;;  %v16007_v25 = vld [vmem:[%s21525_s15 + $0x269] sm:$0xff] }
  0x72   : > { %19380 = vmatmul.mubr.msk.f32.gmra.mxu0 %vm541_vm0, %v1253_v26  ;;  %19436 = vmatmul.mubr.msk.f32.gmra.mxu1 %vm541_vm0, %v15977_v27  ;;  %v2102_v26 = vld [vmem:[%s21525_s15 + $0x2] sm:$0xff] }
  0x73   : > { %19382 = vmatprep.mubr.msk.f32.mxu0 %vm541_vm0, %v1254_v28  ;;  %19438 = vmatprep.mubr.msk.f32.mxu1 %vm541_vm0, %v15978_v10  ;;  %v16082_v27 = vld [vmem:[%s21525_s15 + $0x2a0] sm:$0xff]  ;;  %v2103_v28 = vld [vmem:[%s21525_s15 + $0xa] sm:$0xff] }
  0x74   : > { %v16083_v10 = vld [vmem:[%s21525_s15 + $0x2a8] sm:$0xff] }
  0x76   : > { %19383 = vmatmul.mubr.msk.f32.gmra.mxu0 %vm541_vm0, %v1255_v29  ;;  %19439 = vmatmul.mubr.msk.f32.gmra.mxu1 %vm541_vm0, %v15979_v30  ;;  %v2104_v29 = vld [vmem:[%s21525_s15 + $0x12] sm:$0xff] }
  0x77   : > { %19385 = vmatprep.mubr.msk.f32.mxu0 %vm541_vm0, %v1256_v31  ;;  %19441 = vmatprep.mubr.msk.f32.mxu1 %vm541_vm0, %v15980_v32  ;;  %v16084_v30 = vld [vmem:[%s21525_s15 + $0x2b0] sm:$0xff]  ;;  %v21850_v31 = vld [vmem:[%s27193_s1 + $0x40] sm:$0xff] }
  0x78   : > { %v2105_v32 = vld [vmem:[%s21525_s15 + $0x1a] sm:$0xff] }
  0x7a   : > { %19386 = vmatmul.mubr.msk.f32.gmra.mxu0 %vm541_vm0, %v1257_v33  ;;  %19442 = vmatmul.mubr.msk.f32.gmra.mxu1 %vm541_vm0, %v15981_v34  ;;  %v16085_v33 = vld [vmem:[%s21525_s15 + $0x2b8] sm:$0xff]  ;;  %v2106_v34 = vld [vmem:[%s21525_s15 + $0x22] sm:$0xff] }
  0x7b   : > { %19388 = vmatprep.mubr.msk.f32.mxu0 %vm541_vm0, %v1258_v35  ;;  %19444 = vmatprep.mubr.msk.f32.mxu1 %vm541_vm0, %v15982_v36  ;;  %v16086_v35 = vld [vmem:[%s21525_s15 + $0x2c0] sm:$0xff]  ;;  %v2107_v36 = vld [vmem:[%s21525_s15 + $0x2a] sm:$0xff] }
  0x7e   : > { %19389 = vmatmul.mubr.msk.f32.gmra.mxu0 %vm541_vm0, %v1259_v38  ;;  %19445 = vmatmul.mubr.msk.f32.gmra.mxu1 %vm541_vm0, %v15983_v39  ;;  %v16087_v38 = vld [vmem:[%s21525_s15 + $0x2c8] sm:$0xff]  ;;  %v16088_v39 = vld [vmem:[%s21525_s15 + $0x2d0] sm:$0xff] }
  0x7f   : > { %19391 = vmatprep.mubr.msk.f32.mxu0 %vm541_vm0, %v1260_v40  ;;  %19447 = vmatprep.mubr.msk.f32.mxu1 %vm541_vm0, %v15984_v41  ;;  %v16089_v40 = vld [vmem:[%s21525_s15 + $0x2d8] sm:$0xff]  ;;  %v2110_v41 = vld [vmem:[%s21525_s15 + $0x42] sm:$0xff] }
  0x82   : > { %19392 = vmatmul.mubr.msk.f32.gmra.mxu0 %vm541_vm0, %v1261_v42  ;;  %19448 = vmatmul.mubr.msk.f32.gmra.mxu1 %vm541_vm0, %v15985_v43  ;;  %v16090_v42 = vld [vmem:[%s21525_s15 + $0x2e0] sm:$0xff]  ;;  %v2111_v43 = vld [vmem:[%s21525_s15 + $0x4a] sm:$0xff] }
  0x83   : > { %19394 = vmatprep.mubr.msk.f32.mxu0 %vm541_vm0, %v1262_v44  ;;  %19450 = vmatprep.mubr.msk.f32.mxu1 %vm541_vm0, %v15986_v45  ;;  %v16091_v44 = vld [vmem:[%s21525_s15 + $0x2e8] sm:$0xff]  ;;  %v2112_v45 = vld [vmem:[%s21525_s15 + $0x52] sm:$0xff] }
  0x86   : > { %19395 = vmatmul.mubr.msk.f32.gmra.mxu0 %vm541_vm0, %v1263_v46  ;;  %19451 = vmatmul.mubr.msk.f32.gmra.mxu1 %vm541_vm0, %v15987_v47  ;;  %v16092_v46 = vld [vmem:[%s21525_s15 + $0x2f0] sm:$0xff]  ;;  %v21888_v47 = vld [vmem:[%s27193_s1 + $0x48] sm:$0xff] }
  0x87   : > { %19397 = vmatprep.mubr.msk.f32.mxu0 %vm541_vm0, %v1264_v48  ;;  %19453 = vmatprep.mubr.msk.f32.mxu1 %vm541_vm0, %v15988_v49  ;;  %v2113_v48 = vld [vmem:[%s21525_s15 + $0x5a] sm:$0xff] }
  0x88   : > { %v16093_v49 = vld [vmem:[%s21525_s15 + $0x2f8] sm:$0xff] }
  0x8a   : > { %19398 = vmatmul.mubr.msk.f32.gmra.mxu0 %vm541_vm0, %v1265_v50  ;;  %19454 = vmatmul.mubr.msk.f32.gmra.mxu1 %vm541_vm0, %v15989_v51  ;;  %v2114_v50 = vld [vmem:[%s21525_s15 + $0x62] sm:$0xff] }
  0x8b   : > { %19400 = vmatprep.mubr.msk.f32.mxu0 %vm541_vm0, %v1266_v52  ;;  %19456 = vmatprep.mubr.msk.f32.mxu1 %vm541_vm0, %v15990_v53  ;;  %v16094_v51 = vld [vmem:[%s21525_s15 + $0x300] sm:$0xff]  ;;  %v2115_v52 = vld [vmem:[%s21525_s15 + $0x6a] sm:$0xff] }
  0x8c   : > { %v16095_v53 = vld [vmem:[%s21525_s15 + $0x308] sm:$0xff] }
  0x8e   : > { %19401 = vmatmul.mubr.msk.f32.gmra.mxu0 %vm541_vm0, %v1267_v54  ;;  %19457 = vmatmul.mubr.msk.f32.gmra.mxu1 %vm541_vm0, %v15991_v55  ;;  %v2116_v54 = vld [vmem:[%s21525_s15 + $0x72] sm:$0xff] }
  0x8f   : > { %19403 = vmatprep.mubr.msk.f32.mxu0 %vm541_vm0, %v1268_v56  ;;  %19459 = vmatprep.mubr.msk.f32.mxu1 %vm541_vm0, %v15992_v57  ;;  %v16096_v55 = vld [vmem:[%s21525_s15 + $0x310] sm:$0xff]  ;;  %v2117_v56 = vld [vmem:[%s21525_s15 + $0x7a] sm:$0xff] }
  0x90   : > { %v16097_v57 = vld [vmem:[%s21525_s15 + $0x318] sm:$0xff] }
  0x92   : > { %19404 = vmatmul.mubr.msk.f32.gmra.mxu0 %vm541_vm0, %v1269_v58  ;;  %19460 = vmatmul.mubr.msk.f32.gmra.mxu1 %vm541_vm0, %v15993_v59  ;;  %v2118_v58 = vld [vmem:[%s21525_s15 + $0x82] sm:$0xff] }
  0x93   : > { %19406 = vmatprep.mubr.msk.f32.mxu0 %vm541_vm0, %v1270_v60  ;;  %19462 = vmatprep.mubr.msk.f32.mxu1 %vm541_vm0, %v15994_v61  ;;  %v16098_v59 = vld [vmem:[%s21525_s15 + $0x320] sm:$0xff]  ;;  %v2119_v60 = vld [vmem:[%s21525_s15 + $0x8a] sm:$0xff] }
  0x94   : > { %v16099_v61 = vld [vmem:[%s21525_s15 + $0x328] sm:$0xff] }
  0x96   : > { %19407 = vmatmul.mubr.msk.f32.gmra.mxu0 %vm541_vm0, %v1271_v62  ;;  %19463 = vmatmul.mubr.msk.f32.gmra.mxu1 %vm541_vm0, %v15995_v63  ;;  %v2120_v62 = vld [vmem:[%s21525_s15 + $0x92] sm:$0xff] }
  0x97   : > { %19409 = vmatprep.mubr.msk.f32.mxu0 %vm541_vm0, %v1272_v0  ;;  %19465 = vmatprep.mubr.msk.f32.mxu1 %vm541_vm0, %v15996_v1  ;;  %v16100_v63 = vld [vmem:[%s21525_s15 + $0x330] sm:$0xff]  ;;  %v2121_v0 = vld [vmem:[%s21525_s15 + $0x9a] sm:$0xff] }
  0x98   : > { %v16101_v1 = vld [vmem:[%s21525_s15 + $0x338] sm:$0xff] }
  0x9a   : > { %19410 = vmatmul.mubr.msk.f32.gmra.mxu0 %vm541_vm0, %v1273_v2  ;;  %19466 = vmatmul.mubr.msk.f32.gmra.mxu1 %vm541_vm0, %v15997_v3  ;;  %v2122_v2 = vld [vmem:[%s21525_s15 + $0xa2] sm:$0xff] }
  0x9b   : > { %19412 = vmatprep.mubr.msk.f32.mxu0 %vm541_vm0, %v1274_v4  ;;  %19468 = vmatprep.mubr.msk.f32.mxu1 %vm541_vm0, %v15998_v5  ;;  %v16102_v3 = vld [vmem:[%s21525_s15 + $0x340] sm:$0xff]  ;;  %v2123_v4 = vld [vmem:[%s21525_s15 + $0xaa] sm:$0xff] }
  0x9c   : > { %v16103_v5 = vld [vmem:[%s21525_s15 + $0x348] sm:$0xff] }
  0x9e   : > { %19413 = vmatmul.mubr.msk.f32.gmra.mxu0 %vm541_vm0, %v1275_v6  ;;  %19469 = vmatmul.mubr.msk.f32.gmra.mxu1 %vm541_vm0, %v15999_v7  ;;  %v2124_v6 = vld [vmem:[%s21525_s15 + $0xb2] sm:$0xff] }
  0x9f   : > { %19415 = vmatprep.mubr.msk.f32.mxu0 %vm541_vm0, %v1276_v8  ;;  %19471 = vmatprep.mubr.msk.f32.mxu1 %vm541_vm0, %v16000_v9  ;;  %v16104_v7 = vld [vmem:[%s21525_s15 + $0x350] sm:$0xff]  ;;  %v2125_v8 = vld [vmem:[%s21525_s15 + $0xba] sm:$0xff] }
  0xa0   : > { %v16105_v9 = vld [vmem:[%s21525_s15 + $0x358] sm:$0xff] }
  0xa2   : > { %19416 = vmatmul.mubr.msk.f32.gmra.mxu0 %vm541_vm0, %v1277_v11  ;;  %19472 = vmatmul.mubr.msk.f32.gmra.mxu1 %vm541_vm0, %v16001_v12  ;;  %v2126_v11 = vld [vmem:[%s21525_s15 + $0xc2] sm:$0xff] }
  0xa3   : > { %19418 = vmatprep.mubr.msk.f32.mxu0 %vm541_vm0, %v1278_v13  ;;  %19474 = vmatprep.mubr.msk.f32.mxu1 %vm541_vm0, %v16002_v14  ;;  %v16106_v12 = vld [vmem:[%s21525_s15 + $0x360] sm:$0xff]  ;;  %v2127_v13 = vld [vmem:[%s21525_s15 + $0xca] sm:$0xff] }
  0xa4   : > { %v16107_v14 = vld [vmem:[%s21525_s15 + $0x368] sm:$0xff] }
  0xa6   : > { %19419 = vmatmul.mubr.msk.f32.gmra.mxu0 %vm541_vm0, %v1279_v15  ;;  %19475 = vmatmul.mubr.msk.f32.gmra.mxu1 %vm541_vm0, %v16003_v16  ;;  %v2128_v15 = vld [vmem:[%s21525_s15 + $0xd2] sm:$0xff] }
  0xa7   : > { %19421 = vmatprep.mubr.msk.f32.mxu0 %vm541_vm0, %v1280_v17  ;;  %19477 = vmatprep.mubr.msk.f32.mxu1 %vm541_vm0, %v16004_v18  ;;  %v16108_v16 = vld [vmem:[%s21525_s15 + $0x370] sm:$0xff] }
  0xaa   : > { %19422 = vmatmul.mubr.msk.f32.gmra.mxu0 %vm541_vm0, %v1281_v19  ;;  %19478 = vmatmul.mubr.msk.f32.gmra.mxu1 %vm541_vm0, %v16005_v20  ;;  %v2129_v20 = vld [vmem:[%s21525_s15 + $0xda] sm:$0xff] }
  0xab   : > { %19424 = vmatprep.mubr.msk.f32.mxu0 %vm541_vm0, %v1282_v22  ;;  %19480 = vmatprep.mubr.msk.f32.mxu1 %vm541_vm0, %v16006_v23  ;;  %v16109_v22 = vld [vmem:[%s21525_s15 + $0x378] sm:$0xff] }
  0xae   : > { %19425 = vmatmul.mubr.msk.f32.gmra.mxu0 %vm541_vm0, %v1283_v24  ;;  %19481 = vmatmul.mubr.msk.f32.gmra.mxu1 %vm541_vm0, %v16007_v25  ;;  %v2130_v25 = vld [vmem:[%s21525_s15 + $0xe2] sm:$0xff] }
  0xaf   : > { %19485 = vmatprep.mubr.msk.f32.mxu0 %vm541_vm0, %v2102_v26  ;;  %19541 = vmatprep.mubr.msk.f32.mxu1 %vm541_vm0, %v16082_v27  ;;  %v16110_v26 = vld [vmem:[%s21525_s15 + $0x380] sm:$0xff] }
  0xb2   : > { %19486 = vmatmul.mubr.msk.f32.vlgmr.msra.gmra.mxu0 %vm541_vm0, %v2103_v28  ;;  %19542 = vmatmul.mubr.msk.f32.vlgmr.msra.gmra.mxu1 %vm541_vm0, %v16083_v10 }
  0xb3   : > { %19488 = vmatprep.mubr.msk.f32.mxu0 %vm541_vm0, %v2104_v29  ;;  %19544 = vmatprep.mubr.msk.f32.mxu1 %vm541_vm0, %v16084_v30  ;;  %v2131_v30 = vld [vmem:[%s21525_s15 + $0xea] sm:$0xff] }
  0xb4   : > { %19596 = vmatpush3.msra.mxu0 %v21693_v21  ;;  %19652 = vmatpush3.msra.mxu1 %v21730_v37  ;;  %v2108_v21 = vld [vmem:[%s21525_s15 + $0x32] sm:$0xff]  ;;  %v2109_v37 = vld [vmem:[%s21525_s15 + $0x3a] sm:$0xff] }
  0xb5   : > { %19707 = vmatprep.subr.mxu0 %v21850_v31  ;;  %19763 = vmatprep.subr.mxu1 %v21888_v47 }
  0xb6   : > { %19489 = vmatmul.mubr.msk.f32.gmra.mxu0 %vm541_vm0, %v2105_v32  ;;  %19545 = vmatmul.mubr.msk.f32.gmra.mxu1 %vm541_vm0, %v16085_v33  ;;  %v16111_v32 = vld [vmem:[%s21525_s15 + $0x388] sm:$0xff] }
  0xb7   : > { %19491 = vmatprep.mubr.msk.f32.mxu0 %vm541_vm0, %v2106_v34  ;;  %19547 = vmatprep.mubr.msk.f32.mxu1 %vm541_vm0, %v16086_v35  ;;  %v2132_v35 = vld [vmem:[%s21525_s15 + $0xf2] sm:$0xff] }
  0xba   : > { %19492 = vmatmul.mubr.msk.f32.gmra.mxu0 %vm541_vm0, %v2107_v36  ;;  %19548 = vmatmul.mubr.msk.f32.gmra.mxu1 %vm541_vm0, %v16087_v38  ;;  %v16112_v36 = vld [vmem:[%s21525_s15 + $0x390] sm:$0xff] }
  0xbb   : > { %19494 = vmatprep.mubr.msk.f32.mxu0 %vm541_vm0, %v2108_v21  ;;  %19550 = vmatprep.mubr.msk.f32.mxu1 %vm541_vm0, %v16088_v39 }
  0xbe   : > { %19495 = vmatmul.mubr.msk.f32.gmra.mxu0 %vm541_vm0, %v2109_v37  ;;  %19551 = vmatmul.mubr.msk.f32.gmra.mxu1 %vm541_vm0, %v16089_v40  ;;  %v2133_v40 = vld [vmem:[%s21525_s15 + $0xfa] sm:$0xff] }
  0xbf   : > { %19497 = vmatprep.mubr.msk.f32.mxu0 %vm541_vm0, %v2110_v41  ;;  %19553 = vmatprep.mubr.msk.f32.mxu1 %vm541_vm0, %v16090_v42  ;;  %v16113_v41 = vld [vmem:[%s21525_s15 + $0x398] sm:$0xff] }
  0xc2   : > { %19498 = vmatmul.mubr.msk.f32.gmra.mxu0 %vm541_vm0, %v2111_v43  ;;  %19554 = vmatmul.mubr.msk.f32.gmra.mxu1 %vm541_vm0, %v16091_v44  ;;  %v2134_v44 = vld [vmem:[%s21525_s15 + $0x102] sm:$0xff] }
  0xc3   : > { %19500 = vmatprep.mubr.msk.f32.mxu0 %vm541_vm0, %v2112_v45  ;;  %19556 = vmatprep.mubr.msk.f32.mxu1 %vm541_vm0, %v16092_v46  ;;  %v16114_v45 = vld [vmem:[%s21525_s15 + $0x3a0] sm:$0xff] }
  0xc6   : > { %19501 = vmatmul.mubr.msk.f32.gmra.mxu0 %vm541_vm0, %v2113_v48  ;;  %19557 = vmatmul.mubr.msk.f32.gmra.mxu1 %vm541_vm0, %v16093_v49 }
  0xc7   : > { %19503 = vmatprep.mubr.msk.f32.mxu0 %vm541_vm0, %v2114_v50  ;;  %19559 = vmatprep.mubr.msk.f32.mxu1 %vm541_vm0, %v16094_v51  ;;  %v2135_v51 = vld [vmem:[%s21525_s15 + $0x10a] sm:$0xff] }
  0xca   : > { %19504 = vmatmul.mubr.msk.f32.gmra.mxu0 %vm541_vm0, %v2115_v52  ;;  %19560 = vmatmul.mubr.msk.f32.gmra.mxu1 %vm541_vm0, %v16095_v53  ;;  %v16115_v52 = vld [vmem:[%s21525_s15 + $0x3a8] sm:$0xff] }
  0xcb   : > { %19506 = vmatprep.mubr.msk.f32.mxu0 %vm541_vm0, %v2116_v54  ;;  %19562 = vmatprep.mubr.msk.f32.mxu1 %vm541_vm0, %v16096_v55  ;;  %v2136_v55 = vld [vmem:[%s21525_s15 + $0x112] sm:$0xff] }
  0xce   : > { %19507 = vmatmul.mubr.msk.f32.gmra.mxu0 %vm541_vm0, %v2117_v56  ;;  %19563 = vmatmul.mubr.msk.f32.gmra.mxu1 %vm541_vm0, %v16097_v57  ;;  %v16116_v56 = vld [vmem:[%s21525_s15 + $0x3b0] sm:$0xff] }
  0xcf   : > { %19509 = vmatprep.mubr.msk.f32.mxu0 %vm541_vm0, %v2118_v58  ;;  %19565 = vmatprep.mubr.msk.f32.mxu1 %vm541_vm0, %v16098_v59 }
  0xd2   : > { %19510 = vmatmul.mubr.msk.f32.gmra.mxu0 %vm541_vm0, %v2119_v60  ;;  %19566 = vmatmul.mubr.msk.f32.gmra.mxu1 %vm541_vm0, %v16099_v61  ;;  %v2137_v61 = vld [vmem:[%s21525_s15 + $0x11a] sm:$0xff] }
  0xd3   : > { %19512 = vmatprep.mubr.msk.f32.mxu0 %vm541_vm0, %v2120_v62  ;;  %19568 = vmatprep.mubr.msk.f32.mxu1 %vm541_vm0, %v16100_v63  ;;  %v16117_v62 = vld [vmem:[%s21525_s15 + $0x3b8] sm:$0xff] }
  0xd6   : > { %19513 = vmatmul.mubr.msk.f32.gmra.mxu0 %vm541_vm0, %v2121_v0  ;;  %19569 = vmatmul.mubr.msk.f32.gmra.mxu1 %vm541_vm0, %v16101_v1  ;;  %v16155_v1 = vld [vmem:[%s21525_s15 + $0x3f0] sm:$0xff] }
  0xd7   : > { %19515 = vmatprep.mubr.msk.f32.mxu0 %vm541_vm0, %v2122_v2  ;;  %19571 = vmatprep.mubr.msk.f32.mxu1 %vm541_vm0, %v16102_v3  ;;  %v16228_v2 = vld [vmem:[%s21525_s15 + $0x2a1] sm:$0xff] }
  0xda   : > { %19516 = vmatmul.mubr.msk.f32.gmra.mxu0 %vm541_vm0, %v2123_v4  ;;  %19572 = vmatmul.mubr.msk.f32.gmra.mxu1 %vm541_vm0, %v16103_v5 }
  0xdb   : > { %19518 = vmatprep.mubr.msk.f32.mxu0 %vm541_vm0, %v2124_v6  ;;  %19574 = vmatprep.mubr.msk.f32.mxu1 %vm541_vm0, %v16104_v7  ;;  %v16156_v7 = vld [vmem:[%s21525_s15 + $0x3f8] sm:$0xff] }
  0xde   : > { %19519 = vmatmul.mubr.msk.f32.gmra.mxu0 %vm541_vm0, %v2125_v8  ;;  %19575 = vmatmul.mubr.msk.f32.gmra.mxu1 %vm541_vm0, %v16105_v9  ;;  %v16229_v8 = vld [vmem:[%s21525_s15 + $0x2a9] sm:$0xff] }
  0xdf   : > { %19521 = vmatprep.mubr.msk.f32.mxu0 %vm541_vm0, %v2126_v11  ;;  %19577 = vmatprep.mubr.msk.f32.mxu1 %vm541_vm0, %v16106_v12  ;;  %v16157_v12 = vld [vmem:[%s21525_s15 + $0x400] sm:$0xff] }
  0xe2   : > { %v19263_v17 = vpop.f32.mrf.mxu0  ;;  %v19319_v18 = vpop.f32.mrf.mxu1  ;;  %19522 = vmatmul.mubr.msk.f32.gmra.mxu0 %vm541_vm0, %v2127_v13  ;;  %19578 = vmatmul.mubr.msk.f32.gmra.mxu1 %vm541_vm0, %v16107_v14  ;;  %v16230_v13 = vld [vmem:[%s21525_s15 + $0x2b1] sm:$0xff] }
  0xe3   : > { %v21957_v19 = vadd.f32 %v19319_v18, %v19263_v17  ;;  %19524 = vmatprep.mubr.msk.f32.mxu0 %vm541_vm0, %v2128_v15  ;;  %19580 = vmatprep.mubr.msk.f32.mxu1 %vm541_vm0, %v16108_v16  ;;  %v22032_v17 = vld [vmem:[%s27193_s1 + $0x50] sm:$0xff] }
  0xe4   : > { %v716_v23 = vpop.f32.mrf.mxu0  ;;  %v1069_v24 = vpop.f32.mrf.mxu1 }
  0xe5   : > { %v21965_v27 = vadd.f32 %v1069_v24, %v716_v23 }
  0xe6   : > { %v19266_v28 = vpop.f32.mrf.mxu0  ;;  %v19322_v10 = vpop.f32.mrf.mxu1  ;;  %19525 = vmatmul.mubr.msk.f32.gmra.mxu0 %vm541_vm0, %v2129_v20  ;;  %19581 = vmatmul.mubr.msk.f32.gmra.mxu1 %vm541_vm0, %v16109_v22  ;;  %v16158_v20 = vld [vmem:[%s21525_s15 + $0x408] sm:$0xff]  ;;  %v16231_v22 = vld [vmem:[%s21525_s15 + $0x2b9] sm:$0xff] }
  0xe7   : > { %v21969_v29 = vadd.f32 %v19322_v10, %v19266_v28  ;;  %19527 = vmatprep.mubr.msk.f32.mxu0 %vm541_vm0, %v2130_v25  ;;  %19583 = vmatprep.mubr.msk.f32.mxu1 %vm541_vm0, %v16110_v26  ;;  %v16159_v25 = vld [vmem:[%s21525_s15 + $0x410] sm:$0xff]  ;;  %v16232_v26 = vld [vmem:[%s21525_s15 + $0x2c1] sm:$0xff] }
  0xe8   : > { %v726_v33 = vpop.f32.mrf.mxu0  ;;  %v1079_v34 = vpop.f32.mrf.mxu1 }
  0xe9   : > { %v21977_v38 = vadd.f32 %v1079_v34, %v726_v33  ;;  %v16160_v33 = vld [vmem:[%s21525_s15 + $0x418] sm:$0xff] }
  0xea   : > { %v19269_v21 = vpop.f32.mrf.mxu0  ;;  %v19325_v39 = vpop.f32.mrf.mxu1  ;;  %19528 = vmatmul.mubr.msk.f32.gmra.mxu0 %vm541_vm0, %v2131_v30  ;;  %19584 = vmatmul.mubr.msk.f32.gmra.mxu1 %vm541_vm0, %v16111_v32 }
  0xeb   : > { %v21981_v37 = vadd.f32 %v19325_v39, %v19269_v21  ;;  %19530 = vmatprep.mubr.msk.f32.mxu0 %vm541_vm0, %v2132_v35  ;;  %19586 = vmatprep.mubr.msk.f32.mxu1 %vm541_vm0, %v16112_v36  ;;  %v16161_v35 = vld [vmem:[%s21525_s15 + $0x420] sm:$0xff]  ;;  %v16234_v36 = vld [vmem:[%s21525_s15 + $0x2d1] sm:$0xff] }
  0xec   : > { %v736_v42 = vpop.f32.mrf.mxu0  ;;  %v1089_v43 = vpop.f32.mrf.mxu1 }
  0xed   : > { %v21989_v46 = vadd.f32 %v1089_v43, %v736_v42  ;;  %v16162_v42 = vld [vmem:[%s21525_s15 + $0x428] sm:$0xff]  ;;  %v16235_v43 = vld [vmem:[%s21525_s15 + $0x2d9] sm:$0xff] }
  0xee   : > { %v19272_v48 = vpop.f32.mrf.mxu0  ;;  %v19328_v49 = vpop.f32.mrf.mxu1  ;;  %19531 = vmatmul.mubr.msk.f32.gmra.mxu0 %vm541_vm0, %v2133_v40  ;;  %19587 = vmatmul.mubr.msk.f32.gmra.mxu1 %vm541_vm0, %v16113_v41 }
  0xef   : > { %v21993_v50 = vadd.f32 %v19328_v49, %v19272_v48  ;;  %19533 = vmatprep.mubr.msk.f32.mxu0 %vm541_vm0, %v2134_v44  ;;  %19589 = vmatprep.mubr.msk.f32.mxu1 %vm541_vm0, %v16114_v45  ;;  %v16163_v48 = vld [vmem:[%s21525_s15 + $0x430] sm:$0xff]  ;;  %v16236_v49 = vld [vmem:[%s21525_s15 + $0x2e1] sm:$0xff] }
  0xf0   : > { %v746_v53 = vpop.f32.mrf.mxu0  ;;  %v1099_v54 = vpop.f32.mrf.mxu1 }
  0xf1   : > { %v22001_v57 = vadd.f32 %v1099_v54, %v746_v53 }
  0xf2   : > { %v19275_v58 = vpop.f32.mrf.mxu0  ;;  %v19331_v59 = vpop.f32.mrf.mxu1  ;;  %19534 = vmatmul.mubr.msk.f32.gmra.mxu0 %vm541_vm0, %v2135_v51  ;;  %19590 = vmatmul.mubr.msk.f32.gmra.mxu1 %vm541_vm0, %v16115_v52 }
  0xf3   : > { %v22005_v60 = vadd.f32 %v19331_v59, %v19275_v58  ;;  %19536 = vmatprep.mubr.msk.f32.mxu0 %vm541_vm0, %v2136_v55  ;;  %19592 = vmatprep.mubr.msk.f32.mxu1 %vm541_vm0, %v16116_v56  ;;  %v16164_v55 = vld [vmem:[%s21525_s15 + $0x438] sm:$0xff]  ;;  %v16237_v56 = vld [vmem:[%s21525_s15 + $0x2e9] sm:$0xff] }
  0xf4   : > { %v756_v63 = vpop.f32.mrf.mxu0  ;;  %v1109_v0 = vpop.f32.mrf.mxu1 }
  0xf5   : > { %v22013_v3 = vadd.f32 %v1109_v0, %v756_v63  ;;  %v22086_v0 = vld [vmem:[%s27193_s1 + $0x58] sm:$0xff] }
  0xf6   : > { %v19278_v4 = vpop.f32.mrf.mxu0  ;;  %v19334_v5 = vpop.f32.mrf.mxu1  ;;  %19537 = vmatmul.mubr.msk.f32.gmra.mxu0 %vm541_vm0, %v2137_v61  ;;  %19593 = vmatmul.mubr.msk.f32.gmra.mxu1 %vm541_vm0, %v16117_v62  ;;  %v16165_v61 = vld [vmem:[%s21525_s15 + $0x440] sm:$0xff]  ;;  %v16238_v62 = vld [vmem:[%s21525_s15 + $0x2f1] sm:$0xff] }
  0xf7   : > { %v22017_v6 = vadd.f32 %v19334_v5, %v19278_v4  ;;  %19597 = vmatprep.mubr.msk.f32.mxu0 %vm541_vm0, %v16155_v1  ;;  %19653 = vmatprep.mubr.msk.f32.mxu1 %vm541_vm0, %v16228_v2  ;;  %v16166_v5 = vld [vmem:[%s21525_s15 + $0x448] sm:$0xff] }
  0xf8   : > { %v766_v9 = vpop.f32.mrf.mxu0  ;;  %v1119_v11 = vpop.f32.mrf.mxu1 }
  0xf9   : > { %v22025_v14 = vadd.f32 %v1119_v11, %v766_v9  ;;  %v16167_v11 = vld [vmem:[%s21525_s15 + $0x450] sm:$0xff] }
  0xfa   : > { %v19281_v15 = vpop.f32.mrf.mxu0  ;;  %v19337_v16 = vpop.f32.mrf.mxu1  ;;  %19598 = vmatmul.mubr.msk.f32.vlgmr.msra.gmra.mxu0 %vm541_vm0, %v16156_v7  ;;  %19654 = vmatmul.mubr.msk.f32.vlgmr.msra.gmra.mxu1 %vm541_vm0, %v16229_v8  ;;  %v16239_v7 = vld [vmem:[%s21525_s15 + $0x2f9] sm:$0xff] }
  0xfb   : > { %v22034_v18 = vadd.f32 %v19337_v16, %v19281_v15  ;;  %19600 = vmatprep.mubr.msk.f32.mxu0 %vm541_vm0, %v16157_v12  ;;  %19656 = vmatprep.mubr.msk.f32.mxu1 %vm541_vm0, %v16230_v13  ;;  %v16240_v12 = vld [vmem:[%s21525_s15 + $0x301] sm:$0xff] }
  0xfc   : > { %v776_v23 = vpop.f32.mrf.mxu0  ;;  %v1129_v24 = vpop.f32.mrf.mxu1  ;;  %19708 = vmatpush3.msra.mxu0 %v21850_v31  ;;  %19764 = vmatpush3.msra.mxu1 %v21888_v47  ;;  %v16233_v31 = vld [vmem:[%s21525_s15 + $0x2c9] sm:$0xff] }
  0xfd   : > { %v22044_v28 = vadd.f32 %v1129_v24, %v776_v23  ;;  %19819 = vmatprep.subr.mxu0 %v22032_v17  ;;  %19875 = vmatprep.subr.mxu1 %v22086_v0  ;;  %v16241_v23 = vld [vmem:[%s21525_s15 + $0x309] sm:$0xff] }
  0xfe   : > { %v19284_v10 = vpop.f32.mrf.mxu0  ;;  %v19340_v30 = vpop.f32.mrf.mxu1  ;;  %19601 = vmatmul.mubr.msk.f32.gmra.mxu0 %vm541_vm0, %v16158_v20  ;;  %19657 = vmatmul.mubr.msk.f32.gmra.mxu1 %vm541_vm0, %v16231_v22  ;;  %v16168_v22 = vld [vmem:[%s21525_s15 + $0x458] sm:$0xff] }
  0xff   : > { %v22049_v32 = vadd.f32 %v19340_v30, %v19284_v10  ;;  %19603 = vmatprep.mubr.msk.f32.mxu0 %vm541_vm0, %v16159_v25  ;;  %19659 = vmatprep.mubr.msk.f32.mxu1 %vm541_vm0, %v16232_v26  ;;  %v16169_v26 = vld [vmem:[%s21525_s15 + $0x460] sm:$0xff]  ;;  %v16242_v10 = vld [vmem:[%s21525_s15 + $0x311] sm:$0xff] }
 0x100   : > { %v786_v47 = vpop.f32.mrf.mxu0  ;;  %v1139_v34 = vpop.f32.mrf.mxu1 }
 0x101   : > { %v22057_v21 = vadd.f32 %v1139_v34, %v786_v47  ;;  %v16170_v34 = vld [vmem:[%s21525_s15 + $0x468] sm:$0xff] }
 0x102   : > { %v19287_v39 = vpop.f32.mrf.mxu0  ;;  %v19343_v40 = vpop.f32.mrf.mxu1  ;;  %19604 = vmatmul.mubr.msk.f32.gmra.mxu0 %vm541_vm0, %v16160_v33  ;;  %19660 = vmatmul.mubr.msk.f32.gmra.mxu1 %vm541_vm0, %v16233_v31 }
 0x103   : > { %v22061_v41 = vadd.f32 %v19343_v40, %v19287_v39  ;;  %19606 = vmatprep.mubr.msk.f32.mxu0 %vm541_vm0, %v16161_v35  ;;  %19662 = vmatprep.mubr.msk.f32.mxu1 %vm541_vm0, %v16234_v36  ;;  %v16243_v35 = vld [vmem:[%s21525_s15 + $0x319] sm:$0xff]  ;;  %v16171_v40 = vld [vmem:[%s21525_s15 + $0x470] sm:$0xff] }
 0x104   : > { %v796_v44 = vpop.f32.mrf.mxu0  ;;  %v1149_v45 = vpop.f32.mrf.mxu1 }
 0x105   : > { %v22069_v51 = vadd.f32 %v1149_v45, %v796_v44 }
 0x106   : > { %v19290_v52 = vpop.f32.mrf.mxu0  ;;  %v19346_v53 = vpop.f32.mrf.mxu1  ;;  %19607 = vmatmul.mubr.msk.f32.gmra.mxu0 %vm541_vm0, %v16162_v42  ;;  %19663 = vmatmul.mubr.msk.f32.gmra.mxu1 %vm541_vm0, %v16235_v43  ;;  %v16244_v42 = vld [vmem:[%s21525_s15 + $0x321] sm:$0xff] }
 0x107   : > { %v22073_v54 = vadd.f32 %v19346_v53, %v19290_v52  ;;  %19609 = vmatprep.mubr.msk.f32.mxu0 %vm541_vm0, %v16163_v48  ;;  %19665 = vmatprep.mubr.msk.f32.mxu1 %vm541_vm0, %v16236_v49  ;;  %v16172_v49 = vld [vmem:[%s21525_s15 + $0x478] sm:$0xff]  ;;  %v16245_v52 = vld [vmem:[%s21525_s15 + $0x329] sm:$0xff] }
 0x108   : > { %v806_v58 = vpop.f32.mrf.mxu0  ;;  %v1159_v59 = vpop.f32.mrf.mxu1 }
 0x109   : > { %v22081_v63 = vadd.f32 %v1159_v59, %v806_v58  ;;  %v16246_v58 = vld [vmem:[%s21525_s15 + $0x331] sm:$0xff] }
 0x10a   : > { %v19293_v1 = vpop.f32.mrf.mxu0  ;;  %v19349_v2 = vpop.f32.mrf.mxu1  ;;  %19610 = vmatmul.mubr.msk.f32.gmra.mxu0 %vm541_vm0, %v16164_v55  ;;  %19666 = vmatmul.mubr.msk.f32.gmra.mxu1 %vm541_vm0, %v16237_v56  ;;  %v16173_v56 = vld [vmem:[%s21525_s15 + $0x480] sm:$0xff] }
 0x10b   : > { %v22090_v4 = vadd.f32 %v19349_v2, %v19293_v1  ;;  %19612 = vmatprep.mubr.msk.f32.mxu0 %vm541_vm0, %v16165_v61  ;;  %19668 = vmatprep.mubr.msk.f32.mxu1 %vm541_vm0, %v16238_v62  ;;  %v16174_v2 = vld [vmem:[%s21525_s15 + $0x488] sm:$0xff] }
 0x10c   : > { %v816_v8 = vpop.f32.mrf.mxu0  ;;  %v1169_v9 = vpop.f32.mrf.mxu1 }
 0x10d   : > { %v22099_v13 = vadd.f32 %v1169_v9, %v816_v8  ;;  %v16175_v9 = vld [vmem:[%s21525_s15 + $0x490] sm:$0xff] }
 0x10e   : > { %v19296_v15 = vpop.f32.mrf.mxu0  ;;  %v19352_v16 = vpop.f32.mrf.mxu1  ;;  %19613 = vmatmul.mubr.msk.f32.gmra.mxu0 %vm541_vm0, %v16166_v5  ;;  %19669 = vmatmul.mubr.msk.f32.gmra.mxu1 %vm541_vm0, %v16239_v7  ;;  %v16247_v5 = vld [vmem:[%s21525_s15 + $0x339] sm:$0xff] }
 0x10f   : > { %v22103_v20 = vadd.f32 %v19352_v16, %v19296_v15  ;;  %19615 = vmatprep.mubr.msk.f32.mxu0 %vm541_vm0, %v16167_v11  ;;  %19671 = vmatprep.mubr.msk.f32.mxu1 %vm541_vm0, %v16240_v12  ;;  %v16248_v11 = vld [vmem:[%s21525_s15 + $0x341] sm:$0xff] }
 0x110   : > { %v826_v24 = vpop.f32.mrf.mxu0  ;;  %v1179_v25 = vpop.f32.mrf.mxu1 }
 0x111   : > { %v22111_v30 = vadd.f32 %v1179_v25, %v826_v24  ;;  %v16249_v24 = vld [vmem:[%s21525_s15 + $0x349] sm:$0xff] }
 0x112   : > { %v19299_v33 = vpop.f32.mrf.mxu0  ;;  %v19355_v31 = vpop.f32.mrf.mxu1  ;;  %19616 = vmatmul.mubr.msk.f32.gmra.mxu0 %vm541_vm0, %v16168_v22  ;;  %19672 = vmatmul.mubr.msk.f32.gmra.mxu1 %vm541_vm0, %v16241_v23  ;;  %v16176_v23 = vld [vmem:[%s21525_s15 + $0x498] sm:$0xff] }
 0x113   : > { %v22115_v47 = vadd.f32 %v19355_v31, %v19299_v33  ;;  %19618 = vmatprep.mubr.msk.f32.mxu0 %vm541_vm0, %v16169_v26  ;;  %19674 = vmatprep.mubr.msk.f32.mxu1 %vm541_vm0, %v16242_v10  ;;  %v16177_v10 = vld [vmem:[%s21525_s15 + $0x4a0] sm:$0xff]  ;;  %v16250_v33 = vld [vmem:[%s21525_s15 + $0x351] sm:$0xff] }
 0x114   : > { %v836_v36 = vpop.f32.mrf.mxu0  ;;  %v1189_v39 = vpop.f32.mrf.mxu1 }
 0x115   : > { %v22123_v43 = vadd.f32 %v1189_v39, %v836_v36  ;;  %v16178_v39 = vld [vmem:[%s21525_s15 + $0x4a8] sm:$0xff] }
 0x116   : > { %v19302_v44 = vpop.f32.mrf.mxu0  ;;  %v19358_v45 = vpop.f32.mrf.mxu1  ;;  %19619 = vmatmul.mubr.msk.f32.gmra.mxu0 %vm541_vm0, %v16170_v34  ;;  %19675 = vmatmul.mubr.msk.f32.gmra.mxu1 %vm541_vm0, %v16243_v35 }
 0x117   : > { %v22127_v48 = vadd.f32 %v19358_v45, %v19302_v44  ;;  %19621 = vmatprep.mubr.msk.f32.mxu0 %vm541_vm0, %v16171_v40  ;;  %19677 = vmatprep.mubr.msk.f32.mxu1 %vm541_vm0, %v16244_v42  ;;  %v16251_v40 = vld [vmem:[%s21525_s15 + $0x359] sm:$0xff]  ;;  %v16179_v45 = vld [vmem:[%s21525_s15 + $0x4b0] sm:$0xff] }
 0x118   : > { %v846_v53 = vpop.f32.mrf.mxu0  ;;  %v1199_v55 = vpop.f32.mrf.mxu1 }
 0x119   : > { %v22135_v59 = vadd.f32 %v1199_v55, %v846_v53 }
 0x11a   : > { %v19305_v61 = vpop.f32.mrf.mxu0  ;;  %v19361_v62 = vpop.f32.mrf.mxu1  ;;  %19622 = vmatmul.mubr.msk.f32.gmra.mxu0 %vm541_vm0, %v16172_v49  ;;  %19678 = vmatmul.mubr.msk.f32.gmra.mxu1 %vm541_vm0, %v16245_v52  ;;  %v16252_v49 = vld [vmem:[%s21525_s15 + $0x361] sm:$0xff] }
 0x11b   : > { %v22139_v1 = vadd.f32 %v19361_v62, %v19305_v61  ;;  %19624 = vmatprep.mubr.msk.f32.mxu0 %vm541_vm0, %v16173_v56  ;;  %19680 = vmatprep.mubr.msk.f32.mxu1 %vm541_vm0, %v16246_v58  ;;  %v16180_v58 = vld [vmem:[%s21525_s15 + $0x4b8] sm:$0xff]  ;;  %v16253_v61 = vld [vmem:[%s21525_s15 + $0x369] sm:$0xff] }
 0x11c   : > { %v856_v7 = vpop.f32.mrf.mxu0  ;;  %v1209_v8 = vpop.f32.mrf.mxu1 }
 0x11d   : > { %v22147_v12 = vadd.f32 %v1209_v8, %v856_v7  ;;  %v16254_v7 = vld [vmem:[%s21525_s15 + $0x371] sm:$0xff] }
 0x11e   : > { %v19308_v15 = vpop.f32.mrf.mxu0  ;;  %v19364_v16 = vpop.f32.mrf.mxu1  ;;  %19625 = vmatmul.mubr.msk.f32.gmra.mxu0 %vm541_vm0, %v16174_v2  ;;  %19681 = vmatmul.mubr.msk.f32.gmra.mxu1 %vm541_vm0, %v16247_v5  ;;  %v16181_v5 = vld [vmem:[%s21525_s15 + $0x4c0] sm:$0xff] }
 0x11f   : > { %v22151_v22 = vadd.f32 %v19364_v16, %v19308_v15  ;;  %19627 = vmatprep.mubr.msk.f32.mxu0 %vm541_vm0, %v16175_v9  ;;  %19683 = vmatprep.mubr.msk.f32.mxu1 %vm541_vm0, %v16248_v11  ;;  %v16182_v16 = vld [vmem:[%s21525_s15 + $0x4c8] sm:$0xff] }
 0x120   : > { %v866_v25 = vpop.f32.mrf.mxu0  ;;  %v1219_v26 = vpop.f32.mrf.mxu1 }
 0x121   : > { %v22159_v31 = vadd.f32 %v1219_v26, %v866_v25  ;;  %v16183_v26 = vld [vmem:[%s21525_s15 + $0x4d0] sm:$0xff] }
 0x122   : > { %v19311_v34 = vpop.f32.mrf.mxu0  ;;  %v19367_v35 = vpop.f32.mrf.mxu1  ;;  %19628 = vmatmul.mubr.msk.f32.gmra.mxu0 %vm541_vm0, %v16176_v23  ;;  %19684 = vmatmul.mubr.msk.f32.gmra.mxu1 %vm541_vm0, %v16249_v24  ;;  %v16255_v23 = vld [vmem:[%s21525_s15 + $0x379] sm:$0xff] }
 0x123   : > { %v22163_v36 = vadd.f32 %v19367_v35, %v19311_v34  ;;  %19630 = vmatprep.mubr.msk.f32.mxu0 %vm541_vm0, %v16177_v10  ;;  %19686 = vmatprep.mubr.msk.f32.mxu1 %vm541_vm0, %v16250_v33  ;;  %v16256_v10 = vld [vmem:[%s21525_s15 + $0x381] sm:$0xff] }
 0x124   : > { %v876_v42 = vpop.f32.mrf.mxu0  ;;  %v1229_v44 = vpop.f32.mrf.mxu1 }
 0x125   : > { %v22171_v52 = vadd.f32 %v1229_v44, %v876_v42  ;;  %v16184_v42 = vld [vmem:[%s21525_s15 + $0x4d8] sm:$0xff]  ;;  %v16257_v44 = vld [vmem:[%s21525_s15 + $0x389] sm:$0xff] }
 0x126   : > { %v19314_v53 = vpop.f32.mrf.mxu0  ;;  %v19370_v55 = vpop.f32.mrf.mxu1  ;;  %19631 = vmatmul.mubr.msk.f32.gmra.mxu0 %vm541_vm0, %v16178_v39  ;;  %19687 = vmatmul.mubr.msk.f32.gmra.mxu1 %vm541_vm0, %v16251_v40 }
 0x127   : > { %v22175_v56 = vadd.f32 %v19370_v55, %v19314_v53  ;;  %19633 = vmatprep.mubr.msk.f32.mxu0 %vm541_vm0, %v16179_v45  ;;  %19689 = vmatprep.mubr.msk.f32.mxu1 %vm541_vm0, %v16252_v49  ;;  %v16185_v49 = vld [vmem:[%s21525_s15 + $0x4e0] sm:$0xff]  ;;  %v16258_v53 = vld [vmem:[%s21525_s15 + $0x391] sm:$0xff] }
 0x128   : > { %v886_v62 = vpop.f32.mrf.mxu0  ;;  %v1239_v2 = vpop.f32.mrf.mxu1 }
 0x129   : > { %v22183_v8 = vadd.f32 %v1239_v2, %v886_v62 }
 0x12a   : > { %v19375_v9 = vpop.f32.mrf.mxu0  ;;  %19634 = vmatmul.mubr.msk.f32.gmra.mxu0 %vm541_vm0, %v16180_v58  ;;  %v19431_v11 = vpop.f32.mrf.mxu1  ;;  %19690 = vmatmul.mubr.msk.f32.gmra.mxu1 %vm541_vm0, %v16253_v61 }
 0x12b   : > { %v1640_v15 = vadd.f32 %v19375_v9, %v21957_v19  ;;  %19636 = vmatprep.mubr.msk.f32.mxu0 %vm541_vm0, %v16181_v5  ;;  %19692 = vmatprep.mubr.msk.f32.mxu1 %vm541_vm0, %v16254_v7  ;;  %v16186_v5 = vld [vmem:[%s21525_s15 + $0x4e8] sm:$0xff]  ;;  %v16259_v7 = vld [vmem:[%s21525_s15 + $0x399] sm:$0xff] }
 0x12c   : > { %v1460_v24 = vpop.f32.mrf.mxu0  ;;  %v1887_v25 = vpop.f32.mrf.mxu1 }
 0x12d   : > { %v1639_v33 = vadd.f32 %v1460_v24, %v21965_v27  ;;  %v22195_v34 = vadd.f32 %v19431_v11, %v1640_v15  ;;  %v16187_v11 = vld [vmem:[%s21525_s15 + $0x4f0] sm:$0xff]  ;;  %v16260_v15 = vld [vmem:[%s21525_s15 + $0x3a1] sm:$0xff] }
 0x12e   : > { %v19378_v35 = vpop.f32.mrf.mxu0  ;;  %19637 = vmatmul.mubr.msk.f32.gmra.mxu0 %vm541_vm0, %v16182_v16  ;;  %v19434_v19 = vpop.f32.mrf.mxu1  ;;  %19693 = vmatmul.mubr.msk.f32.gmra.mxu1 %vm541_vm0, %v16255_v23 }
 0x12f   : > { %v1642_v39 = vadd.f32 %v19378_v35, %v21969_v29  ;;  %v22200_v40 = vadd.f32 %v1887_v25, %v1639_v33  ;;  %19639 = vmatprep.mubr.msk.f32.mxu0 %vm541_vm0, %v16183_v26  ;;  %19695 = vmatprep.mubr.msk.f32.mxu1 %vm541_vm0, %v16256_v10  ;;  %v16188_v10 = vld [vmem:[%s21525_s15 + $0x4f8] sm:$0xff]  ;;  %v16261_v33 = vld [vmem:[%s21525_s15 + $0x3a9] sm:$0xff] }
 0x130   : > { %v1470_v27 = vpop.f32.mrf.mxu0  ;;  %v1897_v45 = vpop.f32.mrf.mxu1 }
 0x131   : > { %v1641_v55 = vadd.f32 %v1470_v27, %v21977_v38  ;;  %v22209_v58 = vadd.f32 %v19434_v19, %v1642_v39  ;;  %v16189_v19 = vld [vmem:[%s21525_s15 + $0x500] sm:$0xff]  ;;  %v16262_v39 = vld [vmem:[%s21525_s15 + $0x3b1] sm:$0xff] }
 0x132   : > { %v19381_v29 = vpop.f32.mrf.mxu0  ;;  %19640 = vmatmul.mubr.msk.f32.gmra.mxu0 %vm541_vm0, %v16184_v42  ;;  %v19437_v61 = vpop.f32.mrf.mxu1  ;;  %19696 = vmatmul.mubr.msk.f32.gmra.mxu1 %vm541_vm0, %v16257_v44 }
 0x133   : > { %v1644_v62 = vadd.f32 %v19381_v29, %v21981_v37  ;;  %v22214_v2 = vadd.f32 %v1897_v45, %v1641_v55  ;;  %19642 = vmatprep.mubr.msk.f32.mxu0 %vm541_vm0, %v16185_v49  ;;  %19698 = vmatprep.mubr.msk.f32.mxu1 %vm541_vm0, %v16258_v53  ;;  %v16190_v53 = vld [vmem:[%s21525_s15 + $0x508] sm:$0xff]  ;;  %v16263_v55 = vld [vmem:[%s21525_s15 + $0x3b9] sm:$0xff] }
 0x134   : > { %v1480_v38 = vpop.f32.mrf.mxu0  ;;  %v1907_v9 = vpop.f32.mrf.mxu1 }
 0x135   : > { %v1643_v16 = vadd.f32 %v1480_v38, %v21989_v46  ;;  %v22223_v23 = vadd.f32 %v19437_v61, %v1644_v62  ;;  %v16301_v61 = vld [vmem:[%s21525_s15 + $0x3f1] sm:$0xff]  ;;  %v16374_v62 = vld [vmem:[%s21525_s15 + $0x2a2] sm:$0xff] }
 0x136   : > { %v19384_v37 = vpop.f32.mrf.mxu0  ;;  %19643 = vmatmul.mubr.msk.f32.gmra.mxu0 %vm541_vm0, %v16186_v5  ;;  %v19440_v24 = vpop.f32.mrf.mxu1  ;;  %19699 = vmatmul.mubr.msk.f32.gmra.mxu1 %vm541_vm0, %v16259_v7 }
 0x137   : > { %v1646_v25 = vadd.f32 %v19384_v37, %v21993_v50  ;;  %v22228_v26 = vadd.f32 %v1907_v9, %v1643_v16  ;;  %19645 = vmatprep.mubr.msk.f32.mxu0 %vm541_vm0, %v16187_v11  ;;  %19701 = vmatprep.mubr.msk.f32.mxu1 %vm541_vm0, %v16260_v15  ;;  %v16302_v15 = vld [vmem:[%s21525_s15 + $0x3f9] sm:$0xff]  ;;  %v16375_v16 = vld [vmem:[%s21525_s15 + $0x2aa] sm:$0xff] }
 0x138   : > { %v1490_v46 = vpop.f32.mrf.mxu0  ;;  %v1917_v35 = vpop.f32.mrf.mxu1 }
 0x139   : > { %v1645_v42 = vadd.f32 %v1490_v46, %v22001_v57  ;;  %v22237_v44 = vadd.f32 %v19440_v24, %v1646_v25  ;;  %v16303_v24 = vld [vmem:[%s21525_s15 + $0x401] sm:$0xff]  ;;  %v16376_v25 = vld [vmem:[%s21525_s15 + $0x2b2] sm:$0xff] }
 0x13a   : > { %v19387_v50 = vpop.f32.mrf.mxu0  ;;  %19646 = vmatmul.mubr.msk.f32.gmra.mxu0 %vm541_vm0, %v16188_v10  ;;  %v19443_v27 = vpop.f32.mrf.mxu1  ;;  %19702 = vmatmul.mubr.msk.f32.gmra.mxu1 %vm541_vm0, %v16261_v33 }
 0x13b   : > { %v1648_v45 = vadd.f32 %v19387_v50, %v22005_v60  ;;  %v22242_v49 = vadd.f32 %v1917_v35, %v1645_v42  ;;  %19648 = vmatprep.mubr.msk.f32.mxu0 %vm541_vm0, %v16189_v19  ;;  %19704 = vmatprep.mubr.msk.f32.mxu1 %vm541_vm0, %v16262_v39  ;;  %v22272_v35 = vld [vmem:[%s27193_s1 + $0x60] sm:$0xff] }
 0x13c   : > { %v1500_v57 = vpop.f32.mrf.mxu0  ;;  %v1927_v29 = vpop.f32.mrf.mxu1  ;;  %v16377_v42 = vld [vmem:[%s21525_s15 + $0x2ba] sm:$0xff] }
 0x13d   : > { %v1647_v5 = vadd.f32 %v1500_v57, %v22013_v3  ;;  %v22251_v7 = vadd.f32 %v19443_v27, %v1648_v45  ;;  %v16305_v45 = vld [vmem:[%s21525_s15 + $0x411] sm:$0xff] }
 0x13e   : > { %v19390_v60 = vpop.f32.mrf.mxu0  ;;  %19649 = vmatmul.mubr.msk.f32.gmra.mxu0 %vm541_vm0, %v16190_v53  ;;  %v19446_v38 = vpop.f32.mrf.mxu1  ;;  %19705 = vmatmul.mubr.msk.f32.gmra.mxu1 %vm541_vm0, %v16263_v55  ;;  %v16378_v53 = vld [vmem:[%s21525_s15 + $0x2c2] sm:$0xff] }
 0x13f   : > { %v1650_v9 = vadd.f32 %v19390_v60, %v22017_v6  ;;  %v22256_v11 = vadd.f32 %v1927_v29, %v1647_v5  ;;  %19709 = vmatprep.mubr.msk.f32.mxu0 %vm541_vm0, %v16301_v61  ;;  %19765 = vmatprep.mubr.msk.f32.mxu1 %vm541_vm0, %v16374_v62  ;;  %v16307_v60 = vld [vmem:[%s21525_s15 + $0x421] sm:$0xff] }
 0x140   : > { %v1510_v3 = vpop.f32.mrf.mxu0  ;;  %v1937_v37 = vpop.f32.mrf.mxu1 }
 0x141   : > { %v1649_v10 = vadd.f32 %v1510_v3, %v22025_v14  ;;  %v22265_v33 = vadd.f32 %v19446_v38, %v1650_v9  ;;  %v16304_v14 = vld [vmem:[%s21525_s15 + $0x409] sm:$0xff]  ;;  %v16380_v38 = vld [vmem:[%s21525_s15 + $0x2d2] sm:$0xff] }
 0x142   : > { %v19393_v6 = vpop.f32.mrf.mxu0  ;;  %19710 = vmatmul.mubr.msk.f32.vlgmr.msra.gmra.mxu0 %vm541_vm0, %v16302_v15  ;;  %v19449_v46 = vpop.f32.mrf.mxu1  ;;  %19766 = vmatmul.mubr.msk.f32.vlgmr.msra.gmra.mxu1 %vm541_vm0, %v16375_v16 }
 0x143   : > { %v1652_v19 = vadd.f32 %v19393_v6, %v22034_v18  ;;  %v22275_v39 = vadd.f32 %v1937_v37, %v1649_v10  ;;  %19712 = vmatprep.mubr.msk.f32.mxu0 %vm541_vm0, %v16303_v24  ;;  %19768 = vmatprep.mubr.msk.f32.mxu1 %vm541_vm0, %v16376_v25  ;;  %v16308_v24 = vld [vmem:[%s21525_s15 + $0x429] sm:$0xff]  ;;  %v16381_v25 = vld [vmem:[%s21525_s15 + $0x2da] sm:$0xff]  ;;  %v16309_v6 = vld [vmem:[%s21525_s15 + $0x431] sm:$0xff] }
 0x144   : > { %v1520_v50 = vpop.f32.mrf.mxu0  ;;  %v1947_v27 = vpop.f32.mrf.mxu1  ;;  %19820 = vmatpush3.msra.mxu0 %v22032_v17  ;;  %19876 = vmatpush3.msra.mxu1 %v22086_v0  ;;  %v16306_v17 = vld [vmem:[%s21525_s15 + $0x419] sm:$0xff] }
 0x145   : > { %v1651_v18 = vadd.f32 %v1520_v50, %v22044_v28  ;;  %v22286_v55 = vadd.f32 %v19449_v46, %v1652_v19  ;;  %19931 = vmatprep.subr.mxu0 %v22272_v35  ;;  %v16379_v28 = vld [vmem:[%s21525_s15 + $0x2ca] sm:$0xff]  ;;  %v16382_v46 = vld [vmem:[%s21525_s15 + $0x2e2] sm:$0xff] }
 0x146   : > { %v19396_v57 = vpop.f32.mrf.mxu0  ;;  %19713 = vmatmul.mubr.msk.f32.gmra.mxu0 %vm541_vm0, %v16304_v14  ;;  %v19452_v29 = vpop.f32.mrf.mxu1  ;;  %19769 = vmatmul.mubr.msk.f32.gmra.mxu1 %vm541_vm0, %v16377_v42 }
 0x147   : > { %v1654_v61 = vadd.f32 %v19396_v57, %v22049_v32  ;;  %v22292_v62 = vadd.f32 %v1947_v27, %v1651_v18  ;;  %19715 = vmatprep.mubr.msk.f32.mxu0 %vm541_vm0, %v16305_v45  ;;  %19771 = vmatprep.mubr.msk.f32.mxu1 %vm541_vm0, %v16378_v53  ;;  %v16310_v45 = vld [vmem:[%s21525_s15 + $0x439] sm:$0xff]  ;;  %v16383_v53 = vld [vmem:[%s21525_s15 + $0x2ea] sm:$0xff]  ;;  %v16311_v57 = vld [vmem:[%s21525_s15 + $0x441] sm:$0xff] }
 0x148   : > { %v1530_v0 = vpop.f32.mrf.mxu0  ;;  %v1957_v5 = vpop.f32.mrf.mxu1 }
 0x149   : > { %v1653_v9 = vadd.f32 %v1530_v0, %v22057_v21  ;;  %v22301_v15 = vadd.f32 %v19452_v29, %v1654_v61  ;;  %v16384_v29 = vld [vmem:[%s21525_s15 + $0x2f2] sm:$0xff] }
 0x14a   : > { %v19399_v32 = vpop.f32.mrf.mxu0  ;;  %19716 = vmatmul.mubr.msk.f32.gmra.mxu0 %vm541_vm0, %v16306_v17  ;;  %v19455_v16 = vpop.f32.mrf.mxu1  ;;  %19772 = vmatmul.mubr.msk.f32.gmra.mxu1 %vm541_vm0, %v16379_v28 }
 0x14b   : > { %v1656_v3 = vadd.f32 %v19399_v32, %v22061_v41  ;;  %v22306_v37 = vadd.f32 %v1957_v5, %v1653_v9  ;;  %19718 = vmatprep.mubr.msk.f32.mxu0 %vm541_vm0, %v16307_v60  ;;  %19774 = vmatprep.mubr.msk.f32.mxu1 %vm541_vm0, %v16380_v38  ;;  %v16385_v38 = vld [vmem:[%s21525_s15 + $0x2fa] sm:$0xff] }
 0x14c   : > { %v1540_v21 = vpop.f32.mrf.mxu0  ;;  %v1967_v10 = vpop.f32.mrf.mxu1 }
 0x14d   : > { %v1655_v19 = vadd.f32 %v1540_v21, %v22069_v51  ;;  %v22315_v14 = vadd.f32 %v19455_v16, %v1656_v3  ;;  %v16313_v16 = vld [vmem:[%s21525_s15 + $0x451] sm:$0xff]  ;;  %v16386_v3 = vld [vmem:[%s21525_s15 + $0x302] sm:$0xff] }
 0x14e   : > { %v19402_v41 = vpop.f32.mrf.mxu0  ;;  %19719 = vmatmul.mubr.msk.f32.gmra.mxu0 %vm541_vm0, %v16308_v24  ;;  %v19458_v42 = vpop.f32.mrf.mxu1  ;;  %19775 = vmatmul.mubr.msk.f32.gmra.mxu1 %vm541_vm0, %v16381_v25 }
 0x14f   : > { %v1658_v50 = vadd.f32 %v19402_v41, %v22073_v54  ;;  %v22320_v27 = vadd.f32 %v1967_v10, %v1655_v19  ;;  %19721 = vmatprep.mubr.msk.f32.mxu0 %vm541_vm0, %v16309_v6  ;;  %19777 = vmatprep.mubr.msk.f32.mxu1 %vm541_vm0, %v16382_v46  ;;  %v22334_v54 = vld [vmem:[%s27193_s1 + $0x68] sm:$0xff]  ;;  %v16314_v46 = vld [vmem:[%s21525_s15 + $0x459] sm:$0xff] }
 0x150   : > { %v1550_v51 = vpop.f32.mrf.mxu0  ;;  %v1977_v18 = vpop.f32.mrf.mxu1  ;;  %19987 = vmatprep.subr.mxu1 %v22334_v54  ;;  %v16387_v19 = vld [vmem:[%s21525_s15 + $0x30a] sm:$0xff] }
 0x151   : > { %v1657_v61 = vadd.f32 %v1550_v51, %v22081_v63  ;;  %v22329_v17 = vadd.f32 %v19458_v42, %v1658_v50  ;;  %v16312_v63 = vld [vmem:[%s21525_s15 + $0x449] sm:$0xff]  ;;  %v16315_v42 = vld [vmem:[%s21525_s15 + $0x461] sm:$0xff]  ;;  %v16388_v50 = vld [vmem:[%s21525_s15 + $0x312] sm:$0xff] }
 0x152   : > { %v19405_v28 = vpop.f32.mrf.mxu0  ;;  %19722 = vmatmul.mubr.msk.f32.gmra.mxu0 %vm541_vm0, %v16310_v45  ;;  %v19461_v0 = vpop.f32.mrf.mxu1  ;;  %19778 = vmatmul.mubr.msk.f32.gmra.mxu1 %vm541_vm0, %v16383_v53 }
 0x153   : > { %v1660_v5 = vadd.f32 %v19405_v28, %v22090_v4  ;;  %v22339_v60 = vadd.f32 %v1977_v18, %v1657_v61  ;;  %19724 = vmatprep.mubr.msk.f32.mxu0 %vm541_vm0, %v16311_v57  ;;  %19780 = vmatprep.mubr.msk.f32.mxu1 %vm541_vm0, %v16384_v29  ;;  %v16316_v29 = vld [vmem:[%s21525_s15 + $0x469] sm:$0xff]  ;;  %v16389_v61 = vld [vmem:[%s21525_s15 + $0x31a] sm:$0xff] }
 0x154   : > { %v1560_v9 = vpop.f32.mrf.mxu0  ;;  %v1987_v32 = vpop.f32.mrf.mxu1 }
 0x155   : > { %v1659_v4 = vadd.f32 %v1560_v9, %v22099_v13  ;;  %v22349_v24 = vadd.f32 %v19461_v0, %v1660_v5  ;;  %v16317_v0 = vld [vmem:[%s21525_s15 + $0x471] sm:$0xff]  ;;  %v16390_v5 = vld [vmem:[%s21525_s15 + $0x322] sm:$0xff] }
 0x156   : > { %v19408_v25 = vpop.f32.mrf.mxu0  ;;  %19725 = vmatmul.mubr.msk.f32.gmra.mxu0 %vm541_vm0, %v16312_v63  ;;  %v19464_v21 = vpop.f32.mrf.mxu1  ;;  %19781 = vmatmul.mubr.msk.f32.gmra.mxu1 %vm541_vm0, %v16385_v38 }
 0x157   : > { %v1662_v10 = vadd.f32 %v19408_v25, %v22103_v20  ;;  %v22354_v6 = vadd.f32 %v1987_v32, %v1659_v4  ;;  %19727 = vmatprep.mubr.msk.f32.mxu0 %vm541_vm0, %v16313_v16  ;;  %19783 = vmatprep.mubr.msk.f32.mxu1 %vm541_vm0, %v16386_v3  ;;  %v16318_v3 = vld [vmem:[%s21525_s15 + $0x479] sm:$0xff]  ;;  %v16391_v4 = vld [vmem:[%s21525_s15 + $0x32a] sm:$0xff] }
 0x158   : > { %v1570_v13 = vpop.f32.mrf.mxu0  ;;  %v1997_v41 = vpop.f32.mrf.mxu1 }
 0x159   : > { %v1661_v45 = vadd.f32 %v1570_v13, %v22111_v30  ;;  %v22363_v53 = vadd.f32 %v19464_v21, %v1662_v10  ;;  %v16319_v21 = vld [vmem:[%s21525_s15 + $0x481] sm:$0xff]  ;;  %v16392_v10 = vld [vmem:[%s21525_s15 + $0x332] sm:$0xff] }
 0x15a   : > { %v19411_v20 = vpop.f32.mrf.mxu0  ;;  %19728 = vmatmul.mubr.msk.f32.gmra.mxu0 %vm541_vm0, %v16314_v46  ;;  %v19467_v51 = vpop.f32.mrf.mxu1  ;;  %19784 = vmatmul.mubr.msk.f32.gmra.mxu1 %vm541_vm0, %v16387_v19 }
 0x15b   : > { %v1664_v18 = vadd.f32 %v19411_v20, %v22115_v47  ;;  %v22368_v57 = vadd.f32 %v1997_v41, %v1661_v45  ;;  %19730 = vmatprep.mubr.msk.f32.mxu0 %vm541_vm0, %v16315_v42  ;;  %19786 = vmatprep.mubr.msk.f32.mxu1 %vm541_vm0, %v16388_v50  ;;  %v16320_v50 = vld [vmem:[%s21525_s15 + $0x489] sm:$0xff]  ;;  %v16393_v45 = vld [vmem:[%s21525_s15 + $0x33a] sm:$0xff] }
 0x15c   : > { %v1580_v30 = vpop.f32.mrf.mxu0  ;;  %v2007_v28 = vpop.f32.mrf.mxu1 }
 0x15d   : > { %v1663_v63 = vadd.f32 %v1580_v30, %v22123_v43  ;;  %v22377_v38 = vadd.f32 %v19467_v51, %v1664_v18  ;;  %v16321_v51 = vld [vmem:[%s21525_s15 + $0x491] sm:$0xff]  ;;  %v16394_v18 = vld [vmem:[%s21525_s15 + $0x342] sm:$0xff] }
 0x15e   : > { %v19414_v47 = vpop.f32.mrf.mxu0  ;;  %19731 = vmatmul.mubr.msk.f32.gmra.mxu0 %vm541_vm0, %v16316_v29  ;;  %v19470_v9 = vpop.f32.mrf.mxu1  ;;  %19787 = vmatmul.mubr.msk.f32.gmra.mxu1 %vm541_vm0, %v16389_v61 }
 0x15f   : > { %v1666_v32 = vadd.f32 %v19414_v47, %v22127_v48  ;;  %v22382_v16 = vadd.f32 %v2007_v28, %v1663_v63  ;;  %19733 = vmatprep.mubr.msk.f32.mxu0 %vm541_vm0, %v16317_v0  ;;  %19789 = vmatprep.mubr.msk.f32.mxu1 %vm541_vm0, %v16390_v5  ;;  %v16322_v5 = vld [vmem:[%s21525_s15 + $0x499] sm:$0xff]  ;;  %v16395_v63 = vld [vmem:[%s21525_s15 + $0x34a] sm:$0xff] }
 0x160   : > { %v1590_v43 = vpop.f32.mrf.mxu0  ;;  %v2017_v25 = vpop.f32.mrf.mxu1 }
 0x161   : > { %v1665_v46 = vadd.f32 %v1590_v43, %v22135_v59  ;;  %v22391_v19 = vadd.f32 %v19470_v9, %v1666_v32  ;;  %v16323_v9 = vld [vmem:[%s21525_s15 + $0x4a1] sm:$0xff]  ;;  %v16396_v32 = vld [vmem:[%s21525_s15 + $0x352] sm:$0xff] }
 0x162   : > { %v19417_v48 = vpop.f32.mrf.mxu0  ;;  %19734 = vmatmul.mubr.msk.f32.gmra.mxu0 %vm541_vm0, %v16318_v3  ;;  %v19473_v13 = vpop.f32.mrf.mxu1  ;;  %19790 = vmatmul.mubr.msk.f32.gmra.mxu1 %vm541_vm0, %v16391_v4 }
 0x163   : > { %v1668_v41 = vadd.f32 %v19417_v48, %v22139_v1  ;;  %v22396_v42 = vadd.f32 %v2017_v25, %v1665_v46  ;;  %19736 = vmatprep.mubr.msk.f32.mxu0 %vm541_vm0, %v16319_v21  ;;  %19792 = vmatprep.mubr.msk.f32.mxu1 %vm541_vm0, %v16392_v10  ;;  %v16324_v10 = vld [vmem:[%s21525_s15 + $0x4a9] sm:$0xff]  ;;  %v16397_v46 = vld [vmem:[%s21525_s15 + $0x35a] sm:$0xff] }
 0x164   : > { %v1600_v59 = vpop.f32.mrf.mxu0  ;;  %v2027_v20 = vpop.f32.mrf.mxu1 }
 0x165   : > { %v1667_v29 = vadd.f32 %v1600_v59, %v22147_v12  ;;  %v22405_v61 = vadd.f32 %v19473_v13, %v1668_v41  ;;  %v16325_v13 = vld [vmem:[%s21525_s15 + $0x4b1] sm:$0xff]  ;;  %v16398_v41 = vld [vmem:[%s21525_s15 + $0x362] sm:$0xff] }
 0x166   : > { %v19420_v1 = vpop.f32.mrf.mxu0  ;;  %19737 = vmatmul.mubr.msk.f32.gmra.mxu0 %vm541_vm0, %v16320_v50  ;;  %v19476_v30 = vpop.f32.mrf.mxu1  ;;  %19793 = vmatmul.mubr.msk.f32.gmra.mxu1 %vm541_vm0, %v16393_v45 }
 0x167   : > { %v1670_v28 = vadd.f32 %v19420_v1, %v22151_v22  ;;  %v22410_v0 = vadd.f32 %v2027_v20, %v1667_v29  ;;  %19739 = vmatprep.mubr.msk.f32.mxu0 %vm541_vm0, %v16321_v51  ;;  %19795 = vmatprep.mubr.msk.f32.mxu1 %vm541_vm0, %v16394_v18  ;;  %v16326_v18 = vld [vmem:[%s21525_s15 + $0x4b9] sm:$0xff]  ;;  %v16399_v29 = vld [vmem:[%s21525_s15 + $0x36a] sm:$0xff] }
 0x168   : > { %v1610_v12 = vpop.f32.mrf.mxu0  ;;  %v2037_v47 = vpop.f32.mrf.mxu1 }
 0x169   : > { %v1669_v3 = vadd.f32 %v1610_v12, %v22159_v31  ;;  %v22419_v4 = vadd.f32 %v19476_v30, %v1670_v28  ;;  %v16327_v30 = vld [vmem:[%s21525_s15 + $0x4c1] sm:$0xff]  ;;  %v16400_v28 = vld [vmem:[%s21525_s15 + $0x372] sm:$0xff] }
 0x16a   : > { %v19423_v22 = vpop.f32.mrf.mxu0  ;;  %19740 = vmatmul.mubr.msk.f32.gmra.mxu0 %vm541_vm0, %v16322_v5  ;;  %v19479_v43 = vpop.f32.mrf.mxu1  ;;  %19796 = vmatmul.mubr.msk.f32.gmra.mxu1 %vm541_vm0, %v16395_v63 }
 0x16b   : > { %v1672_v25 = vadd.f32 %v19423_v22, %v22163_v36  ;;  %v22424_v21 = vadd.f32 %v2037_v47, %v1669_v3  ;;  %19742 = vmatprep.mubr.msk.f32.mxu0 %vm541_vm0, %v16323_v9  ;;  %19798 = vmatprep.mubr.msk.f32.mxu1 %vm541_vm0, %v16396_v32  ;;  %v16328_v32 = vld [vmem:[%s21525_s15 + $0x4c9] sm:$0xff]  ;;  %v16401_v3 = vld [vmem:[%s21525_s15 + $0x37a] sm:$0xff] }
 0x16c   : > { %v1620_v31 = vpop.f32.mrf.mxu0  ;;  %v2047_v48 = vpop.f32.mrf.mxu1 }
 0x16d   : > { %v1671_v50 = vadd.f32 %v1620_v31, %v22171_v52  ;;  %v22433_v45 = vadd.f32 %v19479_v43, %v1672_v25  ;;  %v16329_v43 = vld [vmem:[%s21525_s15 + $0x4d1] sm:$0xff]  ;;  %v16402_v25 = vld [vmem:[%s21525_s15 + $0x382] sm:$0xff] }
 0x16e   : > { %v19426_v36 = vpop.f32.mrf.mxu0  ;;  %19743 = vmatmul.mubr.msk.f32.gmra.mxu0 %vm541_vm0, %v16324_v10  ;;  %v19482_v59 = vpop.f32.mrf.mxu1  ;;  %19799 = vmatmul.mubr.msk.f32.gmra.mxu1 %vm541_vm0, %v16397_v46 }
 0x16f   : > { %v1674_v20 = vadd.f32 %v19426_v36, %v22175_v56  ;;  %v22438_v51 = vadd.f32 %v2047_v48, %v1671_v50  ;;  %19745 = vmatprep.mubr.msk.f32.mxu0 %vm541_vm0, %v16325_v13  ;;  %19801 = vmatprep.mubr.msk.f32.mxu1 %vm541_vm0, %v16398_v41  ;;  %v16330_v41 = vld [vmem:[%s21525_s15 + $0x4d9] sm:$0xff]  ;;  %v16403_v50 = vld [vmem:[%s21525_s15 + $0x38a] sm:$0xff] }
 0x170   : > { %v1630_v52 = vpop.f32.mrf.mxu0  ;;  %v2057_v1 = vpop.f32.mrf.mxu1 }
 0x171   : > { %v1673_v5 = vadd.f32 %v1630_v52, %v22183_v8  ;;  %v22447_v63 = vadd.f32 %v19482_v59, %v1674_v20  ;;  %v16331_v59 = vld [vmem:[%s21525_s15 + $0x4e1] sm:$0xff]  ;;  %v16404_v20 = vld [vmem:[%s21525_s15 + $0x392] sm:$0xff] }
 0x172   : > { %v19487_v56 = vpop.f32.mrf.mxu0  ;;  %19746 = vmatmul.mubr.msk.f32.gmra.mxu0 %vm541_vm0, %v16326_v18  ;;  %v19543_v12 = vpop.f32.mrf.mxu1  ;;  %19802 = vmatmul.mubr.msk.f32.gmra.mxu1 %vm541_vm0, %v16399_v29 }
 0x173   : > { %v22451_v47 = vadd.f32 %v2057_v1, %v1673_v5  ;;  %v2494_v9 = vadd.f32 %v19487_v56, %v22195_v34  ;;  %19748 = vmatprep.mubr.msk.f32.mxu0 %vm541_vm0, %v16327_v30  ;;  %19804 = vmatprep.mubr.msk.f32.mxu1 %vm541_vm0, %v16400_v28  ;;  %v16332_v28 = vld [vmem:[%s21525_s15 + $0x4e9] sm:$0xff]  ;;  %v16405_v5 = vld [vmem:[%s21525_s15 + $0x39a] sm:$0xff] }
 0x174   : > { %v2314_v8 = vpop.f32.mrf.mxu0  ;;  %v2742_v22 = vpop.f32.mrf.mxu1 }
 0x175   : > { %v2493_v10 = vadd.f32 %v2314_v8, %v22200_v40  ;;  %v22461_v46 = vadd.f32 %v19543_v12, %v2494_v9  ;;  %v16333_v12 = vld [vmem:[%s21525_s15 + $0x4f1] sm:$0xff]  ;;  %v16406_v9 = vld [vmem:[%s21525_s15 + $0x3a2] sm:$0xff] }
 0x176   : > { %v19490_v31 = vpop.f32.mrf.mxu0  ;;  %19749 = vmatmul.mubr.msk.f32.gmra.mxu0 %vm541_vm0, %v16328_v32  ;;  %v19546_v34 = vpop.f32.mrf.mxu1  ;;  %19805 = vmatmul.mubr.msk.f32.gmra.mxu1 %vm541_vm0, %v16401_v3 }
 0x177   : > { %v2496_v48 = vadd.f32 %v19490_v31, %v22209_v58  ;;  %v22466_v13 = vadd.f32 %v2742_v22, %v2493_v10  ;;  %19751 = vmatprep.mubr.msk.f32.mxu0 %vm541_vm0, %v16329_v43  ;;  %19807 = vmatprep.mubr.msk.f32.mxu1 %vm541_vm0, %v16402_v25  ;;  %v16334_v25 = vld [vmem:[%s21525_s15 + $0x4f9] sm:$0xff]  ;;  %v16407_v10 = vld [vmem:[%s21525_s15 + $0x3aa] sm:$0xff] }
 0x178   : > { %v2324_v40 = vpop.f32.mrf.mxu0  ;;  %v2752_v36 = vpop.f32.mrf.mxu1 }
 0x179   : > { %v2495_v18 = vadd.f32 %v2324_v40, %v22214_v2  ;;  %v22475_v29 = vadd.f32 %v19546_v34, %v2496_v48  ;;  %v16335_v34 = vld [vmem:[%s21525_s15 + $0x501] sm:$0xff]  ;;  %v16408_v48 = vld [vmem:[%s21525_s15 + $0x3b2] sm:$0xff] }
 0x17a   : > { %v19493_v58 = vpop.f32.mrf.mxu0  ;;  %19752 = vmatmul.mubr.msk.f32.gmra.mxu0 %vm541_vm0, %v16330_v41  ;;  %v19549_v52 = vpop.f32.mrf.mxu1  ;;  %19808 = vmatmul.mubr.msk.f32.gmra.mxu1 %vm541_vm0, %v16403_v50 }
 0x17b   : > { %v2498_v1 = vadd.f32 %v19493_v58, %v22223_v23  ;;  %v22480_v30 = vadd.f32 %v2752_v36, %v2495_v18  ;;  %19754 = vmatprep.mubr.msk.f32.mxu0 %vm541_vm0, %v16331_v59  ;;  %19810 = vmatprep.mubr.msk.f32.mxu1 %vm541_vm0, %v16404_v20  ;;  %v16336_v20 = vld [vmem:[%s21525_s15 + $0x509] sm:$0xff]  ;;  %v16409_v18 = vld [vmem:[%s21525_s15 + $0x3ba] sm:$0xff] }
 0x17c   : > { %v2334_v2 = vpop.f32.mrf.mxu0  ;;  %v2762_v56 = vpop.f32.mrf.mxu1 }
 0x17d   : > { %v2497_v32 = vadd.f32 %v2334_v2, %v22228_v26  ;;  %v22489_v3 = vadd.f32 %v19549_v52, %v2498_v1  ;;  %v4666_v52 = vld [vmem:[%s21525_s15 + $0x12] sm:$0xff]  ;;  %v16484_v1 = vld [vmem:[%s21525_s15 + $0x162] sm:$0xff] }
 0x17e   : > { %v19496_v23 = vpop.f32.mrf.mxu0  ;;  %19755 = vmatmul.mubr.msk.f32.gmra.mxu0 %vm541_vm0, %v16332_v28  ;;  %v19552_v8 = vpop.f32.mrf.mxu1  ;;  %19811 = vmatmul.mubr.msk.f32.gmra.mxu1 %vm541_vm0, %v16405_v5 }
 0x17f   : > { %v2500_v22 = vadd.f32 %v19496_v23, %v22237_v44  ;;  %v22494_v43 = vadd.f32 %v2762_v56, %v2497_v32  ;;  %19757 = vmatprep.mubr.msk.f32.mxu0 %vm541_vm0, %v16333_v12  ;;  %19813 = vmatprep.mubr.msk.f32.mxu1 %vm541_vm0, %v16406_v9  ;;  %v4667_v9 = vld [vmem:[%s21525_s15 + $0x1a] sm:$0xff]  ;;  %v16485_v32 = vld [vmem:[%s21525_s15 + $0x16a] sm:$0xff] }
 0x180   : > { %v2344_v26 = vpop.f32.mrf.mxu0  ;;  %v2772_v31 = vpop.f32.mrf.mxu1 }
 0x181   : > { %v2499_v41 = vadd.f32 %v2344_v26, %v22242_v49  ;;  %v22503_v50 = vadd.f32 %v19552_v8, %v2500_v22  ;;  %v4668_v8 = vld [vmem:[%s21525_s15 + $0x22] sm:$0xff]  ;;  %v16486_v22 = vld [vmem:[%s21525_s15 + $0x172] sm:$0xff] }
 0x182   : > { %v19499_v44 = vpop.f32.mrf.mxu0  ;;  %19758 = vmatmul.mubr.msk.f32.gmra.mxu0 %vm541_vm0, %v16334_v25  ;;  %v19555_v40 = vpop.f32.mrf.mxu1  ;;  %19814 = vmatmul.mubr.msk.f32.gmra.mxu1 %vm541_vm0, %v16407_v10 }
 0x183   : > { %v2502_v36 = vadd.f32 %v19499_v44, %v22251_v7  ;;  %v22508_v59 = vadd.f32 %v2772_v31, %v2499_v41  ;;  %19760 = vmatprep.mubr.msk.f32.mxu0 %vm541_vm0, %v16335_v34  ;;  %19816 = vmatprep.mubr.msk.f32.mxu1 %vm541_vm0, %v16408_v48  ;;  %v22538_v31 = vld [vmem:[%s27193_s1 + $0x70] sm:$0xff]  ;;  %v16487_v41 = vld [vmem:[%s21525_s15 + $0x17a] sm:$0xff] }
 0x184   : > { %v2354_v49 = vpop.f32.mrf.mxu0  ;;  %v2782_v58 = vpop.f32.mrf.mxu1 }
 0x185   : > { %v2501_v28 = vadd.f32 %v2354_v49, %v22256_v11  ;;  %v22517_v5 = vadd.f32 %v19555_v40, %v2502_v36  ;;  %v4670_v36 = vld [vmem:[%s21525_s15 + $0x32] sm:$0xff] }
 0x186   : > { %v19502_v7 = vpop.f32.mrf.mxu0  ;;  %19761 = vmatmul.mubr.msk.f32.gmra.mxu0 %vm541_vm0, %v16336_v20  ;;  %v19558_v2 = vpop.f32.mrf.mxu1  ;;  %19817 = vmatmul.mubr.msk.f32.gmra.mxu1 %vm541_vm0, %v16409_v18  ;;  %v16488_v20 = vld [vmem:[%s21525_s15 + $0x182] sm:$0xff] }
 0x187   : > { %v2504_v56 = vadd.f32 %v19502_v7, %v22265_v33  ;;  %v22522_v12 = vadd.f32 %v2782_v58, %v2501_v28  ;;  %19821 = vmatprep.mubr.msk.f32.mxu0 %vm541_vm0, %v4666_v52  ;;  %19877 = vmatprep.mubr.msk.f32.mxu1 %vm541_vm0, %v16484_v1  ;;  %v4672_v7 = vld [vmem:[%s21525_s15 + $0x42] sm:$0xff] }
 0x188   : > { %v2364_v11 = vpop.f32.mrf.mxu0  ;;  %v2792_v23 = vpop.f32.mrf.mxu1 }
 0x189   : > { %v2503_v25 = vadd.f32 %v2364_v11, %v22275_v39  ;;  %v22531_v10 = vadd.f32 %v19558_v2, %v2504_v56  ;;  %v4669_v39 = vld [vmem:[%s21525_s15 + $0x2a] sm:$0xff]  ;;  %v16490_v2 = vld [vmem:[%s21525_s15 + $0x192] sm:$0xff] }
 0x18a   : > { %v19505_v33 = vpop.f32.mrf.mxu0  ;;  %19822 = vmatmul.mubr.msk.f32.vlgmr.msra.gmra.mxu0 %vm541_vm0, %v4667_v9  ;;  %v19561_v26 = vpop.f32.mrf.mxu1  ;;  %19878 = vmatmul.mubr.msk.f32.vlgmr.msra.gmra.mxu1 %vm541_vm0, %v16485_v32 }
 0x18b   : > { %v2506_v34 = vadd.f32 %v19505_v33, %v22286_v55  ;;  %v22541_v48 = vadd.f32 %v2792_v23, %v2503_v25  ;;  %19824 = vmatprep.mubr.msk.f32.mxu0 %vm541_vm0, %v4668_v8  ;;  %19880 = vmatprep.mubr.msk.f32.mxu1 %vm541_vm0, %v16486_v22  ;;  %v4673_v8 = vld [vmem:[%s21525_s15 + $0x4a] sm:$0xff]  ;;  %v16491_v22 = vld [vmem:[%s21525_s15 + $0x19a] sm:$0xff]  ;;  %v4674_v33 = vld [vmem:[%s21525_s15 + $0x52] sm:$0xff] }
 0x18c   : > { %v2374_v44 = vpop.f32.mrf.mxu0  ;;  %v2802_v40 = vpop.f32.mrf.mxu1  ;;  %19932 = vmatpush3.msra.mxu0 %v22272_v35  ;;  %19988 = vmatpush3.msra.mxu1 %v22334_v54  ;;  %v4671_v35 = vld [vmem:[%s21525_s15 + $0x3a] sm:$0xff] }
 0x18d   : > { %v2505_v55 = vadd.f32 %v2374_v44, %v22292_v62  ;;  %v22552_v18 = vadd.f32 %v19561_v26, %v2506_v34  ;;  %20043 = vmatprep.subr.mxu0 %v22538_v31  ;;  %v16489_v62 = vld [vmem:[%s21525_s15 + $0x18a] sm:$0xff]  ;;  %v16492_v26 = vld [vmem:[%s21525_s15 + $0x1a2] sm:$0xff] }
 0x18e   : > { %v19508_v49 = vpop.f32.mrf.mxu0  ;;  %19825 = vmatmul.mubr.msk.f32.gmra.mxu0 %vm541_vm0, %v4669_v39  ;;  %v19564_v58 = vpop.f32.mrf.mxu1  ;;  %19881 = vmatmul.mubr.msk.f32.gmra.mxu1 %vm541_vm0, %v16487_v41 }
 0x18f   : > { %v2508_v52 = vadd.f32 %v19508_v49, %v22301_v15  ;;  %v22558_v1 = vadd.f32 %v2802_v40, %v2505_v55  ;;  %19827 = vmatprep.mubr.msk.f32.mxu0 %vm541_vm0, %v4670_v36  ;;  %19883 = vmatprep.mubr.msk.f32.mxu1 %vm541_vm0, %v16488_v20  ;;  %v4675_v36 = vld [vmem:[%s21525_s15 + $0x5a] sm:$0xff]  ;;  %v16493_v20 = vld [vmem:[%s21525_s15 + $0x1aa] sm:$0xff]  ;;  %v4676_v49 = vld [vmem:[%s21525_s15 + $0x62] sm:$0xff] }
 0x190   : > { %v2384_v54 = vpop.f32.mrf.mxu0  ;;  %v2812_v28 = vpop.f32.mrf.mxu1 }
 0x191   : > { %v2507_v56 = vadd.f32 %v2384_v54, %v22306_v37  ;;  %v22567_v9 = vadd.f32 %v19564_v58, %v2508_v52  ;;  %v16494_v58 = vld [vmem:[%s21525_s15 + $0x1b2] sm:$0xff] }
 0x192   : > { %v19511_v15 = vpop.f32.mrf.mxu0  ;;  %19828 = vmatmul.mubr.msk.f32.gmra.mxu0 %vm541_vm0, %v4671_v35  ;;  %v19567_v32 = vpop.f32.mrf.mxu1  ;;  %19884 = vmatmul.mubr.msk.f32.gmra.mxu1 %vm541_vm0, %v16489_v62 }
 0x193   : > { %v2510_v11 = vadd.f32 %v19511_v15, %v22315_v14  ;;  %v22572_v23 = vadd.f32 %v2812_v28, %v2507_v56  ;;  %19830 = vmatprep.mubr.msk.f32.mxu0 %vm541_vm0, %v4672_v7  ;;  %19886 = vmatprep.mubr.msk.f32.mxu1 %vm541_vm0, %v16490_v2  ;;  %v16495_v2 = vld [vmem:[%s21525_s15 + $0x1ba] sm:$0xff] }
 0x194   : > { %v2394_v37 = vpop.f32.mrf.mxu0  ;;  %v2822_v25 = vpop.f32.mrf.mxu1 }
 0x195   : > { %v2509_v34 = vadd.f32 %v2394_v37, %v22320_v27  ;;  %v22581_v39 = vadd.f32 %v19567_v32, %v2510_v11  ;;  %v4678_v32 = vld [vmem:[%s21525_s15 + $0x72] sm:$0xff]  ;;  %v16496_v11 = vld [vmem:[%s21525_s15 + $0x1c2] sm:$0xff] }
 0x196   : > { %v19514_v14 = vpop.f32.mrf.mxu0  ;;  %19831 = vmatmul.mubr.msk.f32.gmra.mxu0 %vm541_vm0, %v4673_v8  ;;  %v19570_v41 = vpop.f32.mrf.mxu1  ;;  %19887 = vmatmul.mubr.msk.f32.gmra.mxu1 %vm541_vm0, %v16491_v22 }
 0x197   : > { %v2512_v44 = vadd.f32 %v19514_v14, %v22329_v17  ;;  %v22586_v40 = vadd.f32 %v2822_v25, %v2509_v34  ;;  %19833 = vmatprep.mubr.msk.f32.mxu0 %vm541_vm0, %v4674_v33  ;;  %19889 = vmatprep.mubr.msk.f32.mxu1 %vm541_vm0, %v16492_v26  ;;  %v22600_v17 = vld [vmem:[%s27193_s1 + $0x78] sm:$0xff]  ;;  %v16497_v34 = vld [vmem:[%s21525_s15 + $0x1ca] sm:$0xff] }
 0x198   : > { %v2404_v27 = vpop.f32.mrf.mxu0  ;;  %v2832_v55 = vpop.f32.mrf.mxu1  ;;  %20099 = vmatprep.subr.mxu1 %v22600_v17  ;;  %v4679_v26 = vld [vmem:[%s21525_s15 + $0x7a] sm:$0xff] }
 0x199   : > { %v2511_v52 = vadd.f32 %v2404_v27, %v22339_v60  ;;  %v22595_v35 = vadd.f32 %v19570_v41, %v2512_v44  ;;  %v4677_v60 = vld [vmem:[%s21525_s15 + $0x6a] sm:$0xff]  ;;  %v4680_v41 = vld [vmem:[%s21525_s15 + $0x82] sm:$0xff]  ;;  %v16498_v44 = vld [vmem:[%s21525_s15 + $0x1d2] sm:$0xff] }
 0x19a   : > { %v19517_v62 = vpop.f32.mrf.mxu0  ;;  %19834 = vmatmul.mubr.msk.f32.gmra.mxu0 %vm541_vm0, %v4675_v36  ;;  %v19573_v54 = vpop.f32.mrf.mxu1  ;;  %19890 = vmatmul.mubr.msk.f32.gmra.mxu1 %vm541_vm0, %v16493_v20 }
 0x19b   : > { %v2514_v28 = vadd.f32 %v19517_v62, %v22349_v24  ;;  %v22605_v7 = vadd.f32 %v2832_v55, %v2511_v52  ;;  %19836 = vmatprep.mubr.msk.f32.mxu0 %vm541_vm0, %v4676_v49  ;;  %19892 = vmatprep.mubr.msk.f32.mxu1 %vm541_vm0, %v16494_v58  ;;  %v4681_v58 = vld [vmem:[%s21525_s15 + $0x8a] sm:$0xff]  ;;  %v16499_v52 = vld [vmem:[%s21525_s15 + $0x1da] sm:$0xff] }
 0x19c   : > { %v2414_v56 = vpop.f32.mrf.mxu0  ;;  %v2842_v15 = vpop.f32.mrf.mxu1 }
 0x19d   : > { %v2513_v24 = vadd.f32 %v2414_v56, %v22354_v6  ;;  %v22615_v8 = vadd.f32 %v19573_v54, %v2514_v28  ;;  %v4682_v54 = vld [vmem:[%s21525_s15 + $0x92] sm:$0xff]  ;;  %v16500_v28 = vld [vmem:[%s21525_s15 + $0x1e2] sm:$0xff] }
 0x19e   : > { %v19520_v22 = vpop.f32.mrf.mxu0  ;;  %19837 = vmatmul.mubr.msk.f32.gmra.mxu0 %vm541_vm0, %v4677_v60  ;;  %v19576_v37 = vpop.f32.mrf.mxu1  ;;  %19893 = vmatmul.mubr.msk.f32.gmra.mxu1 %vm541_vm0, %v16495_v2 }
 0x19f   : > { %v2516_v25 = vadd.f32 %v19520_v22, %v22363_v53  ;;  %v22620_v33 = vadd.f32 %v2842_v15, %v2513_v24  ;;  %19839 = vmatprep.mubr.msk.f32.mxu0 %vm541_vm0, %v4678_v32  ;;  %19895 = vmatprep.mubr.msk.f32.mxu1 %vm541_vm0, %v16496_v11  ;;  %v4683_v11 = vld [vmem:[%s21525_s15 + $0x9a] sm:$0xff]  ;;  %v16501_v24 = vld [vmem:[%s21525_s15 + $0x1ea] sm:$0xff] }
 0x1a0   : > { %v2424_v6 = vpop.f32.mrf.mxu0  ;;  %v2852_v14 = vpop.f32.mrf.mxu1 }
 0x1a1   : > { %v2515_v36 = vadd.f32 %v2424_v6, %v22368_v57  ;;  %v22629_v20 = vadd.f32 %v19576_v37, %v2516_v25  ;;  %v4684_v37 = vld [vmem:[%s21525_s15 + $0xa2] sm:$0xff]  ;;  %v16502_v25 = vld [vmem:[%s21525_s15 + $0x1f2] sm:$0xff] }
 0x1a2   : > { %v19523_v53 = vpop.f32.mrf.mxu0  ;;  %19840 = vmatmul.mubr.msk.f32.gmra.mxu0 %vm541_vm0, %v4679_v26  ;;  %v19579_v27 = vpop.f32.mrf.mxu1  ;;  %19896 = vmatmul.mubr.msk.f32.gmra.mxu1 %vm541_vm0, %v16497_v34 }
 0x1a3   : > { %v2518_v55 = vadd.f32 %v19523_v53, %v22377_v38  ;;  %v22634_v49 = vadd.f32 %v2852_v14, %v2515_v36  ;;  %19842 = vmatprep.mubr.msk.f32.mxu0 %vm541_vm0, %v4680_v41  ;;  %19898 = vmatprep.mubr.msk.f32.mxu1 %vm541_vm0, %v16498_v44  ;;  %v4685_v44 = vld [vmem:[%s21525_s15 + $0xaa] sm:$0xff]  ;;  %v16503_v36 = vld [vmem:[%s21525_s15 + $0x1fa] sm:$0xff] }
 0x1a4   : > { %v2434_v57 = vpop.f32.mrf.mxu0  ;;  %v2862_v62 = vpop.f32.mrf.mxu1 }
 0x1a5   : > { %v2517_v60 = vadd.f32 %v2434_v57, %v22382_v16  ;;  %v22643_v2 = vadd.f32 %v19579_v27, %v2518_v55  ;;  %v4686_v27 = vld [vmem:[%s21525_s15 + $0xb2] sm:$0xff]  ;;  %v16504_v55 = vld [vmem:[%s21525_s15 + $0x202] sm:$0xff] }
 0x1a6   : > { %v19526_v38 = vpop.f32.mrf.mxu0  ;;  %19843 = vmatmul.mubr.msk.f32.gmra.mxu0 %vm541_vm0, %v4681_v58  ;;  %v19582_v56 = vpop.f32.mrf.mxu1  ;;  %19899 = vmatmul.mubr.msk.f32.gmra.mxu1 %vm541_vm0, %v16499_v52 }
 0x1a7   : > { %v2520_v15 = vadd.f32 %v19526_v38, %v22391_v19  ;;  %v22648_v32 = vadd.f32 %v2862_v62, %v2517_v60  ;;  %19845 = vmatprep.mubr.msk.f32.mxu0 %vm541_vm0, %v4682_v54  ;;  %19901 = vmatprep.mubr.msk.f32.mxu1 %vm541_vm0, %v16500_v28  ;;  %v4687_v28 = vld [vmem:[%s21525_s15 + $0xba] sm:$0xff]  ;;  %v16505_v60 = vld [vmem:[%s21525_s15 + $0x20a] sm:$0xff] }
 0x1a8   : > { %v2444_v16 = vpop.f32.mrf.mxu0  ;;  %v2872_v22 = vpop.f32.mrf.mxu1 }
 0x1a9   : > { %v2519_v26 = vadd.f32 %v2444_v16, %v22396_v42  ;;  %v22657_v34 = vadd.f32 %v19582_v56, %v2520_v15  ;;  %v4688_v56 = vld [vmem:[%s21525_s15 + $0xc2] sm:$0xff]  ;;  %v16506_v15 = vld [vmem:[%s21525_s15 + $0x212] sm:$0xff] }
 0x1aa   : > { %v19529_v19 = vpop.f32.mrf.mxu0  ;;  %19846 = vmatmul.mubr.msk.f32.gmra.mxu0 %vm541_vm0, %v4683_v11  ;;  %v19585_v6 = vpop.f32.mrf.mxu1  ;;  %19902 = vmatmul.mubr.msk.f32.gmra.mxu1 %vm541_vm0, %v16501_v24 }
 0x1ab   : > { %v2522_v14 = vadd.f32 %v19529_v19, %v22405_v61  ;;  %v22662_v41 = vadd.f32 %v2872_v22, %v2519_v26  ;;  %19848 = vmatprep.mubr.msk.f32.mxu0 %vm541_vm0, %v4684_v37  ;;  %19904 = vmatprep.mubr.msk.f32.mxu1 %vm541_vm0, %v16502_v25  ;;  %v4689_v25 = vld [vmem:[%s21525_s15 + $0xca] sm:$0xff]  ;;  %v16507_v26 = vld [vmem:[%s21525_s15 + $0x21a] sm:$0xff] }
 0x1ac   : > { %v2454_v42 = vpop.f32.mrf.mxu0  ;;  %v2882_v53 = vpop.f32.mrf.mxu1 }
 0x1ad   : > { %v2521_v58 = vadd.f32 %v2454_v42, %v22410_v0  ;;  %v22671_v52 = vadd.f32 %v19585_v6, %v2522_v14  ;;  %v4690_v6 = vld [vmem:[%s21525_s15 + $0xd2] sm:$0xff]  ;;  %v16508_v14 = vld [vmem:[%s21525_s15 + $0x222] sm:$0xff] }
 0x1ae   : > { %v19532_v61 = vpop.f32.mrf.mxu0  ;;  %19849 = vmatmul.mubr.msk.f32.gmra.mxu0 %vm541_vm0, %v4685_v44  ;;  %v19588_v57 = vpop.f32.mrf.mxu1  ;;  %19905 = vmatmul.mubr.msk.f32.gmra.mxu1 %vm541_vm0, %v16503_v36 }
 0x1af   : > { %v2524_v62 = vadd.f32 %v19532_v61, %v22419_v4  ;;  %v22676_v54 = vadd.f32 %v2882_v53, %v2521_v58  ;;  %19851 = vmatprep.mubr.msk.f32.mxu0 %vm541_vm0, %v4686_v27  ;;  %19907 = vmatprep.mubr.msk.f32.mxu1 %vm541_vm0, %v16504_v55  ;;  %v4691_v55 = vld [vmem:[%s21525_s15 + $0xda] sm:$0xff]  ;;  %v16509_v58 = vld [vmem:[%s21525_s15 + $0x22a] sm:$0xff] }
 0x1b0   : > { %v2464_v0 = vpop.f32.mrf.mxu0  ;;  %v2892_v38 = vpop.f32.mrf.mxu1 }
 0x1b1   : > { %v2523_v11 = vadd.f32 %v2464_v0, %v22424_v21  ;;  %v22685_v24 = vadd.f32 %v19588_v57, %v2524_v62  ;;  %v4692_v57 = vld [vmem:[%s21525_s15 + $0xe2] sm:$0xff]  ;;  %v16510_v62 = vld [vmem:[%s21525_s15 + $0x232] sm:$0xff] }
 0x1b2   : > { %v19535_v4 = vpop.f32.mrf.mxu0  ;;  %19852 = vmatmul.mubr.msk.f32.gmra.mxu0 %vm541_vm0, %v4687_v28  ;;  %v19591_v16 = vpop.f32.mrf.mxu1  ;;  %19908 = vmatmul.mubr.msk.f32.gmra.mxu1 %vm541_vm0, %v16505_v60 }
 0x1b3   : > { %v2526_v22 = vadd.f32 %v19535_v4, %v22433_v45  ;;  %v22690_v37 = vadd.f32 %v2892_v38, %v2523_v11  ;;  %19854 = vmatprep.mubr.msk.f32.mxu0 %vm541_vm0, %v4688_v56  ;;  %19910 = vmatprep.mubr.msk.f32.mxu1 %vm541_vm0, %v16506_v15  ;;  %v4693_v15 = vld [vmem:[%s21525_s15 + $0xea] sm:$0xff]  ;;  %v16511_v11 = vld [vmem:[%s21525_s15 + $0x23a] sm:$0xff] }
 0x1b4   : > { %v2474_v21 = vpop.f32.mrf.mxu0  ;;  %v2902_v19 = vpop.f32.mrf.mxu1 }
 0x1b5   : > { %v2525_v44 = vadd.f32 %v2474_v21, %v22438_v51  ;;  %v22699_v36 = vadd.f32 %v19591_v16, %v2526_v22  ;;  %v4694_v16 = vld [vmem:[%s21525_s15 + $0xf2] sm:$0xff]  ;;  %v16512_v22 = vld [vmem:[%s21525_s15 + $0x242] sm:$0xff] }
 0x1b6   : > { %v19538_v45 = vpop.f32.mrf.mxu0  ;;  %19855 = vmatmul.mubr.msk.f32.gmra.mxu0 %vm541_vm0, %v4689_v25  ;;  %v19594_v42 = vpop.f32.mrf.mxu1  ;;  %19911 = vmatmul.mubr.msk.f32.gmra.mxu1 %vm541_vm0, %v16507_v26 }
 0x1b7   : > { %v2528_v53 = vadd.f32 %v19538_v45, %v22447_v63  ;;  %v22704_v27 = vadd.f32 %v2902_v19, %v2525_v44  ;;  %19857 = vmatprep.mubr.msk.f32.mxu0 %vm541_vm0, %v4690_v6  ;;  %19913 = vmatprep.mubr.msk.f32.mxu1 %vm541_vm0, %v16508_v14  ;;  %v4695_v14 = vld [vmem:[%s21525_s15 + $0xfa] sm:$0xff]  ;;  %v16513_v44 = vld [vmem:[%s21525_s15 + $0x24a] sm:$0xff] }
 0x1b8   : > { %v2484_v51 = vpop.f32.mrf.mxu0  ;;  %v2912_v61 = vpop.f32.mrf.mxu1 }
 0x1b9   : > { %v2527_v28 = vadd.f32 %v2484_v51, %v22451_v47  ;;  %v22713_v60 = vadd.f32 %v19594_v42, %v2528_v53  ;;  %v4696_v42 = vld [vmem:[%s21525_s15 + $0x102] sm:$0xff]  ;;  %v16514_v53 = vld [vmem:[%s21525_s15 + $0x252] sm:$0xff] }
 0x1ba   : > { %v19599_v63 = vpop.f32.mrf.mxu0  ;;  %19858 = vmatmul.mubr.msk.f32.gmra.mxu0 %vm541_vm0, %v4691_v55  ;;  %v19655_v0 = vpop.f32.mrf.mxu1  ;;  %19914 = vmatmul.mubr.msk.f32.gmra.mxu1 %vm541_vm0, %v16509_v58 }
 0x1bb   : > { %v22717_v38 = vadd.f32 %v2912_v61, %v2527_v28  ;;  %v3350_v56 = vadd.f32 %v19599_v63, %v22461_v46  ;;  %19860 = vmatprep.mubr.msk.f32.mxu0 %vm541_vm0, %v4692_v57  ;;  %19916 = vmatprep.mubr.msk.f32.mxu1 %vm541_vm0, %v16510_v62  ;;  %v4697_v62 = vld [vmem:[%s21525_s15 + $0x10a] sm:$0xff]  ;;  %v16515_v28 = vld [vmem:[%s21525_s15 + $0x25a] sm:$0xff] }
 0x1bc   : > { %v3170_v47 = vpop.f32.mrf.mxu0  ;;  %v3597_v4 = vpop.f32.mrf.mxu1 }
 0x1bd   : > { %v3349_v25 = vadd.f32 %v3170_v47, %v22466_v13  ;;  %v22727_v26 = vadd.f32 %v19655_v0, %v3350_v56  ;;  %v4698_v0 = vld [vmem:[%s21525_s15 + $0x112] sm:$0xff]  ;;  %v16516_v56 = vld [vmem:[%s21525_s15 + $0x262] sm:$0xff] }
 0x1be   : > { %v19602_v21 = vpop.f32.mrf.mxu0  ;;  %19861 = vmatmul.mubr.msk.f32.gmra.mxu0 %vm541_vm0, %v4693_v15  ;;  %v19658_v46 = vpop.f32.mrf.mxu1  ;;  %19917 = vmatmul.mubr.msk.f32.gmra.mxu1 %vm541_vm0, %v16511_v11 }
 0x1bf   : > { %v3352_v19 = vadd.f32 %v19602_v21, %v22475_v29  ;;  %v22732_v6 = vadd.f32 %v3597_v4, %v3349_v25  ;;  %19863 = vmatprep.mubr.msk.f32.mxu0 %vm541_vm0, %v4694_v16  ;;  %19919 = vmatprep.mubr.msk.f32.mxu1 %vm541_vm0, %v16512_v22  ;;  %v4699_v22 = vld [vmem:[%s21525_s15 + $0x11a] sm:$0xff]  ;;  %v16517_v25 = vld [vmem:[%s21525_s15 + $0x26a] sm:$0xff] }
 0x1c0   : > { %v3180_v13 = vpop.f32.mrf.mxu0  ;;  %v3607_v45 = vpop.f32.mrf.mxu1 }
 0x1c1   : > { %v3351_v55 = vadd.f32 %v3180_v13, %v22480_v30  ;;  %v22741_v58 = vadd.f32 %v19658_v46, %v3352_v19  ;;  %v4700_v46 = vld [vmem:[%s21525_s15 + $0x122] sm:$0xff]  ;;  %v16518_v19 = vld [vmem:[%s21525_s15 + $0x272] sm:$0xff] }
 0x1c2   : > { %v19605_v29 = vpop.f32.mrf.mxu0  ;;  %19864 = vmatmul.mubr.msk.f32.gmra.mxu0 %vm541_vm0, %v4695_v14  ;;  %v19661_v51 = vpop.f32.mrf.mxu1  ;;  %19920 = vmatmul.mubr.msk.f32.gmra.mxu1 %vm541_vm0, %v16513_v44 }
 0x1c3   : > { %v3354_v61 = vadd.f32 %v19605_v29, %v22489_v3  ;;  %v22746_v57 = vadd.f32 %v3607_v45, %v3351_v55  ;;  %19866 = vmatprep.mubr.msk.f32.mxu0 %vm541_vm0, %v4696_v42  ;;  %19922 = vmatprep.mubr.msk.f32.mxu1 %vm541_vm0, %v16514_v53  ;;  %v4701_v53 = vld [vmem:[%s21525_s15 + $0x12a] sm:$0xff]  ;;  %v16519_v55 = vld [vmem:[%s21525_s15 + $0x27a] sm:$0xff] }
 0x1c4   : > { %v3190_v30 = vpop.f32.mrf.mxu0  ;;  %v3617_v63 = vpop.f32.mrf.mxu1 }
 0x1c5   : > { %v3353_v15 = vadd.f32 %v3190_v30, %v22494_v43  ;;  %v22755_v11 = vadd.f32 %v19661_v51, %v3354_v61  ;;  %v5520_v51 = vld [vmem:[%s21525_s15 + $0x13] sm:$0xff]  ;;  %v16594_v61 = vld [vmem:[%s21525_s15 + $0x163] sm:$0xff] }
 0x1c6   : > { %v19608_v3 = vpop.f32.mrf.mxu0  ;;  %19867 = vmatmul.mubr.msk.f32.gmra.mxu0 %vm541_vm0, %v4697_v62  ;;  %v19664_v47 = vpop.f32.mrf.mxu1  ;;  %19923 = vmatmul.mubr.msk.f32.gmra.mxu1 %vm541_vm0, %v16515_v28 }
 0x1c7   : > { %v3356_v4 = vadd.f32 %v19608_v3, %v22503_v50  ;;  %v22760_v16 = vadd.f32 %v3617_v63, %v3353_v15  ;;  %19869 = vmatprep.mubr.msk.f32.mxu0 %vm541_vm0, %v4698_v0  ;;  %19925 = vmatprep.mubr.msk.f32.mxu1 %vm541_vm0, %v16516_v56  ;;  %v5521_v56 = vld [vmem:[%s21525_s15 + $0x1b] sm:$0xff]  ;;  %v16595_v15 = vld [vmem:[%s21525_s15 + $0x16b] sm:$0xff] }
 0x1c8   : > { %v3200_v43 = vpop.f32.mrf.mxu0  ;;  %v3627_v21 = vpop.f32.mrf.mxu1 }
 0x1c9   : > { %v3355_v14 = vadd.f32 %v3200_v43, %v22508_v59  ;;  %v22769_v44 = vadd.f32 %v19664_v47, %v3356_v4  ;;  %v5522_v47 = vld [vmem:[%s21525_s15 + $0x23] sm:$0xff]  ;;  %v16596_v4 = vld [vmem:[%s21525_s15 + $0x173] sm:$0xff] }
 0x1ca   : > { %v19611_v50 = vpop.f32.mrf.mxu0  ;;  %19870 = vmatmul.mubr.msk.f32.gmra.mxu0 %vm541_vm0, %v4699_v22  ;;  %v19667_v13 = vpop.f32.mrf.mxu1  ;;  %19926 = vmatmul.mubr.msk.f32.gmra.mxu1 %vm541_vm0, %v16517_v25 }
 0x1cb   : > { %v3358_v45 = vadd.f32 %v19611_v50, %v22517_v5  ;;  %v22774_v42 = vadd.f32 %v3627_v21, %v3355_v14  ;;  %19872 = vmatprep.mubr.msk.f32.mxu0 %vm541_vm0, %v4700_v46  ;;  %19928 = vmatprep.mubr.msk.f32.mxu1 %vm541_vm0, %v16518_v19  ;;  %v22804_v21 = vld [vmem:[%s27193_s1 + $0x80] sm:$0xff] }
 0x1cc   : > { %v3210_v59 = vpop.f32.mrf.mxu0  ;;  %v3637_v29 = vpop.f32.mrf.mxu1  ;;  %v16597_v14 = vld [vmem:[%s21525_s15 + $0x17b] sm:$0xff] }
 0x1cd   : > { %v3357_v62 = vadd.f32 %v3210_v59, %v22522_v12  ;;  %v22783_v28 = vadd.f32 %v19667_v13, %v3358_v45  ;;  %v5524_v45 = vld [vmem:[%s21525_s15 + $0x33] sm:$0xff] }
 0x1ce   : > { %v19614_v5 = vpop.f32.mrf.mxu0  ;;  %19873 = vmatmul.mubr.msk.f32.gmra.mxu0 %vm541_vm0, %v4701_v53  ;;  %v19670_v30 = vpop.f32.mrf.mxu1  ;;  %19929 = vmatmul.mubr.msk.f32.gmra.mxu1 %vm541_vm0, %v16519_v55  ;;  %v16598_v53 = vld [vmem:[%s21525_s15 + $0x183] sm:$0xff] }
 0x1cf   : > { %v3360_v63 = vadd.f32 %v19614_v5, %v22531_v10  ;;  %v22788_v0 = vadd.f32 %v3637_v29, %v3357_v62  ;;  %19933 = vmatprep.mubr.msk.f32.mxu0 %vm541_vm0, %v5520_v51  ;;  %19989 = vmatprep.mubr.msk.f32.mxu1 %vm541_vm0, %v16594_v61  ;;  %v5526_v5 = vld [vmem:[%s21525_s15 + $0x43] sm:$0xff] }
 0x1d0   : > { %v3220_v12 = vpop.f32.mrf.mxu0  ;;  %v3647_v3 = vpop.f32.mrf.mxu1 }
 0x1d1   : > { %v3359_v22 = vadd.f32 %v3220_v12, %v22541_v48  ;;  %v22797_v25 = vadd.f32 %v19670_v30, %v3360_v63  ;;  %v5523_v48 = vld [vmem:[%s21525_s15 + $0x2b] sm:$0xff]  ;;  %v16600_v30 = vld [vmem:[%s21525_s15 + $0x193] sm:$0xff] }
 0x1d2   : > { %v19617_v10 = vpop.f32.mrf.mxu0  ;;  %19934 = vmatmul.mubr.msk.f32.vlgmr.msra.gmra.mxu0 %vm541_vm0, %v5521_v56  ;;  %v19673_v43 = vpop.f32.mrf.mxu1  ;;  %19990 = vmatmul.mubr.msk.f32.vlgmr.msra.gmra.mxu1 %vm541_vm0, %v16595_v15 }
 0x1d3   : > { %v3362_v46 = vadd.f32 %v19617_v10, %v22552_v18  ;;  %v22807_v19 = vadd.f32 %v3647_v3, %v3359_v22  ;;  %19936 = vmatprep.mubr.msk.f32.mxu0 %vm541_vm0, %v5522_v47  ;;  %19992 = vmatprep.mubr.msk.f32.mxu1 %vm541_vm0, %v16596_v4  ;;  %v5527_v47 = vld [vmem:[%s21525_s15 + $0x4b] sm:$0xff]  ;;  %v16601_v4 = vld [vmem:[%s21525_s15 + $0x19b] sm:$0xff]  ;;  %v5528_v10 = vld [vmem:[%s21525_s15 + $0x53] sm:$0xff] }
 0x1d4   : > { %v3230_v50 = vpop.f32.mrf.mxu0  ;;  %v3657_v13 = vpop.f32.mrf.mxu1  ;;  %20044 = vmatpush3.msra.mxu0 %v22538_v31  ;;  %20100 = vmatpush3.msra.mxu1 %v22600_v17  ;;  %v5525_v31 = vld [vmem:[%s21525_s15 + $0x3b] sm:$0xff] }
 0x1d5   : > { %v3361_v18 = vadd.f32 %v3230_v50, %v22558_v1  ;;  %v22818_v55 = vadd.f32 %v19673_v43, %v3362_v46  ;;  %20155 = vmatprep.subr.mxu0 %v22804_v21  ;;  %v16599_v1 = vld [vmem:[%s21525_s15 + $0x18b] sm:$0xff]  ;;  %v16602_v43 = vld [vmem:[%s21525_s15 + $0x1a3] sm:$0xff] }
 0x1d6   : > { %v19620_v59 = vpop.f32.mrf.mxu0  ;;  %19937 = vmatmul.mubr.msk.f32.gmra.mxu0 %vm541_vm0, %v5523_v48  ;;  %v19676_v29 = vpop.f32.mrf.mxu1  ;;  %19993 = vmatmul.mubr.msk.f32.gmra.mxu1 %vm541_vm0, %v16597_v14 }
 0x1d7   : > { %v3364_v51 = vadd.f32 %v19620_v59, %v22567_v9  ;;  %v22824_v61 = vadd.f32 %v3657_v13, %v3361_v18  ;;  %19939 = vmatprep.mubr.msk.f32.mxu0 %vm541_vm0, %v5524_v45  ;;  %19995 = vmatprep.mubr.msk.f32.mxu1 %vm541_vm0, %v16598_v53  ;;  %v5529_v45 = vld [vmem:[%s21525_s15 + $0x5b] sm:$0xff]  ;;  %v16603_v53 = vld [vmem:[%s21525_s15 + $0x1ab] sm:$0xff]  ;;  %v5530_v59 = vld [vmem:[%s21525_s15 + $0x63] sm:$0xff] }
 0x1d8   : > { %v3240_v17 = vpop.f32.mrf.mxu0  ;;  %v3667_v62 = vpop.f32.mrf.mxu1 }
 0x1d9   : > { %v3363_v63 = vadd.f32 %v3240_v17, %v22572_v23  ;;  %v22833_v56 = vadd.f32 %v19676_v29, %v3364_v51  ;;  %v16604_v29 = vld [vmem:[%s21525_s15 + $0x1b3] sm:$0xff] }
 0x1da   : > { %v19623_v9 = vpop.f32.mrf.mxu0  ;;  %19940 = vmatmul.mubr.msk.f32.gmra.mxu0 %vm541_vm0, %v5525_v31  ;;  %v19679_v15 = vpop.f32.mrf.mxu1  ;;  %19996 = vmatmul.mubr.msk.f32.gmra.mxu1 %vm541_vm0, %v16599_v1 }
 0x1db   : > { %v3366_v12 = vadd.f32 %v19623_v9, %v22581_v39  ;;  %v22838_v3 = vadd.f32 %v3667_v62, %v3363_v63  ;;  %19942 = vmatprep.mubr.msk.f32.mxu0 %vm541_vm0, %v5526_v5  ;;  %19998 = vmatprep.mubr.msk.f32.mxu1 %vm541_vm0, %v16600_v30  ;;  %v16605_v30 = vld [vmem:[%s21525_s15 + $0x1bb] sm:$0xff] }
 0x1dc   : > { %v3250_v23 = vpop.f32.mrf.mxu0  ;;  %v3677_v22 = vpop.f32.mrf.mxu1 }
 0x1dd   : > { %v3365_v46 = vadd.f32 %v3250_v23, %v22586_v40  ;;  %v22847_v48 = vadd.f32 %v19679_v15, %v3366_v12  ;;  %v5532_v15 = vld [vmem:[%s21525_s15 + $0x73] sm:$0xff]  ;;  %v16606_v12 = vld [vmem:[%s21525_s15 + $0x1c3] sm:$0xff] }
 0x1de   : > { %v19626_v39 = vpop.f32.mrf.mxu0  ;;  %19943 = vmatmul.mubr.msk.f32.gmra.mxu0 %vm541_vm0, %v5527_v47  ;;  %v19682_v14 = vpop.f32.mrf.mxu1  ;;  %19999 = vmatmul.mubr.msk.f32.gmra.mxu1 %vm541_vm0, %v16601_v4 }
 0x1df   : > { %v3368_v50 = vadd.f32 %v19626_v39, %v22595_v35  ;;  %v22852_v13 = vadd.f32 %v3677_v22, %v3365_v46  ;;  %19945 = vmatprep.mubr.msk.f32.mxu0 %vm541_vm0, %v5528_v10  ;;  %20001 = vmatprep.mubr.msk.f32.mxu1 %vm541_vm0, %v16602_v43  ;;  %v22866_v35 = vld [vmem:[%s27193_s1 + $0x88] sm:$0xff]  ;;  %v5533_v43 = vld [vmem:[%s21525_s15 + $0x7b] sm:$0xff] }
 0x1e0   : > { %v3260_v40 = vpop.f32.mrf.mxu0  ;;  %v3687_v18 = vpop.f32.mrf.mxu1  ;;  %20211 = vmatprep.subr.mxu1 %v22866_v35  ;;  %v16607_v46 = vld [vmem:[%s21525_s15 + $0x1cb] sm:$0xff] }
 0x1e1   : > { %v3367_v51 = vadd.f32 %v3260_v40, %v22605_v7  ;;  %v22861_v31 = vadd.f32 %v19682_v14, %v3368_v50  ;;  %v5531_v7 = vld [vmem:[%s21525_s15 + $0x6b] sm:$0xff]  ;;  %v5534_v14 = vld [vmem:[%s21525_s15 + $0x83] sm:$0xff]  ;;  %v16608_v50 = vld [vmem:[%s21525_s15 + $0x1d3] sm:$0xff] }
 0x1e2   : > { %v19629_v1 = vpop.f32.mrf.mxu0  ;;  %19946 = vmatmul.mubr.msk.f32.gmra.mxu0 %vm541_vm0, %v5529_v45  ;;  %v19685_v17 = vpop.f32.mrf.mxu1  ;;  %20002 = vmatmul.mubr.msk.f32.gmra.mxu1 %vm541_vm0, %v16603_v53 }
 0x1e3   : > { %v3370_v62 = vadd.f32 %v19629_v1, %v22615_v8  ;;  %v22871_v5 = vadd.f32 %v3687_v18, %v3367_v51  ;;  %19948 = vmatprep.mubr.msk.f32.mxu0 %vm541_vm0, %v5530_v59  ;;  %20004 = vmatprep.mubr.msk.f32.mxu1 %vm541_vm0, %v16604_v29  ;;  %v5535_v29 = vld [vmem:[%s21525_s15 + $0x8b] sm:$0xff]  ;;  %v16609_v51 = vld [vmem:[%s21525_s15 + $0x1db] sm:$0xff] }
 0x1e4   : > { %v3270_v63 = vpop.f32.mrf.mxu0  ;;  %v3697_v9 = vpop.f32.mrf.mxu1 }
 0x1e5   : > { %v3369_v8 = vadd.f32 %v3270_v63, %v22620_v33  ;;  %v22881_v47 = vadd.f32 %v19685_v17, %v3370_v62  ;;  %v5536_v17 = vld [vmem:[%s21525_s15 + $0x93] sm:$0xff]  ;;  %v16610_v62 = vld [vmem:[%s21525_s15 + $0x1e3] sm:$0xff] }
 0x1e6   : > { %v19632_v4 = vpop.f32.mrf.mxu0  ;;  %19949 = vmatmul.mubr.msk.f32.gmra.mxu0 %vm541_vm0, %v5531_v7  ;;  %v19688_v23 = vpop.f32.mrf.mxu1  ;;  %20005 = vmatmul.mubr.msk.f32.gmra.mxu1 %vm541_vm0, %v16605_v30 }
 0x1e7   : > { %v3372_v22 = vadd.f32 %v19632_v4, %v22629_v20  ;;  %v22886_v10 = vadd.f32 %v3697_v9, %v3369_v8  ;;  %19951 = vmatprep.mubr.msk.f32.mxu0 %vm541_vm0, %v5532_v15  ;;  %20007 = vmatprep.mubr.msk.f32.mxu1 %vm541_vm0, %v16606_v12  ;;  %v5537_v12 = vld [vmem:[%s21525_s15 + $0x9b] sm:$0xff]  ;;  %v16611_v8 = vld [vmem:[%s21525_s15 + $0x1eb] sm:$0xff] }
 0x1e8   : > { %v3280_v33 = vpop.f32.mrf.mxu0  ;;  %v3707_v39 = vpop.f32.mrf.mxu1 }
 0x1e9   : > { %v3371_v45 = vadd.f32 %v3280_v33, %v22634_v49  ;;  %v22895_v53 = vadd.f32 %v19688_v23, %v3372_v22  ;;  %v5538_v23 = vld [vmem:[%s21525_s15 + $0xa3] sm:$0xff]  ;;  %v16612_v22 = vld [vmem:[%s21525_s15 + $0x1f3] sm:$0xff] }
 0x1ea   : > { %v19635_v20 = vpop.f32.mrf.mxu0  ;;  %19952 = vmatmul.mubr.msk.f32.gmra.mxu0 %vm541_vm0, %v5533_v43  ;;  %v19691_v40 = vpop.f32.mrf.mxu1  ;;  %20008 = vmatmul.mubr.msk.f32.gmra.mxu1 %vm541_vm0, %v16607_v46 }
 0x1eb   : > { %v3374_v18 = vadd.f32 %v19635_v20, %v22643_v2  ;;  %v22900_v59 = vadd.f32 %v3707_v39, %v3371_v45  ;;  %19954 = vmatprep.mubr.msk.f32.mxu0 %vm541_vm0, %v5534_v14  ;;  %20010 = vmatprep.mubr.msk.f32.mxu1 %vm541_vm0, %v16608_v50  ;;  %v5539_v50 = vld [vmem:[%s21525_s15 + $0xab] sm:$0xff]  ;;  %v16613_v45 = vld [vmem:[%s21525_s15 + $0x1fb] sm:$0xff] }
 0x1ec   : > { %v3290_v49 = vpop.f32.mrf.mxu0  ;;  %v3717_v1 = vpop.f32.mrf.mxu1 }
 0x1ed   : > { %v3373_v7 = vadd.f32 %v3290_v49, %v22648_v32  ;;  %v22909_v30 = vadd.f32 %v19691_v40, %v3374_v18  ;;  %v5540_v40 = vld [vmem:[%s21525_s15 + $0xb3] sm:$0xff]  ;;  %v16614_v18 = vld [vmem:[%s21525_s15 + $0x203] sm:$0xff] }
 0x1ee   : > { %v19638_v2 = vpop.f32.mrf.mxu0  ;;  %19955 = vmatmul.mubr.msk.f32.gmra.mxu0 %vm541_vm0, %v5535_v29  ;;  %v19694_v63 = vpop.f32.mrf.mxu1  ;;  %20011 = vmatmul.mubr.msk.f32.gmra.mxu1 %vm541_vm0, %v16609_v51 }
 0x1ef   : > { %v3376_v9 = vadd.f32 %v19638_v2, %v22657_v34  ;;  %v22914_v15 = vadd.f32 %v3717_v1, %v3373_v7  ;;  %19957 = vmatprep.mubr.msk.f32.mxu0 %vm541_vm0, %v5536_v17  ;;  %20013 = vmatprep.mubr.msk.f32.mxu1 %vm541_vm0, %v16610_v62  ;;  %v5541_v62 = vld [vmem:[%s21525_s15 + $0xbb] sm:$0xff]  ;;  %v16615_v7 = vld [vmem:[%s21525_s15 + $0x20b] sm:$0xff] }
 0x1f0   : > { %v3300_v32 = vpop.f32.mrf.mxu0  ;;  %v3727_v4 = vpop.f32.mrf.mxu1 }
 0x1f1   : > { %v3375_v43 = vadd.f32 %v3300_v32, %v22662_v41  ;;  %v22923_v46 = vadd.f32 %v19694_v63, %v3376_v9  ;;  %v5542_v63 = vld [vmem:[%s21525_s15 + $0xc3] sm:$0xff]  ;;  %v16616_v9 = vld [vmem:[%s21525_s15 + $0x213] sm:$0xff] }
 0x1f2   : > { %v19641_v34 = vpop.f32.mrf.mxu0  ;;  %19958 = vmatmul.mubr.msk.f32.gmra.mxu0 %vm541_vm0, %v5537_v12  ;;  %v19697_v33 = vpop.f32.mrf.mxu1  ;;  %20014 = vmatmul.mubr.msk.f32.gmra.mxu1 %vm541_vm0, %v16611_v8 }
 0x1f3   : > { %v3378_v39 = vadd.f32 %v19641_v34, %v22671_v52  ;;  %v22928_v14 = vadd.f32 %v3727_v4, %v3375_v43  ;;  %19960 = vmatprep.mubr.msk.f32.mxu0 %vm541_vm0, %v5538_v23  ;;  %20016 = vmatprep.mubr.msk.f32.mxu1 %vm541_vm0, %v16612_v22  ;;  %v5543_v22 = vld [vmem:[%s21525_s15 + $0xcb] sm:$0xff]  ;;  %v16617_v43 = vld [vmem:[%s21525_s15 + $0x21b] sm:$0xff] }
 0x1f4   : > { %v3310_v41 = vpop.f32.mrf.mxu0  ;;  %v3737_v20 = vpop.f32.mrf.mxu1 }
 0x1f5   : > { %v3377_v29 = vadd.f32 %v3310_v41, %v22676_v54  ;;  %v22937_v51 = vadd.f32 %v19697_v33, %v3378_v39  ;;  %v5544_v33 = vld [vmem:[%s21525_s15 + $0xd3] sm:$0xff]  ;;  %v16618_v39 = vld [vmem:[%s21525_s15 + $0x223] sm:$0xff] }
 0x1f6   : > { %v19644_v52 = vpop.f32.mrf.mxu0  ;;  %19961 = vmatmul.mubr.msk.f32.gmra.mxu0 %vm541_vm0, %v5539_v50  ;;  %v19700_v49 = vpop.f32.mrf.mxu1  ;;  %20017 = vmatmul.mubr.msk.f32.gmra.mxu1 %vm541_vm0, %v16613_v45 }
 0x1f7   : > { %v3380_v1 = vadd.f32 %v19644_v52, %v22685_v24  ;;  %v22942_v17 = vadd.f32 %v3737_v20, %v3377_v29  ;;  %19963 = vmatprep.mubr.msk.f32.mxu0 %vm541_vm0, %v5540_v40  ;;  %20019 = vmatprep.mubr.msk.f32.mxu1 %vm541_vm0, %v16614_v18  ;;  %v5545_v18 = vld [vmem:[%s21525_s15 + $0xdb] sm:$0xff]  ;;  %v16619_v29 = vld [vmem:[%s21525_s15 + $0x22b] sm:$0xff] }
 0x1f8   : > { %v3320_v54 = vpop.f32.mrf.mxu0  ;;  %v3747_v2 = vpop.f32.mrf.mxu1 }
 0x1f9   : > { %v3379_v12 = vadd.f32 %v3320_v54, %v22690_v37  ;;  %v22951_v8 = vadd.f32 %v19700_v49, %v3380_v1  ;;  %v5546_v49 = vld [vmem:[%s21525_s15 + $0xe3] sm:$0xff]  ;;  %v16620_v1 = vld [vmem:[%s21525_s15 + $0x233] sm:$0xff] }
 0x1fa   : > { %v19647_v24 = vpop.f32.mrf.mxu0  ;;  %19964 = vmatmul.mubr.msk.f32.gmra.mxu0 %vm541_vm0, %v5541_v62  ;;  %v19703_v32 = vpop.f32.mrf.mxu1  ;;  %20020 = vmatmul.mubr.msk.f32.gmra.mxu1 %vm541_vm0, %v16615_v7 }
 0x1fb   : > { %v3382_v4 = vadd.f32 %v19647_v24, %v22699_v36  ;;  %v22956_v23 = vadd.f32 %v3747_v2, %v3379_v12  ;;  %19966 = vmatprep.mubr.msk.f32.mxu0 %vm541_vm0, %v5542_v63  ;;  %20022 = vmatprep.mubr.msk.f32.mxu1 %vm541_vm0, %v16616_v9  ;;  %v5547_v9 = vld [vmem:[%s21525_s15 + $0xeb] sm:$0xff]  ;;  %v16621_v12 = vld [vmem:[%s21525_s15 + $0x23b] sm:$0xff] }
 0x1fc   : > { %v3330_v37 = vpop.f32.mrf.mxu0  ;;  %v3757_v34 = vpop.f32.mrf.mxu1 }
 0x1fd   : > { %v3381_v50 = vadd.f32 %v3330_v37, %v22704_v27  ;;  %v22965_v45 = vadd.f32 %v19703_v32, %v3382_v4  ;;  %v5548_v32 = vld [vmem:[%s21525_s15 + $0xf3] sm:$0xff]  ;;  %v16622_v4 = vld [vmem:[%s21525_s15 + $0x243] sm:$0xff] }
 0x1fe   : > { %v19650_v36 = vpop.f32.mrf.mxu0  ;;  %19967 = vmatmul.mubr.msk.f32.gmra.mxu0 %vm541_vm0, %v5543_v22  ;;  %v19706_v41 = vpop.f32.mrf.mxu1  ;;  %20023 = vmatmul.mubr.msk.f32.gmra.mxu1 %vm541_vm0, %v16617_v43 }
 0x1ff   : > { %v3384_v20 = vadd.f32 %v19650_v36, %v22713_v60  ;;  %v22970_v40 = vadd.f32 %v3757_v34, %v3381_v50  ;;  %19969 = vmatprep.mubr.msk.f32.mxu0 %vm541_vm0, %v5544_v33  ;;  %20025 = vmatprep.mubr.msk.f32.mxu1 %vm541_vm0, %v16618_v39  ;;  %v5549_v39 = vld [vmem:[%s21525_s15 + $0xfb] sm:$0xff]  ;;  %v16623_v50 = vld [vmem:[%s21525_s15 + $0x24b] sm:$0xff] }
 0x200   : > { %v3340_v27 = vpop.f32.mrf.mxu0  ;;  %v3767_v52 = vpop.f32.mrf.mxu1 }
 0x201   : > { %v3383_v62 = vadd.f32 %v3340_v27, %v22717_v38  ;;  %v22979_v7 = vadd.f32 %v19706_v41, %v3384_v20  ;;  %v5550_v41 = vld [vmem:[%s21525_s15 + $0x103] sm:$0xff]  ;;  %v16624_v20 = vld [vmem:[%s21525_s15 + $0x253] sm:$0xff] }
 0x202   : > { %v19711_v60 = vpop.f32.mrf.mxu0  ;;  %19970 = vmatmul.mubr.msk.f32.gmra.mxu0 %vm541_vm0, %v5545_v18  ;;  %v19767_v54 = vpop.f32.mrf.mxu1  ;;  %20026 = vmatmul.mubr.msk.f32.gmra.mxu1 %vm541_vm0, %v16619_v29 }
 0x203   : > { %v22983_v2 = vadd.f32 %v3767_v52, %v3383_v62  ;;  %v4204_v63 = vadd.f32 %v19711_v60, %v22727_v26  ;;  %19972 = vmatprep.mubr.msk.f32.mxu0 %vm541_vm0, %v5546_v49  ;;  %20028 = vmatprep.mubr.msk.f32.mxu1 %vm541_vm0, %v16620_v1  ;;  %v5551_v1 = vld [vmem:[%s21525_s15 + $0x10b] sm:$0xff]  ;;  %v16625_v62 = vld [vmem:[%s21525_s15 + $0x25b] sm:$0xff] }
 0x204   : > { %v4024_v38 = vpop.f32.mrf.mxu0  ;;  %v4451_v24 = vpop.f32.mrf.mxu1 }
 0x205   : > { %v4203_v22 = vadd.f32 %v4024_v38, %v22732_v6  ;;  %v22993_v43 = vadd.f32 %v19767_v54, %v4204_v63  ;;  %v5552_v54 = vld [vmem:[%s21525_s15 + $0x113] sm:$0xff]  ;;  %v16626_v63 = vld [vmem:[%s21525_s15 + $0x263] sm:$0xff] }
 0x206   : > { %v19714_v37 = vpop.f32.mrf.mxu0  ;;  %19973 = vmatmul.mubr.msk.f32.gmra.mxu0 %vm541_vm0, %v5547_v9  ;;  %v19770_v26 = vpop.f32.mrf.mxu1  ;;  %20029 = vmatmul.mubr.msk.f32.gmra.mxu1 %vm541_vm0, %v16621_v12 }
 0x207   : > { %v4206_v34 = vadd.f32 %v19714_v37, %v22741_v58  ;;  %v22998_v33 = vadd.f32 %v4451_v24, %v4203_v22  ;;  %19975 = vmatprep.mubr.msk.f32.mxu0 %vm541_vm0, %v5548_v32  ;;  %20031 = vmatprep.mubr.msk.f32.mxu1 %vm541_vm0, %v16622_v4  ;;  %v5553_v4 = vld [vmem:[%s21525_s15 + $0x11b] sm:$0xff]  ;;  %v16627_v22 = vld [vmem:[%s21525_s15 + $0x26b] sm:$0xff] }
 0x208   : > { %v4034_v6 = vpop.f32.mrf.mxu0  ;;  %v4461_v36 = vpop.f32.mrf.mxu1 }
 0x209   : > { %v4205_v18 = vadd.f32 %v4034_v6, %v22746_v57  ;;  %v23007_v29 = vadd.f32 %v19770_v26, %v4206_v34  ;;  %v5554_v26 = vld [vmem:[%s21525_s15 + $0x123] sm:$0xff]  ;;  %v16628_v34 = vld [vmem:[%s21525_s15 + $0x273] sm:$0xff] }
 0x20a   : > { %v19717_v58 = vpop.f32.mrf.mxu0  ;;  %19976 = vmatmul.mubr.msk.f32.gmra.mxu0 %vm541_vm0, %v5549_v39  ;;  %v19773_v27 = vpop.f32.mrf.mxu1  ;;  %20032 = vmatmul.mubr.msk.f32.gmra.mxu1 %vm541_vm0, %v16623_v50 }
 0x20b   : > { %v4208_v52 = vadd.f32 %v19717_v58, %v22755_v11  ;;  %v23012_v49 = vadd.f32 %v4461_v36, %v4205_v18  ;;  %19978 = vmatprep.mubr.msk.f32.mxu0 %vm541_vm0, %v5550_v41  ;;  %20034 = vmatprep.mubr.msk.f32.mxu1 %vm541_vm0, %v16624_v20  ;;  %v5555_v20 = vld [vmem:[%s21525_s15 + $0x12b] sm:$0xff]  ;;  %v16629_v18 = vld [vmem:[%s21525_s15 + $0x27b] sm:$0xff] }
 0x20c   : > { %v4044_v57 = vpop.f32.mrf.mxu0  ;;  %v4471_v60 = vpop.f32.mrf.mxu1 }
 0x20d   : > { %v4207_v9 = vadd.f32 %v4044_v57, %v22760_v16  ;;  %v23021_v12 = vadd.f32 %v19773_v27, %v4208_v52  ;;  %v6374_v27 = vld [vmem:[%s21525_s15 + $0x14] sm:$0xff] }
 0x20e   : > { %v19720_v11 = vpop.f32.mrf.mxu0  ;;  %19979 = vmatmul.mubr.msk.f32.gmra.mxu0 %vm541_vm0, %v5551_v1  ;;  %v19776_v38 = vpop.f32.mrf.mxu1  ;;  %20035 = vmatmul.mubr.msk.f32.gmra.mxu1 %vm541_vm0, %v16625_v62  ;;  %v16704_v52 = vld [vmem:[%s21525_s15 + $0x2b2] sm:$0xff] }
 0x20f   : > { %v4210_v24 = vadd.f32 %v19720_v11, %v22769_v44  ;;  %v23026_v32 = vadd.f32 %v4471_v60, %v4207_v9  ;;  %19981 = vmatprep.mubr.msk.f32.mxu0 %vm541_vm0, %v5552_v54  ;;  %20037 = vmatprep.mubr.msk.f32.mxu1 %vm541_vm0, %v16626_v63  ;;  %v6375_v63 = vld [vmem:[%s21525_s15 + $0x1c] sm:$0xff] }
 0x210   : > { %v4054_v16 = vpop.f32.mrf.mxu0  ;;  %v4481_v37 = vpop.f32.mrf.mxu1  ;;  %v16705_v9 = vld [vmem:[%s21525_s15 + $0x2ba] sm:$0xff] }
 0x211   : > { %v4209_v39 = vadd.f32 %v4054_v16, %v22774_v42  ;;  %v23035_v50 = vadd.f32 %v19776_v38, %v4210_v24  ;;  %v6376_v38 = vld [vmem:[%s21525_s15 + $0x24] sm:$0xff] }
 0x212   : > { %v19723_v44 = vpop.f32.mrf.mxu0  ;;  %19982 = vmatmul.mubr.msk.f32.gmra.mxu0 %vm541_vm0, %v5553_v4  ;;  %v19779_v6 = vpop.f32.mrf.mxu1  ;;  %20038 = vmatmul.mubr.msk.f32.gmra.mxu1 %vm541_vm0, %v16627_v22  ;;  %v16706_v24 = vld [vmem:[%s21525_s15 + $0x2c2] sm:$0xff] }
 0x213   : > { %v4212_v36 = vadd.f32 %v19723_v44, %v22783_v28  ;;  %v23040_v41 = vadd.f32 %v4481_v37, %v4209_v39  ;;  %19984 = vmatprep.mubr.msk.f32.mxu0 %vm541_vm0, %v5554_v26  ;;  %20040 = vmatprep.mubr.msk.f32.mxu1 %vm541_vm0, %v16628_v34  ;;  %v23070_v37 = vld [vmem:[%s27193_s1 + $0x90] sm:$0xff] }
 0x214   : > { %v4064_v42 = vpop.f32.mrf.mxu0  ;;  %v4491_v58 = vpop.f32.mrf.mxu1  ;;  %v16707_v39 = vld [vmem:[%s21525_s15 + $0x2ca] sm:$0xff] }
 0x215   : > { %v4211_v1 = vadd.f32 %v4064_v42, %v22788_v0  ;;  %v23049_v62 = vadd.f32 %v19779_v6, %v4212_v36  ;;  %v6378_v36 = vld [vmem:[%s21525_s15 + $0x34] sm:$0xff] }
 0x216   : > { %v19726_v28 = vpop.f32.mrf.mxu0  ;;  %19985 = vmatmul.mubr.msk.f32.gmra.mxu0 %vm541_vm0, %v5555_v20  ;;  %v19782_v57 = vpop.f32.mrf.mxu1  ;;  %20041 = vmatmul.mubr.msk.f32.gmra.mxu1 %vm541_vm0, %v16629_v18  ;;  %v16708_v20 = vld [vmem:[%s21525_s15 + $0x2d2] sm:$0xff] }
 0x217   : > { %v4214_v60 = vadd.f32 %v19726_v28, %v22797_v25  ;;  %v23054_v54 = vadd.f32 %v4491_v58, %v4211_v1  ;;  %20045 = vmatprep.mubr.msk.f32.mxu0 %vm541_vm0, %v6374_v27  ;;  %20101 = vmatprep.mubr.msk.f32.mxu1 %vm541_vm0, %v16704_v52  ;;  %v6380_v28 = vld [vmem:[%s21525_s15 + $0x44] sm:$0xff] }
 0x218   : > { %v4074_v0 = vpop.f32.mrf.mxu0  ;;  %v4501_v11 = vpop.f32.mrf.mxu1 }
 0x219   : > { %v4213_v4 = vadd.f32 %v4074_v0, %v22807_v19  ;;  %v23063_v22 = vadd.f32 %v19782_v57, %v4214_v60  ;;  %v6377_v19 = vld [vmem:[%s21525_s15 + $0x2c] sm:$0xff]  ;;  %v16710_v57 = vld [vmem:[%s21525_s15 + $0x2e2] sm:$0xff] }
 0x21a   : > { %v19729_v25 = vpop.f32.mrf.mxu0  ;;  %20046 = vmatmul.mubr.msk.f32.vlgmr.msra.gmra.mxu0 %vm541_vm0, %v6375_v63  ;;  %v19785_v16 = vpop.f32.mrf.mxu1  ;;  %20102 = vmatmul.mubr.msk.f32.vlgmr.msra.gmra.mxu1 %vm541_vm0, %v16705_v9 }
 0x21b   : > { %v4216_v26 = vadd.f32 %v19729_v25, %v22818_v55  ;;  %v23073_v34 = vadd.f32 %v4501_v11, %v4213_v4  ;;  %20048 = vmatprep.mubr.msk.f32.mxu0 %vm541_vm0, %v6376_v38  ;;  %20104 = vmatprep.mubr.msk.f32.mxu1 %vm541_vm0, %v16706_v24  ;;  %v6381_v38 = vld [vmem:[%s21525_s15 + $0x4c] sm:$0xff]  ;;  %v6382_v25 = vld [vmem:[%s21525_s15 + $0x54] sm:$0xff] }
 0x21c   : > { %v4084_v44 = vpop.f32.mrf.mxu0  ;;  %v4511_v6 = vpop.f32.mrf.mxu1  ;;  %20156 = vmatpush3.msra.mxu0 %v22804_v21  ;;  %20212 = vmatpush3.msra.mxu1 %v22866_v35  ;;  %v6379_v21 = vld [vmem:[%s21525_s15 + $0x3c] sm:$0xff]  ;;  %v16711_v24 = vld [vmem:[%s21525_s15 + $0x2ea] sm:$0xff] }
 0x21d   : > { %v4215_v55 = vadd.f32 %v4084_v44, %v22824_v61  ;;  %v23084_v18 = vadd.f32 %v19785_v16, %v4216_v26  ;;  %20267 = vmatprep.subr.mxu0 %v23070_v37  ;;  %v16709_v61 = vld [vmem:[%s21525_s15 + $0x2da] sm:$0xff]  ;;  %v16712_v16 = vld [vmem:[%s21525_s15 + $0x2f2] sm:$0xff] }
 0x21e   : > { %v19732_v42 = vpop.f32.mrf.mxu0  ;;  %20049 = vmatmul.mubr.msk.f32.gmra.mxu0 %vm541_vm0, %v6377_v19  ;;  %v19788_v58 = vpop.f32.mrf.mxu1  ;;  %20105 = vmatmul.mubr.msk.f32.gmra.mxu1 %vm541_vm0, %v16707_v39 }
 0x21f   : > { %v4218_v27 = vadd.f32 %v19732_v42, %v22833_v56  ;;  %v23090_v52 = vadd.f32 %v4511_v6, %v4215_v55  ;;  %20051 = vmatprep.mubr.msk.f32.mxu0 %vm541_vm0, %v6378_v36  ;;  %20107 = vmatprep.mubr.msk.f32.mxu1 %vm541_vm0, %v16708_v20  ;;  %v6383_v36 = vld [vmem:[%s21525_s15 + $0x5c] sm:$0xff]  ;;  %v6384_v42 = vld [vmem:[%s21525_s15 + $0x64] sm:$0xff] }
 0x220   : > { %v4094_v35 = vpop.f32.mrf.mxu0  ;;  %v4521_v1 = vpop.f32.mrf.mxu1  ;;  %v16713_v20 = vld [vmem:[%s21525_s15 + $0x2fa] sm:$0xff] }
 0x221   : > { %v4217_v60 = vadd.f32 %v4094_v35, %v22838_v3  ;;  %v23099_v63 = vadd.f32 %v19788_v58, %v4218_v27  ;;  %v16714_v58 = vld [vmem:[%s21525_s15 + $0x302] sm:$0xff] }
 0x222   : > { %v19735_v56 = vpop.f32.mrf.mxu0  ;;  %20052 = vmatmul.mubr.msk.f32.gmra.mxu0 %vm541_vm0, %v6379_v21  ;;  %v19791_v9 = vpop.f32.mrf.mxu1  ;;  %20108 = vmatmul.mubr.msk.f32.gmra.mxu1 %vm541_vm0, %v16709_v61 }
 0x223   : > { %v4220_v0 = vadd.f32 %v19735_v56, %v22847_v48  ;;  %v23104_v11 = vadd.f32 %v4521_v1, %v4217_v60  ;;  %20054 = vmatprep.mubr.msk.f32.mxu0 %vm541_vm0, %v6380_v28  ;;  %20110 = vmatprep.mubr.msk.f32.mxu1 %vm541_vm0, %v16710_v57  ;;  %v16715_v57 = vld [vmem:[%s21525_s15 + $0x30a] sm:$0xff] }
 0x224   : > { %v4104_v3 = vpop.f32.mrf.mxu0  ;;  %v4531_v4 = vpop.f32.mrf.mxu1 }
 0x225   : > { %v4219_v26 = vadd.f32 %v4104_v3, %v22852_v13  ;;  %v23113_v19 = vadd.f32 %v19791_v9, %v4220_v0  ;;  %v6386_v9 = vld [vmem:[%s21525_s15 + $0x74] sm:$0xff] }
 0x226   : > { %v19738_v48 = vpop.f32.mrf.mxu0  ;;  %20055 = vmatmul.mubr.msk.f32.gmra.mxu0 %vm541_vm0, %v6381_v38  ;;  %v19794_v39 = vpop.f32.mrf.mxu1  ;;  %20111 = vmatmul.mubr.msk.f32.gmra.mxu1 %vm541_vm0, %v16711_v24  ;;  %v16716_v0 = vld [vmem:[%s21525_s15 + $0x312] sm:$0xff] }
 0x227   : > { %v4222_v44 = vadd.f32 %v19738_v48, %v22861_v31  ;;  %v23118_v6 = vadd.f32 %v4531_v4, %v4219_v26  ;;  %20057 = vmatprep.mubr.msk.f32.mxu0 %vm541_vm0, %v6382_v25  ;;  %20113 = vmatprep.mubr.msk.f32.mxu1 %vm541_vm0, %v16712_v16  ;;  %v23132_v31 = vld [vmem:[%s27193_s1 + $0x98] sm:$0xff] }
 0x228   : > { %v4114_v13 = vpop.f32.mrf.mxu0  ;;  %v4541_v55 = vpop.f32.mrf.mxu1  ;;  %20323 = vmatprep.subr.mxu1 %v23132_v31  ;;  %v6387_v16 = vld [vmem:[%s21525_s15 + $0x7c] sm:$0xff] }
 0x229   : > { %v4221_v27 = vadd.f32 %v4114_v13, %v22871_v5  ;;  %v23127_v21 = vadd.f32 %v19794_v39, %v4222_v44  ;;  %v6385_v5 = vld [vmem:[%s21525_s15 + $0x6c] sm:$0xff]  ;;  %v16717_v26 = vld [vmem:[%s21525_s15 + $0x31a] sm:$0xff]  ;;  %v6388_v39 = vld [vmem:[%s21525_s15 + $0x84] sm:$0xff] }
 0x22a   : > { %v19741_v61 = vpop.f32.mrf.mxu0  ;;  %20058 = vmatmul.mubr.msk.f32.gmra.mxu0 %vm541_vm0, %v6383_v36  ;;  %v19797_v35 = vpop.f32.mrf.mxu1  ;;  %20114 = vmatmul.mubr.msk.f32.gmra.mxu1 %vm541_vm0, %v16713_v20  ;;  %v16718_v44 = vld [vmem:[%s21525_s15 + $0x322] sm:$0xff] }
 0x22b   : > { %v4224_v1 = vadd.f32 %v19741_v61, %v22881_v47  ;;  %v23137_v28 = vadd.f32 %v4541_v55, %v4221_v27  ;;  %20060 = vmatprep.mubr.msk.f32.mxu0 %vm541_vm0, %v6384_v42  ;;  %20116 = vmatprep.mubr.msk.f32.mxu1 %vm541_vm0, %v16714_v58  ;;  %v6389_v58 = vld [vmem:[%s21525_s15 + $0x8c] sm:$0xff] }
 0x22c   : > { %v4124_v60 = vpop.f32.mrf.mxu0  ;;  %v4551_v56 = vpop.f32.mrf.mxu1  ;;  %v16719_v27 = vld [vmem:[%s21525_s15 + $0x32a] sm:$0xff] }
 0x22d   : > { %v4223_v47 = vadd.f32 %v4124_v60, %v22886_v10  ;;  %v23147_v38 = vadd.f32 %v19797_v35, %v4224_v1  ;;  %v6390_v35 = vld [vmem:[%s21525_s15 + $0x94] sm:$0xff] }
 0x22e   : > { %v19744_v24 = vpop.f32.mrf.mxu0  ;;  %20061 = vmatmul.mubr.msk.f32.gmra.mxu0 %vm541_vm0, %v6385_v5  ;;  %v19800_v3 = vpop.f32.mrf.mxu1  ;;  %20117 = vmatmul.mubr.msk.f32.gmra.mxu1 %vm541_vm0, %v16715_v57  ;;  %v16720_v1 = vld [vmem:[%s21525_s15 + $0x332] sm:$0xff] }
 0x22f   : > { %v4226_v4 = vadd.f32 %v19744_v24, %v22895_v53  ;;  %v23152_v25 = vadd.f32 %v4551_v56, %v4223_v47  ;;  %20063 = vmatprep.mubr.msk.f32.mxu0 %vm541_vm0, %v6386_v9  ;;  %20119 = vmatprep.mubr.msk.f32.mxu1 %vm541_vm0, %v16716_v0  ;;  %v6391_v0 = vld [vmem:[%s21525_s15 + $0x9c] sm:$0xff] }
 0x230   : > { %v4134_v10 = vpop.f32.mrf.mxu0  ;;  %v4561_v48 = vpop.f32.mrf.mxu1  ;;  %v16721_v47 = vld [vmem:[%s21525_s15 + $0x33a] sm:$0xff] }
 0x231   : > { %v4225_v36 = vadd.f32 %v4134_v10, %v22900_v59  ;;  %v23161_v20 = vadd.f32 %v19800_v3, %v4226_v4  ;;  %v6392_v3 = vld [vmem:[%s21525_s15 + $0xa4] sm:$0xff] }
 0x232   : > { %v19747_v53 = vpop.f32.mrf.mxu0  ;;  %20064 = vmatmul.mubr.msk.f32.gmra.mxu0 %vm541_vm0, %v6387_v16  ;;  %v19803_v13 = vpop.f32.mrf.mxu1  ;;  %20120 = vmatmul.mubr.msk.f32.gmra.mxu1 %vm541_vm0, %v16717_v26  ;;  %v16722_v4 = vld [vmem:[%s21525_s15 + $0x342] sm:$0xff] }
 0x233   : > { %v4228_v55 = vadd.f32 %v19747_v53, %v22909_v30  ;;  %v23166_v42 = vadd.f32 %v4561_v48, %v4225_v36  ;;  %20066 = vmatprep.mubr.msk.f32.mxu0 %vm541_vm0, %v6388_v39  ;;  %20122 = vmatprep.mubr.msk.f32.mxu1 %vm541_vm0, %v16718_v44  ;;  %v6393_v44 = vld [vmem:[%s21525_s15 + $0xac] sm:$0xff] }
 0x234   : > { %v4144_v59 = vpop.f32.mrf.mxu0  ;;  %v4571_v61 = vpop.f32.mrf.mxu1  ;;  %v16723_v36 = vld [vmem:[%s21525_s15 + $0x34a] sm:$0xff] }
 0x235   : > { %v4227_v5 = vadd.f32 %v4144_v59, %v22914_v15  ;;  %v23175_v57 = vadd.f32 %v19803_v13, %v4228_v55  ;;  %v6394_v13 = vld [vmem:[%s21525_s15 + $0xb4] sm:$0xff] }
 0x236   : > { %v19750_v30 = vpop.f32.mrf.mxu0  ;;  %20067 = vmatmul.mubr.msk.f32.gmra.mxu0 %vm541_vm0, %v6389_v58  ;;  %v19806_v60 = vpop.f32.mrf.mxu1  ;;  %20123 = vmatmul.mubr.msk.f32.gmra.mxu1 %vm541_vm0, %v16719_v27  ;;  %v16724_v55 = vld [vmem:[%s21525_s15 + $0x352] sm:$0xff] }
 0x237   : > { %v4230_v56 = vadd.f32 %v19750_v30, %v22923_v46  ;;  %v23180_v9 = vadd.f32 %v4571_v61, %v4227_v5  ;;  %20069 = vmatprep.mubr.msk.f32.mxu0 %vm541_vm0, %v6390_v35  ;;  %20125 = vmatprep.mubr.msk.f32.mxu1 %vm541_vm0, %v16720_v1  ;;  %v6395_v1 = vld [vmem:[%s21525_s15 + $0xbc] sm:$0xff] }
 0x238   : > { %v4154_v15 = vpop.f32.mrf.mxu0  ;;  %v4581_v24 = vpop.f32.mrf.mxu1  ;;  %v16725_v5 = vld [vmem:[%s21525_s15 + $0x35a] sm:$0xff] }
 0x239   : > { %v4229_v16 = vadd.f32 %v4154_v15, %v22928_v14  ;;  %v23189_v26 = vadd.f32 %v19806_v60, %v4230_v56  ;;  %v6396_v60 = vld [vmem:[%s21525_s15 + $0xc4] sm:$0xff] }
 0x23a   : > { %v19753_v46 = vpop.f32.mrf.mxu0  ;;  %20070 = vmatmul.mubr.msk.f32.gmra.mxu0 %vm541_vm0, %v6391_v0  ;;  %v19809_v10 = vpop.f32.mrf.mxu1  ;;  %20126 = vmatmul.mubr.msk.f32.gmra.mxu1 %vm541_vm0, %v16721_v47  ;;  %v16726_v56 = vld [vmem:[%s21525_s15 + $0x362] sm:$0xff] }
 0x23b   : > { %v4232_v48 = vadd.f32 %v19753_v46, %v22937_v51  ;;  %v23194_v39 = vadd.f32 %v4581_v24, %v4229_v16  ;;  %20072 = vmatprep.mubr.msk.f32.mxu0 %vm541_vm0, %v6392_v3  ;;  %20128 = vmatprep.mubr.msk.f32.mxu1 %vm541_vm0, %v16722_v4  ;;  %v6397_v4 = vld [vmem:[%s21525_s15 + $0xcc] sm:$0xff] }
 0x23c   : > { %v4164_v14 = vpop.f32.mrf.mxu0  ;;  %v4591_v53 = vpop.f32.mrf.mxu1  ;;  %v16727_v16 = vld [vmem:[%s21525_s15 + $0x36a] sm:$0xff] }
 0x23d   : > { %v4231_v58 = vadd.f32 %v4164_v14, %v22942_v17  ;;  %v23203_v27 = vadd.f32 %v19809_v10, %v4232_v48  ;;  %v6398_v10 = vld [vmem:[%s21525_s15 + $0xd4] sm:$0xff] }
 0x23e   : > { %v19756_v51 = vpop.f32.mrf.mxu0  ;;  %20073 = vmatmul.mubr.msk.f32.gmra.mxu0 %vm541_vm0, %v6393_v44  ;;  %v19812_v59 = vpop.f32.mrf.mxu1  ;;  %20129 = vmatmul.mubr.msk.f32.gmra.mxu1 %vm541_vm0, %v16723_v36  ;;  %v16728_v48 = vld [vmem:[%s21525_s15 + $0x372] sm:$0xff] }
 0x23f   : > { %v4234_v61 = vadd.f32 %v19756_v51, %v22951_v8  ;;  %v23208_v35 = vadd.f32 %v4591_v53, %v4231_v58  ;;  %20075 = vmatprep.mubr.msk.f32.mxu0 %vm541_vm0, %v6394_v13  ;;  %20131 = vmatprep.mubr.msk.f32.mxu1 %vm541_vm0, %v16724_v55  ;;  %v6399_v55 = vld [vmem:[%s21525_s15 + $0xdc] sm:$0xff] }
 0x240   : > { %v4174_v17 = vpop.f32.mrf.mxu0  ;;  %v4601_v30 = vpop.f32.mrf.mxu1  ;;  %v16729_v58 = vld [vmem:[%s21525_s15 + $0x37a] sm:$0xff] }
 0x241   : > { %v4233_v0 = vadd.f32 %v4174_v17, %v22956_v23  ;;  %v23217_v47 = vadd.f32 %v19812_v59, %v4234_v61  ;;  %v6400_v59 = vld [vmem:[%s21525_s15 + $0xe4] sm:$0xff] }
 0x242   : > { %v19759_v8 = vpop.f32.mrf.mxu0  ;;  %20076 = vmatmul.mubr.msk.f32.gmra.mxu0 %vm541_vm0, %v6395_v1  ;;  %v19815_v15 = vpop.f32.mrf.mxu1  ;;  %20132 = vmatmul.mubr.msk.f32.gmra.mxu1 %vm541_vm0, %v16725_v5  ;;  %v16730_v61 = vld [vmem:[%s21525_s15 + $0x382] sm:$0xff] }
 0x243   : > { %v4236_v24 = vadd.f32 %v19759_v8, %v22965_v45  ;;  %v23222_v3 = vadd.f32 %v4601_v30, %v4233_v0  ;;  %20078 = vmatprep.mubr.msk.f32.mxu0 %vm541_vm0, %v6396_v60  ;;  %20134 = vmatprep.mubr.msk.f32.mxu1 %vm541_vm0, %v16726_v56  ;;  %v6401_v56 = vld [vmem:[%s21525_s15 + $0xec] sm:$0xff] }
 0x244   : > { %v4184_v23 = vpop.f32.mrf.mxu0  ;;  %v4611_v46 = vpop.f32.mrf.mxu1  ;;  %v16731_v0 = vld [vmem:[%s21525_s15 + $0x38a] sm:$0xff] }
 0x245   : > { %v4235_v44 = vadd.f32 %v4184_v23, %v22970_v40  ;;  %v23231_v36 = vadd.f32 %v19815_v15, %v4236_v24  ;;  %v6402_v15 = vld [vmem:[%s21525_s15 + $0xf4] sm:$0xff] }
 0x246   : > { %v19762_v45 = vpop.f32.mrf.mxu0  ;;  %20079 = vmatmul.mubr.msk.f32.gmra.mxu0 %vm541_vm0, %v6397_v4  ;;  %v19818_v14 = vpop.f32.mrf.mxu1  ;;  %20135 = vmatmul.mubr.msk.f32.gmra.mxu1 %vm541_vm0, %v16727_v16  ;;  %v16732_v24 = vld [vmem:[%s21525_s15 + $0x392] sm:$0xff] }
 0x247   : > { %v4238_v53 = vadd.f32 %v19762_v45, %v22979_v7  ;;  %v23236_v13 = vadd.f32 %v4611_v46, %v4235_v44  ;;  %20081 = vmatprep.mubr.msk.f32.mxu0 %vm541_vm0, %v6398_v10  ;;  %20137 = vmatprep.mubr.msk.f32.mxu1 %vm541_vm0, %v16728_v48  ;;  %v6403_v48 = vld [vmem:[%s21525_s15 + $0xfc] sm:$0xff] }
 0x248   : > { %v4194_v40 = vpop.f32.mrf.mxu0  ;;  %v4621_v51 = vpop.f32.mrf.mxu1  ;;  %v16733_v44 = vld [vmem:[%s21525_s15 + $0x39a] sm:$0xff] }
 0x249   : > { %v4237_v1 = vadd.f32 %v4194_v40, %v22983_v2  ;;  %v23245_v5 = vadd.f32 %v19818_v14, %v4238_v53  ;;  %v6404_v14 = vld [vmem:[%s21525_s15 + $0x104] sm:$0xff] }
 0x24a   : > { %v19823_v7 = vpop.f32.mrf.mxu0  ;;  %20082 = vmatmul.mubr.msk.f32.gmra.mxu0 %vm541_vm0, %v6399_v55  ;;  %v19879_v17 = vpop.f32.mrf.mxu1  ;;  %20138 = vmatmul.mubr.msk.f32.gmra.mxu1 %vm541_vm0, %v16729_v58  ;;  %v16734_v53 = vld [vmem:[%s21525_s15 + $0x3a2] sm:$0xff] }
 0x24b   : > { %v23249_v30 = vadd.f32 %v4621_v51, %v4237_v1  ;;  %v5058_v60 = vadd.f32 %v19823_v7, %v22993_v43  ;;  %20084 = vmatprep.mubr.msk.f32.mxu0 %vm541_vm0, %v6400_v59  ;;  %20140 = vmatprep.mubr.msk.f32.mxu1 %vm541_vm0, %v16730_v61  ;;  %v6405_v61 = vld [vmem:[%s21525_s15 + $0x10c] sm:$0xff] }
 0x24c   : > { %v4878_v2 = vpop.f32.mrf.mxu0  ;;  %v5305_v8 = vpop.f32.mrf.mxu1  ;;  %v16735_v1 = vld [vmem:[%s21525_s15 + $0x3aa] sm:$0xff] }
 0x24d   : > { %v5057_v4 = vadd.f32 %v4878_v2, %v22998_v33  ;;  %v23259_v16 = vadd.f32 %v19879_v17, %v5058_v60  ;;  %v6406_v17 = vld [vmem:[%s21525_s15 + $0x114] sm:$0xff] }
 0x24e   : > { %v19826_v23 = vpop.f32.mrf.mxu0  ;;  %20085 = vmatmul.mubr.msk.f32.gmra.mxu0 %vm541_vm0, %v6401_v56  ;;  %v19882_v43 = vpop.f32.mrf.mxu1  ;;  %20141 = vmatmul.mubr.msk.f32.gmra.mxu1 %vm541_vm0, %v16731_v0  ;;  %v16736_v60 = vld [vmem:[%s21525_s15 + $0x3b2] sm:$0xff] }
 0x24f   : > { %v5060_v46 = vadd.f32 %v19826_v23, %v23007_v29  ;;  %v23264_v10 = vadd.f32 %v5305_v8, %v5057_v4  ;;  %20087 = vmatprep.mubr.msk.f32.mxu0 %vm541_vm0, %v6402_v15  ;;  %20143 = vmatprep.mubr.msk.f32.mxu1 %vm541_vm0, %v16732_v24  ;;  %v6407_v24 = vld [vmem:[%s21525_s15 + $0x11c] sm:$0xff] }
 0x250   : > { %v4888_v33 = vpop.f32.mrf.mxu0  ;;  %v5315_v45 = vpop.f32.mrf.mxu1  ;;  %v16737_v4 = vld [vmem:[%s21525_s15 + $0x3ba] sm:$0xff] }
 0x251   : > { %v5059_v55 = vadd.f32 %v4888_v33, %v23012_v49  ;;  %v23273_v58 = vadd.f32 %v19882_v43, %v5060_v46  ;;  %v6408_v43 = vld [vmem:[%s21525_s15 + $0x124] sm:$0xff] }
 0x252   : > { %v19829_v29 = vpop.f32.mrf.mxu0  ;;  %20088 = vmatmul.mubr.msk.f32.gmra.mxu0 %vm541_vm0, %v6403_v48  ;;  %v19885_v40 = vpop.f32.mrf.mxu1  ;;  %20144 = vmatmul.mubr.msk.f32.gmra.mxu1 %vm541_vm0, %v16733_v44  ;;  %v16738_v46 = vld [vmem:[%s21525_s15 + $0x3c2] sm:$0xff] }
 0x253   : > { %v5062_v51 = vadd.f32 %v19829_v29, %v23021_v12  ;;  %v23278_v59 = vadd.f32 %v5315_v45, %v5059_v55  ;;  %20090 = vmatprep.mubr.msk.f32.mxu0 %vm541_vm0, %v6404_v14  ;;  %20146 = vmatprep.mubr.msk.f32.mxu1 %vm541_vm0, %v16734_v53  ;;  %v6409_v53 = vld [vmem:[%s21525_s15 + $0x12c] sm:$0xff] }
 0x254   : > { %v4898_v49 = vpop.f32.mrf.mxu0  ;;  %v5325_v7 = vpop.f32.mrf.mxu1  ;;  %v16739_v55 = vld [vmem:[%s21525_s15 + $0x3ca] sm:$0xff] }
 0x255   : > { %v5061_v56 = vadd.f32 %v4898_v49, %v23026_v32  ;;  %v23287_v0 = vadd.f32 %v19885_v40, %v5062_v51  ;;  %v16777_v40 = vld [vmem:[%s21525_s15 + $0x402] sm:$0xff]  ;;  %v16850_v51 = vld [vmem:[%s21525_s15 + $0x2b3] sm:$0xff] }
 0x256   : > { %v19832_v12 = vpop.f32.mrf.mxu0  ;;  %20091 = vmatmul.mubr.msk.f32.gmra.mxu0 %vm541_vm0, %v6405_v61  ;;  %v19888_v2 = vpop.f32.mrf.mxu1  ;;  %20147 = vmatmul.mubr.msk.f32.gmra.mxu1 %vm541_vm0, %v16735_v1 }
 0x257   : > { %v5064_v8 = vadd.f32 %v19832_v12, %v23035_v50  ;;  %v23292_v15 = vadd.f32 %v5325_v7, %v5061_v56  ;;  %20093 = vmatprep.mubr.msk.f32.mxu0 %vm541_vm0, %v6406_v17  ;;  %20149 = vmatprep.mubr.msk.f32.mxu1 %vm541_vm0, %v16736_v60  ;;  %v16778_v60 = vld [vmem:[%s21525_s15 + $0x40a] sm:$0xff]  ;;  %v16851_v56 = vld [vmem:[%s21525_s15 + $0x2bb] sm:$0xff] }
 0x258   : > { %v4908_v32 = vpop.f32.mrf.mxu0  ;;  %v5335_v23 = vpop.f32.mrf.mxu1 }
 0x259   : > { %v5063_v48 = vadd.f32 %v4908_v32, %v23040_v41  ;;  %v23301_v44 = vadd.f32 %v19888_v2, %v5064_v8  ;;  %v16779_v2 = vld [vmem:[%s21525_s15 + $0x412] sm:$0xff]  ;;  %v16852_v8 = vld [vmem:[%s21525_s15 + $0x2c3] sm:$0xff] }
 0x25a   : > { %v19835_v50 = vpop.f32.mrf.mxu0  ;;  %20094 = vmatmul.mubr.msk.f32.gmra.mxu0 %vm541_vm0, %v6407_v24  ;;  %v19891_v33 = vpop.f32.mrf.mxu1  ;;  %20150 = vmatmul.mubr.msk.f32.gmra.mxu1 %vm541_vm0, %v16737_v4 }
 0x25b   : > { %v5066_v45 = vadd.f32 %v19835_v50, %v23049_v62  ;;  %v23306_v14 = vadd.f32 %v5335_v23, %v5063_v48  ;;  %20096 = vmatprep.mubr.msk.f32.mxu0 %vm541_vm0, %v6408_v43  ;;  %20152 = vmatprep.mubr.msk.f32.mxu1 %vm541_vm0, %v16738_v46  ;;  %v23336_v23 = vld [vmem:[%s27193_s1 + $0xa0] sm:$0xff]  ;;  %v16853_v48 = vld [vmem:[%s21525_s15 + $0x2cb] sm:$0xff] }
 0x25c   : > { %v4918_v41 = vpop.f32.mrf.mxu0  ;;  %v5345_v29 = vpop.f32.mrf.mxu1 }
 0x25d   : > { %v5065_v61 = vadd.f32 %v4918_v41, %v23054_v54  ;;  %v23315_v1 = vadd.f32 %v19891_v33, %v5066_v45  ;;  %v16781_v45 = vld [vmem:[%s21525_s15 + $0x422] sm:$0xff] }
 0x25e   : > { %v19838_v62 = vpop.f32.mrf.mxu0  ;;  %20097 = vmatmul.mubr.msk.f32.gmra.mxu0 %vm541_vm0, %v6409_v53  ;;  %v19894_v49 = vpop.f32.mrf.mxu1  ;;  %20153 = vmatmul.mubr.msk.f32.gmra.mxu1 %vm541_vm0, %v16739_v55  ;;  %v16854_v53 = vld [vmem:[%s21525_s15 + $0x2d3] sm:$0xff] }
 0x25f   : > { %v5068_v7 = vadd.f32 %v19838_v62, %v23063_v22  ;;  %v23320_v17 = vadd.f32 %v5345_v29, %v5065_v61  ;;  %20157 = vmatprep.mubr.msk.f32.mxu0 %vm541_vm0, %v16777_v40  ;;  %20213 = vmatprep.mubr.msk.f32.mxu1 %vm541_vm0, %v16850_v51  ;;  %v16783_v62 = vld [vmem:[%s21525_s15 + $0x432] sm:$0xff] }
 0x260   : > { %v4928_v54 = vpop.f32.mrf.mxu0  ;;  %v5355_v12 = vpop.f32.mrf.mxu1 }
 0x261   : > { %v5067_v24 = vadd.f32 %v4928_v54, %v23073_v34  ;;  %v23329_v4 = vadd.f32 %v19894_v49, %v5068_v7  ;;  %v16780_v34 = vld [vmem:[%s21525_s15 + $0x41a] sm:$0xff]  ;;  %v16856_v49 = vld [vmem:[%s21525_s15 + $0x2e3] sm:$0xff] }
 0x262   : > { %v19841_v22 = vpop.f32.mrf.mxu0  ;;  %20158 = vmatmul.mubr.msk.f32.vlgmr.msra.gmra.mxu0 %vm541_vm0, %v16778_v60  ;;  %v19897_v32 = vpop.f32.mrf.mxu1  ;;  %20214 = vmatmul.mubr.msk.f32.vlgmr.msra.gmra.mxu1 %vm541_vm0, %v16851_v56 }
 0x263   : > { %v5070_v43 = vadd.f32 %v19841_v22, %v23084_v18  ;;  %v23339_v46 = vadd.f32 %v5355_v12, %v5067_v24  ;;  %20160 = vmatprep.mubr.msk.f32.mxu0 %vm541_vm0, %v16779_v2  ;;  %20216 = vmatprep.mubr.msk.f32.mxu1 %vm541_vm0, %v16852_v8  ;;  %v16784_v2 = vld [vmem:[%s21525_s15 + $0x43a] sm:$0xff]  ;;  %v16857_v8 = vld [vmem:[%s21525_s15 + $0x2eb] sm:$0xff]  ;;  %v16785_v22 = vld [vmem:[%s21525_s15 + $0x442] sm:$0xff] }
 0x264   : > { %v4938_v50 = vpop.f32.mrf.mxu0  ;;  %v5365_v33 = vpop.f32.mrf.mxu1  ;;  %20268 = vmatpush3.msra.mxu0 %v23070_v37  ;;  %20324 = vmatpush3.msra.mxu1 %v23132_v31  ;;  %v16782_v37 = vld [vmem:[%s21525_s15 + $0x42a] sm:$0xff] }
 0x265   : > { %v5069_v18 = vadd.f32 %v4938_v50, %v23090_v52  ;;  %v23350_v55 = vadd.f32 %v19897_v32, %v5070_v43  ;;  %20379 = vmatprep.subr.mxu0 %v23336_v23  ;;  %v16855_v52 = vld [vmem:[%s21525_s15 + $0x2db] sm:$0xff]  ;;  %v16858_v32 = vld [vmem:[%s21525_s15 + $0x2f3] sm:$0xff] }
 0x266   : > { %v19844_v41 = vpop.f32.mrf.mxu0  ;;  %20161 = vmatmul.mubr.msk.f32.gmra.mxu0 %vm541_vm0, %v16780_v34  ;;  %v19900_v29 = vpop.f32.mrf.mxu1  ;;  %20217 = vmatmul.mubr.msk.f32.gmra.mxu1 %vm541_vm0, %v16853_v48 }
 0x267   : > { %v5072_v40 = vadd.f32 %v19844_v41, %v23099_v63  ;;  %v23356_v51 = vadd.f32 %v5365_v33, %v5069_v18  ;;  %20163 = vmatprep.mubr.msk.f32.mxu0 %vm541_vm0, %v16781_v45  ;;  %20219 = vmatprep.mubr.msk.f32.mxu1 %vm541_vm0, %v16854_v53  ;;  %v16786_v45 = vld [vmem:[%s21525_s15 + $0x44a] sm:$0xff]  ;;  %v16859_v53 = vld [vmem:[%s21525_s15 + $0x2fb] sm:$0xff]  ;;  %v16787_v41 = vld [vmem:[%s21525_s15 + $0x452] sm:$0xff] }
 0x268   : > { %v4948_v31 = vpop.f32.mrf.mxu0  ;;  %v5375_v61 = vpop.f32.mrf.mxu1 }
 0x269   : > { %v5071_v7 = vadd.f32 %v4948_v31, %v23104_v11  ;;  %v23365_v60 = vadd.f32 %v19900_v29, %v5072_v40  ;;  %v16860_v29 = vld [vmem:[%s21525_s15 + $0x303] sm:$0xff] }
 0x26a   : > { %v19847_v63 = vpop.f32.mrf.mxu0  ;;  %20164 = vmatmul.mubr.msk.f32.gmra.mxu0 %vm541_vm0, %v16782_v37  ;;  %v19903_v56 = vpop.f32.mrf.mxu1  ;;  %20220 = vmatmul.mubr.msk.f32.gmra.mxu1 %vm541_vm0, %v16855_v52 }
 0x26b   : > { %v5074_v54 = vadd.f32 %v19847_v63, %v23113_v19  ;;  %v23370_v12 = vadd.f32 %v5375_v61, %v5071_v7  ;;  %20166 = vmatprep.mubr.msk.f32.mxu0 %vm541_vm0, %v16783_v62  ;;  %20222 = vmatprep.mubr.msk.f32.mxu1 %vm541_vm0, %v16856_v49  ;;  %v16861_v49 = vld [vmem:[%s21525_s15 + $0x30b] sm:$0xff] }
 0x26c   : > { %v4958_v11 = vpop.f32.mrf.mxu0  ;;  %v5385_v24 = vpop.f32.mrf.mxu1 }
 0x26d   : > { %v5073_v43 = vadd.f32 %v4958_v11, %v23118_v6  ;;  %v23379_v34 = vadd.f32 %v19903_v56, %v5074_v54  ;;  %v16789_v56 = vld [vmem:[%s21525_s15 + $0x462] sm:$0xff]  ;;  %v16862_v54 = vld [vmem:[%s21525_s15 + $0x313] sm:$0xff] }
 0x26e   : > { %v19850_v19 = vpop.f32.mrf.mxu0  ;;  %20167 = vmatmul.mubr.msk.f32.gmra.mxu0 %vm541_vm0, %v16784_v2  ;;  %v19906_v48 = vpop.f32.mrf.mxu1  ;;  %20223 = vmatmul.mubr.msk.f32.gmra.mxu1 %vm541_vm0, %v16857_v8 }
 0x26f   : > { %v5076_v50 = vadd.f32 %v19850_v19, %v23127_v21  ;;  %v23384_v33 = vadd.f32 %v5385_v24, %v5073_v43  ;;  %20169 = vmatprep.mubr.msk.f32.mxu0 %vm541_vm0, %v16785_v22  ;;  %20225 = vmatprep.mubr.msk.f32.mxu1 %vm541_vm0, %v16858_v32  ;;  %v23398_v21 = vld [vmem:[%s27193_s1 + $0xa8] sm:$0xff]  ;;  %v16863_v43 = vld [vmem:[%s21525_s15 + $0x31b] sm:$0xff] }
 0x270   : > { %v4968_v6 = vpop.f32.mrf.mxu0  ;;  %v5395_v18 = vpop.f32.mrf.mxu1  ;;  %20435 = vmatprep.subr.mxu1 %v23398_v21  ;;  %v16790_v32 = vld [vmem:[%s21525_s15 + $0x46a] sm:$0xff] }
 0x271   : > { %v5075_v40 = vadd.f32 %v4968_v6, %v23137_v28  ;;  %v23393_v37 = vadd.f32 %v19906_v48, %v5076_v50  ;;  %v16788_v28 = vld [vmem:[%s21525_s15 + $0x45a] sm:$0xff]  ;;  %v16791_v48 = vld [vmem:[%s21525_s15 + $0x472] sm:$0xff]  ;;  %v16864_v50 = vld [vmem:[%s21525_s15 + $0x323] sm:$0xff] }
 0x272   : > { %v19853_v52 = vpop.f32.mrf.mxu0  ;;  %20170 = vmatmul.mubr.msk.f32.gmra.mxu0 %vm541_vm0, %v16786_v45  ;;  %v19909_v31 = vpop.f32.mrf.mxu1  ;;  %20226 = vmatmul.mubr.msk.f32.gmra.mxu1 %vm541_vm0, %v16859_v53 }
 0x273   : > { %v5078_v61 = vadd.f32 %v19853_v52, %v23147_v38  ;;  %v23403_v62 = vadd.f32 %v5395_v18, %v5075_v40  ;;  %20172 = vmatprep.mubr.msk.f32.mxu0 %vm541_vm0, %v16787_v41  ;;  %20228 = vmatprep.mubr.msk.f32.mxu1 %vm541_vm0, %v16860_v29  ;;  %v16792_v29 = vld [vmem:[%s21525_s15 + $0x47a] sm:$0xff]  ;;  %v16865_v40 = vld [vmem:[%s21525_s15 + $0x32b] sm:$0xff] }
 0x274   : > { %v4978_v7 = vpop.f32.mrf.mxu0  ;;  %v5405_v63 = vpop.f32.mrf.mxu1 }
 0x275   : > { %v5077_v38 = vadd.f32 %v4978_v7, %v23152_v25  ;;  %v23413_v2 = vadd.f32 %v19909_v31, %v5078_v61  ;;  %v16793_v31 = vld [vmem:[%s21525_s15 + $0x482] sm:$0xff]  ;;  %v16866_v61 = vld [vmem:[%s21525_s15 + $0x333] sm:$0xff] }
 0x276   : > { %v19856_v8 = vpop.f32.mrf.mxu0  ;;  %20173 = vmatmul.mubr.msk.f32.gmra.mxu0 %vm541_vm0, %v16788_v28  ;;  %v19912_v11 = vpop.f32.mrf.mxu1  ;;  %20229 = vmatmul.mubr.msk.f32.gmra.mxu1 %vm541_vm0, %v16861_v49 }
 0x277   : > { %v5080_v24 = vadd.f32 %v19856_v8, %v23161_v20  ;;  %v23418_v22 = vadd.f32 %v5405_v63, %v5077_v38  ;;  %20175 = vmatprep.mubr.msk.f32.mxu0 %vm541_vm0, %v16789_v56  ;;  %20231 = vmatprep.mubr.msk.f32.mxu1 %vm541_vm0, %v16862_v54  ;;  %v16794_v54 = vld [vmem:[%s21525_s15 + $0x48a] sm:$0xff]  ;;  %v16867_v38 = vld [vmem:[%s21525_s15 + $0x33b] sm:$0xff] }
 0x278   : > { %v4988_v25 = vpop.f32.mrf.mxu0  ;;  %v5415_v19 = vpop.f32.mrf.mxu1 }
 0x279   : > { %v5079_v45 = vadd.f32 %v4988_v25, %v23166_v42  ;;  %v23427_v53 = vadd.f32 %v19912_v11, %v5080_v24  ;;  %v16795_v11 = vld [vmem:[%s21525_s15 + $0x492] sm:$0xff]  ;;  %v16868_v24 = vld [vmem:[%s21525_s15 + $0x343] sm:$0xff] }
 0x27a   : > { %v19859_v20 = vpop.f32.mrf.mxu0  ;;  %20176 = vmatmul.mubr.msk.f32.gmra.mxu0 %vm541_vm0, %v16790_v32  ;;  %v19915_v6 = vpop.f32.mrf.mxu1  ;;  %20232 = vmatmul.mubr.msk.f32.gmra.mxu1 %vm541_vm0, %v16863_v43 }
 0x27b   : > { %v5082_v18 = vadd.f32 %v19859_v20, %v23175_v57  ;;  %v23432_v41 = vadd.f32 %v5415_v19, %v5079_v45  ;;  %20178 = vmatprep.mubr.msk.f32.mxu0 %vm541_vm0, %v16791_v48  ;;  %20234 = vmatprep.mubr.msk.f32.mxu1 %vm541_vm0, %v16864_v50  ;;  %v16796_v50 = vld [vmem:[%s21525_s15 + $0x49a] sm:$0xff]  ;;  %v16869_v45 = vld [vmem:[%s21525_s15 + $0x34b] sm:$0xff] }
 0x27c   : > { %v4998_v42 = vpop.f32.mrf.mxu0  ;;  %v5425_v52 = vpop.f32.mrf.mxu1 }
 0x27d   : > { %v5081_v28 = vadd.f32 %v4998_v42, %v23180_v9  ;;  %v23441_v49 = vadd.f32 %v19915_v6, %v5082_v18  ;;  %v16797_v6 = vld [vmem:[%s21525_s15 + $0x4a2] sm:$0xff]  ;;  %v16870_v18 = vld [vmem:[%s21525_s15 + $0x353] sm:$0xff] }
 0x27e   : > { %v19862_v57 = vpop.f32.mrf.mxu0  ;;  %20179 = vmatmul.mubr.msk.f32.gmra.mxu0 %vm541_vm0, %v16792_v29  ;;  %v19918_v7 = vpop.f32.mrf.mxu1  ;;  %20235 = vmatmul.mubr.msk.f32.gmra.mxu1 %vm541_vm0, %v16865_v40 }
 0x27f   : > { %v5084_v63 = vadd.f32 %v19862_v57, %v23189_v26  ;;  %v23446_v56 = vadd.f32 %v5425_v52, %v5081_v28  ;;  %20181 = vmatprep.mubr.msk.f32.mxu0 %vm541_vm0, %v16793_v31  ;;  %20237 = vmatprep.mubr.msk.f32.mxu1 %vm541_vm0, %v16866_v61  ;;  %v16798_v61 = vld [vmem:[%s21525_s15 + $0x4aa] sm:$0xff]  ;;  %v16871_v28 = vld [vmem:[%s21525_s15 + $0x35b] sm:$0xff] }
 0x280   : > { %v5008_v9 = vpop.f32.mrf.mxu0  ;;  %v5435_v8 = vpop.f32.mrf.mxu1 }
 0x281   : > { %v5083_v32 = vadd.f32 %v5008_v9, %v23194_v39  ;;  %v23455_v43 = vadd.f32 %v19918_v7, %v5084_v63  ;;  %v16799_v7 = vld [vmem:[%s21525_s15 + $0x4b2] sm:$0xff]  ;;  %v16872_v63 = vld [vmem:[%s21525_s15 + $0x363] sm:$0xff] }
 0x282   : > { %v19865_v26 = vpop.f32.mrf.mxu0  ;;  %20182 = vmatmul.mubr.msk.f32.gmra.mxu0 %vm541_vm0, %v16794_v54  ;;  %v19921_v25 = vpop.f32.mrf.mxu1  ;;  %20238 = vmatmul.mubr.msk.f32.gmra.mxu1 %vm541_vm0, %v16867_v38 }
 0x283   : > { %v5086_v19 = vadd.f32 %v19865_v26, %v23203_v27  ;;  %v23460_v48 = vadd.f32 %v5435_v8, %v5083_v32  ;;  %20184 = vmatprep.mubr.msk.f32.mxu0 %vm541_vm0, %v16795_v11  ;;  %20240 = vmatprep.mubr.msk.f32.mxu1 %vm541_vm0, %v16868_v24  ;;  %v16800_v24 = vld [vmem:[%s21525_s15 + $0x4ba] sm:$0xff]  ;;  %v16873_v32 = vld [vmem:[%s21525_s15 + $0x36b] sm:$0xff] }
 0x284   : > { %v5018_v39 = vpop.f32.mrf.mxu0  ;;  %v5445_v20 = vpop.f32.mrf.mxu1 }
 0x285   : > { %v5085_v29 = vadd.f32 %v5018_v39, %v23208_v35  ;;  %v23469_v40 = vadd.f32 %v19921_v25, %v5086_v19  ;;  %v16801_v25 = vld [vmem:[%s21525_s15 + $0x4c2] sm:$0xff]  ;;  %v16874_v19 = vld [vmem:[%s21525_s15 + $0x373] sm:$0xff] }
 0x286   : > { %v19868_v27 = vpop.f32.mrf.mxu0  ;;  %20185 = vmatmul.mubr.msk.f32.gmra.mxu0 %vm541_vm0, %v16796_v50  ;;  %v19924_v42 = vpop.f32.mrf.mxu1  ;;  %20241 = vmatmul.mubr.msk.f32.gmra.mxu1 %vm541_vm0, %v16869_v45 }
 0x287   : > { %v5088_v52 = vadd.f32 %v19868_v27, %v23217_v47  ;;  %v23474_v31 = vadd.f32 %v5445_v20, %v5085_v29  ;;  %20187 = vmatprep.mubr.msk.f32.mxu0 %vm541_vm0, %v16797_v6  ;;  %20243 = vmatprep.mubr.msk.f32.mxu1 %vm541_vm0, %v16870_v18  ;;  %v16802_v18 = vld [vmem:[%s21525_s15 + $0x4ca] sm:$0xff]  ;;  %v16875_v29 = vld [vmem:[%s21525_s15 + $0x37b] sm:$0xff] }
 0x288   : > { %v5028_v35 = vpop.f32.mrf.mxu0  ;;  %v5455_v57 = vpop.f32.mrf.mxu1 }
 0x289   : > { %v5087_v54 = vadd.f32 %v5028_v35, %v23222_v3  ;;  %v23483_v38 = vadd.f32 %v19924_v42, %v5088_v52  ;;  %v16803_v42 = vld [vmem:[%s21525_s15 + $0x4d2] sm:$0xff]  ;;  %v16876_v52 = vld [vmem:[%s21525_s15 + $0x383] sm:$0xff] }
 0x28a   : > { %v19871_v47 = vpop.f32.mrf.mxu0  ;;  %20188 = vmatmul.mubr.msk.f32.gmra.mxu0 %vm541_vm0, %v16798_v61  ;;  %v19927_v9 = vpop.f32.mrf.mxu1  ;;  %20244 = vmatmul.mubr.msk.f32.gmra.mxu1 %vm541_vm0, %v16871_v28 }
 0x28b   : > { %v5090_v8 = vadd.f32 %v19871_v47, %v23231_v36  ;;  %v23488_v11 = vadd.f32 %v5455_v57, %v5087_v54  ;;  %20190 = vmatprep.mubr.msk.f32.mxu0 %vm541_vm0, %v16799_v7  ;;  %20246 = vmatprep.mubr.msk.f32.mxu1 %vm541_vm0, %v16872_v63  ;;  %v16804_v63 = vld [vmem:[%s21525_s15 + $0x4da] sm:$0xff]  ;;  %v16877_v54 = vld [vmem:[%s21525_s15 + $0x38b] sm:$0xff] }
 0x28c   : > { %v5038_v3 = vpop.f32.mrf.mxu0  ;;  %v5465_v26 = vpop.f32.mrf.mxu1 }
 0x28d   : > { %v5089_v50 = vadd.f32 %v5038_v3, %v23236_v13  ;;  %v23497_v45 = vadd.f32 %v19927_v9, %v5090_v8  ;;  %v16805_v9 = vld [vmem:[%s21525_s15 + $0x4e2] sm:$0xff]  ;;  %v16878_v8 = vld [vmem:[%s21525_s15 + $0x393] sm:$0xff] }
 0x28e   : > { %v19874_v36 = vpop.f32.mrf.mxu0  ;;  %20191 = vmatmul.mubr.msk.f32.gmra.mxu0 %vm541_vm0, %v16800_v24  ;;  %v19930_v39 = vpop.f32.mrf.mxu1  ;;  %20247 = vmatmul.mubr.msk.f32.gmra.mxu1 %vm541_vm0, %v16873_v32 }
 0x28f   : > { %v5092_v20 = vadd.f32 %v19874_v36, %v23245_v5  ;;  %v23502_v6 = vadd.f32 %v5465_v26, %v5089_v50  ;;  %20193 = vmatprep.mubr.msk.f32.mxu0 %vm541_vm0, %v16801_v25  ;;  %20249 = vmatprep.mubr.msk.f32.mxu1 %vm541_vm0, %v16874_v19  ;;  %v16806_v19 = vld [vmem:[%s21525_s15 + $0x4ea] sm:$0xff]  ;;  %v16879_v50 = vld [vmem:[%s21525_s15 + $0x39b] sm:$0xff] }
 0x290   : > { %v5048_v13 = vpop.f32.mrf.mxu0  ;;  %v5475_v27 = vpop.f32.mrf.mxu1 }
 0x291   : > { %v5091_v61 = vadd.f32 %v5048_v13, %v23249_v30  ;;  %v23511_v28 = vadd.f32 %v19930_v39, %v5092_v20  ;;  %v16807_v39 = vld [vmem:[%s21525_s15 + $0x4f2] sm:$0xff]  ;;  %v16880_v20 = vld [vmem:[%s21525_s15 + $0x3a3] sm:$0xff] }
 0x292   : > { %v19935_v5 = vpop.f32.mrf.mxu0  ;;  %20194 = vmatmul.mubr.msk.f32.gmra.mxu0 %vm541_vm0, %v16802_v18  ;;  %v19991_v35 = vpop.f32.mrf.mxu1  ;;  %20250 = vmatmul.mubr.msk.f32.gmra.mxu1 %vm541_vm0, %v16875_v29 }
 0x293   : > { %v23515_v57 = vadd.f32 %v5475_v27, %v5091_v61  ;;  %v5912_v7 = vadd.f32 %v19935_v5, %v23259_v16  ;;  %20196 = vmatprep.mubr.msk.f32.mxu0 %vm541_vm0, %v16803_v42  ;;  %20252 = vmatprep.mubr.msk.f32.mxu1 %vm541_vm0, %v16876_v52  ;;  %v16808_v52 = vld [vmem:[%s21525_s15 + $0x4fa] sm:$0xff]  ;;  %v16881_v61 = vld [vmem:[%s21525_s15 + $0x3ab] sm:$0xff] }
 0x294   : > { %v5732_v30 = vpop.f32.mrf.mxu0  ;;  %v6159_v47 = vpop.f32.mrf.mxu1 }
 0x295   : > { %v5911_v24 = vadd.f32 %v5732_v30, %v23264_v10  ;;  %v23525_v32 = vadd.f32 %v19991_v35, %v5912_v7  ;;  %v16809_v35 = vld [vmem:[%s21525_s15 + $0x502] sm:$0xff]  ;;  %v16882_v7 = vld [vmem:[%s21525_s15 + $0x3b3] sm:$0xff] }
 0x296   : > { %v19938_v3 = vpop.f32.mrf.mxu0  ;;  %20197 = vmatmul.mubr.msk.f32.gmra.mxu0 %vm541_vm0, %v16804_v63  ;;  %v19994_v16 = vpop.f32.mrf.mxu1  ;;  %20253 = vmatmul.mubr.msk.f32.gmra.mxu1 %vm541_vm0, %v16877_v54 }
 0x297   : > { %v5914_v26 = vadd.f32 %v19938_v3, %v23273_v58  ;;  %v23530_v25 = vadd.f32 %v6159_v47, %v5911_v24  ;;  %20199 = vmatprep.mubr.msk.f32.mxu0 %vm541_vm0, %v16805_v9  ;;  %20255 = vmatprep.mubr.msk.f32.mxu1 %vm541_vm0, %v16878_v8  ;;  %v16810_v8 = vld [vmem:[%s21525_s15 + $0x50a] sm:$0xff]  ;;  %v16883_v24 = vld [vmem:[%s21525_s15 + $0x3bb] sm:$0xff] }
 0x298   : > { %v5742_v10 = vpop.f32.mrf.mxu0  ;;  %v6169_v36 = vpop.f32.mrf.mxu1 }
 0x299   : > { %v5913_v18 = vadd.f32 %v5742_v10, %v23278_v59  ;;  %v23539_v29 = vadd.f32 %v19994_v16, %v5914_v26  ;;  %v16811_v16 = vld [vmem:[%s21525_s15 + $0x512] sm:$0xff]  ;;  %v16884_v26 = vld [vmem:[%s21525_s15 + $0x3c3] sm:$0xff] }
 0x29a   : > { %v19941_v58 = vpop.f32.mrf.mxu0  ;;  %20200 = vmatmul.mubr.msk.f32.gmra.mxu0 %vm541_vm0, %v16806_v19  ;;  %v19997_v13 = vpop.f32.mrf.mxu1  ;;  %20256 = vmatmul.mubr.msk.f32.gmra.mxu1 %vm541_vm0, %v16879_v50 }
 0x29b   : > { %v5916_v27 = vadd.f32 %v19941_v58, %v23287_v0  ;;  %v23544_v42 = vadd.f32 %v6169_v36, %v5913_v18  ;;  %20202 = vmatprep.mubr.msk.f32.mxu0 %vm541_vm0, %v16807_v39  ;;  %20258 = vmatprep.mubr.msk.f32.mxu1 %vm541_vm0, %v16880_v20  ;;  %v16812_v20 = vld [vmem:[%s21525_s15 + $0x51a] sm:$0xff]  ;;  %v16885_v18 = vld [vmem:[%s21525_s15 + $0x3cb] sm:$0xff] }
 0x29c   : > { %v5752_v59 = vpop.f32.mrf.mxu0  ;;  %v6179_v5 = vpop.f32.mrf.mxu1 }
 0x29d   : > { %v5915_v63 = vadd.f32 %v5752_v59, %v23292_v15  ;;  %v23553_v54 = vadd.f32 %v19997_v13, %v5916_v27  ;;  %v16923_v13 = vld [vmem:[%s21525_s15 + $0x403] sm:$0xff]  ;;  %v16996_v27 = vld [vmem:[%s21525_s15 + $0x2b4] sm:$0xff] }
 0x29e   : > { %v19944_v0 = vpop.f32.mrf.mxu0  ;;  %20203 = vmatmul.mubr.msk.f32.gmra.mxu0 %vm541_vm0, %v16808_v52  ;;  %v20000_v30 = vpop.f32.mrf.mxu1  ;;  %20259 = vmatmul.mubr.msk.f32.gmra.mxu1 %vm541_vm0, %v16881_v61 }
 0x29f   : > { %v5918_v47 = vadd.f32 %v19944_v0, %v23301_v44  ;;  %v23558_v9 = vadd.f32 %v6179_v5, %v5915_v63  ;;  %20205 = vmatprep.mubr.msk.f32.mxu0 %vm541_vm0, %v16809_v35  ;;  %20261 = vmatprep.mubr.msk.f32.mxu1 %vm541_vm0, %v16882_v7  ;;  %v16924_v7 = vld [vmem:[%s21525_s15 + $0x40b] sm:$0xff]  ;;  %v16997_v63 = vld [vmem:[%s21525_s15 + $0x2bc] sm:$0xff] }
 0x2a0   : > { %v5762_v15 = vpop.f32.mrf.mxu0  ;;  %v6189_v3 = vpop.f32.mrf.mxu1 }
 0x2a1   : > { %v5917_v19 = vadd.f32 %v5762_v15, %v23306_v14  ;;  %v23567_v50 = vadd.f32 %v20000_v30, %v5918_v47  ;;  %v16925_v30 = vld [vmem:[%s21525_s15 + $0x413] sm:$0xff]  ;;  %v16998_v47 = vld [vmem:[%s21525_s15 + $0x2c4] sm:$0xff] }
 0x2a2   : > { %v19947_v44 = vpop.f32.mrf.mxu0  ;;  %20206 = vmatmul.mubr.msk.f32.gmra.mxu0 %vm541_vm0, %v16810_v8  ;;  %v20003_v10 = vpop.f32.mrf.mxu1  ;;  %20262 = vmatmul.mubr.msk.f32.gmra.mxu1 %vm541_vm0, %v16883_v24 }
 0x2a3   : > { %v5920_v36 = vadd.f32 %v19947_v44, %v23315_v1  ;;  %v23572_v39 = vadd.f32 %v6189_v3, %v5917_v19  ;;  %20208 = vmatprep.mubr.msk.f32.mxu0 %vm541_vm0, %v16811_v16  ;;  %20264 = vmatprep.mubr.msk.f32.mxu1 %vm541_vm0, %v16884_v26  ;;  %v23602_v3 = vld [vmem:[%s27193_s1 + $0xb0] sm:$0xff] }
 0x2a4   : > { %v5772_v14 = vpop.f32.mrf.mxu0  ;;  %v6199_v58 = vpop.f32.mrf.mxu1  ;;  %v16999_v19 = vld [vmem:[%s21525_s15 + $0x2cc] sm:$0xff] }
 0x2a5   : > { %v5919_v52 = vadd.f32 %v5772_v14, %v23320_v17  ;;  %v23581_v61 = vadd.f32 %v20003_v10, %v5920_v36  ;;  %v16927_v36 = vld [vmem:[%s21525_s15 + $0x423] sm:$0xff] }
 0x2a6   : > { %v19950_v1 = vpop.f32.mrf.mxu0  ;;  %20209 = vmatmul.mubr.msk.f32.gmra.mxu0 %vm541_vm0, %v16812_v20  ;;  %v20006_v59 = vpop.f32.mrf.mxu1  ;;  %20265 = vmatmul.mubr.msk.f32.gmra.mxu1 %vm541_vm0, %v16885_v18  ;;  %v17000_v20 = vld [vmem:[%s21525_s15 + $0x2d4] sm:$0xff] }
 0x2a7   : > { %v5922_v5 = vadd.f32 %v19950_v1, %v23329_v4  ;;  %v23586_v35 = vadd.f32 %v6199_v58, %v5919_v52  ;;  %20269 = vmatprep.mubr.msk.f32.mxu0 %vm541_vm0, %v16923_v13  ;;  %20325 = vmatprep.mubr.msk.f32.mxu1 %vm541_vm0, %v16996_v27  ;;  %v16929_v1 = vld [vmem:[%s21525_s15 + $0x433] sm:$0xff] }
 0x2a8   : > { %v5782_v17 = vpop.f32.mrf.mxu0  ;;  %v6209_v0 = vpop.f32.mrf.mxu1 }
 0x2a9   : > { %v5921_v8 = vadd.f32 %v5782_v17, %v23339_v46  ;;  %v23595_v24 = vadd.f32 %v20006_v59, %v5922_v5  ;;  %v16926_v46 = vld [vmem:[%s21525_s15 + $0x41b] sm:$0xff]  ;;  %v17002_v59 = vld [vmem:[%s21525_s15 + $0x2e4] sm:$0xff] }
 0x2aa   : > { %v19953_v4 = vpop.f32.mrf.mxu0  ;;  %20270 = vmatmul.mubr.msk.f32.vlgmr.msra.gmra.mxu0 %vm541_vm0, %v16924_v7  ;;  %v20009_v15 = vpop.f32.mrf.mxu1  ;;  %20326 = vmatmul.mubr.msk.f32.vlgmr.msra.gmra.mxu1 %vm541_vm0, %v16997_v63 }
 0x2ab   : > { %v5924_v16 = vadd.f32 %v19953_v4, %v23350_v55  ;;  %v23605_v26 = vadd.f32 %v6209_v0, %v5921_v8  ;;  %20272 = vmatprep.mubr.msk.f32.mxu0 %vm541_vm0, %v16925_v30  ;;  %20328 = vmatprep.mubr.msk.f32.mxu1 %vm541_vm0, %v16998_v47  ;;  %v16930_v30 = vld [vmem:[%s21525_s15 + $0x43b] sm:$0xff]  ;;  %v17003_v47 = vld [vmem:[%s21525_s15 + $0x2ec] sm:$0xff]  ;;  %v16931_v4 = vld [vmem:[%s21525_s15 + $0x443] sm:$0xff] }
 0x2ac   : > { %v5792_v44 = vpop.f32.mrf.mxu0  ;;  %v6219_v10 = vpop.f32.mrf.mxu1  ;;  %20380 = vmatpush3.msra.mxu0 %v23336_v23  ;;  %20436 = vmatpush3.msra.mxu1 %v23398_v21  ;;  %v16928_v23 = vld [vmem:[%s21525_s15 + $0x42b] sm:$0xff] }
 0x2ad   : > { %v5923_v55 = vadd.f32 %v5792_v44, %v23356_v51  ;;  %v23616_v18 = vadd.f32 %v20009_v15, %v5924_v16  ;;  %20491 = vmatprep.subr.mxu0 %v23602_v3  ;;  %v17001_v51 = vld [vmem:[%s21525_s15 + $0x2dc] sm:$0xff]  ;;  %v17004_v15 = vld [vmem:[%s21525_s15 + $0x2f4] sm:$0xff] }
 0x2ae   : > { %v19956_v14 = vpop.f32.mrf.mxu0  ;;  %20273 = vmatmul.mubr.msk.f32.gmra.mxu0 %vm541_vm0, %v16926_v46  ;;  %v20012_v58 = vpop.f32.mrf.mxu1  ;;  %20329 = vmatmul.mubr.msk.f32.gmra.mxu1 %vm541_vm0, %v16999_v19 }
 0x2af   : > { %v5926_v13 = vadd.f32 %v19956_v14, %v23365_v60  ;;  %v23622_v27 = vadd.f32 %v6219_v10, %v5923_v55  ;;  %20275 = vmatprep.mubr.msk.f32.mxu0 %vm541_vm0, %v16927_v36  ;;  %20331 = vmatprep.mubr.msk.f32.mxu1 %vm541_vm0, %v17000_v20  ;;  %v16932_v36 = vld [vmem:[%s21525_s15 + $0x44b] sm:$0xff]  ;;  %v17005_v20 = vld [vmem:[%s21525_s15 + $0x2fc] sm:$0xff]  ;;  %v16933_v14 = vld [vmem:[%s21525_s15 + $0x453] sm:$0xff] }
 0x2b0   : > { %v5802_v21 = vpop.f32.mrf.mxu0  ;;  %v6229_v52 = vpop.f32.mrf.mxu1 }
 0x2b1   : > { %v5925_v5 = vadd.f32 %v5802_v21, %v23370_v12  ;;  %v23631_v7 = vadd.f32 %v20012_v58, %v5926_v13  ;;  %v17006_v58 = vld [vmem:[%s21525_s15 + $0x304] sm:$0xff] }
 0x2b2   : > { %v19959_v60 = vpop.f32.mrf.mxu0  ;;  %20276 = vmatmul.mubr.msk.f32.gmra.mxu0 %vm541_vm0, %v16928_v23  ;;  %v20015_v63 = vpop.f32.mrf.mxu1  ;;  %20332 = vmatmul.mubr.msk.f32.gmra.mxu1 %vm541_vm0, %v17001_v51 }
 0x2b3   : > { %v5928_v17 = vadd.f32 %v19959_v60, %v23379_v34  ;;  %v23636_v0 = vadd.f32 %v6229_v52, %v5925_v5  ;;  %20278 = vmatprep.mubr.msk.f32.mxu0 %vm541_vm0, %v16929_v1  ;;  %20334 = vmatprep.mubr.msk.f32.mxu1 %vm541_vm0, %v17002_v59  ;;  %v17007_v59 = vld [vmem:[%s21525_s15 + $0x30c] sm:$0xff] }
 0x2b4   : > { %v5812_v12 = vpop.f32.mrf.mxu0  ;;  %v6239_v8 = vpop.f32.mrf.mxu1 }
 0x2b5   : > { %v5927_v16 = vadd.f32 %v5812_v12, %v23384_v33  ;;  %v23645_v46 = vadd.f32 %v20015_v63, %v5928_v17  ;;  %v16935_v63 = vld [vmem:[%s21525_s15 + $0x463] sm:$0xff]  ;;  %v17008_v17 = vld [vmem:[%s21525_s15 + $0x314] sm:$0xff] }
 0x2b6   : > { %v19962_v34 = vpop.f32.mrf.mxu0  ;;  %20279 = vmatmul.mubr.msk.f32.gmra.mxu0 %vm541_vm0, %v16930_v30  ;;  %v20018_v19 = vpop.f32.mrf.mxu1  ;;  %20335 = vmatmul.mubr.msk.f32.gmra.mxu1 %vm541_vm0, %v17003_v47 }
 0x2b7   : > { %v5930_v44 = vadd.f32 %v19962_v34, %v23393_v37  ;;  %v23650_v10 = vadd.f32 %v6239_v8, %v5927_v16  ;;  %20281 = vmatprep.mubr.msk.f32.mxu0 %vm541_vm0, %v16931_v4  ;;  %20337 = vmatprep.mubr.msk.f32.mxu1 %vm541_vm0, %v17004_v15  ;;  %v23664_v37 = vld [vmem:[%s27193_s1 + $0xb8] sm:$0xff]  ;;  %v16936_v15 = vld [vmem:[%s21525_s15 + $0x46b] sm:$0xff] }
 0x2b8   : > { %v5822_v33 = vpop.f32.mrf.mxu0  ;;  %v6249_v55 = vpop.f32.mrf.mxu1  ;;  %20547 = vmatprep.subr.mxu1 %v23664_v37  ;;  %v17009_v16 = vld [vmem:[%s21525_s15 + $0x31c] sm:$0xff] }
 0x2b9   : > { %v5929_v13 = vadd.f32 %v5822_v33, %v23403_v62  ;;  %v23659_v23 = vadd.f32 %v20018_v19, %v5930_v44  ;;  %v16934_v62 = vld [vmem:[%s21525_s15 + $0x45b] sm:$0xff]  ;;  %v16937_v19 = vld [vmem:[%s21525_s15 + $0x473] sm:$0xff]  ;;  %v17010_v44 = vld [vmem:[%s21525_s15 + $0x324] sm:$0xff] }
 0x2ba   : > { %v19965_v51 = vpop.f32.mrf.mxu0  ;;  %20282 = vmatmul.mubr.msk.f32.gmra.mxu0 %vm541_vm0, %v16932_v36  ;;  %v20021_v21 = vpop.f32.mrf.mxu1  ;;  %20338 = vmatmul.mubr.msk.f32.gmra.mxu1 %vm541_vm0, %v17005_v20 }
 0x2bb   : > { %v5932_v52 = vadd.f32 %v19965_v51, %v23413_v2  ;;  %v23669_v1 = vadd.f32 %v6249_v55, %v5929_v13  ;;  %20284 = vmatprep.mubr.msk.f32.mxu0 %vm541_vm0, %v16933_v14  ;;  %20340 = vmatprep.mubr.msk.f32.mxu1 %vm541_vm0, %v17006_v58  ;;  %v16938_v58 = vld [vmem:[%s21525_s15 + $0x47b] sm:$0xff]  ;;  %v17011_v13 = vld [vmem:[%s21525_s15 + $0x32c] sm:$0xff] }
 0x2bc   : > { %v5832_v5 = vpop.f32.mrf.mxu0  ;;  %v6259_v60 = vpop.f32.mrf.mxu1 }
 0x2bd   : > { %v5931_v2 = vadd.f32 %v5832_v5, %v23418_v22  ;;  %v23679_v30 = vadd.f32 %v20021_v21, %v5932_v52  ;;  %v16939_v21 = vld [vmem:[%s21525_s15 + $0x483] sm:$0xff]  ;;  %v17012_v52 = vld [vmem:[%s21525_s15 + $0x334] sm:$0xff] }
 0x2be   : > { %v19968_v47 = vpop.f32.mrf.mxu0  ;;  %20285 = vmatmul.mubr.msk.f32.gmra.mxu0 %vm541_vm0, %v16934_v62  ;;  %v20024_v12 = vpop.f32.mrf.mxu1  ;;  %20341 = vmatmul.mubr.msk.f32.gmra.mxu1 %vm541_vm0, %v17007_v59 }
 0x2bf   : > { %v5934_v8 = vadd.f32 %v19968_v47, %v23427_v53  ;;  %v23684_v4 = vadd.f32 %v6259_v60, %v5931_v2  ;;  %20287 = vmatprep.mubr.msk.f32.mxu0 %vm541_vm0, %v16935_v63  ;;  %20343 = vmatprep.mubr.msk.f32.mxu1 %vm541_vm0, %v17008_v17  ;;  %v16940_v17 = vld [vmem:[%s21525_s15 + $0x48b] sm:$0xff]  ;;  %v17013_v2 = vld [vmem:[%s21525_s15 + $0x33c] sm:$0xff] }
 0x2c0   : > { %v5842_v22 = vpop.f32.mrf.mxu0  ;;  %v6269_v34 = vpop.f32.mrf.mxu1 }
 0x2c1   : > { %v5933_v36 = vadd.f32 %v5842_v22, %v23432_v41  ;;  %v23693_v20 = vadd.f32 %v20024_v12, %v5934_v8  ;;  %v16941_v12 = vld [vmem:[%s21525_s15 + $0x493] sm:$0xff]  ;;  %v17014_v8 = vld [vmem:[%s21525_s15 + $0x344] sm:$0xff] }
 0x2c2   : > { %v19971_v53 = vpop.f32.mrf.mxu0  ;;  %20288 = vmatmul.mubr.msk.f32.gmra.mxu0 %vm541_vm0, %v16936_v15  ;;  %v20027_v33 = vpop.f32.mrf.mxu1  ;;  %20344 = vmatmul.mubr.msk.f32.gmra.mxu1 %vm541_vm0, %v17009_v16 }
 0x2c3   : > { %v5936_v55 = vadd.f32 %v19971_v53, %v23441_v49  ;;  %v23698_v14 = vadd.f32 %v6269_v34, %v5933_v36  ;;  %20290 = vmatprep.mubr.msk.f32.mxu0 %vm541_vm0, %v16937_v19  ;;  %20346 = vmatprep.mubr.msk.f32.mxu1 %vm541_vm0, %v17010_v44  ;;  %v16942_v44 = vld [vmem:[%s21525_s15 + $0x49b] sm:$0xff]  ;;  %v17015_v36 = vld [vmem:[%s21525_s15 + $0x34c] sm:$0xff] }
 0x2c4   : > { %v5852_v41 = vpop.f32.mrf.mxu0  ;;  %v6279_v51 = vpop.f32.mrf.mxu1 }
 0x2c5   : > { %v5935_v62 = vadd.f32 %v5852_v41, %v23446_v56  ;;  %v23707_v59 = vadd.f32 %v20027_v33, %v5936_v55  ;;  %v16943_v33 = vld [vmem:[%s21525_s15 + $0x4a3] sm:$0xff]  ;;  %v17016_v55 = vld [vmem:[%s21525_s15 + $0x354] sm:$0xff] }
 0x2c6   : > { %v19974_v49 = vpop.f32.mrf.mxu0  ;;  %20291 = vmatmul.mubr.msk.f32.gmra.mxu0 %vm541_vm0, %v16938_v58  ;;  %v20030_v5 = vpop.f32.mrf.mxu1  ;;  %20347 = vmatmul.mubr.msk.f32.gmra.mxu1 %vm541_vm0, %v17011_v13 }
 0x2c7   : > { %v5938_v60 = vadd.f32 %v19974_v49, %v23455_v43  ;;  %v23712_v63 = vadd.f32 %v6279_v51, %v5935_v62  ;;  %20293 = vmatprep.mubr.msk.f32.mxu0 %vm541_vm0, %v16939_v21  ;;  %20349 = vmatprep.mubr.msk.f32.mxu1 %vm541_vm0, %v17012_v52  ;;  %v16944_v52 = vld [vmem:[%s21525_s15 + $0x4ab] sm:$0xff]  ;;  %v17017_v62 = vld [vmem:[%s21525_s15 + $0x35c] sm:$0xff] }
 0x2c8   : > { %v5862_v56 = vpop.f32.mrf.mxu0  ;;  %v6289_v47 = vpop.f32.mrf.mxu1 }
 0x2c9   : > { %v5937_v15 = vadd.f32 %v5862_v56, %v23460_v48  ;;  %v23721_v16 = vadd.f32 %v20030_v5, %v5938_v60  ;;  %v16945_v5 = vld [vmem:[%s21525_s15 + $0x4b3] sm:$0xff]  ;;  %v17018_v60 = vld [vmem:[%s21525_s15 + $0x364] sm:$0xff] }
 0x2ca   : > { %v19977_v43 = vpop.f32.mrf.mxu0  ;;  %20294 = vmatmul.mubr.msk.f32.gmra.mxu0 %vm541_vm0, %v16940_v17  ;;  %v20033_v22 = vpop.f32.mrf.mxu1  ;;  %20350 = vmatmul.mubr.msk.f32.gmra.mxu1 %vm541_vm0, %v17013_v2 }
 0x2cb   : > { %v5940_v34 = vadd.f32 %v19977_v43, %v23469_v40  ;;  %v23726_v19 = vadd.f32 %v6289_v47, %v5937_v15  ;;  %20296 = vmatprep.mubr.msk.f32.mxu0 %vm541_vm0, %v16941_v12  ;;  %20352 = vmatprep.mubr.msk.f32.mxu1 %vm541_vm0, %v17014_v8  ;;  %v16946_v8 = vld [vmem:[%s21525_s15 + $0x4bb] sm:$0xff]  ;;  %v17019_v15 = vld [vmem:[%s21525_s15 + $0x36c] sm:$0xff] }
 0x2cc   : > { %v5872_v48 = vpop.f32.mrf.mxu0  ;;  %v6299_v53 = vpop.f32.mrf.mxu1 }
 0x2cd   : > { %v5939_v58 = vadd.f32 %v5872_v48, %v23474_v31  ;;  %v23735_v13 = vadd.f32 %v20033_v22, %v5940_v34  ;;  %v16947_v22 = vld [vmem:[%s21525_s15 + $0x4c3] sm:$0xff]  ;;  %v17020_v34 = vld [vmem:[%s21525_s15 + $0x374] sm:$0xff] }
 0x2ce   : > { %v19980_v40 = vpop.f32.mrf.mxu0  ;;  %20297 = vmatmul.mubr.msk.f32.gmra.mxu0 %vm541_vm0, %v16942_v44  ;;  %v20036_v41 = vpop.f32.mrf.mxu1  ;;  %20353 = vmatmul.mubr.msk.f32.gmra.mxu1 %vm541_vm0, %v17015_v36 }
 0x2cf   : > { %v5942_v51 = vadd.f32 %v19980_v40, %v23483_v38  ;;  %v23740_v21 = vadd.f32 %v6299_v53, %v5939_v58  ;;  %20299 = vmatprep.mubr.msk.f32.mxu0 %vm541_vm0, %v16943_v33  ;;  %20355 = vmatprep.mubr.msk.f32.mxu1 %vm541_vm0, %v17016_v55  ;;  %v16948_v55 = vld [vmem:[%s21525_s15 + $0x4cb] sm:$0xff]  ;;  %v17021_v58 = vld [vmem:[%s21525_s15 + $0x37c] sm:$0xff] }
 0x2d0   : > { %v5882_v31 = vpop.f32.mrf.mxu0  ;;  %v6309_v49 = vpop.f32.mrf.mxu1 }
 0x2d1   : > { %v5941_v17 = vadd.f32 %v5882_v31, %v23488_v11  ;;  %v23749_v2 = vadd.f32 %v20036_v41, %v5942_v51  ;;  %v16949_v41 = vld [vmem:[%s21525_s15 + $0x4d3] sm:$0xff]  ;;  %v17022_v51 = vld [vmem:[%s21525_s15 + $0x384] sm:$0xff] }
 0x2d2   : > { %v19983_v38 = vpop.f32.mrf.mxu0  ;;  %20300 = vmatmul.mubr.msk.f32.gmra.mxu0 %vm541_vm0, %v16944_v52  ;;  %v20039_v56 = vpop.f32.mrf.mxu1  ;;  %20356 = vmatmul.mubr.msk.f32.gmra.mxu1 %vm541_vm0, %v17017_v62 }
 0x2d3   : > { %v5944_v47 = vadd.f32 %v19983_v38, %v23497_v45  ;;  %v23754_v12 = vadd.f32 %v6309_v49, %v5941_v17  ;;  %20302 = vmatprep.mubr.msk.f32.mxu0 %vm541_vm0, %v16945_v5  ;;  %20358 = vmatprep.mubr.msk.f32.mxu1 %vm541_vm0, %v17018_v60  ;;  %v16950_v60 = vld [vmem:[%s21525_s15 + $0x4db] sm:$0xff]  ;;  %v17023_v17 = vld [vmem:[%s21525_s15 + $0x38c] sm:$0xff] }
 0x2d4   : > { %v5892_v11 = vpop.f32.mrf.mxu0  ;;  %v6319_v43 = vpop.f32.mrf.mxu1 }
 0x2d5   : > { %v5943_v44 = vadd.f32 %v5892_v11, %v23502_v6  ;;  %v23763_v36 = vadd.f32 %v20039_v56, %v5944_v47  ;;  %v16951_v56 = vld [vmem:[%s21525_s15 + $0x4e3] sm:$0xff]  ;;  %v17024_v47 = vld [vmem:[%s21525_s15 + $0x394] sm:$0xff] }
 0x2d6   : > { %v19986_v45 = vpop.f32.mrf.mxu0  ;;  %20303 = vmatmul.mubr.msk.f32.gmra.mxu0 %vm541_vm0, %v16946_v8  ;;  %v20042_v48 = vpop.f32.mrf.mxu1  ;;  %20359 = vmatmul.mubr.msk.f32.gmra.mxu1 %vm541_vm0, %v17019_v15 }
 0x2d7   : > { %v5946_v53 = vadd.f32 %v19986_v45, %v23511_v28  ;;  %v23768_v33 = vadd.f32 %v6319_v43, %v5943_v44  ;;  %20305 = vmatprep.mubr.msk.f32.mxu0 %vm541_vm0, %v16947_v22  ;;  %20361 = vmatprep.mubr.msk.f32.mxu1 %vm541_vm0, %v17020_v34  ;;  %v16952_v34 = vld [vmem:[%s21525_s15 + $0x4eb] sm:$0xff]  ;;  %v17025_v44 = vld [vmem:[%s21525_s15 + $0x39c] sm:$0xff] }
 0x2d8   : > { %v5902_v6 = vpop.f32.mrf.mxu0  ;;  %v6329_v40 = vpop.f32.mrf.mxu1 }
 0x2d9   : > { %v5945_v52 = vadd.f32 %v5902_v6, %v23515_v57  ;;  %v23777_v62 = vadd.f32 %v20042_v48, %v5946_v53  ;;  %v16953_v48 = vld [vmem:[%s21525_s15 + $0x4f3] sm:$0xff]  ;;  %v17026_v53 = vld [vmem:[%s21525_s15 + $0x3a4] sm:$0xff] }
 0x2da   : > { %v20047_v28 = vpop.f32.mrf.mxu0  ;;  %20306 = vmatmul.mubr.msk.f32.gmra.mxu0 %vm541_vm0, %v16948_v55  ;;  %v20103_v31 = vpop.f32.mrf.mxu1  ;;  %20362 = vmatmul.mubr.msk.f32.gmra.mxu1 %vm541_vm0, %v17021_v58 }
 0x2db   : > { %v23781_v49 = vadd.f32 %v6329_v40, %v5945_v52  ;;  %v6766_v5 = vadd.f32 %v20047_v28, %v23525_v32  ;;  %20308 = vmatprep.mubr.msk.f32.mxu0 %vm541_vm0, %v16949_v41  ;;  %20364 = vmatprep.mubr.msk.f32.mxu1 %vm541_vm0, %v17022_v51  ;;  %v16954_v51 = vld [vmem:[%s21525_s15 + $0x4fb] sm:$0xff]  ;;  %v17027_v52 = vld [vmem:[%s21525_s15 + $0x3ac] sm:$0xff] }
 0x2dc   : > { %v6586_v57 = vpop.f32.mrf.mxu0  ;;  %v7013_v38 = vpop.f32.mrf.mxu1 }
 0x2dd   : > { %v6765_v8 = vadd.f32 %v6586_v57, %v23530_v25  ;;  %v23791_v15 = vadd.f32 %v20103_v31, %v6766_v5  ;;  %v16955_v31 = vld [vmem:[%s21525_s15 + $0x503] sm:$0xff]  ;;  %v17028_v5 = vld [vmem:[%s21525_s15 + $0x3b4] sm:$0xff] }
 0x2de   : > { %v20050_v11 = vpop.f32.mrf.mxu0  ;;  %20309 = vmatmul.mubr.msk.f32.gmra.mxu0 %vm541_vm0, %v16950_v60  ;;  %v20106_v32 = vpop.f32.mrf.mxu1  ;;  %20365 = vmatmul.mubr.msk.f32.gmra.mxu1 %vm541_vm0, %v17023_v17 }
 0x2df   : > { %v6768_v43 = vadd.f32 %v20050_v11, %v23539_v29  ;;  %v23796_v22 = vadd.f32 %v7013_v38, %v6765_v8  ;;  %20311 = vmatprep.mubr.msk.f32.mxu0 %vm541_vm0, %v16951_v56  ;;  %20367 = vmatprep.mubr.msk.f32.mxu1 %vm541_vm0, %v17024_v47  ;;  %v16956_v47 = vld [vmem:[%s21525_s15 + $0x50b] sm:$0xff]  ;;  %v17029_v8 = vld [vmem:[%s21525_s15 + $0x3bc] sm:$0xff] }
 0x2e0   : > { %v6596_v25 = vpop.f32.mrf.mxu0  ;;  %v7023_v45 = vpop.f32.mrf.mxu1 }
 0x2e1   : > { %v6767_v55 = vadd.f32 %v6596_v25, %v23544_v42  ;;  %v23805_v58 = vadd.f32 %v20106_v32, %v6768_v43  ;;  %v16957_v32 = vld [vmem:[%s21525_s15 + $0x513] sm:$0xff]  ;;  %v17030_v43 = vld [vmem:[%s21525_s15 + $0x3c4] sm:$0xff] }
 0x2e2   : > { %v20053_v29 = vpop.f32.mrf.mxu0  ;;  %20312 = vmatmul.mubr.msk.f32.gmra.mxu0 %vm541_vm0, %v16952_v34  ;;  %v20109_v6 = vpop.f32.mrf.mxu1  ;;  %20368 = vmatmul.mubr.msk.f32.gmra.mxu1 %vm541_vm0, %v17025_v44 }
 0x2e3   : > { %v6770_v40 = vadd.f32 %v20053_v29, %v23553_v54  ;;  %v23810_v41 = vadd.f32 %v7023_v45, %v6767_v55  ;;  %20314 = vmatprep.mubr.msk.f32.mxu0 %vm541_vm0, %v16953_v48  ;;  %20370 = vmatprep.mubr.msk.f32.mxu1 %vm541_vm0, %v17026_v53  ;;  %v16958_v53 = vld [vmem:[%s21525_s15 + $0x51b] sm:$0xff]  ;;  %v17031_v55 = vld [vmem:[%s21525_s15 + $0x3cc] sm:$0xff] }
 0x2e4   : > { %v6606_v42 = vpop.f32.mrf.mxu0  ;;  %v7033_v28 = vpop.f32.mrf.mxu1 }
 0x2e5   : > { %v6769_v60 = vadd.f32 %v6606_v42, %v23558_v9  ;;  %v23819_v17 = vadd.f32 %v20109_v6, %v6770_v40  ;;  %v8936_v6 = vld [vmem:[%s21525_s15 + $0x24] sm:$0xff]  ;;  %v17106_v40 = vld [vmem:[%s21525_s15 + $0x174] sm:$0xff] }
 0x2e6   : > { %v20056_v54 = vpop.f32.mrf.mxu0  ;;  %20315 = vmatmul.mubr.msk.f32.gmra.mxu0 %vm541_vm0, %v16954_v51  ;;  %v20112_v57 = vpop.f32.mrf.mxu1  ;;  %20371 = vmatmul.mubr.msk.f32.gmra.mxu1 %vm541_vm0, %v17027_v52 }
 0x2e7   : > { %v6772_v38 = vadd.f32 %v20056_v54, %v23567_v50  ;;  %v23824_v56 = vadd.f32 %v7033_v28, %v6769_v60  ;;  %20317 = vmatprep.mubr.msk.f32.mxu0 %vm541_vm0, %v16955_v31  ;;  %20373 = vmatprep.mubr.msk.f32.mxu1 %vm541_vm0, %v17028_v5  ;;  %v8937_v5 = vld [vmem:[%s21525_s15 + $0x2c] sm:$0xff]  ;;  %v17107_v60 = vld [vmem:[%s21525_s15 + $0x17c] sm:$0xff] }
 0x2e8   : > { %v6616_v9 = vpop.f32.mrf.mxu0  ;;  %v7043_v11 = vpop.f32.mrf.mxu1 }
 0x2e9   : > { %v6771_v34 = vadd.f32 %v6616_v9, %v23572_v39  ;;  %v23833_v44 = vadd.f32 %v20112_v57, %v6772_v38  ;;  %v8938_v57 = vld [vmem:[%s21525_s15 + $0x34] sm:$0xff]  ;;  %v17108_v38 = vld [vmem:[%s21525_s15 + $0x184] sm:$0xff] }
 0x2ea   : > { %v20059_v50 = vpop.f32.mrf.mxu0  ;;  %20318 = vmatmul.mubr.msk.f32.gmra.mxu0 %vm541_vm0, %v16956_v47  ;;  %v20115_v25 = vpop.f32.mrf.mxu1  ;;  %20374 = vmatmul.mubr.msk.f32.gmra.mxu1 %vm541_vm0, %v17029_v8 }
 0x2eb   : > { %v6774_v45 = vadd.f32 %v20059_v50, %v23581_v61  ;;  %v23838_v48 = vadd.f32 %v7043_v11, %v6771_v34  ;;  %20320 = vmatprep.mubr.msk.f32.mxu0 %vm541_vm0, %v16957_v32  ;;  %20376 = vmatprep.mubr.msk.f32.mxu1 %vm541_vm0, %v17030_v43  ;;  %v23868_v11 = vld [vmem:[%s27193_s1 + $0xc0] sm:$0xff]  ;;  %v17109_v34 = vld [vmem:[%s21525_s15 + $0x18c] sm:$0xff]  ;;  %s21320_s1 = scalar_lea.vmem %s15767_s28, 16 }
 0x2ec   : > { %v6626_v39 = vpop.f32.mrf.mxu0  ;;  %v7053_v29 = vpop.f32.mrf.mxu1  ;;  %p21321_p11 = scmp.ne.s32.totalorder %s15767_s28, %s21320_s1  ;;  %p21328_p1 = scmp.lt.s32.totalorder %s21326_s26, %s21320_s1 }
 0x2ed   : > { %v6773_v51 = vadd.f32 %v6626_v39, %v23586_v35  ;;  %v23847_v52 = vadd.f32 %v20115_v25, %v6774_v45  ;;  %v8940_v45 = vld [vmem:[%s21525_s15 + $0x44] sm:$0xff] }
 0x2ee   : > { %v20062_v61 = vpop.f32.mrf.mxu0  ;;  %20321 = vmatmul.mubr.msk.f32.gmra.mxu0 %vm541_vm0, %v16958_v53  ;;  %v20118_v42 = vpop.f32.mrf.mxu1  ;;  %20377 = vmatmul.mubr.msk.f32.gmra.mxu1 %vm541_vm0, %v17031_v55  ;;  %v17110_v53 = vld [vmem:[%s21525_s15 + $0x194] sm:$0xff]  ;;  %p21322_p12 = pnand %p21321_p11, %p21498_p5  ;;  %p21329_p2 = por %p21328_p1, %p21327_p0 }
 0x2ef   : > { %v6776_v28 = vadd.f32 %v20062_v61, %v23595_v24  ;;  %v23852_v31 = vadd.f32 %v7053_v29, %v6773_v51  ;;  %20381 = vmatprep.mubr.msk.f32.mxu0 %vm541_vm0, %v8936_v6  ;;  %20437 = vmatprep.mubr.msk.f32.mxu1 %vm541_vm0, %v17106_v40  ;;  %v8942_v61 = vld [vmem:[%s21525_s15 + $0x54] sm:$0xff] }
 0x2f0   : > { %v6636_v35 = vpop.f32.mrf.mxu0  ;;  %v7063_v54 = vpop.f32.mrf.mxu1  ;;  %p21323_p13 = pneg %p21322_p12 }
 0x2f1   : > { %v6775_v47 = vadd.f32 %v6636_v35, %v23605_v26  ;;  %v23861_v8 = vadd.f32 %v20118_v42, %v6776_v28  ;;  %v8939_v26 = vld [vmem:[%s21525_s15 + $0x3c] sm:$0xff]  ;;  %v17112_v42 = vld [vmem:[%s21525_s15 + $0x1a4] sm:$0xff] }
 0x2f2   : > { %v20065_v24 = vpop.f32.mrf.mxu0  ;;  %20382 = vmatmul.mubr.msk.f32.vlgmr.msra.gmra.mxu0 %vm541_vm0, %v8937_v5  ;;  %v20121_v9 = vpop.f32.mrf.mxu1  ;;  %20438 = vmatmul.mubr.msk.f32.vlgmr.msra.gmra.mxu1 %vm541_vm0, %v17107_v60  ;;  %p21330_p3 = pnand %p21329_p2, %p21323_p13 }
 0x2f3   : > { %v6778_v32 = vadd.f32 %v20065_v24, %v23616_v18  ;;  %v23871_v43 = vadd.f32 %v7063_v54, %v6775_v47  ;;  %20384 = vmatprep.mubr.msk.f32.mxu0 %vm541_vm0, %v8938_v57  ;;  %20440 = vmatprep.mubr.msk.f32.mxu1 %vm541_vm0, %v17108_v38  ;;  %v8943_v57 = vld [vmem:[%s21525_s15 + $0x5c] sm:$0xff]  ;;  %v17113_v38 = vld [vmem:[%s21525_s15 + $0x1ac] sm:$0xff]  ;;  %v8944_v24 = vld [vmem:[%s21525_s15 + $0x64] sm:$0xff] }
 0x2f4   : > { %v6646_v50 = vpop.f32.mrf.mxu0  ;;  %v7073_v25 = vpop.f32.mrf.mxu1  ;;  %20492 = vmatpush3.msra.mxu0 %v23602_v3  ;;  %20548 = vmatpush3.msra.mxu1 %v23664_v37  ;;  %v8941_v3 = vld [vmem:[%s21525_s15 + $0x4c] sm:$0xff] }
 0x2f5   : > { %v6777_v18 = vadd.f32 %v6646_v50, %v23622_v27  ;;  %v23882_v55 = vadd.f32 %v20121_v9, %v6778_v32  ;;  %20603 = vmatprep.subr.mxu0 %v23868_v11  ;;  %v17111_v27 = vld [vmem:[%s21525_s15 + $0x19c] sm:$0xff]  ;;  %v17114_v9 = vld [vmem:[%s21525_s15 + $0x1b4] sm:$0xff] }
 0x2f6   : > { %v20068_v39 = vpop.f32.mrf.mxu0  ;;  %20385 = vmatmul.mubr.msk.f32.gmra.mxu0 %vm541_vm0, %v8939_v26  ;;  %v20124_v29 = vpop.f32.mrf.mxu1  ;;  %20441 = vmatmul.mubr.msk.f32.gmra.mxu1 %vm541_vm0, %v17109_v34 }
 0x2f7   : > { %v6780_v6 = vadd.f32 %v20068_v39, %v23631_v7  ;;  %v23888_v40 = vadd.f32 %v7073_v25, %v6777_v18  ;;  %20387 = vmatprep.mubr.msk.f32.mxu0 %vm541_vm0, %v8940_v45  ;;  %20443 = vmatprep.mubr.msk.f32.mxu1 %vm541_vm0, %v17110_v53  ;;  %v8945_v45 = vld [vmem:[%s21525_s15 + $0x6c] sm:$0xff]  ;;  %v17115_v53 = vld [vmem:[%s21525_s15 + $0x1bc] sm:$0xff]  ;;  %v8946_v39 = vld [vmem:[%s21525_s15 + $0x74] sm:$0xff] }
 0x2f8   : > { %v6656_v37 = vpop.f32.mrf.mxu0  ;;  %v7083_v51 = vpop.f32.mrf.mxu1 }
 0x2f9   : > { %v6779_v28 = vadd.f32 %v6656_v37, %v23636_v0  ;;  %v23897_v5 = vadd.f32 %v20124_v29, %v6780_v6  ;;  %v17116_v29 = vld [vmem:[%s21525_s15 + $0x1c4] sm:$0xff] }
 0x2fa   : > { %v20071_v7 = vpop.f32.mrf.mxu0  ;;  %20388 = vmatmul.mubr.msk.f32.gmra.mxu0 %vm541_vm0, %v8941_v3  ;;  %v20127_v60 = vpop.f32.mrf.mxu1  ;;  %20444 = vmatmul.mubr.msk.f32.gmra.mxu1 %vm541_vm0, %v17111_v27 }
 0x2fb   : > { %v6782_v35 = vadd.f32 %v20071_v7, %v23645_v46  ;;  %v23902_v54 = vadd.f32 %v7083_v51, %v6779_v28  ;;  %20390 = vmatprep.mubr.msk.f32.mxu0 %vm541_vm0, %v8942_v61  ;;  %20446 = vmatprep.mubr.msk.f32.mxu1 %vm541_vm0, %v17112_v42  ;;  %v8947_v61 = vld [vmem:[%s21525_s15 + $0x7c] sm:$0xff]  ;;  %v17117_v42 = vld [vmem:[%s21525_s15 + $0x1cc] sm:$0xff]  ;;  %v8948_v7 = vld [vmem:[%s21525_s15 + $0x84] sm:$0xff] }
 0x2fc   : > { %v6666_v0 = vpop.f32.mrf.mxu0  ;;  %v7093_v47 = vpop.f32.mrf.mxu1 }
 0x2fd   : > { %v6781_v32 = vadd.f32 %v6666_v0, %v23650_v10  ;;  %v23911_v26 = vadd.f32 %v20127_v60, %v6782_v35  ;;  %v17118_v60 = vld [vmem:[%s21525_s15 + $0x1d4] sm:$0xff] }
 0x2fe   : > { %v20074_v46 = vpop.f32.mrf.mxu0  ;;  %20391 = vmatmul.mubr.msk.f32.gmra.mxu0 %vm541_vm0, %v8943_v57  ;;  %v20130_v34 = vpop.f32.mrf.mxu1  ;;  %20447 = vmatmul.mubr.msk.f32.gmra.mxu1 %vm541_vm0, %v17113_v38 }
 0x2ff   : > { %v6784_v50 = vadd.f32 %v20074_v46, %v23659_v23  ;;  %v23916_v25 = vadd.f32 %v7093_v47, %v6781_v32  ;;  %20393 = vmatprep.mubr.msk.f32.mxu0 %vm541_vm0, %v8944_v24  ;;  %20449 = vmatprep.mubr.msk.f32.mxu1 %vm541_vm0, %v17114_v9  ;;  %v8949_v24 = vld [vmem:[%s21525_s15 + $0x8c] sm:$0xff]  ;;  %v17119_v9 = vld [vmem:[%s21525_s15 + $0x1dc] sm:$0xff]  ;;  %v8950_v46 = vld [vmem:[%s21525_s15 + $0x94] sm:$0xff] }
 0x300   : > { %v6676_v10 = vpop.f32.mrf.mxu0  ;;  %v7103_v18 = vpop.f32.mrf.mxu1 }
 0x301   : > { %v6783_v6 = vadd.f32 %v6676_v10, %v23669_v1  ;;  %v23925_v3 = vadd.f32 %v20130_v34, %v6784_v50  ;;  %v17120_v34 = vld [vmem:[%s21525_s15 + $0x1e4] sm:$0xff] }
 0x302   : > { %v20077_v23 = vpop.f32.mrf.mxu0  ;;  %20394 = vmatmul.mubr.msk.f32.gmra.mxu0 %vm541_vm0, %v8945_v45  ;;  %v20133_v27 = vpop.f32.mrf.mxu1  ;;  %20450 = vmatmul.mubr.msk.f32.gmra.mxu1 %vm541_vm0, %v17115_v53 }
 0x303   : > { %v6786_v37 = vadd.f32 %v20077_v23, %v23679_v30  ;;  %v23930_v51 = vadd.f32 %v7103_v18, %v6783_v6  ;;  %20396 = vmatprep.mubr.msk.f32.mxu0 %vm541_vm0, %v8946_v39  ;;  %20452 = vmatprep.mubr.msk.f32.mxu1 %vm541_vm0, %v17116_v29  ;;  %v8951_v39 = vld [vmem:[%s21525_s15 + $0x9c] sm:$0xff]  ;;  %v17121_v29 = vld [vmem:[%s21525_s15 + $0x1ec] sm:$0xff]  ;;  %v8952_v23 = vld [vmem:[%s21525_s15 + $0xa4] sm:$0xff] }
 0x304   : > { %v6686_v1 = vpop.f32.mrf.mxu0  ;;  %v7113_v28 = vpop.f32.mrf.mxu1 }
 0x305   : > { %v6785_v35 = vadd.f32 %v6686_v1, %v23684_v4  ;;  %v23939_v57 = vadd.f32 %v20133_v27, %v6786_v37  ;;  %v17122_v27 = vld [vmem:[%s21525_s15 + $0x1f4] sm:$0xff] }
 0x306   : > { %v20080_v30 = vpop.f32.mrf.mxu0  ;;  %20397 = vmatmul.mubr.msk.f32.gmra.mxu0 %vm541_vm0, %v8947_v61  ;;  %v20136_v38 = vpop.f32.mrf.mxu1  ;;  %20453 = vmatmul.mubr.msk.f32.gmra.mxu1 %vm541_vm0, %v17117_v42 }
 0x307   : > { %v6788_v0 = vadd.f32 %v20080_v30, %v23693_v20  ;;  %v23944_v47 = vadd.f32 %v7113_v28, %v6785_v35  ;;  %20399 = vmatprep.mubr.msk.f32.mxu0 %vm541_vm0, %v8948_v7  ;;  %20455 = vmatprep.mubr.msk.f32.mxu1 %vm541_vm0, %v17118_v60  ;;  %v8953_v7 = vld [vmem:[%s21525_s15 + $0xac] sm:$0xff]  ;;  %v17123_v60 = vld [vmem:[%s21525_s15 + $0x1fc] sm:$0xff]  ;;  %v8954_v30 = vld [vmem:[%s21525_s15 + $0xb4] sm:$0xff] }
 0x308   : > { %v6696_v4 = vpop.f32.mrf.mxu0  ;;  %v7123_v32 = vpop.f32.mrf.mxu1 }
 0x309   : > { %v6787_v50 = vadd.f32 %v6696_v4, %v23698_v14  ;;  %v23953_v45 = vadd.f32 %v20136_v38, %v6788_v0  ;;  %v17124_v38 = vld [vmem:[%s21525_s15 + $0x204] sm:$0xff] }
 0x30a   : > { %v20083_v20 = vpop.f32.mrf.mxu0  ;;  %20400 = vmatmul.mubr.msk.f32.gmra.mxu0 %vm541_vm0, %v8949_v24  ;;  %v20139_v53 = vpop.f32.mrf.mxu1  ;;  %20456 = vmatmul.mubr.msk.f32.gmra.mxu1 %vm541_vm0, %v17119_v9 }
 0x30b   : > { %v6790_v10 = vadd.f32 %v20083_v20, %v23707_v59  ;;  %v23958_v18 = vadd.f32 %v7123_v32, %v6787_v50  ;;  %20402 = vmatprep.mubr.msk.f32.mxu0 %vm541_vm0, %v8950_v46  ;;  %20458 = vmatprep.mubr.msk.f32.mxu1 %vm541_vm0, %v17120_v34  ;;  %v8955_v46 = vld [vmem:[%s21525_s15 + $0xbc] sm:$0xff]  ;;  %v17125_v34 = vld [vmem:[%s21525_s15 + $0x20c] sm:$0xff]  ;;  %v8956_v20 = vld [vmem:[%s21525_s15 + $0xc4] sm:$0xff] }
 0x30c   : > { %v6706_v14 = vpop.f32.mrf.mxu0  ;;  %v7133_v6 = vpop.f32.mrf.mxu1 }
 0x30d   : > { %v6789_v37 = vadd.f32 %v6706_v14, %v23712_v63  ;;  %v23967_v61 = vadd.f32 %v20139_v53, %v6790_v10  ;;  %v17126_v53 = vld [vmem:[%s21525_s15 + $0x214] sm:$0xff] }
 0x30e   : > { %v20086_v59 = vpop.f32.mrf.mxu0  ;;  %20403 = vmatmul.mubr.msk.f32.gmra.mxu0 %vm541_vm0, %v8951_v39  ;;  %v20142_v42 = vpop.f32.mrf.mxu1  ;;  %20459 = vmatmul.mubr.msk.f32.gmra.mxu1 %vm541_vm0, %v17121_v29 }
 0x30f   : > { %v6792_v1 = vadd.f32 %v20086_v59, %v23721_v16  ;;  %v23972_v28 = vadd.f32 %v7133_v6, %v6789_v37  ;;  %20405 = vmatprep.mubr.msk.f32.mxu0 %vm541_vm0, %v8952_v23  ;;  %20461 = vmatprep.mubr.msk.f32.mxu1 %vm541_vm0, %v17122_v27  ;;  %v8957_v23 = vld [vmem:[%s21525_s15 + $0xcc] sm:$0xff]  ;;  %v17127_v27 = vld [vmem:[%s21525_s15 + $0x21c] sm:$0xff]  ;;  %v8958_v59 = vld [vmem:[%s21525_s15 + $0xd4] sm:$0xff] }
 0x310   : > { %v6716_v63 = vpop.f32.mrf.mxu0  ;;  %v7143_v35 = vpop.f32.mrf.mxu1 }
 0x311   : > { %v6791_v0 = vadd.f32 %v6716_v63, %v23726_v19  ;;  %v23981_v24 = vadd.f32 %v20142_v42, %v6792_v1  ;;  %v17128_v42 = vld [vmem:[%s21525_s15 + $0x224] sm:$0xff] }
 0x312   : > { %v20089_v16 = vpop.f32.mrf.mxu0  ;;  %20406 = vmatmul.mubr.msk.f32.gmra.mxu0 %vm541_vm0, %v8953_v7  ;;  %v20145_v9 = vpop.f32.mrf.mxu1  ;;  %20462 = vmatmul.mubr.msk.f32.gmra.mxu1 %vm541_vm0, %v17123_v60 }
 0x313   : > { %v6794_v4 = vadd.f32 %v20089_v16, %v23735_v13  ;;  %v23986_v32 = vadd.f32 %v7143_v35, %v6791_v0  ;;  %20408 = vmatprep.mubr.msk.f32.mxu0 %vm541_vm0, %v8954_v30  ;;  %20464 = vmatprep.mubr.msk.f32.mxu1 %vm541_vm0, %v17124_v38  ;;  %v8959_v30 = vld [vmem:[%s21525_s15 + $0xdc] sm:$0xff]  ;;  %v17129_v38 = vld [vmem:[%s21525_s15 + $0x22c] sm:$0xff]  ;;  %v8960_v16 = vld [vmem:[%s21525_s15 + $0xe4] sm:$0xff] }
 0x314   : > { %v6726_v19 = vpop.f32.mrf.mxu0  ;;  %v7153_v50 = vpop.f32.mrf.mxu1 }
 0x315   : > { %v6793_v10 = vadd.f32 %v6726_v19, %v23740_v21  ;;  %v23995_v39 = vadd.f32 %v20145_v9, %v6794_v4  ;;  %v17130_v9 = vld [vmem:[%s21525_s15 + $0x234] sm:$0xff] }
 0x316   : > { %v20092_v13 = vpop.f32.mrf.mxu0  ;;  %20409 = vmatmul.mubr.msk.f32.gmra.mxu0 %vm541_vm0, %v8955_v46  ;;  %v20148_v29 = vpop.f32.mrf.mxu1  ;;  %20465 = vmatmul.mubr.msk.f32.gmra.mxu1 %vm541_vm0, %v17125_v34 }
 0x317   : > { %v6796_v14 = vadd.f32 %v20092_v13, %v23749_v2  ;;  %v24000_v6 = vadd.f32 %v7153_v50, %v6793_v10  ;;  %20411 = vmatprep.mubr.msk.f32.mxu0 %vm541_vm0, %v8956_v20  ;;  %20467 = vmatprep.mubr.msk.f32.mxu1 %vm541_vm0, %v17126_v53  ;;  %v8961_v20 = vld [vmem:[%s21525_s15 + $0xec] sm:$0xff]  ;;  %v17131_v53 = vld [vmem:[%s21525_s15 + $0x23c] sm:$0xff]  ;;  %v8962_v13 = vld [vmem:[%s21525_s15 + $0xf4] sm:$0xff] }
 0x318   : > { %v6736_v21 = vpop.f32.mrf.mxu0  ;;  %v7163_v37 = vpop.f32.mrf.mxu1 }
 0x319   : > { %v6795_v1 = vadd.f32 %v6736_v21, %v23754_v12  ;;  %v24009_v7 = vadd.f32 %v20148_v29, %v6796_v14  ;;  %v17132_v29 = vld [vmem:[%s21525_s15 + $0x244] sm:$0xff] }
 0x31a   : > { %v20095_v2 = vpop.f32.mrf.mxu0  ;;  %20412 = vmatmul.mubr.msk.f32.gmra.mxu0 %vm541_vm0, %v8957_v23  ;;  %v20151_v60 = vpop.f32.mrf.mxu1  ;;  %20468 = vmatmul.mubr.msk.f32.gmra.mxu1 %vm541_vm0, %v17127_v27 }
 0x31b   : > { %v6798_v63 = vadd.f32 %v20095_v2, %v23763_v36  ;;  %v24014_v35 = vadd.f32 %v7163_v37, %v6795_v1  ;;  %20414 = vmatprep.mubr.msk.f32.mxu0 %vm541_vm0, %v8958_v59  ;;  %20470 = vmatprep.mubr.msk.f32.mxu1 %vm541_vm0, %v17128_v42  ;;  %v8963_v59 = vld [vmem:[%s21525_s15 + $0xfc] sm:$0xff]  ;;  %v17133_v42 = vld [vmem:[%s21525_s15 + $0x24c] sm:$0xff]  ;;  %v8964_v2 = vld [vmem:[%s21525_s15 + $0x104] sm:$0xff] }
 0x31c   : > { %v6746_v12 = vpop.f32.mrf.mxu0  ;;  %v7173_v0 = vpop.f32.mrf.mxu1 }
 0x31d   : > { %v6797_v4 = vadd.f32 %v6746_v12, %v23768_v33  ;;  %v24023_v46 = vadd.f32 %v20151_v60, %v6798_v63  ;;  %v17134_v60 = vld [vmem:[%s21525_s15 + $0x254] sm:$0xff] }
 0x31e   : > { %v20098_v36 = vpop.f32.mrf.mxu0  ;;  %20415 = vmatmul.mubr.msk.f32.gmra.mxu0 %vm541_vm0, %v8959_v30  ;;  %v20154_v34 = vpop.f32.mrf.mxu1  ;;  %20471 = vmatmul.mubr.msk.f32.gmra.mxu1 %vm541_vm0, %v17129_v38 }
 0x31f   : > { %v6800_v19 = vadd.f32 %v20098_v36, %v23777_v62  ;;  %v24028_v50 = vadd.f32 %v7173_v0, %v6797_v4  ;;  %20417 = vmatprep.mubr.msk.f32.mxu0 %vm541_vm0, %v8960_v16  ;;  %20473 = vmatprep.mubr.msk.f32.mxu1 %vm541_vm0, %v17130_v9  ;;  %v8965_v16 = vld [vmem:[%s21525_s15 + $0x10c] sm:$0xff]  ;;  %v17135_v9 = vld [vmem:[%s21525_s15 + $0x25c] sm:$0xff]  ;;  %v8966_v36 = vld [vmem:[%s21525_s15 + $0x114] sm:$0xff] }
 0x320   : > { %v6756_v33 = vpop.f32.mrf.mxu0  ;;  %v7183_v10 = vpop.f32.mrf.mxu1 }
 0x321   : > { %v6799_v14 = vadd.f32 %v6756_v33, %v23781_v49  ;;  %v24037_v23 = vadd.f32 %v20154_v34, %v6800_v19  ;;  %v17136_v34 = vld [vmem:[%s21525_s15 + $0x264] sm:$0xff] }
 0x322   : > { %v20159_v62 = vpop.f32.mrf.mxu0  ;;  %20418 = vmatmul.mubr.msk.f32.gmra.mxu0 %vm541_vm0, %v8961_v20  ;;  %v20215_v27 = vpop.f32.mrf.mxu1  ;;  %20474 = vmatmul.mubr.msk.f32.gmra.mxu1 %vm541_vm0, %v17131_v53 }
 0x323   : > { %v24041_v21 = vadd.f32 %v7183_v10, %v6799_v14  ;;  %v7620_v37 = vadd.f32 %v20159_v62, %v23791_v15  ;;  %20420 = vmatprep.mubr.msk.f32.mxu0 %vm541_vm0, %v8962_v13  ;;  %20476 = vmatprep.mubr.msk.f32.mxu1 %vm541_vm0, %v17132_v29  ;;  %v8967_v13 = vld [vmem:[%s21525_s15 + $0x11c] sm:$0xff]  ;;  %v17137_v29 = vld [vmem:[%s21525_s15 + $0x26c] sm:$0xff]  ;;  %v8968_v62 = vld [vmem:[%s21525_s15 + $0x124] sm:$0xff] }
 0x324   : > { %v7440_v49 = vpop.f32.mrf.mxu0  ;;  %v7867_v1 = vpop.f32.mrf.mxu1 }
 0x325   : > { %v7619_v63 = vadd.f32 %v7440_v49, %v23796_v22  ;;  %v24051_v30 = vadd.f32 %v20215_v27, %v7620_v37  ;;  %v17138_v27 = vld [vmem:[%s21525_s15 + $0x274] sm:$0xff] }
 0x326   : > { %v20162_v38 = vpop.f32.mrf.mxu0  ;;  %20421 = vmatmul.mubr.msk.f32.gmra.mxu0 %vm541_vm0, %v8963_v59  ;;  %v20218_v15 = vpop.f32.mrf.mxu1  ;;  %20477 = vmatmul.mubr.msk.f32.gmra.mxu1 %vm541_vm0, %v17133_v42 }
 0x327   : > { %v7622_v12 = vadd.f32 %v20162_v38, %v23805_v58  ;;  %v24056_v0 = vadd.f32 %v7867_v1, %v7619_v63  ;;  %20423 = vmatprep.mubr.msk.f32.mxu0 %vm541_vm0, %v8964_v2  ;;  %20479 = vmatprep.mubr.msk.f32.mxu1 %vm541_vm0, %v17134_v60  ;;  %v8969_v2 = vld [vmem:[%s21525_s15 + $0x12c] sm:$0xff]  ;;  %v17139_v60 = vld [vmem:[%s21525_s15 + $0x27c] sm:$0xff]  ;;  %v8970_v38 = vld [vmem:[%s21525_s15 + $0x134] sm:$0xff] }
 0x328   : > { %v7450_v22 = vpop.f32.mrf.mxu0  ;;  %v7877_v4 = vpop.f32.mrf.mxu1 }
 0x329   : > { %v7621_v19 = vadd.f32 %v7450_v22, %v23810_v41  ;;  %v24065_v20 = vadd.f32 %v20218_v15, %v7622_v12  ;;  %v17140_v15 = vld [vmem:[%s21525_s15 + $0x284] sm:$0xff] }
 0x32a   : > { %v20165_v58 = vpop.f32.mrf.mxu0  ;;  %20424 = vmatmul.mubr.msk.f32.gmra.mxu0 %vm541_vm0, %v8965_v16  ;;  %v20221_v53 = vpop.f32.mrf.mxu1  ;;  %20480 = vmatmul.mubr.msk.f32.gmra.mxu1 %vm541_vm0, %v17135_v9 }
 0x32b   : > { %v7624_v33 = vadd.f32 %v20165_v58, %v23819_v17  ;;  %v24070_v10 = vadd.f32 %v7877_v4, %v7621_v19  ;;  %20426 = vmatprep.mubr.msk.f32.mxu0 %vm541_vm0, %v8966_v36  ;;  %20482 = vmatprep.mubr.msk.f32.mxu1 %vm541_vm0, %v17136_v34  ;;  %v8971_v36 = vld [vmem:[%s21525_s15 + $0x13c] sm:$0xff]  ;;  %v17141_v34 = vld [vmem:[%s21525_s15 + $0x28c] sm:$0xff] }
 0x32c   : > { %v7460_v41 = vpop.f32.mrf.mxu0  ;;  %v7887_v14 = vpop.f32.mrf.mxu1  ;;  %v9790_v58 = vld [vmem:[%s21525_s15 + $0x25] sm:$0xff] }
 0x32d   : > { %v7623_v37 = vadd.f32 %v7460_v41, %v23824_v56  ;;  %v24079_v59 = vadd.f32 %v20221_v53, %v7624_v33  ;;  %v17216_v53 = vld [vmem:[%s21525_s15 + $0x175] sm:$0xff] }
 0x32e   : > { %v20168_v17 = vpop.f32.mrf.mxu0  ;;  %20427 = vmatmul.mubr.msk.f32.gmra.mxu0 %vm541_vm0, %v8967_v13  ;;  %v20224_v42 = vpop.f32.mrf.mxu1  ;;  %20483 = vmatmul.mubr.msk.f32.gmra.mxu1 %vm541_vm0, %v17137_v29 }
 0x32f   : > { %v7626_v49 = vadd.f32 %v20168_v17, %v23833_v44  ;;  %v24084_v1 = vadd.f32 %v7887_v14, %v7623_v37  ;;  %20429 = vmatprep.mubr.msk.f32.mxu0 %vm541_vm0, %v8968_v62  ;;  %20485 = vmatprep.mubr.msk.f32.mxu1 %vm541_vm0, %v17138_v27  ;;  %v9791_v62 = vld [vmem:[%s21525_s15 + $0x2d] sm:$0xff]  ;;  %v17217_v27 = vld [vmem:[%s21525_s15 + $0x17d] sm:$0xff]  ;;  %v9792_v17 = vld [vmem:[%s21525_s15 + $0x35] sm:$0xff] }
 0x330   : > { %v7470_v56 = vpop.f32.mrf.mxu0  ;;  %v7897_v63 = vpop.f32.mrf.mxu1 }
 0x331   : > { %v7625_v12 = vadd.f32 %v7470_v56, %v23838_v48  ;;  %v24093_v16 = vadd.f32 %v20224_v42, %v7626_v49  ;;  %v17218_v42 = vld [vmem:[%s21525_s15 + $0x185] sm:$0xff] }
 0x332   : > { %v20171_v44 = vpop.f32.mrf.mxu0  ;;  %20430 = vmatmul.mubr.msk.f32.gmra.mxu0 %vm541_vm0, %v8969_v2  ;;  %v20227_v9 = vpop.f32.mrf.mxu1  ;;  %20486 = vmatmul.mubr.msk.f32.gmra.mxu1 %vm541_vm0, %v17139_v60 }
 0x333   : > { %v7628_v22 = vadd.f32 %v20171_v44, %v23847_v52  ;;  %v24098_v4 = vadd.f32 %v7897_v63, %v7625_v12  ;;  %20432 = vmatprep.mubr.msk.f32.mxu0 %vm541_vm0, %v8970_v38  ;;  %20488 = vmatprep.mubr.msk.f32.mxu1 %vm541_vm0, %v17140_v15  ;;  %v9793_v38 = vld [vmem:[%s21525_s15 + $0x3d] sm:$0xff]  ;;  %v17219_v15 = vld [vmem:[%s21525_s15 + $0x18d] sm:$0xff]  ;;  %v9794_v44 = vld [vmem:[%s21525_s15 + $0x45] sm:$0xff] }
 0x334   : > { %v7480_v48 = vpop.f32.mrf.mxu0  ;;  %v7907_v19 = vpop.f32.mrf.mxu1 }
 0x335   : > { %v7627_v33 = vadd.f32 %v7480_v48, %v23852_v31  ;;  %v24107_v13 = vadd.f32 %v20227_v9, %v7628_v22  ;;  %v17220_v9 = vld [vmem:[%s21525_s15 + $0x195] sm:$0xff] }
 0x336   : > { %v20174_v52 = vpop.f32.mrf.mxu0  ;;  %20433 = vmatmul.mubr.msk.f32.gmra.mxu0 %vm541_vm0, %v8971_v36  ;;  %v20230_v29 = vpop.f32.mrf.mxu1  ;;  %20489 = vmatmul.mubr.msk.f32.gmra.mxu1 %vm541_vm0, %v17141_v34 }
 0x337   : > { %v7630_v41 = vadd.f32 %v20174_v52, %v23861_v8  ;;  %v24112_v14 = vadd.f32 %v7907_v19, %v7627_v33  ;;  %20493 = vmatprep.mubr.msk.f32.mxu0 %vm541_vm0, %v9790_v58  ;;  %20549 = vmatprep.mubr.msk.f32.mxu1 %vm541_vm0, %v17216_v53  ;;  %v9795_v58 = vld [vmem:[%s21525_s15 + $0x4d] sm:$0xff]  ;;  %v9796_v33 = vld [vmem:[%s21525_s15 + $0x55] sm:$0xff]  ;;  %v17222_v52 = vld [vmem:[%s21525_s15 + $0x1a5] sm:$0xff] }
 0x338   : > { %v7490_v31 = vpop.f32.mrf.mxu0  ;;  %v7917_v37 = vpop.f32.mrf.mxu1 }
 0x339   : > { %v7629_v49 = vadd.f32 %v7490_v31, %v23871_v43  ;;  %v24121_v2 = vadd.f32 %v20230_v29, %v7630_v41 }
 0x33a   : > { %v20177_v8 = vpop.f32.mrf.mxu0  ;;  %20494 = vmatmul.mubr.msk.f32.vlgmr.msra.gmra.mxu0 %vm541_vm0, %v9791_v62  ;;  %v20233_v60 = vpop.f32.mrf.mxu1  ;;  %20550 = vmatmul.mubr.msk.f32.vlgmr.msra.gmra.mxu1 %vm541_vm0, %v17217_v27 }
 0x33b   : > { %v7632_v56 = vadd.f32 %v20177_v8, %v23882_v55  ;;  %v24126_v63 = vadd.f32 %v7917_v37, %v7629_v49  ;;  %20496 = vmatprep.mubr.msk.f32.mxu0 %vm541_vm0, %v9792_v17  ;;  %20552 = vmatprep.mubr.msk.f32.mxu1 %vm541_vm0, %v17218_v42  ;;  %v9797_v37 = vld [vmem:[%s21525_s15 + $0x5d] sm:$0xff]  ;;  %v17223_v17 = vld [vmem:[%s21525_s15 + $0x1ad] sm:$0xff]  ;;  %v9798_v49 = vld [vmem:[%s21525_s15 + $0x65] sm:$0xff] }
 0x33c   : > { %v7500_v43 = vpop.f32.mrf.mxu0  ;;  %v7927_v12 = vpop.f32.mrf.mxu1  ;;  %20604 = vmatpush3.msra.mxu0 %v23868_v11  ;;  %v17221_v11 = vld [vmem:[%s21525_s15 + $0x19d] sm:$0xff]  ;;  %v17224_v8 = vld [vmem:[%s21525_s15 + $0x1b5] sm:$0xff] }
 0x33d   : > { %v7631_v55 = vadd.f32 %v7500_v43, %v23888_v40  ;;  %v24136_v22 = vadd.f32 %v20233_v60, %v7632_v56 }
 0x33e   : > { %v20180_v36 = vpop.f32.mrf.mxu0  ;;  %20497 = vmatmul.mubr.msk.f32.gmra.mxu0 %vm541_vm0, %v9793_v38  ;;  %v20236_v34 = vpop.f32.mrf.mxu1  ;;  %20553 = vmatmul.mubr.msk.f32.gmra.mxu1 %vm541_vm0, %v17219_v15 }
 0x33f   : > { %v7634_v48 = vadd.f32 %v20180_v36, %v23897_v5  ;;  %v24141_v19 = vadd.f32 %v7927_v12, %v7631_v55  ;;  %20499 = vmatprep.mubr.msk.f32.mxu0 %vm541_vm0, %v9794_v44  ;;  %20555 = vmatprep.mubr.msk.f32.mxu1 %vm541_vm0, %v17220_v9  ;;  %v9799_v12 = vld [vmem:[%s21525_s15 + $0x6d] sm:$0xff]  ;;  %v17225_v44 = vld [vmem:[%s21525_s15 + $0x1bd] sm:$0xff]  ;;  %v9800_v55 = vld [vmem:[%s21525_s15 + $0x75] sm:$0xff] }
 0x340   : > { %v7510_v40 = vpop.f32.mrf.mxu0  ;;  %v7937_v53 = vpop.f32.mrf.mxu1  ;;  %v17226_v36 = vld [vmem:[%s21525_s15 + $0x1c5] sm:$0xff] }
 0x341   : > { %v7633_v29 = vadd.f32 %v7510_v40, %v23902_v54  ;;  %v24150_v41 = vadd.f32 %v20236_v34, %v7634_v48 }
 0x342   : > { %v20183_v5 = vpop.f32.mrf.mxu0  ;;  %20500 = vmatmul.mubr.msk.f32.gmra.mxu0 %vm541_vm0, %v9795_v58  ;;  %v20239_v62 = vpop.f32.mrf.mxu1  ;;  %20556 = vmatmul.mubr.msk.f32.gmra.mxu1 %vm541_vm0, %v17221_v11 }
 0x343   : > { %v7636_v27 = vadd.f32 %v20183_v5, %v23911_v26  ;;  %v24155_v31 = vadd.f32 %v7937_v53, %v7633_v29  ;;  %20502 = vmatprep.mubr.msk.f32.mxu0 %vm541_vm0, %v9796_v33  ;;  %20558 = vmatprep.mubr.msk.f32.mxu1 %vm541_vm0, %v17222_v52  ;;  %v9801_v53 = vld [vmem:[%s21525_s15 + $0x7d] sm:$0xff]  ;;  %v17227_v33 = vld [vmem:[%s21525_s15 + $0x1cd] sm:$0xff]  ;;  %v9802_v29 = vld [vmem:[%s21525_s15 + $0x85] sm:$0xff] }
 0x344   : > { %v7520_v54 = vpop.f32.mrf.mxu0  ;;  %v7947_v42 = vpop.f32.mrf.mxu1  ;;  %v17228_v5 = vld [vmem:[%s21525_s15 + $0x1d5] sm:$0xff] }
 0x345   : > { %v7635_v60 = vadd.f32 %v7520_v54, %v23916_v25  ;;  %v24164_v56 = vadd.f32 %v20239_v62, %v7636_v27 }
 0x346   : > { %v20186_v26 = vpop.f32.mrf.mxu0  ;;  %20503 = vmatmul.mubr.msk.f32.gmra.mxu0 %vm541_vm0, %v9797_v37  ;;  %v20242_v38 = vpop.f32.mrf.mxu1  ;;  %20559 = vmatmul.mubr.msk.f32.gmra.mxu1 %vm541_vm0, %v17223_v17 }
 0x347   : > { %v7638_v15 = vadd.f32 %v20186_v26, %v23925_v3  ;;  %v24169_v43 = vadd.f32 %v7947_v42, %v7635_v60  ;;  %20505 = vmatprep.mubr.msk.f32.mxu0 %vm541_vm0, %v9798_v49  ;;  %20561 = vmatprep.mubr.msk.f32.mxu1 %vm541_vm0, %v17224_v8  ;;  %v9803_v42 = vld [vmem:[%s21525_s15 + $0x8d] sm:$0xff]  ;;  %v17229_v49 = vld [vmem:[%s21525_s15 + $0x1dd] sm:$0xff]  ;;  %v9804_v60 = vld [vmem:[%s21525_s15 + $0x95] sm:$0xff] }
 0x348   : > { %v7530_v25 = vpop.f32.mrf.mxu0  ;;  %v7957_v9 = vpop.f32.mrf.mxu1  ;;  %v17230_v26 = vld [vmem:[%s21525_s15 + $0x1e5] sm:$0xff] }
 0x349   : > { %v7637_v34 = vadd.f32 %v7530_v25, %v23930_v51  ;;  %v24178_v48 = vadd.f32 %v20242_v38, %v7638_v15 }
 0x34a   : > { %v20189_v3 = vpop.f32.mrf.mxu0  ;;  %20506 = vmatmul.mubr.msk.f32.gmra.mxu0 %vm541_vm0, %v9799_v12  ;;  %v20245_v58 = vpop.f32.mrf.mxu1  ;;  %20562 = vmatmul.mubr.msk.f32.gmra.mxu1 %vm541_vm0, %v17225_v44 }
 0x34b   : > { %v7640_v11 = vadd.f32 %v20189_v3, %v23939_v57  ;;  %v24183_v40 = vadd.f32 %v7957_v9, %v7637_v34  ;;  %20508 = vmatprep.mubr.msk.f32.mxu0 %vm541_vm0, %v9800_v55  ;;  %20564 = vmatprep.mubr.msk.f32.mxu1 %vm541_vm0, %v17226_v36  ;;  %v9805_v9 = vld [vmem:[%s21525_s15 + $0x9d] sm:$0xff]  ;;  %v17231_v55 = vld [vmem:[%s21525_s15 + $0x1ed] sm:$0xff]  ;;  %v9806_v34 = vld [vmem:[%s21525_s15 + $0xa5] sm:$0xff] }
 0x34c   : > { %v7540_v51 = vpop.f32.mrf.mxu0  ;;  %v7967_v52 = vpop.f32.mrf.mxu1  ;;  %v17232_v3 = vld [vmem:[%s21525_s15 + $0x1f5] sm:$0xff] }
 0x34d   : > { %v7639_v62 = vadd.f32 %v7540_v51, %v23944_v47  ;;  %v24192_v27 = vadd.f32 %v20245_v58, %v7640_v11 }
 0x34e   : > { %v20192_v57 = vpop.f32.mrf.mxu0  ;;  %20509 = vmatmul.mubr.msk.f32.gmra.mxu0 %vm541_vm0, %v9801_v53  ;;  %v20248_v37 = vpop.f32.mrf.mxu1  ;;  %20565 = vmatmul.mubr.msk.f32.gmra.mxu1 %vm541_vm0, %v17227_v33 }
 0x34f   : > { %v7642_v17 = vadd.f32 %v20192_v57, %v23953_v45  ;;  %v24197_v54 = vadd.f32 %v7967_v52, %v7639_v62  ;;  %20511 = vmatprep.mubr.msk.f32.mxu0 %vm541_vm0, %v9802_v29  ;;  %20567 = vmatprep.mubr.msk.f32.mxu1 %vm541_vm0, %v17228_v5  ;;  %v9807_v52 = vld [vmem:[%s21525_s15 + $0xad] sm:$0xff]  ;;  %v17233_v29 = vld [vmem:[%s21525_s15 + $0x1fd] sm:$0xff]  ;;  %v9808_v62 = vld [vmem:[%s21525_s15 + $0xb5] sm:$0xff] }
 0x350   : > { %v7550_v47 = vpop.f32.mrf.mxu0  ;;  %v7977_v8 = vpop.f32.mrf.mxu1  ;;  %v17234_v57 = vld [vmem:[%s21525_s15 + $0x205] sm:$0xff] }
 0x351   : > { %v7641_v38 = vadd.f32 %v7550_v47, %v23958_v18  ;;  %v24206_v15 = vadd.f32 %v20248_v37, %v7642_v17 }
 0x352   : > { %v20195_v45 = vpop.f32.mrf.mxu0  ;;  %20512 = vmatmul.mubr.msk.f32.gmra.mxu0 %vm541_vm0, %v9803_v42  ;;  %v20251_v12 = vpop.f32.mrf.mxu1  ;;  %20568 = vmatmul.mubr.msk.f32.gmra.mxu1 %vm541_vm0, %v17229_v49 }
 0x353   : > { %v7644_v44 = vadd.f32 %v20195_v45, %v23967_v61  ;;  %v24211_v25 = vadd.f32 %v7977_v8, %v7641_v38  ;;  %20514 = vmatprep.mubr.msk.f32.mxu0 %vm541_vm0, %v9804_v60  ;;  %20570 = vmatprep.mubr.msk.f32.mxu1 %vm541_vm0, %v17230_v26  ;;  %v9809_v8 = vld [vmem:[%s21525_s15 + $0xbd] sm:$0xff]  ;;  %v17235_v60 = vld [vmem:[%s21525_s15 + $0x20d] sm:$0xff]  ;;  %v9810_v38 = vld [vmem:[%s21525_s15 + $0xc5] sm:$0xff] }
 0x354   : > { %v7560_v18 = vpop.f32.mrf.mxu0  ;;  %v7987_v36 = vpop.f32.mrf.mxu1  ;;  %v17236_v45 = vld [vmem:[%s21525_s15 + $0x215] sm:$0xff] }
 0x355   : > { %v7643_v58 = vadd.f32 %v7560_v18, %v23972_v28  ;;  %v24220_v11 = vadd.f32 %v20251_v12, %v7644_v44 }
 0x356   : > { %v20198_v61 = vpop.f32.mrf.mxu0  ;;  %20515 = vmatmul.mubr.msk.f32.gmra.mxu0 %vm541_vm0, %v9805_v9  ;;  %v20254_v53 = vpop.f32.mrf.mxu1  ;;  %20571 = vmatmul.mubr.msk.f32.gmra.mxu1 %vm541_vm0, %v17231_v55 }
 0x357   : > { %v7646_v33 = vadd.f32 %v20198_v61, %v23981_v24  ;;  %v24225_v51 = vadd.f32 %v7987_v36, %v7643_v58  ;;  %20517 = vmatprep.mubr.msk.f32.mxu0 %vm541_vm0, %v9806_v34  ;;  %20573 = vmatprep.mubr.msk.f32.mxu1 %vm541_vm0, %v17232_v3  ;;  %v9811_v36 = vld [vmem:[%s21525_s15 + $0xcd] sm:$0xff]  ;;  %v17237_v34 = vld [vmem:[%s21525_s15 + $0x21d] sm:$0xff]  ;;  %v9812_v58 = vld [vmem:[%s21525_s15 + $0xd5] sm:$0xff] }
 0x358   : > { %v7570_v28 = vpop.f32.mrf.mxu0  ;;  %v7997_v5 = vpop.f32.mrf.mxu1  ;;  %v17238_v61 = vld [vmem:[%s21525_s15 + $0x225] sm:$0xff] }
 0x359   : > { %v7645_v37 = vadd.f32 %v7570_v28, %v23986_v32  ;;  %v24234_v17 = vadd.f32 %v20254_v53, %v7646_v33 }
 0x35a   : > { %v20201_v24 = vpop.f32.mrf.mxu0  ;;  %20518 = vmatmul.mubr.msk.f32.gmra.mxu0 %vm541_vm0, %v9807_v52  ;;  %v20257_v42 = vpop.f32.mrf.mxu1  ;;  %20574 = vmatmul.mubr.msk.f32.gmra.mxu1 %vm541_vm0, %v17233_v29 }
 0x35b   : > { %v7648_v49 = vadd.f32 %v20201_v24, %v23995_v39  ;;  %v24239_v47 = vadd.f32 %v7997_v5, %v7645_v37  ;;  %20520 = vmatprep.mubr.msk.f32.mxu0 %vm541_vm0, %v9808_v62  ;;  %20576 = vmatprep.mubr.msk.f32.mxu1 %vm541_vm0, %v17234_v57  ;;  %v9813_v5 = vld [vmem:[%s21525_s15 + $0xdd] sm:$0xff]  ;;  %v9814_v37 = vld [vmem:[%s21525_s15 + $0xe5] sm:$0xff]  ;;  %v17240_v24 = vld [vmem:[%s21525_s15 + $0x235] sm:$0xff] }
 0x35c   : > { %v7580_v32 = vpop.f32.mrf.mxu0  ;;  %v8007_v26 = vpop.f32.mrf.mxu1 }
 0x35d   : > { %v7647_v12 = vadd.f32 %v7580_v32, %v24000_v6  ;;  %v24248_v44 = vadd.f32 %v20257_v42, %v7648_v49  ;;  %v9815_v32 = vld [vmem:[%s21525_s15 + $0xed] sm:$0xff] }
 0x35e   : > { %v20204_v39 = vpop.f32.mrf.mxu0  ;;  %20521 = vmatmul.mubr.msk.f32.gmra.mxu0 %vm541_vm0, %v9809_v8  ;;  %v20260_v9 = vpop.f32.mrf.mxu1  ;;  %20577 = vmatmul.mubr.msk.f32.gmra.mxu1 %vm541_vm0, %v17235_v60 }
 0x35f   : > { %v7650_v55 = vadd.f32 %v20204_v39, %v24009_v7  ;;  %v24253_v18 = vadd.f32 %v8007_v26, %v7647_v12  ;;  %20523 = vmatprep.mubr.msk.f32.mxu0 %vm541_vm0, %v9810_v38  ;;  %20579 = vmatprep.mubr.msk.f32.mxu1 %vm541_vm0, %v17236_v45  ;;  %v17241_v26 = vld [vmem:[%s21525_s15 + $0x23d] sm:$0xff]  ;;  %v9816_v45 = vld [vmem:[%s21525_s15 + $0xf5] sm:$0xff]  ;;  %v17242_v12 = vld [vmem:[%s21525_s15 + $0x245] sm:$0xff] }
 0x360   : > { %v7590_v6 = vpop.f32.mrf.mxu0  ;;  %v8017_v3 = vpop.f32.mrf.mxu1 }
 0x361   : > { %v7649_v53 = vadd.f32 %v7590_v6, %v24014_v35  ;;  %v24262_v33 = vadd.f32 %v20260_v9, %v7650_v55  ;;  %v17239_v35 = vld [vmem:[%s21525_s15 + $0x22d] sm:$0xff] }
 0x362   : > { %v20207_v7 = vpop.f32.mrf.mxu0  ;;  %20524 = vmatmul.mubr.msk.f32.gmra.mxu0 %vm541_vm0, %v9811_v36  ;;  %v20263_v52 = vpop.f32.mrf.mxu1  ;;  %20580 = vmatmul.mubr.msk.f32.gmra.mxu1 %vm541_vm0, %v17237_v34  ;;  %v9817_v34 = vld [vmem:[%s21525_s15 + $0xfd] sm:$0xff]  ;;  %v17243_v6 = vld [vmem:[%s21525_s15 + $0x24d] sm:$0xff] }
 0x363   : > { %v7652_v29 = vadd.f32 %v20207_v7, %v24023_v46  ;;  %v24267_v28 = vadd.f32 %v8017_v3, %v7649_v53  ;;  %20526 = vmatprep.mubr.msk.f32.mxu0 %vm541_vm0, %v9812_v58  ;;  %20582 = vmatprep.mubr.msk.f32.mxu1 %vm541_vm0, %v17238_v61  ;;  %v9818_v58 = vld [vmem:[%s21525_s15 + $0x105] sm:$0xff]  ;;  %v17244_v61 = vld [vmem:[%s21525_s15 + $0x255] sm:$0xff] }
 0x364   : > { %v7600_v62 = vpop.f32.mrf.mxu0  ;;  %v24273_v57 = vpop.f32.mrf.mxu1 }
 0x365   : > { %v24278_v42 = vadd.f32 %v7600_v62, %v24028_v50  ;;  %v24280_v46 = vadd.f32 %v20263_v52, %v7652_v29 }
 0x366   : > { %v20210_v49 = vpop.f32.mrf.mxu0  ;;  %20527 = vmatmul.mubr.msk.f32.gmra.mxu0 %vm541_vm0, %v9813_v5  ;;  %v20266_v8 = vpop.f32.mrf.mxu1  ;;  %20583 = vmatmul.mubr.msk.f32.gmra.mxu1 %vm541_vm0, %v17239_v35  ;;  %v9819_v5 = vld [vmem:[%s21525_s15 + $0x10d] sm:$0xff]  ;;  %v17245_v35 = vld [vmem:[%s21525_s15 + $0x25d] sm:$0xff] }
 0x367   : > { %v7654_v60 = vadd.f32 %v20210_v49, %v24037_v23  ;;  %20529 = vmatprep.mubr.msk.f32.mxu0 %vm541_vm0, %v9814_v37  ;;  %20585 = vmatprep.mubr.msk.f32.mxu1 %vm541_vm0, %v17240_v24  ;;  %v9820_v37 = vld [vmem:[%s21525_s15 + $0x115] sm:$0xff]  ;;  %v17246_v24 = vld [vmem:[%s21525_s15 + $0x265] sm:$0xff] }
 0x368   : > { %v7610_v50 = vpop.f32.mrf.mxu0  ;;  %v24289_v38 = vpop.f32.mrf.mxu1 }
 0x369   : > { %v24294_v39 = vadd.f32 %v7610_v50, %v24041_v21  ;;  %v24296_v9 = vadd.f32 %v20266_v8, %v7654_v60  ;;  %v17247_v50 = vld [vmem:[%s21525_s15 + $0x26d] sm:$0xff] }
 0x36a   : > { %v20271_v23 = vpop.f32.mrf.mxu0  ;;  %20530 = vmatmul.mubr.msk.f32.gmra.mxu0 %vm541_vm0, %v9815_v32  ;;  %v20327_v55 = vpop.f32.mrf.mxu1  ;;  %20586 = vmatmul.mubr.msk.f32.gmra.mxu1 %vm541_vm0, %v17241_v26  ;;  %v9821_v26 = vld [vmem:[%s21525_s15 + $0x11d] sm:$0xff] }
 0x36b   : > { %v8474_v36 = vadd.f32 %v20271_v23, %v24051_v30  ;;  %20532 = vmatprep.mubr.msk.f32.mxu0 %vm541_vm0, %v9816_v45  ;;  %20588 = vmatprep.mubr.msk.f32.mxu1 %vm541_vm0, %v17242_v12  ;;  %v9822_v12 = vld [vmem:[%s21525_s15 + $0x125] sm:$0xff]  ;;  %v17248_v23 = vld [vmem:[%s21525_s15 + $0x275] sm:$0xff] }
 0x36c   : > { %v8294_v21 = vpop.f32.mrf.mxu0  ;;  %v24305_v3 = vpop.f32.mrf.mxu1 }
 0x36d   : > { %v24310_v53 = vadd.f32 %v8294_v21, %v24056_v0  ;;  %v24312_v7 = vadd.f32 %v20327_v55, %v8474_v36  ;;  %v9823_v21 = vld [vmem:[%s21525_s15 + $0x12d] sm:$0xff] }
 0x36e   : > { %v20274_v30 = vpop.f32.mrf.mxu0  ;;  %20533 = vmatmul.mubr.msk.f32.gmra.mxu0 %vm541_vm0, %v9817_v34  ;;  %v20330_v52 = vpop.f32.mrf.mxu1  ;;  %20589 = vmatmul.mubr.msk.f32.gmra.mxu1 %vm541_vm0, %v17243_v6 }
 0x36f   : > { %v8476_v29 = vadd.f32 %v20274_v30, %v24065_v20  ;;  %20535 = vmatprep.mubr.msk.f32.mxu0 %vm541_vm0, %v9818_v58  ;;  %20591 = vmatprep.mubr.msk.f32.mxu1 %vm541_vm0, %v17244_v61  ;;  %v17249_v58 = vld [vmem:[%s21525_s15 + $0x27d] sm:$0xff]  ;;  %v9824_v30 = vld [vmem:[%s21525_s15 + $0x135] sm:$0xff] }
 0x370   : > { %v8304_v0 = vpop.f32.mrf.mxu0  ;;  %v24321_v62 = vpop.f32.mrf.mxu1 }
 0x371   : > { %v24326_v49 = vadd.f32 %v8304_v0, %v24070_v10  ;;  %v24328_v8 = vadd.f32 %v20330_v52, %v8476_v29  ;;  %v17250_v52 = vld [vmem:[%s21525_s15 + $0x285] sm:$0xff] }
 0x372   : > { %v20277_v20 = vpop.f32.mrf.mxu0  ;;  %20536 = vmatmul.mubr.msk.f32.gmra.mxu0 %vm541_vm0, %v9819_v5  ;;  %v20333_v60 = vpop.f32.mrf.mxu1  ;;  %20592 = vmatmul.mubr.msk.f32.gmra.mxu1 %vm541_vm0, %v17245_v35 }
 0x373   : > { %v8478_v32 = vadd.f32 %v20277_v20, %v24079_v59  ;;  %20538 = vmatprep.mubr.msk.f32.mxu0 %vm541_vm0, %v9820_v37  ;;  %20594 = vmatprep.mubr.msk.f32.mxu1 %vm541_vm0, %v17246_v24  ;;  %v9825_v37 = vld [vmem:[%s21525_s15 + $0x13d] sm:$0xff]  ;;  %v17251_v24 = vld [vmem:[%s21525_s15 + $0x28d] sm:$0xff] }
 0x374   : > { %v8314_v10 = vpop.f32.mrf.mxu0  ;;  %v24337_v45 = vpop.f32.mrf.mxu1 }
 0x375   : > { %v24342_v55 = vadd.f32 %v8314_v10, %v24084_v1  ;;  %v24344_v36 = vadd.f32 %v20333_v60, %v8478_v32  ;;  %v10644_v60 = vld [vmem:[%s21525_s15 + $0x26] sm:$0xff] }
 0x376   : > { %v20280_v59 = vpop.f32.mrf.mxu0  ;;  %20539 = vmatmul.mubr.msk.f32.gmra.mxu0 %vm541_vm0, %v9821_v26  ;;  %v20336_v34 = vpop.f32.mrf.mxu1  ;;  %20595 = vmatmul.mubr.msk.f32.gmra.mxu1 %vm541_vm0, %v17247_v50 }
 0x377   : > { %v8480_v6 = vadd.f32 %v20280_v59, %v24093_v16  ;;  %20541 = vmatprep.mubr.msk.f32.mxu0 %vm541_vm0, %v9822_v12  ;;  %20597 = vmatprep.mubr.msk.f32.mxu1 %vm541_vm0, %v17248_v23  ;;  %v10645_v12 = vld [vmem:[%s21525_s15 + $0x2e] sm:$0xff] }
 0x378   : > { %v8324_v1 = vpop.f32.mrf.mxu0  ;;  %v24353_v61 = vpop.f32.mrf.mxu1 }
 0x379   : > { %v24358_v29 = vadd.f32 %v8324_v1, %v24098_v4  ;;  %v24360_v5 = vadd.f32 %v20336_v34, %v8480_v6  ;;  %v10647_v1 = vld [vmem:[%s21525_s15 + $0x3e] sm:$0xff] }
 0x37a   : > { %v20283_v16 = vpop.f32.mrf.mxu0  ;;  %20542 = vmatmul.mubr.msk.f32.gmra.mxu0 %vm541_vm0, %v9823_v21  ;;  %v20339_v35 = vpop.f32.mrf.mxu1  ;;  %20598 = vmatmul.mubr.msk.f32.gmra.mxu1 %vm541_vm0, %v17249_v58 }
 0x37b   : > { %v8482_v0 = vadd.f32 %v20283_v16, %v24107_v13  ;;  %20544 = vmatprep.mubr.msk.f32.mxu0 %vm541_vm0, %v9824_v30  ;;  %20600 = vmatprep.mubr.msk.f32.mxu1 %vm541_vm0, %v17250_v52  ;;  %v10648_v16 = vld [vmem:[%s21525_s15 + $0x46] sm:$0xff] }
 0x37c   : > { %v8334_v4 = vpop.f32.mrf.mxu0  ;;  %v24369_v20 = vpop.f32.mrf.mxu1 }
 0x37d   : > { %v24373_v32 = vadd.f32 %v8334_v4, %v24112_v14  ;;  %v24375_v26 = vadd.f32 %v20339_v35, %v8482_v0  ;;  %v10646_v14 = vld [vmem:[%s21525_s15 + $0x36] sm:$0xff] }
 0x37e   : > { %v20286_v50 = vpop.f32.mrf.mxu0  ;;  %20545 = vmatmul.mubr.msk.f32.gmra.mxu0 %vm541_vm0, %v9825_v37  ;;  %v20342_v13 = vpop.f32.mrf.mxu1  ;;  %20601 = vmatmul.mubr.msk.f32.gmra.mxu1 %vm541_vm0, %v17251_v24  ;;  %v10649_v24 = vld [vmem:[%s21525_s15 + $0x4e] sm:$0xff] }
 0x37f   : > { %v8484_v10 = vadd.f32 %v20286_v50, %v24121_v2  ;;  %20605 = vmatprep.mubr.msk.f32.mxu0 %vm541_vm0, %v10644_v60  ;;  %v10650_v50 = vld [vmem:[%s21525_s15 + $0x56] sm:$0xff] }
 0x380   : > { %v8344_v23 = vpop.f32.mrf.mxu0  ;;  %v24382_v59 = vpop.f32.mrf.mxu1 }
 0x381   : > { %v24386_v34 = vadd.f32 %v8344_v23, %v24126_v63  ;;  %v24388_v6 = vadd.f32 %v20342_v13, %v8484_v10  ;;  %v10651_v23 = vld [vmem:[%s21525_s15 + $0x5e] sm:$0xff] }
 0x382   : > { %v20289_v21 = vpop.f32.mrf.mxu0  ;;  %20606 = vmatmul.mubr.msk.f32.vlgmr.msra.gmra.mxu0 %vm541_vm0, %v10645_v12  ;;  %v20345_v58 = vpop.f32.mrf.mxu1 }
 0x383   : > { %v8486_v2 = vadd.f32 %v20289_v21, %v24136_v22  ;;  %20608 = vmatprep.mubr.msk.f32.mxu0 %vm541_vm0, %v10646_v14 }
 0x384   : > { %v8354_v30 = vpop.f32.mrf.mxu0  ;;  %v24394_v52 = vpop.f32.mrf.mxu1 }
 0x385   : > { %v24398_v63 = vadd.f32 %v8354_v30, %v24141_v19  ;;  %v24400_v35 = vadd.f32 %v20345_v58, %v8486_v2  ;;  %v10652_v58 = vld [vmem:[%s21525_s15 + $0x66] sm:$0xff] }
 0x386   : > { %v20292_v0 = vpop.f32.mrf.mxu0  ;;  %20609 = vmatmul.mubr.msk.f32.gmra.mxu0 %vm541_vm0, %v10647_v1  ;;  %v20348_v37 = vpop.f32.mrf.mxu1 }
 0x387   : > { %v8488_v22 = vadd.f32 %v20292_v0, %v24150_v41  ;;  %20611 = vmatprep.mubr.msk.f32.mxu0 %vm541_vm0, %v10648_v16  ;;  %v10653_v16 = vld [vmem:[%s21525_s15 + $0x6e] sm:$0xff] }
 0x388   : > { %v8364_v4 = vpop.f32.mrf.mxu0  ;;  %v24406_v60 = vpop.f32.mrf.mxu1 }
 0x389   : > { %v24410_v19 = vadd.f32 %v8364_v4, %v24155_v31  ;;  %v24412_v13 = vadd.f32 %v20348_v37, %v8488_v22  ;;  %v10654_v22 = vld [vmem:[%s21525_s15 + $0x76] sm:$0xff] }
 0x38a   : > { %v20295_v10 = vpop.f32.mrf.mxu0  ;;  %20612 = vmatmul.mubr.msk.f32.gmra.mxu0 %vm541_vm0, %v10649_v24  ;;  %v20351_v12 = vpop.f32.mrf.mxu1 }
 0x38b   : > { %v8490_v41 = vadd.f32 %v20295_v10, %v24164_v56  ;;  %20614 = vmatprep.mubr.msk.f32.mxu0 %vm541_vm0, %v10650_v50  ;;  %v10655_v10 = vld [vmem:[%s21525_s15 + $0x7e] sm:$0xff] }
 0x38c   : > { %v8374_v14 = vpop.f32.mrf.mxu0  ;;  %v24418_v21 = vpop.f32.mrf.mxu1 }
 0x38d   : > { %v24422_v31 = vadd.f32 %v8374_v14, %v24169_v43  ;;  %v24424_v2 = vadd.f32 %v20351_v12, %v8490_v41 }
 0x38e   : > { %v20298_v1 = vpop.f32.mrf.mxu0  ;;  %20615 = vmatmul.mubr.msk.f32.gmra.mxu0 %vm541_vm0, %v10651_v23  ;;  %v20354_v30 = vpop.f32.mrf.mxu1  ;;  %v10656_v23 = vld [vmem:[%s21525_s15 + $0x86] sm:$0xff] }
 0x38f   : > { %v8492_v56 = vadd.f32 %v20298_v1, %v24178_v48  ;;  %20617 = vmatprep.mubr.msk.f32.mxu0 %vm541_vm0, %v10652_v58 }
 0x390   : > { %v8384_v0 = vpop.f32.mrf.mxu0  ;;  %v24430_v37 = vpop.f32.mrf.mxu1 }
 0x391   : > { %v24434_v43 = vadd.f32 %v8384_v0, %v24183_v40  ;;  %v24436_v24 = vadd.f32 %v20354_v30, %v8492_v56  ;;  %v10657_v30 = vld [vmem:[%s21525_s15 + $0x8e] sm:$0xff]  ;;  %v10658_v0 = vld [vmem:[%s21525_s15 + $0x96] sm:$0xff] }
 0x392   : > { %v20301_v4 = vpop.f32.mrf.mxu0  ;;  %20618 = vmatmul.mubr.msk.f32.gmra.mxu0 %vm541_vm0, %v10653_v16  ;;  %v20357_v50 = vpop.f32.mrf.mxu1 }
 0x393   : > { %v8494_v48 = vadd.f32 %v20301_v4, %v24192_v27  ;;  %20620 = vmatprep.mubr.msk.f32.mxu0 %vm541_vm0, %v10654_v22 }
 0x394   : > { %v8394_v12 = vpop.f32.mrf.mxu0  ;;  %v24442_v41 = vpop.f32.mrf.mxu1 }
 0x395   : > { %v24446_v40 = vadd.f32 %v8394_v12, %v24197_v54  ;;  %v24448_v14 = vadd.f32 %v20357_v50, %v8494_v48  ;;  %v10659_v48 = vld [vmem:[%s21525_s15 + $0x9e] sm:$0xff] }
 0x396   : > { %v20304_v58 = vpop.f32.mrf.mxu0  ;;  %20621 = vmatmul.mubr.msk.f32.gmra.mxu0 %vm541_vm0, %v10655_v10  ;;  %v20360_v1 = vpop.f32.mrf.mxu1 }
 0x397   : > { %v8496_v27 = vadd.f32 %v20304_v58, %v24206_v15  ;;  %20623 = vmatprep.mubr.msk.f32.mxu0 %vm541_vm0, %v10656_v23  ;;  %v10660_v23 = vld [vmem:[%s21525_s15 + $0xa6] sm:$0xff] }
 0x398   : > { %v8404_v56 = vpop.f32.mrf.mxu0  ;;  %v24454_v16 = vpop.f32.mrf.mxu1 }
 0x399   : > { %v24458_v54 = vadd.f32 %v8404_v56, %v24211_v25  ;;  %v24460_v22 = vadd.f32 %v20360_v1, %v8496_v27 }
 0x39a   : > { %v20307_v4 = vpop.f32.mrf.mxu0  ;;  %20624 = vmatmul.mubr.msk.f32.gmra.mxu0 %vm541_vm0, %v10657_v30  ;;  %v20363_v50 = vpop.f32.mrf.mxu1  ;;  %v10661_v30 = vld [vmem:[%s21525_s15 + $0xae] sm:$0xff] }
 0x39b   : > { %v8498_v15 = vadd.f32 %v20307_v4, %v24220_v11  ;;  %20626 = vmatprep.mubr.msk.f32.mxu0 %vm541_vm0, %v10658_v0  ;;  %v10662_v4 = vld [vmem:[%s21525_s15 + $0xb6] sm:$0xff] }
 0x39c   : > { %v8414_v10 = vpop.f32.mrf.mxu0  ;;  %v24466_v12 = vpop.f32.mrf.mxu1 }
 0x39d   : > { %27195 = vst [vmem:[#allocation9_spill] sm:$0xff] %v24466_v12  ;;  %v24470_v25 = vadd.f32 %v8414_v10, %v24225_v51  ;;  %v24472_v58 = vadd.f32 %v20363_v50, %v8498_v15  ;;  %v10663_v10 = vld [vmem:[%s21525_s15 + $0xbe] sm:$0xff] }
 0x39e   : > { %v20310_v1 = vpop.f32.mrf.mxu0  ;;  %20627 = vmatmul.mubr.msk.f32.gmra.mxu0 %vm541_vm0, %v10659_v48  ;;  %v20366_v27 = vpop.f32.mrf.mxu1 }
 0x39f   : > { %v8500_v11 = vadd.f32 %v20310_v1, %v24234_v17  ;;  %20629 = vmatprep.mubr.msk.f32.mxu0 %vm541_vm0, %v10660_v23 }
 0x3a0   : > { %v8424_v56 = vpop.f32.mrf.mxu0  ;;  %v24478_v0 = vpop.f32.mrf.mxu1 }
 0x3a1   : > { %27196 = vst [vmem:[#allocation10_spill] sm:$0xff] %v24478_v0  ;;  %v24482_v51 = vadd.f32 %v8424_v56, %v24239_v47  ;;  %v24484_v50 = vadd.f32 %v20366_v27, %v8500_v11  ;;  %v10664_v0 = vld [vmem:[%s21525_s15 + $0xc6] sm:$0xff]  ;;  %v10665_v56 = vld [vmem:[%s21525_s15 + $0xce] sm:$0xff] }
 0x3a2   : > { %v20313_v15 = vpop.f32.mrf.mxu0  ;;  %20630 = vmatmul.mubr.msk.f32.gmra.mxu0 %vm541_vm0, %v10661_v30  ;;  %v20369_v48 = vpop.f32.mrf.mxu1 }
 0x3a3   : > { %27197 = vst [vmem:[#allocation11_spill] sm:$0xff] %v24482_v51  ;;  %v8502_v17 = vadd.f32 %v20313_v15, %v24248_v44  ;;  %20632 = vmatprep.mubr.msk.f32.mxu0 %vm541_vm0, %v10662_v4 }
 0x3a4   : > { %v8434_v23 = vpop.f32.mrf.mxu0  ;;  %v24490_v1 = vpop.f32.mrf.mxu1 }
 0x3a5   : > { %27198 = vst [vmem:[#allocation12_spill] sm:$0xff] %v24490_v1  ;;  %v24494_v47 = vadd.f32 %v8434_v23, %v24253_v18  ;;  %v24496_v27 = vadd.f32 %v20369_v48, %v8502_v17  ;;  %v10666_v1 = vld [vmem:[%s21525_s15 + $0xd6] sm:$0xff] }
 0x3a6   : > { %v20316_v11 = vpop.f32.mrf.mxu0  ;;  %20633 = vmatmul.mubr.msk.f32.gmra.mxu0 %vm541_vm0, %v10663_v10  ;;  %v20372_v30 = vpop.f32.mrf.mxu1 }
 0x3a7   : > { %27199 = vst [vmem:[#allocation13_spill] sm:$0xff] %v24494_v47  ;;  %v8504_v44 = vadd.f32 %v20316_v11, %v24262_v33  ;;  %20635 = vmatprep.mubr.msk.f32.mxu0 %vm541_vm0, %v10664_v0  ;;  %v10667_v0 = vld [vmem:[%s21525_s15 + $0xde] sm:$0xff]  ;;  %v10674_v47 = vld [vmem:[%s21525_s15 + $0x116] sm:$0xff] }
 0x3a8   : > { %v8444_v4 = vpop.f32.mrf.mxu0  ;;  %v24502_v15 = vpop.f32.mrf.mxu1 }
 0x3a9   : > { %27200 = vst [vmem:[#allocation14_spill] sm:$0xff] %v24502_v15  ;;  %v24506_v18 = vadd.f32 %v8444_v4, %v24267_v28  ;;  %v24508_v48 = vadd.f32 %v20372_v30, %v8504_v44  ;;  %v10668_v15 = vld [vmem:[%s21525_s15 + $0xe6] sm:$0xff] }
 0x3aa   : > { %v20319_v17 = vpop.f32.mrf.mxu0  ;;  %20636 = vmatmul.mubr.msk.f32.gmra.mxu0 %vm541_vm0, %v10665_v56  ;;  %v20375_v10 = vpop.f32.mrf.mxu1 }
 0x3ab   : > { %27201 = vst [vmem:[#allocation15_spill] sm:$0xff] %v24506_v18  ;;  %v8506_v33 = vadd.f32 %v20319_v17, %v24280_v46  ;;  %20638 = vmatprep.mubr.msk.f32.mxu0 %vm541_vm0, %v10666_v1  ;;  %v10669_v46 = vld [vmem:[%s21525_s15 + $0xee] sm:$0xff]  ;;  %v10670_v17 = vld [vmem:[%s21525_s15 + $0xf6] sm:$0xff]  ;;  %v10672_v18 = vld [vmem:[%s21525_s15 + $0x106] sm:$0xff] }
 0x3ac   : > { %v24514_v23 = vpop.f32.mrf.mxu0  ;;  %v24516_v11 = vpop.f32.mrf.mxu1 }
 0x3ad   : > { %27202 = vst [vmem:[#allocation16_spill] sm:$0xff] %v24516_v11  ;;  %v24519_v28 = vadd.f32 %v20375_v10, %v8506_v33 }
 0x3ae   : > { %v20322_v30 = vpop.f32.mrf.mxu0  ;;  %20639 = vmatmul.mubr.msk.f32.gmra.mxu0 %vm541_vm0, %v10667_v0  ;;  %v20378_v44 = vpop.f32.mrf.mxu1 }
 0x3af   : > { %v8508_v56 = vadd.f32 %v20322_v30, %v24296_v9  ;;  %20641 = vmatprep.mubr.msk.f32.mxu0 %vm541_vm0, %v10668_v15  ;;  %v10671_v9 = vld [vmem:[%s21525_s15 + $0xfe] sm:$0xff] }
 0x3b0   : > { %v24525_v1 = vpop.f32.mrf.mxu0  ;;  %v24527_v4 = vpop.f32.mrf.mxu1 }
 0x3b1   : > { %27203 = vst [vmem:[#allocation17_spill] sm:$0xff] %v24527_v4  ;;  %v24530_v11 = vadd.f32 %v20378_v44, %v8508_v56 }
 0x3b2   : > { %v20383_v10 = vpop.f32.mrf.mxu0  ;;  %20642 = vmatmul.mubr.msk.f32.gmra.mxu0 %vm541_vm0, %v10669_v46  ;;  %v20439_v33 = vpop.f32.mrf.mxu1 }
 0x3b3   : > { %v9328_v0 = vadd.f32 %v20383_v10, %v24312_v7  ;;  %20644 = vmatprep.mubr.msk.f32.mxu0 %vm541_vm0, %v10670_v17  ;;  %v10673_v7 = vld [vmem:[%s21525_s15 + $0x10e] sm:$0xff] }
 0x3b4   : > { %v24536_v15 = vpop.f32.mrf.mxu0  ;;  %v24538_v30 = vpop.f32.mrf.mxu1 }
 0x3b5   : > { %27204 = vst [vmem:[#allocation18_spill] sm:$0xff] %v24538_v30  ;;  %v24541_v4 = vadd.f32 %v20439_v33, %v9328_v0 }
 0x3b6   : > { %v20386_v44 = vpop.f32.mrf.mxu0  ;;  %20645 = vmatmul.mubr.msk.f32.gmra.mxu0 %vm541_vm0, %v10671_v9  ;;  %v20442_v56 = vpop.f32.mrf.mxu1 }
 0x3b7   : > { %v9330_v46 = vadd.f32 %v20386_v44, %v24328_v8  ;;  %20647 = vmatprep.mubr.msk.f32.mxu0 %vm541_vm0, %v10672_v18  ;;  %v10675_v8 = vld [vmem:[%s21525_s15 + $0x11e] sm:$0xff] }
 0x3b8   : > { %v24547_v17 = vpop.f32.mrf.mxu0  ;;  %v24549_v10 = vpop.f32.mrf.mxu1 }
 0x3b9   : > { %27205 = vst [vmem:[#allocation19_spill] sm:$0xff] %v24547_v17  ;;  %27206 = vst [vmem:[#allocation20_spill] sm:$0xff] %v24549_v10  ;;  %v24552_v30 = vadd.f32 %v20442_v56, %v9330_v46  ;;  %v10676_v17 = vld [vmem:[%s21525_s15 + $0x126] sm:$0xff] }
 0x3ba   : > { %v20389_v33 = vpop.f32.mrf.mxu0  ;;  %20648 = vmatmul.mubr.msk.f32.gmra.mxu0 %vm541_vm0, %v10673_v7  ;;  %v20445_v0 = vpop.f32.mrf.mxu1 }
 0x3bb   : > { %v9332_v9 = vadd.f32 %v20389_v33, %v24344_v36  ;;  %20650 = vmatprep.mubr.msk.f32.mxu0 %vm541_vm0, %v10674_v47  ;;  %v10677_v36 = vld [vmem:[%s21525_s15 + $0x12e] sm:$0xff] }
 0x3bc   : > { %v24558_v18 = vpop.f32.mrf.mxu0  ;;  %v24560_v44 = vpop.f32.mrf.mxu1 }
 0x3bd   : > { %27207 = vst [vmem:[#allocation21_spill] sm:$0xff] %v24558_v18  ;;  %27208 = vst [vmem:[#allocation22_spill] sm:$0xff] %v24560_v44  ;;  %v24563_v10 = vadd.f32 %v20445_v0, %v9332_v9  ;;  %v10678_v18 = vld [vmem:[%s21525_s15 + $0x136] sm:$0xff] }
 0x3be   : > { %v20392_v56 = vpop.f32.mrf.mxu0  ;;  %20651 = vmatmul.mubr.msk.f32.gmra.mxu0 %vm541_vm0, %v10675_v8  ;;  %v20448_v46 = vpop.f32.mrf.mxu1  ;;  %v10679_v8 = vld [vmem:[%s21525_s15 + $0x13e] sm:$0xff]  ;;  %s27116_s15 = scalar_lea.hbm %s27165_s14, %s17714_s27 }
 0x3bf   : > { %v9334_v7 = vadd.f32 %v20392_v56, %v24360_v5  ;;  %20653 = vmatprep.mubr.msk.f32.mxu0 %vm541_vm0, %v10676_v17 }
 0x3c0   : > { %v24569_v33 = vpop.f32.mrf.mxu0  ;;  %v24571_v47 = vpop.f32.mrf.mxu1 }
 0x3c1   : > { %27209 = vst [vmem:[#allocation23_spill] sm:$0xff] %v24569_v33  ;;  %27210 = vst [vmem:[#allocation24_spill] sm:$0xff] %v24571_v47  ;;  %v24574_v51 = vadd.f32 %v20448_v46, %v9334_v7 }
 0x3c2   : > { %v20395_v44 = vpop.f32.mrf.mxu0  ;;  %20654 = vmatmul.mubr.msk.f32.gmra.mxu0 %vm541_vm0, %v10677_v36  ;;  %v20451_v0 = vpop.f32.mrf.mxu1 }
 0x3c3   : > { %v9336_v9 = vadd.f32 %v20395_v44, %v24375_v26  ;;  %20656 = vmatprep.mubr.msk.f32.mxu0 %vm541_vm0, %v10678_v18 }
 0x3c4   : > { %v24580_v5 = vpop.f32.mrf.mxu0  ;;  %v24582_v17 = vpop.f32.mrf.mxu1 }
 0x3c5   : > { %27211 = vst [vmem:[#allocation25_spill] sm:$0xff] %v24580_v5  ;;  %27212 = vst [vmem:[#allocation26_spill] sm:$0xff] %v24582_v17  ;;  %v24584_v56 = vadd.f32 %v20451_v0, %v9336_v9 }
 0x3c6   : > { %v20398_v33 = vpop.f32.mrf.mxu0  ;;  %20657 = vmatmul.mubr.msk.f32.gmra.mxu0 %vm541_vm0, %v10679_v8  ;;  %v20454_v46 = vpop.f32.mrf.mxu1 }
 0x3c7   : > { %v9338_v7 = vadd.f32 %v20398_v33, %v24388_v6 }
 0x3c8   : > { %v24588_v47 = vpop.f32.mrf.mxu0  ;;  %v24590_v36 = vpop.f32.mrf.mxu1 }
 0x3c9   : > { %27213 = vst [vmem:[#allocation27_spill] sm:$0xff] %v24588_v47  ;;  %27214 = vst [vmem:[#allocation28_spill] sm:$0xff] %v24590_v36  ;;  %v24592_v26 = vadd.f32 %v20454_v46, %v9338_v7 }
 0x3ca   : > { %v20401_v18 = vpop.f32.mrf.mxu0  ;;  %v20457_v44 = vpop.f32.mrf.mxu1 }
 0x3cb   : > { %v9340_v5 = vadd.f32 %v20401_v18, %v24400_v35 }
 0x3cc   : > { %v24595_v12 = vpop.f32.mrf.mxu0  ;;  %v24597_v0 = vpop.f32.mrf.mxu1 }
 0x3cd   : > { %27215 = vst [vmem:[#allocation29_spill] sm:$0xff] %v24595_v12  ;;  %27216 = vst [vmem:[#allocation30_spill] sm:$0xff] %v24597_v0  ;;  %v24599_v9 = vadd.f32 %v20457_v44, %v9340_v5 }
 0x3ce   : > { %v20404_v8 = vpop.f32.mrf.mxu0  ;;  %v20460_v17 = vpop.f32.mrf.mxu1 }
 0x3cf   : > { %v9342_v6 = vadd.f32 %v20404_v8, %v24412_v13 }
 0x3d0   : > { %v24602_v33 = vpop.f32.mrf.mxu0  ;;  %v24604_v47 = vpop.f32.mrf.mxu1 }
 0x3d1   : > { %27217 = vst [vmem:[#allocation31_spill] sm:$0xff] %v24602_v33  ;;  %27218 = vst [vmem:[#allocation32_spill] sm:$0xff] %v24604_v47  ;;  %v24606_v46 = vadd.f32 %v20460_v17, %v9342_v6 }
 0x3d2   : > { %v20407_v7 = vpop.f32.mrf.mxu0  ;;  %v20463_v36 = vpop.f32.mrf.mxu1 }
 0x3d3   : > { %v9344_v35 = vadd.f32 %v20407_v7, %v24424_v2 }
 0x3d4   : > { %v24609_v18 = vpop.f32.mrf.mxu0  ;;  %v24611_v12 = vpop.f32.mrf.mxu1 }
 0x3d5   : > { %27219 = vst [vmem:[#allocation33_spill] sm:$0xff] %v24609_v18  ;;  %27220 = vst [vmem:[#allocation34_spill] sm:$0xff] %v24611_v12  ;;  %v24613_v5 = vadd.f32 %v20463_v36, %v9344_v35 }
 0x3d6   : > { %v20410_v44 = vpop.f32.mrf.mxu0  ;;  %v20466_v0 = vpop.f32.mrf.mxu1 }
 0x3d7   : > { %v9346_v13 = vadd.f32 %v20410_v44, %v24436_v24 }
 0x3d8   : > { %v24616_v8 = vpop.f32.mrf.mxu0  ;;  %v24618_v33 = vpop.f32.mrf.mxu1 }
 0x3d9   : > { %27221 = vst [vmem:[#allocation35_spill] sm:$0xff] %v24616_v8  ;;  %27222 = vst [vmem:[#allocation36_spill] sm:$0xff] %v24618_v33  ;;  %v24620_v17 = vadd.f32 %v20466_v0, %v9346_v13 }
 0x3da   : > { %v20413_v6 = vpop.f32.mrf.mxu0  ;;  %v20469_v47 = vpop.f32.mrf.mxu1 }
 0x3db   : > { %v9348_v2 = vadd.f32 %v20413_v6, %v24448_v14 }
 0x3dc   : > { %v24623_v7 = vpop.f32.mrf.mxu0  ;;  %v24625_v18 = vpop.f32.mrf.mxu1 }
 0x3dd   : > { %27223 = vst [vmem:[#allocation37_spill] sm:$0xff] %v24623_v7  ;;  %27224 = vst [vmem:[#allocation38_spill] sm:$0xff] %v24625_v18  ;;  %v24627_v36 = vadd.f32 %v20469_v47, %v9348_v2 }
 0x3de   : > { %v20416_v35 = vpop.f32.mrf.mxu0  ;;  %v20472_v12 = vpop.f32.mrf.mxu1 }
 0x3df   : > { %v9350_v24 = vadd.f32 %v20416_v35, %v24460_v22 }
 0x3e0   : > { %v24630_v44 = vpop.f32.mrf.mxu0  ;;  %v24632_v8 = vpop.f32.mrf.mxu1 }
 0x3e1   : > { %27225 = vst [vmem:[#allocation39_spill] sm:$0xff] %v24630_v44  ;;  %27226 = vst [vmem:[#allocation40_spill] sm:$0xff] %v24632_v8  ;;  %v24634_v0 = vadd.f32 %v20472_v12, %v9350_v24 }
 0x3e2   : > { %v20419_v13 = vpop.f32.mrf.mxu0  ;;  %v20475_v33 = vpop.f32.mrf.mxu1 }
 0x3e3   : > { %v9352_v14 = vadd.f32 %v20419_v13, %v24472_v58 }
 0x3e4   : > { %v24637_v6 = vpop.f32.mrf.mxu0  ;;  %v24639_v7 = vpop.f32.mrf.mxu1 }
 0x3e5   : > { %27227 = vst [vmem:[#allocation41_spill] sm:$0xff] %v24637_v6  ;;  %27228 = vst [vmem:[#allocation42_spill] sm:$0xff] %v24639_v7  ;;  %v24641_v47 = vadd.f32 %v20475_v33, %v9352_v14 }
 0x3e6   : > { %v20422_v2 = vpop.f32.mrf.mxu0  ;;  %v20478_v18 = vpop.f32.mrf.mxu1 }
 0x3e7   : > { %v9354_v22 = vadd.f32 %v20422_v2, %v24484_v50 }
 0x3e8   : > { %v24644_v35 = vpop.f32.mrf.mxu0  ;;  %v24646_v44 = vpop.f32.mrf.mxu1 }
 0x3e9   : > { %27229 = vst [vmem:[#allocation43_spill] sm:$0xff] %v24644_v35  ;;  %27230 = vst [vmem:[#allocation44_spill] sm:$0xff] %v24646_v44  ;;  %v24648_v12 = vadd.f32 %v20478_v18, %v9354_v22 }
 0x3ea   : > { %v20425_v24 = vpop.f32.mrf.mxu0  ;;  %v20481_v8 = vpop.f32.mrf.mxu1 }
 0x3eb   : > { %v9356_v58 = vadd.f32 %v20425_v24, %v24496_v27 }
 0x3ec   : > { %v24651_v13 = vpop.f32.mrf.mxu0  ;;  %v24653_v6 = vpop.f32.mrf.mxu1 }
 0x3ed   : > { %27231 = vst [vmem:[#allocation45_spill] sm:$0xff] %v24651_v13  ;;  %27232 = vst [vmem:[#allocation46_spill] sm:$0xff] %v24653_v6  ;;  %v24655_v33 = vadd.f32 %v20481_v8, %v9356_v58 }
 0x3ee   : > { %v20428_v14 = vpop.f32.mrf.mxu0  ;;  %v20484_v7 = vpop.f32.mrf.mxu1 }
 0x3ef   : > { %v9358_v50 = vadd.f32 %v20428_v14, %v24508_v48 }
 0x3f0   : > { %v24658_v2 = vpop.f32.mrf.mxu0  ;;  %v24660_v35 = vpop.f32.mrf.mxu1 }
 0x3f1   : > { %27233 = vst [vmem:[#allocation47_spill] sm:$0xff] %v24658_v2  ;;  %27234 = vst [vmem:[#allocation48_spill] sm:$0xff] %v24660_v35  ;;  %v24662_v18 = vadd.f32 %v20484_v7, %v9358_v50 }
 0x3f2   : > { %v20431_v22 = vpop.f32.mrf.mxu0  ;;  %v20487_v44 = vpop.f32.mrf.mxu1 }
 0x3f3   : > { %v9360_v27 = vadd.f32 %v20431_v22, %v24519_v28 }
 0x3f4   : > { %v24665_v24 = vpop.f32.mrf.mxu0  ;;  %v24667_v13 = vpop.f32.mrf.mxu1 }
 0x3f5   : > { %27235 = vst [vmem:[#allocation49_spill] sm:$0xff] %v24665_v24  ;;  %27236 = vst [vmem:[#allocation50_spill] sm:$0xff] %v24667_v13  ;;  %v24669_v8 = vadd.f32 %v20487_v44, %v9360_v27 }
 0x3f6   : > { %v20434_v58 = vpop.f32.mrf.mxu0  ;;  %v20490_v6 = vpop.f32.mrf.mxu1 }
 0x3f7   : > { %v9362_v48 = vadd.f32 %v20434_v58, %v24530_v11 }
 0x3f8   : > { %v24672_v14 = vpop.f32.mrf.mxu0  ;;  %v24674_v2 = vpop.f32.mrf.mxu1 }
 0x3f9   : > { %27237 = vst [vmem:[#allocation51_spill] sm:$0xff] %v24672_v14  ;;  %27238 = vst [vmem:[#allocation52_spill] sm:$0xff] %v24674_v2  ;;  %v24676_v7 = vadd.f32 %v20490_v6, %v9362_v48 }
 0x3fa   : > { %v20495_v50 = vpop.f32.mrf.mxu0  ;;  %v20551_v35 = vpop.f32.mrf.mxu1 }
 0x3fb   : > { %v10182_v28 = vadd.f32 %v20495_v50, %v24541_v4 }
 0x3fc   : > { %v24679_v22 = vpop.f32.mrf.mxu0  ;;  %v24681_v24 = vpop.f32.mrf.mxu1 }
 0x3fd   : > { %27239 = vst [vmem:[#allocation53_spill] sm:$0xff] %v24679_v22  ;;  %27240 = vst [vmem:[#allocation54_spill] sm:$0xff] %v24681_v24  ;;  %v24683_v44 = vadd.f32 %v20551_v35, %v10182_v28 }
 0x3fe   : > { %v20498_v27 = vpop.f32.mrf.mxu0  ;;  %v20554_v13 = vpop.f32.mrf.mxu1 }
 0x3ff   : > { %v10184_v11 = vadd.f32 %v20498_v27, %v24552_v30 }
 0x400   : > { %v24686_v58 = vpop.f32.mrf.mxu0  ;;  %v24688_v14 = vpop.f32.mrf.mxu1 }
 0x401   : > { %27241 = vst [vmem:[#allocation55_spill] sm:$0xff] %v24686_v58  ;;  %27242 = vst [vmem:[#allocation56_spill] sm:$0xff] %v24688_v14  ;;  %v24690_v6 = vadd.f32 %v20554_v13, %v10184_v11 }
 0x402   : > { %v20501_v48 = vpop.f32.mrf.mxu0  ;;  %v20557_v2 = vpop.f32.mrf.mxu1 }
 0x403   : > { %v10186_v4 = vadd.f32 %v20501_v48, %v24563_v10 }
 0x404   : > { %v24693_v50 = vpop.f32.mrf.mxu0  ;;  %v24695_v22 = vpop.f32.mrf.mxu1 }
 0x405   : > { %27243 = vst [vmem:[#allocation57_spill] sm:$0xff] %v24693_v50  ;;  %27244 = vst [vmem:[#allocation58_spill] sm:$0xff] %v24695_v22  ;;  %v24697_v35 = vadd.f32 %v20557_v2, %v10186_v4 }
 0x406   : > { %v20504_v28 = vpop.f32.mrf.mxu0  ;;  %v20560_v24 = vpop.f32.mrf.mxu1 }
 0x407   : > { %v10188_v30 = vadd.f32 %v20504_v28, %v24574_v51 }
 0x408   : > { %v24700_v27 = vpop.f32.mrf.mxu0 }
 0x409   : > { %v24702_v58 = vadd.f32 %v20560_v24, %v10188_v30 }
 0x40a   : > { %v20507_v13 = vpop.f32.mrf.mxu0 }
 0x40b   : > { %v24705_v11 = vadd.f32 %v20507_v13, %v24584_v56 }
 0x40c   : > { %v24707_v14 = vpop.f32.mrf.mxu0 }
 0x40e   : > { %v20510_v10 = vpop.f32.mrf.mxu0 }
 0x40f   : > { %v24710_v48 = vadd.f32 %v20510_v10, %v24592_v26  ;;  %v24727_v26 = vpop.f32.mrf.mxu1 }
 0x410   : > { %v24712_v2 = vpop.f32.mrf.mxu0  ;;  %27247 = vst [vmem:[#allocation61_spill] sm:$0xff] %v24727_v26 }
 0x411   : > { %27245 = vst [vmem:[#allocation59_spill] sm:$0xff] %v24710_v48 }
 0x412   : > { %v20513_v4 = vpop.f32.mrf.mxu0 }
 0x413   : > { %v24715_v22 = vadd.f32 %v20513_v4, %v24599_v9  ;;  %v24734_v4 = vpop.f32.mrf.mxu1 }
 0x414   : > { %v24717_v51 = vpop.f32.mrf.mxu0 }
 0x416   : > { %v20516_v24 = vpop.f32.mrf.mxu0 }
 0x417   : > { %v24720_v28 = vadd.f32 %v20516_v24, %v24606_v46 }
 0x418   : > { %v24722_v56 = vpop.f32.mrf.mxu0 }
 0x41a   : > { %v20519_v30 = vpop.f32.mrf.mxu0 }
 0x41b   : > { %v24725_v13 = vadd.f32 %v20519_v30, %v24613_v5  ;;  %v11151_v5 = vld [vmem:[%s27154_s3 + $0x8] sm:$0xff]  ;;  %v17342_v30 = vld [vmem:[%s27154_s3 + $0x158] sm:$0xff] }
 0x41c   : > { %v24729_v10 = vpop.f32.mrf.mxu0  ;;  %11299 = vmatprep.mubr.f32.mxu1 %v11151_v5  ;;  %11654 = vmatprep.mubr.f32.mxu0 %v17342_v30 }
 0x41d   : > { %27246 = vst [vmem:[#allocation60_spill] sm:$0xff] %v24725_v13  ;;  %27248 = vst [vmem:[#allocation62_spill] sm:$0xff] %v24729_v10  ;;  %v24747_v13 = vpop.f32.mrf.mxu1 }
 0x41e   : > { %v20522_v50 = vpop.f32.mrf.mxu0  ;;  %27252 = vst [vmem:[#allocation66_spill] sm:$0xff] %v24747_v13 }
 0x41f   : > { %v24732_v9 = vadd.f32 %v20522_v50, %v24620_v17 }
 0x420   : > { %v24736_v48 = vpop.f32.mrf.mxu0 }
 0x421   : > { %27249 = vst [vmem:[#allocation63_spill] sm:$0xff] %v24732_v9  ;;  %27250 = vst [vmem:[#allocation64_spill] sm:$0xff] %v24736_v48 }
 0x422   : > { %v20525_v46 = vpop.f32.mrf.mxu0 }
 0x423   : > { %v24739_v24 = vadd.f32 %v20525_v46, %v24627_v36  ;;  %v24754_v36 = vpop.f32.mrf.mxu1 }
 0x424   : > { %v24749_v17 = vpop.f32.mrf.mxu0  ;;  %27255 = vst [vmem:[#allocation69_spill] sm:$0xff] %v24754_v36 }
 0x425   : > { %27251 = vst [vmem:[#allocation65_spill] sm:$0xff] %v24739_v24  ;;  %27253 = vst [vmem:[#allocation67_spill] sm:$0xff] %v24749_v17  ;;  %v24761_v24 = vpop.f32.mrf.mxu1 }
 0x426   : > { %v20528_v50 = vpop.f32.mrf.mxu0  ;;  %27258 = vst [vmem:[#allocation72_spill] sm:$0xff] %v24761_v24 }
 0x427   : > { %v24752_v10 = vadd.f32 %v20528_v50, %v24634_v0  ;;  %v24768_v30 = vpop.f32.mrf.mxu1 }
 0x428   : > { %v24756_v46 = vpop.f32.mrf.mxu0 }
 0x429   : > { %27254 = vst [vmem:[#allocation68_spill] sm:$0xff] %v24752_v10  ;;  %27256 = vst [vmem:[#allocation70_spill] sm:$0xff] %v24756_v46  ;;  %v24775_v10 = vpop.f32.mrf.mxu1 }
 0x42a   : > { %v20531_v9 = vpop.f32.mrf.mxu0  ;;  %27262 = vst [vmem:[#allocation76_spill] sm:$0xff] %v24775_v10 }
 0x42b   : > { %v24759_v48 = vadd.f32 %v20531_v9, %v24641_v47 }
 0x42c   : > { %v24763_v26 = vpop.f32.mrf.mxu0 }
 0x42d   : > { %27257 = vst [vmem:[#allocation71_spill] sm:$0xff] %v24759_v48  ;;  %27259 = vst [vmem:[#allocation73_spill] sm:$0xff] %v24763_v26  ;;  %v24782_v48 = vpop.f32.mrf.mxu1 }
 0x42e   : > { %v20534_v13 = vpop.f32.mrf.mxu0 }
 0x42f   : > { %v24766_v5 = vadd.f32 %v20534_v13, %v24648_v12  ;;  %v24789_v26 = vpop.f32.mrf.mxu1 }
 0x430   : > { %v24770_v0 = vpop.f32.mrf.mxu0 }
 0x431   : > { %27260 = vst [vmem:[#allocation74_spill] sm:$0xff] %v24766_v5  ;;  %27261 = vst [vmem:[#allocation75_spill] sm:$0xff] %v24770_v0  ;;  %v24796_v10 = vpop.f32.mrf.mxu1 }
 0x432   : > { %v20537_v50 = vpop.f32.mrf.mxu0  ;;  %27266 = vst [vmem:[#allocation80_spill] sm:$0xff] %v24796_v10 }
 0x433   : > { %v24773_v17 = vadd.f32 %v20537_v50, %v24655_v33  ;;  %v24803_v0 = vpop.f32.mrf.mxu1 }
 0x434   : > { %v24777_v47 = vpop.f32.mrf.mxu0  ;;  %27269 = vst [vmem:[#allocation83_spill] sm:$0xff] %v24803_v0 }
 0x436   : > { %v20540_v9 = vpop.f32.mrf.mxu0 }
 0x437   : > { %v24780_v46 = vadd.f32 %v20540_v9, %v24662_v18 }
 0x438   : > { %v24784_v12 = vpop.f32.mrf.mxu0 }
 0x43a   : > { %v20543_v13 = vpop.f32.mrf.mxu0 }
 0x43b   : > { %v24787_v24 = vadd.f32 %v20543_v13, %v24669_v8 }
 0x43c   : > { %v24791_v33 = vpop.f32.mrf.mxu0 }
 0x43d   : > { %27263 = vst [vmem:[#allocation77_spill] sm:$0xff] %v24787_v24  ;;  %27264 = vst [vmem:[#allocation78_spill] sm:$0xff] %v24791_v33  ;;  %v24810_v33 = vpop.f32.mrf.mxu1 }
 0x43e   : > { %v20546_v50 = vpop.f32.mrf.mxu0  ;;  %27272 = vst [vmem:[#allocation86_spill] sm:$0xff] %v24810_v33 }
 0x43f   : > { %v24794_v5 = vadd.f32 %v20546_v50, %v24676_v7 }
 0x440   : > { %v24798_v18 = vpop.f32.mrf.mxu0 }
 0x441   : > { %27265 = vst [vmem:[#allocation79_spill] sm:$0xff] %v24794_v5  ;;  %27267 = vst [vmem:[#allocation81_spill] sm:$0xff] %v24798_v18  ;;  %v24817_v18 = vpop.f32.mrf.mxu1 }
 0x442   : > { %v20607_v9 = vpop.f32.mrf.mxu0  ;;  %27275 = vst [vmem:[#allocation89_spill] sm:$0xff] %v24817_v18 }
 0x443   : > { %v24801_v36 = vadd.f32 %v20607_v9, %v24683_v44 }
 0x444   : > { %v24805_v8 = vpop.f32.mrf.mxu0 }
 0x445   : > { %27268 = vst [vmem:[#allocation82_spill] sm:$0xff] %v24801_v36  ;;  %27270 = vst [vmem:[#allocation84_spill] sm:$0xff] %v24805_v8  ;;  %v24824_v8 = vpop.f32.mrf.mxu1 }
 0x446   : > { %v20610_v13 = vpop.f32.mrf.mxu0  ;;  %27278 = vst [vmem:[#allocation92_spill] sm:$0xff] %v24824_v8 }
 0x447   : > { %v24808_v24 = vadd.f32 %v20610_v13, %v24690_v6 }
 0x448   : > { %v24812_v7 = vpop.f32.mrf.mxu0 }
 0x449   : > { %27271 = vst [vmem:[#allocation85_spill] sm:$0xff] %v24808_v24  ;;  %27273 = vst [vmem:[#allocation87_spill] sm:$0xff] %v24812_v7  ;;  %v24830_v24 = vpop.f32.mrf.mxu1 }
 0x44a   : > { %v20613_v50 = vpop.f32.mrf.mxu0  ;;  %27281 = vst [vmem:[#allocation95_spill] sm:$0xff] %v24830_v24 }
 0x44b   : > { %v24815_v5 = vadd.f32 %v20613_v50, %v24697_v35  ;;  %v24836_v50 = vpop.f32.mrf.mxu1 }
 0x44c   : > { %v24819_v44 = vpop.f32.mrf.mxu0  ;;  %27283 = vst [vmem:[#allocation97_spill] sm:$0xff] %v24836_v50  ;;  %v8078_v50 = vadd.f32 %v24273_v57, %v24278_v42 }
 0x44d   : > { %27274 = vst [vmem:[#allocation88_spill] sm:$0xff] %v24815_v5  ;;  %27276 = vst [vmem:[#allocation90_spill] sm:$0xff] %v24819_v44 }
 0x44e   : > { %v20616_v9 = vpop.f32.mrf.mxu0  ;;  %v8505_v57 = vadd.f32 %v24514_v23, %v8078_v50 }
 0x44f   : > { %v24822_v36 = vadd.f32 %v20616_v9, %v24702_v58  ;;  %v24842_v58 = vpop.f32.mrf.mxu1 }
 0x450   : > { %v24826_v6 = vpop.f32.mrf.mxu0  ;;  %27285 = vst [vmem:[#allocation99_spill] sm:$0xff] %v24842_v58 }
 0x451   : > { %27277 = vst [vmem:[#allocation91_spill] sm:$0xff] %v24822_v36  ;;  %27279 = vst [vmem:[#allocation93_spill] sm:$0xff] %v24826_v6  ;;  %v24848_v18 = vpop.f32.mrf.mxu1 }
 0x452   : > { %v24828_v13 = vpop.f32.mrf.mxu0 }
 0x453   : > { %27280 = vst [vmem:[#allocation94_spill] sm:$0xff] %v24828_v13  ;;  %v24854_v36 = vpop.f32.mrf.mxu1  ;;  %v8080_v13 = vadd.f32 %v24289_v38, %v24294_v39  ;;  %v8908_v39 = vadd.f32 %v24369_v20, %v24373_v32  ;;  %v8922_v32 = vadd.f32 %v24454_v16, %v24458_v54  ;;  %v27305_v16 = vld [vmem:[#allocation19_spill] sm:$0xff] }
 0x454   : > { %v24832_v0 = vpop.f32.mrf.mxu0 }
 0x455   : > { %27282 = vst [vmem:[#allocation96_spill] sm:$0xff] %v24832_v0  ;;  %v24860_v8 = vpop.f32.mrf.mxu1  ;;  %v8507_v42 = vadd.f32 %v24525_v1, %v8080_v13  ;;  %v27302_v1 = vld [vmem:[#allocation17_spill] sm:$0xff] }
 0x456   : > { %v24834_v35 = vpop.f32.mrf.mxu0 }
 0x458   : > { %v24838_v7 = vpop.f32.mrf.mxu0 }
 0x459   : > { %27284 = vst [vmem:[#allocation98_spill] sm:$0xff] %v24838_v7  ;;  %v24870_v7 = vpop.f32.mrf.mxu1 }
 0x45a   : > { %v24840_v10 = vpop.f32.mrf.mxu0 }
 0x45c   : > { %v24844_v9 = vpop.f32.mrf.mxu0 }
 0x45e   : > { %v24846_v5 = vpop.f32.mrf.mxu0 }
 0x460   : > { %v24850_v44 = vpop.f32.mrf.mxu0 }
 0x462   : > { %v24852_v33 = vpop.f32.mrf.mxu0 }
 0x463   : > { %27286 = vst [vmem:[#allocation100_spill] sm:$0xff] %v24852_v33 }
 0x464   : > { %v24856_v24 = vpop.f32.mrf.mxu0 }
 0x465   : > { %27287 = vst [vmem:[#allocation101_spill] sm:$0xff] %v24856_v24  ;;  %v8900_v24 = vadd.f32 %v24305_v3, %v24310_v53  ;;  %v8910_v3 = vadd.f32 %v24382_v59, %v24386_v34  ;;  %v8912_v53 = vadd.f32 %v24394_v52, %v24398_v63  ;;  %v27294_v59 = vld [vmem:[#allocation9_spill] sm:$0xff]  ;;  %v27295_v52 = vld [vmem:[#allocation11_spill] sm:$0xff]  ;;  %v27296_v63 = vld [vmem:[#allocation10_spill] sm:$0xff] }
 0x466   : > { %v24858_v6 = vpop.f32.mrf.mxu0  ;;  %v8924_v34 = vadd.f32 %v27294_v59, %v24470_v25  ;;  %v27306_v25 = vld [vmem:[#allocation21_spill] sm:$0xff] }
 0x467   : > { %27288 = vst [vmem:[#allocation102_spill] sm:$0xff] %v24858_v6  ;;  %v8902_v6 = vadd.f32 %v24321_v62, %v24326_v49  ;;  %v8914_v62 = vadd.f32 %v24406_v60, %v24410_v19  ;;  %v8916_v49 = vadd.f32 %v24418_v21, %v24422_v31  ;;  %v8926_v60 = vadd.f32 %v27296_v63, %v27295_v52  ;;  %v27297_v19 = vld [vmem:[#allocation13_spill] sm:$0xff]  ;;  %v27298_v21 = vld [vmem:[#allocation12_spill] sm:$0xff] }
 0x468   : > { %v24862_v0 = vpop.f32.mrf.mxu0  ;;  %v8928_v31 = vadd.f32 %v27298_v21, %v27297_v19  ;;  %v27308_v63 = vld [vmem:[#allocation25_spill] sm:$0xff]  ;;  %v27309_v19 = vld [vmem:[#allocation18_spill] sm:$0xff] }
 0x469   : > { %27289 = vst [vmem:[#allocation103_spill] sm:$0xff] %v24862_v0  ;;  %v8904_v0 = vadd.f32 %v24337_v45, %v24342_v55  ;;  %v8918_v45 = vadd.f32 %v24430_v37, %v24434_v43  ;;  %v8920_v55 = vadd.f32 %v24442_v41, %v24446_v40  ;;  %v27299_v37 = vld [vmem:[#allocation15_spill] sm:$0xff]  ;;  %v27300_v43 = vld [vmem:[#allocation14_spill] sm:$0xff]  ;;  %v27301_v40 = vld [vmem:[#allocation16_spill] sm:$0xff]  ;;  %v9329_v54 = vadd.f32 %v27305_v16, %v8902_v6 }
 0x46a   : > { %v24864_v58 = vpop.f32.mrf.mxu0  ;;  %v8930_v41 = vadd.f32 %v27300_v43, %v27299_v37  ;;  %v8932_v23 = vadd.f32 %v27301_v40, %v8505_v57  ;;  %v27311_v37 = vld [vmem:[#allocation27_spill] sm:$0xff]  ;;  %v27312_v57 = vld [vmem:[#allocation29_spill] sm:$0xff] }
 0x46b   : > { %27290 = vst [vmem:[#allocation104_spill] sm:$0xff] %v24864_v58  ;;  %v8906_v58 = vadd.f32 %v24353_v61, %v24358_v29  ;;  %v9327_v61 = vadd.f32 %v24536_v15, %v8900_v24  ;;  %v20593_v29 = vpop.f32.mrf.mxu1  ;;  %v8934_v15 = vadd.f32 %v27302_v1, %v8507_v42  ;;  %v27303_v24 = vld [vmem:[#allocation31_spill] sm:$0xff]  ;;  %v9331_v59 = vadd.f32 %v27306_v25, %v8904_v0  ;;  %v27313_v42 = vld [vmem:[#allocation33_spill] sm:$0xff] }
 0x46c   : > { %v24872_v33 = vpop.f32.mrf.mxu0  ;;  %v9341_v13 = vadd.f32 %v27303_v24, %v8914_v62  ;;  %v9337_v43 = vadd.f32 %v27311_v37, %v8910_v3  ;;  %v9339_v40 = vadd.f32 %v27312_v57, %v8912_v53  ;;  %v9343_v1 = vadd.f32 %v27313_v42, %v8916_v49  ;;  %v27316_v16 = vld [vmem:[#allocation37_spill] sm:$0xff]  ;;  %v27322_v53 = vld [vmem:[#allocation43_spill] sm:$0xff]  ;;  %v27323_v42 = vld [vmem:[#allocation20_spill] sm:$0xff] }
 0x46d   : > { %27291 = vst [vmem:[#allocation105_spill] sm:$0xff] %v24872_v33  ;;  %v27307_v33 = vld [vmem:[#allocation23_spill] sm:$0xff]  ;;  %v24923_v21 = vadd.f32 %v27309_v19, %v9327_v61  ;;  %v10569_v62 = vpop.f32.mrf.mxu1  ;;  %v9347_v0 = vadd.f32 %v27316_v16, %v8920_v55  ;;  %v27317_v25 = vld [vmem:[#allocation45_spill] sm:$0xff]  ;;  %v9353_v57 = vadd.f32 %v27322_v53, %v8926_v60 }
 0x46e   : > { %v24884_v38 = vpop.f32.mrf.mxu0  ;;  %v9333_v52 = vadd.f32 %v27307_v33, %v8906_v58  ;;  %v9355_v33 = vadd.f32 %v27317_v25, %v8928_v31  ;;  %v27318_v58 = vld [vmem:[#allocation47_spill] sm:$0xff]  ;;  %v27321_v3 = vld [vmem:[#allocation41_spill] sm:$0xff]  ;;  %v27326_v31 = vld [vmem:[#allocation26_spill] sm:$0xff] }
 0x46f   : > { %27292 = vst [vmem:[#allocation106_spill] sm:$0xff] %v24884_v38  ;;  %27310 = vst [vmem:[#allocation11_spill] sm:$0xff] %v24923_v21  ;;  %v27315_v38 = vld [vmem:[#allocation35_spill] sm:$0xff]  ;;  %v9351_v37 = vadd.f32 %v27321_v3, %v8924_v34  ;;  %v20596_v60 = vpop.f32.mrf.mxu1 }
 0x470   : > { %v24901_v20 = vpop.f32.mrf.mxu0  ;;  %v9345_v6 = vadd.f32 %v27315_v38, %v8918_v45  ;;  %v27320_v19 = vld [vmem:[#allocation39_spill] sm:$0xff]  ;;  %v27325_v45 = vld [vmem:[#allocation24_spill] sm:$0xff] }
 0x471   : > { %27293 = vst [vmem:[#allocation107_spill] sm:$0xff] %v24901_v20  ;;  %v9335_v20 = vadd.f32 %v27308_v63, %v8908_v39  ;;  %v9357_v39 = vadd.f32 %v27318_v58, %v8930_v41  ;;  %v27319_v63 = vld [vmem:[#allocation32_spill] sm:$0xff]  ;;  %v9349_v21 = vadd.f32 %v27320_v19, %v8922_v32  ;;  %v9760_v55 = vadd.f32 %v27325_v45, %v9333_v52  ;;  %v27329_v32 = vld [vmem:[#allocation34_spill] sm:$0xff] }
 0x472   : > { %v24916_v50 = vpop.f32.mrf.mxu0  ;;  %v9768_v61 = vadd.f32 %v27319_v63, %v9341_v13  ;;  %v27327_v41 = vld [vmem:[#allocation28_spill] sm:$0xff]  ;;  %v27328_v13 = vld [vmem:[#allocation30_spill] sm:$0xff]  ;;  %v24949_v63 = vadd.f32 %v27329_v32, %v9343_v1  ;;  %v27338_v32 = vld [vmem:[#allocation51_spill] sm:$0xff] }
 0x473   : > { %27304 = vst [vmem:[#allocation9_spill] sm:$0xff] %v24916_v50  ;;  %v24939_v50 = vadd.f32 %v27323_v42, %v9329_v54  ;;  %v9762_v16 = vadd.f32 %v27326_v31, %v9335_v20  ;;  %v9764_v25 = vadd.f32 %v27327_v41, %v9337_v43  ;;  %v9766_v58 = vadd.f32 %v27328_v13, %v9339_v40  ;;  %v27330_v54 = vld [vmem:[#allocation36_spill] sm:$0xff]  ;;  %v27332_v52 = vld [vmem:[#allocation46_spill] sm:$0xff]  ;;  %v27337_v13 = vld [vmem:[#allocation49_spill] sm:$0xff] }
 0x474   : > { %v24928_v24 = vpop.f32.mrf.mxu0  ;;  %v10195_v34 = vadd.f32 %v24722_v56, %v9768_v61  ;;  %v24953_v3 = vadd.f32 %v27330_v54, %v9345_v6  ;;  %v9782_v53 = vadd.f32 %v27332_v52, %v9355_v33  ;;  %v27333_v20 = vld [vmem:[#allocation48_spill] sm:$0xff]  ;;  %v27335_v40 = vld [vmem:[#allocation42_spill] sm:$0xff]  ;;  %v10623_v56 = vadd.f32 %v24782_v48, %v24720_v28  ;;  %v10579_v54 = vpop.f32.mrf.mxu1 }
 0x475   : > { %27314 = vst [vmem:[#allocation10_spill] sm:$0xff] %v24928_v24  ;;  %v27324_v24 = vld [vmem:[#allocation22_spill] sm:$0xff]  ;;  %v9784_v42 = vadd.f32 %v27333_v20, %v9357_v39  ;;  %v27334_v43 = vld [vmem:[#allocation40_spill] sm:$0xff]  ;;  %v9778_v31 = vadd.f32 %v27335_v40, %v9351_v37  ;;  %v24966_v6 = vadd.f32 %v27337_v13, %v8932_v23  ;;  %v10193_v37 = vadd.f32 %v24717_v51, %v9766_v58  ;;  %v27344_v20 = vld [vmem:[#allocation73_spill] sm:$0xff] }
 0x476   : > { %v20646_v49 = vpop.f32.mrf.mxu0  ;;  %v24942_v38 = vadd.f32 %v27324_v24, %v9331_v59  ;;  %v27331_v59 = vld [vmem:[#allocation38_spill] sm:$0xff]  ;;  %v9776_v45 = vadd.f32 %v27334_v43, %v9349_v21  ;;  %v27336_v1 = vld [vmem:[#allocation44_spill] sm:$0xff]  ;;  %v10209_v33 = vadd.f32 %v24777_v47, %v9782_v53  ;;  %v24974_v21 = vadd.f32 %v24700_v27, %v9760_v55  ;;  %v27339_v55 = vld [vmem:[#allocation75_spill] sm:$0xff] }
 0x477   : > { %v24956_v24 = vadd.f32 %v27331_v59, %v9347_v0  ;;  %v9780_v41 = vadd.f32 %v27336_v1, %v9353_v57  ;;  %v24969_v0 = vadd.f32 %v27338_v32, %v8934_v15  ;;  %v10211_v39 = vadd.f32 %v24784_v12, %v9784_v42 }
 0x478   : > { %v10986_v19 = vpop.f32.mrf.mxu0  ;;  %v10622_v57 = vadd.f32 %v24789_v26, %v10195_v34  ;;  %v11050_v48 = vadd.f32 %v24846_v5, %v10623_v56  ;;  %v10189_v23 = vadd.f32 %v24707_v14, %v9762_v16  ;;  %v10617_v15 = vadd.f32 %v24734_v4, %v24705_v11  ;;  %v24992_v14 = vld [vmem:[%s27153_s2] ss:$0 sm:$0xff] }
 0x479   : > { %v10637_v47 = vadd.f32 %v20593_v29, %v24773_v17  ;;  %v10639_v12 = vadd.f32 %v20596_v60, %v24780_v46  ;;  %v10191_v27 = vadd.f32 %v24712_v2, %v9764_v25  ;;  %v10621_v51 = vadd.f32 %v24768_v30, %v24715_v22  ;;  %v27340_v17 = vld [vmem:[#allocation59_spill] sm:$0xff]  ;;  %v27341_v46 = vld [vmem:[#allocation69_spill] sm:$0xff]  ;;  %v27342_v29 = vld [vmem:[#allocation76_spill] sm:$0xff] }
 0x47a   : > { %v20649_v61 = vpop.f32.mrf.mxu0  ;;  %v10207_v26 = vadd.f32 %v27339_v55, %v9780_v41  ;;  %v11049_v58 = vadd.f32 %v24850_v44, %v10622_v57  ;;  %v10636_v34 = vadd.f32 %v10569_v62, %v10209_v33  ;;  %v10638_v59 = vadd.f32 %v10579_v54, %v10211_v39  ;;  %v27343_v25 = vld [vmem:[#allocation74_spill] sm:$0xff] }
 0x47b   : > { %v11064_v11 = vadd.f32 %v20649_v61, %v10637_v47  ;;  %v10619_v2 = vadd.f32 %v27341_v46, %v27340_v17  ;;  %v10620_v16 = vadd.f32 %v27342_v29, %v10193_v37  ;;  %v11048_v22 = vadd.f32 %v24840_v10, %v10621_v51  ;;  %v27347_v57 = vld [vmem:[#allocation70_spill] sm:$0xff]  ;;  %v27356_v29 = vld [vmem:[#allocation96_spill] sm:$0xff] }
 0x47c   : > { %v10996_v28 = vpop.f32.mrf.mxu0  ;;  %v11093_v30 = vadd.f32 %v24992_v14, %v11050_v48  ;;  %v10635_v62 = vadd.f32 %v24860_v8, %v27343_v25  ;;  %v10205_v42 = vadd.f32 %v27344_v20, %v9778_v31  ;;  %v10634_v43 = vadd.f32 %v24870_v7, %v10207_v26  ;;  %v27345_v8 = vld [vmem:[#allocation72_spill] sm:$0xff]  ;;  %v27346_v7 = vld [vmem:[#allocation71_spill] sm:$0xff]  ;;  %v27348_v48 = vld [vmem:[#allocation98_spill] sm:$0xff] }
 0x47d   : > { %v11063_v60 = vadd.f32 %v10996_v28, %v10636_v34  ;;  %v11047_v40 = vadd.f32 %v24844_v9, %v10620_v16  ;;  %v11092_v1 = vadd.f32 %v24992_v14, %v11049_v58  ;;  %v11107_v10 = vadd.f32 %v24992_v14, %v11064_v11  ;;  %v27351_v26 = vld [vmem:[#allocation94_spill] sm:$0xff] }
 0x47e   : > { %v20652_v5 = vpop.f32.mrf.mxu0  ;;  %v11062_v41 = vadd.f32 %v20646_v49, %v10635_v62  ;;  %v10618_v13 = vadd.f32 %v27345_v8, %v10191_v27  ;;  %v11046_v32 = vadd.f32 %v24834_v35, %v10619_v2  ;;  %v11091_v33 = vadd.f32 %v24992_v14, %v11048_v22  ;;  %v27358_v62 = vld [vmem:[#allocation106_spill] sm:$0xff]  ;;  %v25077_v8 = vpop.f32.mrf.mxu1 }
 0x47f   : > { %v11066_v4 = vadd.f32 %v20652_v5, %v10639_v12  ;;  %v25013_v31 = vmax.f32 %v11093_v30, 0.0  ;;  %v10633_v9 = vadd.f32 %v24848_v18, %v27346_v7  ;;  %v11061_v39 = vadd.f32 %v10986_v19, %v10634_v43  ;;  %v27349_v19 = vld [vmem:[#allocation9_spill] sm:$0xff] }
 0x480   : > { %v11006_v44 = vpop.f32.mrf.mxu0  ;;  %v11106_v49 = vadd.f32 %v24992_v14, %v11063_v60  ;;  %v10203_v54 = vadd.f32 %v27347_v57, %v9776_v45  ;;  %v11045_v35 = vadd.f32 %v27348_v48, %v10618_v13  ;;  %v11090_v28 = vadd.f32 %v24992_v14, %v11047_v40  ;;  %v27350_v45 = vld [vmem:[#allocation66_spill] sm:$0xff]  ;;  %v27363_v13 = vld [vmem:[#allocation107_spill] sm:$0xff] }
 0x481   : > { %v11109_v52 = vadd.f32 %v24992_v14, %v11066_v4  ;;  %v11065_v53 = vadd.f32 %v11006_v44, %v10638_v59  ;;  %v25025_v47 = vmax.f32 %v11092_v1, 0.0  ;;  %v10632_v18 = vadd.f32 %v24854_v36, %v10205_v42  ;;  %v27352_v36 = vld [vmem:[#allocation68_spill] sm:$0xff]  ;;  %v27353_v59 = vld [vmem:[#allocation97_spill] sm:$0xff]  ;;  %v27354_v4 = vld [vmem:[#allocation10_spill] sm:$0xff] }
 0x482   : > { %v11060_v12 = vadd.f32 %v27349_v19, %v10633_v9  ;;  %v11105_v27 = vadd.f32 %v24992_v14, %v11062_v41  ;;  %v25032_v51 = vmax.f32 %v11107_v10, 0.0  ;;  %v10616_v55 = vadd.f32 %v27350_v45, %v10189_v23  ;;  %v27355_v23 = vld [vmem:[#allocation67_spill] sm:$0xff]  ;;  %v27360_v42 = vld [vmem:[#allocation61_spill] sm:$0xff]  ;;  %v27362_v10 = vld [vmem:[#allocation92_spill] sm:$0xff] }
 0x483   : > { %v25007_v56 = vmax.f32 %v11109_v52, 0.0  ;;  %v11108_v61 = vadd.f32 %v24992_v14, %v11065_v53  ;;  %v11044_v58 = vadd.f32 %v27351_v26, %v10617_v15  ;;  %v11089_v5 = vadd.f32 %v24992_v14, %v11046_v32  ;;  %v27357_v44 = vld [vmem:[#allocation99_spill] sm:$0xff]  ;;  %v27361_v41 = vld [vmem:[#allocation65_spill] sm:$0xff]  ;;  %v27369_v45 = vld [vmem:[#allocation58_spill] sm:$0xff] }
 0x484   : > { %v25039_v34 = vmax.f32 %v11091_v33, 0.0  ;;  %v10631_v11 = vadd.f32 %v27353_v59, %v27352_v36  ;;  %v11059_v17 = vadd.f32 %v27354_v4, %v10632_v18  ;;  %v11104_v46 = vadd.f32 %v24992_v14, %v11061_v39  ;;  %v27365_v9 = vld [vmem:[#allocation93_spill] sm:$0xff]  ;;  %v27370_v26 = vld [vmem:[#allocation91_spill] sm:$0xff]  ;;  %v27372_v59 = vld [vmem:[#allocation86_spill] sm:$0xff]  ;;  %v25113_v4 = vpop.f32.mrf.mxu1 }
 0x485   : > { %v25018_v37 = vmax.f32 %v11108_v61, 0.0  ;;  %18642 = vmatprep.subr.mxu1 %v25007_v56  ;;  %18734 = vmatprep.subr.mxu0 %v25007_v56  ;;  %v25047_v2 = vmax.f32 %v11106_v49, 0.0  ;;  %v10201_v15 = vadd.f32 %v27355_v23, %v24956_v24  ;;  %v11043_v16 = vadd.f32 %v27356_v29, %v10616_v55  ;;  %v27359_v24 = vld [vmem:[#allocation57_spill] sm:$0xff]  ;;  %v27371_v36 = vld [vmem:[#allocation63_spill] sm:$0xff] }
 0x486   : > { %18643 = vmatpush3.msra.mxu1 %v25013_v31  ;;  %18735 = vmatpush3.msra.mxu0 %v25013_v31  ;;  %v11088_v22 = vadd.f32 %v24992_v14, %v11045_v35  ;;  %v25055_v30 = vmax.f32 %v11090_v28, 0.0  ;;  %v10630_v25 = vadd.f32 %v27357_v44, %v10203_v54  ;;  %v11058_v60 = vadd.f32 %v27358_v62, %v10631_v11  ;;  %v27366_v54 = vld [vmem:[#allocation95_spill] sm:$0xff]  ;;  %v27367_v35 = vld [vmem:[#allocation104_spill] sm:$0xff]  ;;  %v27376_v62 = vld [vmem:[#allocation89_spill] sm:$0xff] }
 0x487   : > { %18644 = vmatprep.subr.mxu1 %v25018_v37  ;;  %18736 = vmatprep.subr.mxu0 %v25018_v37  ;;  %v11103_v52 = vadd.f32 %v24992_v14, %v11060_v12  ;;  %v25062_v53 = vmax.f32 %v11105_v27, 0.0  ;;  %v10185_v20 = vadd.f32 %v27359_v24, %v24942_v38  ;;  %v10614_v43 = vadd.f32 %v27360_v42, %v24974_v21  ;;  %v27364_v21 = vld [vmem:[#allocation64_spill] sm:$0xff]  ;;  %v25098_v12 = vpop.f32.mrf.mxu0 }
 0x488   : > { %18645 = vmatpush3.msra.mxu1 %v25025_v47  ;;  %18737 = vmatpush3.msra.mxu0 %v25025_v47  ;;  %v11087_v40 = vadd.f32 %v24992_v14, %v11044_v58  ;;  %v25071_v1 = vmax.f32 %v11089_v5, 0.0  ;;  %v10629_v61 = vadd.f32 %v27362_v10, %v27361_v41  ;;  %v11057_v32 = vadd.f32 %v27363_v13, %v10630_v25  ;;  %v27380_v10 = vld [vmem:[#allocation56_spill] sm:$0xff] }
 0x489   : > { %18646 = vmatprep.subr.mxu1 %v25032_v51  ;;  %18738 = vmatprep.subr.mxu0 %v25032_v51  ;;  %v11102_v38 = vadd.f32 %v24992_v14, %v11059_v17  ;;  %v25081_v33 = vmax.f32 %v11104_v46, 0.0  ;;  %v10199_v7 = vadd.f32 %v27364_v21, %v24953_v3  ;;  %v11041_v39 = vadd.f32 %v27365_v9, %v10614_v43  ;;  %v27368_v3 = vld [vmem:[#allocation55_spill] sm:$0xff]  ;;  %v27373_v17 = vld [vmem:[#allocation105_spill] sm:$0xff]  ;;  %v25134_v43 = vpop.f32.mrf.mxu0  ;;  %v27381_v13 = vld [vmem:[#allocation88_spill] sm:$0xff] }
 0x48a   : > { %18647 = vmatpush3.msra.mxu1 %v25039_v34  ;;  %18739 = vmatpush3.msra.mxu0 %v25039_v34  ;;  %v11086_v49 = vadd.f32 %v24992_v14, %v11043_v16  ;;  %v25089_v57 = vmax.f32 %v11088_v22, 0.0  ;;  %v10628_v48 = vadd.f32 %v27366_v54, %v10201_v15  ;;  %v11056_v28 = vadd.f32 %v27367_v35, %v10629_v61  ;;  %v27374_v15 = vld [vmem:[#allocation62_spill] sm:$0xff]  ;;  %v27382_v21 = vld [vmem:[#allocation60_spill] sm:$0xff] }
 0x48b   : > { %18648 = vmatprep.subr.mxu1 %v25047_v2  ;;  %18740 = vmatprep.subr.mxu0 %v25047_v2  ;;  %v11101_v18 = vadd.f32 %v24992_v14, %v11058_v60  ;;  %v25096_v19 = vmax.f32 %v11103_v52, 0.0  ;;  %v10183_v27 = vadd.f32 %v27368_v3, %v24939_v50  ;;  %v10612_v55 = vadd.f32 %v27369_v45, %v10185_v20  ;;  %v27375_v16 = vld [vmem:[#allocation90_spill] sm:$0xff]  ;;  %v27386_v3 = vld [vmem:[#allocation87_spill] sm:$0xff] }
 0x48c   : > { %18649 = vmatpush3.msra.mxu1 %v25055_v30  ;;  %18741 = vmatpush3.msra.mxu0 %v25055_v30  ;;  %v11085_v58 = vadd.f32 %v24992_v14, %v27370_v26  ;;  %v25107_v5 = vmax.f32 %v11087_v40, 0.0  ;;  %v10627_v11 = vadd.f32 %v27372_v59, %v27371_v36  ;;  %v11055_v46 = vadd.f32 %v27373_v17, %v10628_v48  ;;  %v27377_v52 = vld [vmem:[#allocation102_spill] sm:$0xff]  ;;  %v27379_v40 = vld [vmem:[#allocation53_spill] sm:$0xff]  ;;  %v27387_v26 = vld [vmem:[#allocation83_spill] sm:$0xff] }
 0x48d   : > { %18650 = vmatprep.subr.mxu1 %v25062_v53  ;;  %18742 = vmatprep.subr.mxu0 %v25062_v53  ;;  %v11100_v50 = vadd.f32 %v24992_v14, %v11057_v32  ;;  %v25117_v23 = vmax.f32 %v11102_v38, 0.0  ;;  %v10197_v29 = vadd.f32 %v27374_v15, %v24949_v63  ;;  %v11039_v22 = vadd.f32 %v27375_v16, %v10612_v55  ;;  %v27378_v63 = vld [vmem:[#allocation11_spill] sm:$0xff]  ;;  %v27388_v36 = vld [vmem:[#allocation100_spill] sm:$0xff]  ;;  %v27390_v15 = vld [vmem:[#allocation81_spill] sm:$0xff] }
 0x48e   : > { %18651 = vmatpush3.msra.mxu1 %v25071_v1  ;;  %18743 = vmatpush3.msra.mxu0 %v25071_v1  ;;  %v11084_v44 = vadd.f32 %v24992_v14, %v11041_v39  ;;  %v25125_v25 = vmax.f32 %v11086_v49, 0.0  ;;  %v10626_v60 = vadd.f32 %v27376_v62, %v10199_v7  ;;  %v11054_v24 = vadd.f32 %v27377_v52, %v10627_v11  ;;  %v27383_v7 = vld [vmem:[#allocation80_spill] sm:$0xff]  ;;  %v20602_v39 = vpop.f32.mrf.mxu1  ;;  %v27384_v49 = vld [vmem:[#allocation103_spill] sm:$0xff] }
 0x48f   : > { %18652 = vmatprep.subr.mxu1 %v25081_v33  ;;  %18744 = vmatprep.subr.mxu0 %v25081_v33  ;;  %v11099_v20 = vadd.f32 %v24992_v14, %v11056_v28  ;;  %v25132_v42 = vmax.f32 %v11101_v18, 0.0  ;;  %v10181_v41 = vadd.f32 %v27379_v40, %v27378_v63  ;;  %v10610_v61 = vadd.f32 %v27380_v10, %v10183_v27  ;;  %v27385_v28 = vld [vmem:[#allocation52_spill] sm:$0xff] }
 0x490   : > { %18653 = vmatpush3.msra.mxu1 %v25089_v57  ;;  %18745 = vmatpush3.msra.mxu0 %v25089_v57  ;;  %v11083_v32 = vadd.f32 %v24992_v14, %v27381_v13  ;;  %v25143_v38 = vmax.f32 %v11085_v58, 0.0  ;;  %v10625_v9 = vadd.f32 %v27383_v7, %v27382_v21  ;;  %v11053_v54 = vadd.f32 %v27384_v49, %v10626_v60  ;;  %v10599_v52 = vpop.f32.mrf.mxu1 }
 0x491   : > { %18654 = vmatprep.subr.mxu1 %v25096_v19  ;;  %18746 = vmatprep.subr.mxu0 %v25096_v19  ;;  %v11098_v48 = vadd.f32 %v24992_v14, %v11055_v46  ;;  %v25151_v35 = vmax.f32 %v11100_v50, 0.0  ;;  %v9788_v18 = vadd.f32 %v27385_v28, %v24969_v0  ;;  %v11037_v27 = vadd.f32 %v27386_v3, %v10610_v61  ;;  %v20658_v46 = vpop.f32.mrf.mxu0  ;;  %v27389_v0 = vld [vmem:[#allocation54_spill] sm:$0xff] }
 0x492   : > { %18655 = vmatpush3.msra.mxu1 %v25107_v5  ;;  %18747 = vmatpush3.msra.mxu0 %v25107_v5  ;;  %v11082_v45 = vadd.f32 %v24992_v14, %v11039_v22  ;;  %v25159_v55 = vmax.f32 %v11084_v44, 0.0  ;;  %v10624_v58 = vadd.f32 %v27387_v26, %v10197_v29  ;;  %v11052_v59 = vadd.f32 %v27388_v36, %v10625_v9  ;;  %v27391_v22 = vld [vmem:[#allocation85_spill] sm:$0xff]  ;;  %v27392_v29 = vld [vmem:[#allocation79_spill] sm:$0xff] }
 0x493   : > { %18656 = vmatprep.subr.mxu1 %v25117_v23  ;;  %18748 = vmatprep.subr.mxu0 %v25117_v23  ;;  %v11097_v11 = vadd.f32 %v24992_v14, %v11054_v24  ;;  %v25166_v17 = vmax.f32 %v11099_v20, 0.0  ;;  %v10608_v50 = vadd.f32 %v27389_v0, %v10181_v41  ;;  %v10215_v16 = vadd.f32 %v27390_v15, %v9788_v18  ;;  %v27393_v24 = vld [vmem:[#allocation101_spill] sm:$0xff]  ;;  %v27394_v41 = vld [vmem:[#allocation84_spill] sm:$0xff]  ;;  %v11026_v9 = vpop.f32.mrf.mxu0 }
 0x494   : > { %18657 = vmatpush3.msra.mxu1 %v25125_v25  ;;  %18749 = vmatpush3.msra.mxu0 %v25125_v25  ;;  %v11081_v44 = vadd.f32 %v24992_v14, %v27391_v22  ;;  %v25174_v62 = vmax.f32 %v11083_v32, 0.0  ;;  %v10643_v60 = vadd.f32 %v20602_v39, %v27392_v29  ;;  %v11051_v20 = vadd.f32 %v27393_v24, %v10624_v58  ;;  %v27395_v39 = vld [vmem:[#allocation50_spill] sm:$0xff] }
 0x495   : > { %18658 = vmatprep.subr.mxu1 %v25132_v42  ;;  %18750 = vmatprep.subr.mxu0 %v25132_v42  ;;  %v11096_v63 = vadd.f32 %v24992_v14, %v11053_v54  ;;  %v25181_v40 = vmax.f32 %v11098_v48, 0.0  ;;  %v11035_v10 = vadd.f32 %v27394_v41, %v10608_v50  ;;  %v11080_v61 = vadd.f32 %v24992_v14, %v11037_v27  ;;  %v27396_v48 = vld [vmem:[#allocation82_spill] sm:$0xff]  ;;  %v11153_v41 = vld [vmem:[%s27154_s3 + $0x18] sm:$0xff] }
 0x496   : > { %18659 = vmatpush3.msra.mxu1 %v25143_v38  ;;  %18751 = vmatpush3.msra.mxu0 %v25143_v38  ;;  %v25187_v13 = vmax.f32 %v11082_v45, 0.0  ;;  %v11095_v32 = vadd.f32 %v24992_v14, %v11052_v59  ;;  %v25192_v21 = vmax.f32 %v11097_v11, 0.0  ;;  %v11070_v7 = vadd.f32 %v20658_v46, %v10643_v60  ;;  %v27397_v45 = vld [vmem:[#allocation78_spill] sm:$0xff]  ;;  %v27398_v59 = vld [vmem:[#allocation77_spill] sm:$0xff] }
 0x497   : > { %18660 = vmatprep.subr.mxu1 %v25151_v35  ;;  %18752 = vmatprep.subr.mxu0 %v25151_v35  ;;  %v9786_v49 = vadd.f32 %v27395_v39, %v24966_v6  ;;  %v10642_v54 = vadd.f32 %v10599_v52, %v10215_v16  ;;  %v11079_v28 = vadd.f32 %v24992_v14, %v27396_v48  ;;  %v25200_v18 = vmax.f32 %v11081_v44, 0.0  ;;  %v11150_v29 = vld [vmem:[%s27154_s3] sm:$0xff]  ;;  %v11159_v48 = vld [vmem:[%s27154_s3 + $0x48] sm:$0xff] }
 0x498   : > { %18661 = vmatpush3.msra.mxu1 %v25159_v55  ;;  %18753 = vmatpush3.msra.mxu0 %v25159_v55  ;;  %v11094_v3 = vadd.f32 %v24992_v14, %v11051_v20  ;;  %v25205_v27 = vmax.f32 %v11096_v63, 0.0  ;;  %v11078_v26 = vadd.f32 %v24992_v14, %v11035_v10  ;;  %v25211_v58 = vmax.f32 %v11080_v61, 0.0  ;;  %v11154_v20 = vld [vmem:[%s27154_s3 + $0x20] sm:$0xff]  ;;  %v17344_v61 = vld [vmem:[%s27154_s3 + $0x168] sm:$0xff] }
 0x499   : > { %18662 = vmatprep.subr.mxu1 %v25166_v17  ;;  %18754 = vmatprep.subr.mxu0 %v25166_v17  ;;  %v10213_v6 = vadd.f32 %v27397_v45, %v9786_v49  ;;  %v11069_v36 = vadd.f32 %v11026_v9, %v10642_v54  ;;  %v10641_v11 = vadd.f32 %v25077_v8, %v27398_v59  ;;  %v25217_v46 = vmax.f32 %v11095_v32, 0.0  ;;  %v11157_v32 = vld [vmem:[%s27154_s3 + $0x38] sm:$0xff]  ;;  %v11156_v9 = vld [vmem:[%s27154_s3 + $0x30] sm:$0xff]  ;;  %v17347_v39 = vld [vmem:[%s27154_s3 + $0x180] sm:$0xff] }
 0x49a   : > { %18663 = vmatpush3.msra.mxu1 %v25174_v62  ;;  %18755 = vmatpush3.msra.mxu0 %v25174_v62  ;;  %v11113_v0 = vadd.f32 %v24992_v14, %v11070_v7  ;;  %v25222_v50 = vmax.f32 %v11079_v28, 0.0  ;;  %v25226_v15 = vmax.f32 %v11094_v3, 0.0  ;;  %v25232_v22 = vmax.f32 %v11078_v26, 0.0  ;;  %v17348_v7 = vld [vmem:[%s27154_s3 + $0x188] sm:$0xff]  ;;  %v11160_v49 = vld [vmem:[%s27154_s3 + $0x50] sm:$0xff]  ;;  %v17351_v54 = vld [vmem:[%s27154_s3 + $0x1a0] sm:$0xff] }
 0x49b   : > { %18664 = vmatprep.subr.mxu1 %v25181_v40  ;;  %18756 = vmatprep.subr.mxu0 %v25181_v40  ;;  %v11068_v16 = vadd.f32 %v25098_v12, %v10641_v11  ;;  %v10640_v8 = vadd.f32 %v25113_v4, %v10213_v6  ;;  %v11112_v44 = vadd.f32 %v24992_v14, %v11069_v36  ;;  %v17341_v12 = vld [vmem:[%s27154_s3 + $0x150] sm:$0xff]  ;;  %v17350_v28 = vld [vmem:[%s27154_s3 + $0x198] sm:$0xff]  ;;  %v11163_v3 = vld [vmem:[%s27154_s3 + $0x68] sm:$0xff] }
 0x49c   : > { %18665 = vmatpush3.msra.mxu1 %v25187_v13  ;;  %18757 = vmatpush3.msra.mxu0 %v25187_v13  ;;  %v25240_v60 = vmax.f32 %v11113_v0, 0.0  ;;  %v17354_v45 = vld [vmem:[%s27154_s3 + $0x1b8] sm:$0xff]  ;;  %v11162_v6 = vld [vmem:[%s27154_s3 + $0x60] sm:$0xff]  ;;  %v17353_v26 = vld [vmem:[%s27154_s3 + $0x1b0] sm:$0xff] }
 0x49d   : > { %18666 = vmatprep.subr.mxu1 %v25192_v21  ;;  %18758 = vmatprep.subr.mxu0 %v25192_v21  ;;  %v11067_v4 = vadd.f32 %v25134_v43, %v10640_v8  ;;  %v11111_v52 = vadd.f32 %v24992_v14, %v11068_v16  ;;  %v25252_v24 = vmax.f32 %v11112_v44, 0.0  ;;  %v17345_v43 = vld [vmem:[%s27154_s3 + $0x170] sm:$0xff]  ;;  %v11166_v36 = vld [vmem:[%s27154_s3 + $0x80] sm:$0xff]  ;;  %v11165_v11 = vld [vmem:[%s27154_s3 + $0x78] sm:$0xff] }
 0x49e   : > { %18667 = vmatpush3.msra.mxu1 %v25200_v18  ;;  %18759 = vmatpush3.msra.mxu0 %v25200_v18  ;;  %v17357_v59 = vld [vmem:[%s27154_s3 + $0x1d0] sm:$0xff]  ;;  %v17356_v0 = vld [vmem:[%s27154_s3 + $0x1c8] sm:$0xff]  ;;  %v11169_v16 = vld [vmem:[%s27154_s3 + $0x98] sm:$0xff] }
 0x49f   : > { %18668 = vmatprep.subr.mxu1 %v25205_v27  ;;  %18760 = vmatprep.subr.mxu0 %v25205_v27  ;;  %v11110_v63 = vadd.f32 %v24992_v14, %v11067_v4  ;;  %v25269_v10 = vmax.f32 %v11111_v52, 0.0  ;;  %v17360_v8 = vld [vmem:[%s27154_s3 + $0x1e8] sm:$0xff]  ;;  %v11168_v44 = vld [vmem:[%s27154_s3 + $0x90] sm:$0xff]  ;;  %v17363_v4 = vld [vmem:[%s27154_s3 + $0x200] sm:$0xff] }
 0x4a0   : > { %18669 = vmatpush3.msra.mxu1 %v25211_v58  ;;  %18761 = vmatpush3.msra.mxu0 %v25211_v58  ;;  %v11171_v52 = vld [vmem:[%s27154_s3 + $0xa8] sm:$0xff] }
 0x4a1   : > { %18670 = vmatprep.subr.mxu1 %v25217_v46  ;;  %18762 = vmatprep.subr.mxu0 %v25217_v46  ;;  %v25277_v14 = vmax.f32 %v11110_v63, 0.0  ;;  %v17366_v63 = vld [vmem:[%s27154_s3 + $0x218] sm:$0xff] }
 0x4a2   : > { %18671 = vmatpush3.msra.mxu1 %v25222_v50  ;;  %18763 = vmatpush3.msra.mxu0 %v25222_v50 }
 0x4a3   : > { %18672 = vmatprep.subr.mxu1 %v25226_v15  ;;  %18764 = vmatprep.subr.mxu0 %v25226_v15 }
 0x4a4   : > { %18673 = vmatpush3.msra.mxu1 %v25232_v22  ;;  %18765 = vmatpush3.msra.mxu0 %v25232_v22 }
 0x4a5   : > { %11300 = vmatmul.mubr.f32.vlgmr.msra.gmra.mxu1 %v11150_v29  ;;  %20659 = vmatprep.subr.mxu1 %v25240_v60  ;;  %v17359_v29 = vld [vmem:[%s27154_s3 + $0x1e0] sm:$0xff] }
 0x4a6   : > { %11655 = vmatmul.mubr.f32.vlgmr.msra.gmra.mxu0 %v17341_v12  ;;  %20717 = vmatprep.subr.mxu0 %v25240_v60  ;;  %v11172_v12 = vld [vmem:[%s27154_s3 + $0xb0] sm:$0xff] }
 0x4a7   : > { %20660 = vmatpush3.msra.mxu1 %v25240_v60  ;;  %20718 = vmatpush3.msra.mxu0 %v25240_v60 }
 0x4a8   : > { %20661 = vmatprep.subr.mxu1 %v25252_v24  ;;  %20719 = vmatprep.subr.mxu0 %v25252_v24 }
 0x4a9   : > { %11304 = vmatprep.mubr.f32.mxu1 %v11154_v20  ;;  %20662 = vmatpush3.msra.mxu1 %v25252_v24  ;;  %v17362_v20 = vld [vmem:[%s27154_s3 + $0x1f8] sm:$0xff] }
 0x4aa   : > { %11659 = vmatprep.mubr.f32.mxu0 %v17345_v43  ;;  %20720 = vmatpush3.msra.mxu0 %v25252_v24  ;;  %v11175_v43 = vld [vmem:[%s27154_s3 + $0xc8] sm:$0xff] }
 0x4ab   : > { %11305 = vmatmul.mubr.f32.gmra.mxu1 %v11153_v41  ;;  %20663 = vmatprep.subr.mxu1 %v25269_v10  ;;  %v11174_v41 = vld [vmem:[%s27154_s3 + $0xc0] sm:$0xff] }
 0x4ac   : > { %11660 = vmatmul.mubr.f32.gmra.mxu0 %v17344_v61  ;;  %20721 = vmatprep.subr.mxu0 %v25269_v10  ;;  %v17365_v61 = vld [vmem:[%s27154_s3 + $0x210] sm:$0xff] }
 0x4ad   : > { %20664 = vmatpush3.msra.mxu1 %v25269_v10  ;;  %20722 = vmatpush3.msra.mxu0 %v25269_v10 }
 0x4ae   : > { %20665 = vmatprep.subr.mxu1 %v25277_v14  ;;  %20723 = vmatprep.subr.mxu0 %v25277_v14 }
 0x4af   : > { %11309 = vmatprep.mubr.f32.mxu1 %v11157_v32  ;;  %20666 = vmatpush3.msra.mxu1 %v25277_v14  ;;  %v11178_v32 = vld [vmem:[%s27154_s3 + $0xe0] sm:$0xff] }
 0x4b0   : > { %11664 = vmatprep.mubr.f32.mxu0 %v17348_v7  ;;  %20724 = vmatpush3.msra.mxu0 %v25277_v14  ;;  %v17369_v7 = vld [vmem:[%s27154_s3 + $0x230] sm:$0xff] }
 0x4b1   : > { %11310 = vmatmul.mubr.f32.gmra.mxu1 %v11156_v9  ;;  %11665 = vmatmul.mubr.f32.gmra.mxu0 %v17347_v39  ;;  %v11177_v9 = vld [vmem:[%s27154_s3 + $0xd8] sm:$0xff]  ;;  %v17368_v39 = vld [vmem:[%s27154_s3 + $0x228] sm:$0xff] }
 0x4b2   : > { %20688 = vmatprep.subr.mxu1 %v25240_v60  ;;  %18918 = vmatprep.subr.mxu0 %v25007_v56 }
 0x4b3   : > { %11314 = vmatprep.mubr.f32.mxu1 %v11160_v49  ;;  %11669 = vmatprep.mubr.f32.mxu0 %v17351_v54  ;;  %v11181_v49 = vld [vmem:[%s27154_s3 + $0xf8] sm:$0xff]  ;;  %v17372_v54 = vld [vmem:[%s27154_s3 + $0x248] sm:$0xff] }
 0x4b5   : > { %11315 = vmatmul.mubr.f32.gmra.mxu1 %v11159_v48  ;;  %11670 = vmatmul.mubr.f32.gmra.mxu0 %v17350_v28  ;;  %v11180_v48 = vld [vmem:[%s27154_s3 + $0xf0] sm:$0xff]  ;;  %v17371_v28 = vld [vmem:[%s27154_s3 + $0x240] sm:$0xff] }
 0x4b6   : > { %11319 = vmatprep.mubr.f32.mxu1 %v11163_v3  ;;  %11674 = vmatprep.mubr.f32.mxu0 %v17354_v45  ;;  %v11184_v3 = vld [vmem:[%s27154_s3 + $0x110] sm:$0xff]  ;;  %v17375_v45 = vld [vmem:[%s27154_s3 + $0x260] sm:$0xff] }
 0x4b9   : > { %11320 = vmatmul.mubr.f32.gmra.mxu1 %v11162_v6  ;;  %11675 = vmatmul.mubr.f32.gmra.mxu0 %v17353_v26  ;;  %v11183_v6 = vld [vmem:[%s27154_s3 + $0x108] sm:$0xff]  ;;  %v17374_v26 = vld [vmem:[%s27154_s3 + $0x258] sm:$0xff] }
 0x4ba   : > { %11324 = vmatprep.mubr.f32.mxu1 %v11166_v36  ;;  %11679 = vmatprep.mubr.f32.mxu0 %v17357_v59  ;;  %v11187_v36 = vld [vmem:[%s27154_s3 + $0x128] sm:$0xff]  ;;  %v17378_v59 = vld [vmem:[%s27154_s3 + $0x278] sm:$0xff] }
 0x4bd   : > { %11325 = vmatmul.mubr.f32.gmra.mxu1 %v11165_v11  ;;  %11680 = vmatmul.mubr.f32.gmra.mxu0 %v17356_v0  ;;  %v11186_v11 = vld [vmem:[%s27154_s3 + $0x120] sm:$0xff]  ;;  %v17377_v0 = vld [vmem:[%s27154_s3 + $0x270] sm:$0xff] }
 0x4be   : > { %11329 = vmatprep.mubr.f32.mxu1 %v11169_v16  ;;  %11684 = vmatprep.mubr.f32.mxu0 %v17360_v8  ;;  %v11190_v16 = vld [vmem:[%s27154_s3 + $0x140] sm:$0xff]  ;;  %v17381_v8 = vld [vmem:[%s27154_s3 + $0x290] sm:$0xff] }
 0x4c1   : > { %11330 = vmatmul.mubr.f32.gmra.mxu1 %v11168_v44  ;;  %11685 = vmatmul.mubr.f32.gmra.mxu0 %v17359_v29  ;;  %v11189_v44 = vld [vmem:[%s27154_s3 + $0x138] sm:$0xff]  ;;  %v17380_v29 = vld [vmem:[%s27154_s3 + $0x288] sm:$0xff] }
 0x4c2   : > { %11334 = vmatprep.mubr.f32.mxu1 %v11172_v12  ;;  %11689 = vmatprep.mubr.f32.mxu0 %v17363_v4  ;;  %v11152_v12 = vld [vmem:[%s27154_s3 + $0x10] sm:$0xff] }
 0x4c3   : > { %v17399_v4 = vld [vmem:[%s27154_s3 + $0x2b0] sm:$0xff] }
 0x4c5   : > { %11335 = vmatmul.mubr.f32.gmra.mxu1 %v11171_v52  ;;  %11690 = vmatmul.mubr.f32.gmra.mxu0 %v17362_v20  ;;  %v11155_v52 = vld [vmem:[%s27154_s3 + $0x28] sm:$0xff] }
 0x4c6   : > { %11339 = vmatprep.mubr.f32.mxu1 %v11175_v43  ;;  %11694 = vmatprep.mubr.f32.mxu0 %v17366_v63  ;;  %v17402_v20 = vld [vmem:[%s27154_s3 + $0x2c8] sm:$0xff]  ;;  %v11158_v43 = vld [vmem:[%s27154_s3 + $0x40] sm:$0xff]  ;;  %v11161_v63 = vld [vmem:[%s27154_s3 + $0x58] sm:$0xff] }
 0x4c9   : > { %11340 = vmatmul.mubr.f32.gmra.mxu1 %v11174_v41  ;;  %11695 = vmatmul.mubr.f32.gmra.mxu0 %v17365_v61  ;;  %v11164_v41 = vld [vmem:[%s27154_s3 + $0x70] sm:$0xff]  ;;  %v11167_v61 = vld [vmem:[%s27154_s3 + $0x88] sm:$0xff] }
 0x4ca   : > { %11344 = vmatprep.mubr.f32.mxu1 %v11178_v32  ;;  %11699 = vmatprep.mubr.f32.mxu0 %v17369_v7  ;;  %v11170_v32 = vld [vmem:[%s27154_s3 + $0xa0] sm:$0xff] }
 0x4cb   : > { %v17405_v7 = vld [vmem:[%s27154_s3 + $0x2e0] sm:$0xff] }
 0x4cd   : > { %11345 = vmatmul.mubr.f32.gmra.mxu1 %v11177_v9  ;;  %11700 = vmatmul.mubr.f32.gmra.mxu0 %v17368_v39  ;;  %v11173_v9 = vld [vmem:[%s27154_s3 + $0xb8] sm:$0xff] }
 0x4ce   : > { %11349 = vmatprep.mubr.f32.mxu1 %v11181_v49  ;;  %11704 = vmatprep.mubr.f32.mxu0 %v17372_v54  ;;  %v17408_v39 = vld [vmem:[%s27154_s3 + $0x2f8] sm:$0xff]  ;;  %v17411_v49 = vld [vmem:[%s27154_s3 + $0x310] sm:$0xff]  ;;  %v11179_v54 = vld [vmem:[%s27154_s3 + $0xe8] sm:$0xff] }
 0x4d1   : > { %11350 = vmatmul.mubr.f32.gmra.mxu1 %v11180_v48  ;;  %11705 = vmatmul.mubr.f32.gmra.mxu0 %v17371_v28  ;;  %v11182_v48 = vld [vmem:[%s27154_s3 + $0x100] sm:$0xff]  ;;  %v17414_v28 = vld [vmem:[%s27154_s3 + $0x328] sm:$0xff] }
 0x4d2   : > { %11354 = vmatprep.mubr.f32.mxu1 %v11184_v3  ;;  %11709 = vmatprep.mubr.f32.mxu0 %v17375_v45  ;;  %v17417_v3 = vld [vmem:[%s27154_s3 + $0x340] sm:$0xff]  ;;  %v11185_v45 = vld [vmem:[%s27154_s3 + $0x118] sm:$0xff] }
 0x4d5   : > { %11355 = vmatmul.mubr.f32.gmra.mxu1 %v11183_v6  ;;  %11710 = vmatmul.mubr.f32.gmra.mxu0 %v17374_v26  ;;  %v11188_v6 = vld [vmem:[%s27154_s3 + $0x130] sm:$0xff]  ;;  %v17420_v26 = vld [vmem:[%s27154_s3 + $0x358] sm:$0xff] }
 0x4d6   : > { %11359 = vmatprep.mubr.f32.mxu1 %v11187_v36  ;;  %11714 = vmatprep.mubr.f32.mxu0 %v17378_v59  ;;  %v17423_v36 = vld [vmem:[%s27154_s3 + $0x370] sm:$0xff]  ;;  %v11191_v59 = vld [vmem:[%s27154_s3 + $0x148] sm:$0xff] }
 0x4d9   : > { %11360 = vmatmul.mubr.f32.gmra.mxu1 %v11186_v11  ;;  %11715 = vmatmul.mubr.f32.gmra.mxu0 %v17377_v0  ;;  %v17343_v11 = vld [vmem:[%s27154_s3 + $0x160] sm:$0xff]  ;;  %v17426_v0 = vld [vmem:[%s27154_s3 + $0x388] sm:$0xff] }
 0x4da   : > { %11364 = vmatprep.mubr.f32.mxu1 %v11190_v16  ;;  %11719 = vmatprep.mubr.f32.mxu0 %v17381_v8  ;;  %v17429_v16 = vld [vmem:[%s27154_s3 + $0x3a0] sm:$0xff]  ;;  %v17346_v8 = vld [vmem:[%s27154_s3 + $0x178] sm:$0xff] }
 0x4dd   : > { %11365 = vmatmul.mubr.f32.gmra.mxu1 %v11189_v44  ;;  %11720 = vmatmul.mubr.f32.gmra.mxu0 %v17380_v29  ;;  %v17349_v44 = vld [vmem:[%s27154_s3 + $0x190] sm:$0xff]  ;;  %v17352_v29 = vld [vmem:[%s27154_s3 + $0x1a8] sm:$0xff] }
 0x4de   : > { %20667 = vmatprep.mubr.msk.f32.mxu1 %vm11192_vm1, %v11152_v12  ;;  %20725 = vmatprep.mubr.msk.f32.mxu0 %vm11192_vm1, %v17399_v4  ;;  %v17432_v12 = vld [vmem:[%s27154_s3 + $0x3b8] sm:$0xff]  ;;  %v17403_v4 = vld [vmem:[%s27154_s3 + $0x2d0] sm:$0xff] }
 0x4e1   : > { %20668 = vmatmul.mubr.msk.f32.vlgmr.msra.gmra.mxu1 %vm11192_vm1, %v11155_v52  ;;  %20726 = vmatmul.mubr.msk.f32.vlgmr.msra.gmra.mxu0 %vm11192_vm1, %v17402_v20  ;;  %v17474_v52 = vld [vmem:[%s27154_s3 + $0x498] sm:$0xff]  ;;  %v17406_v20 = vld [vmem:[%s27154_s3 + $0x2e8] sm:$0xff] }
 0x4e2   : > { %20689 = vmatpush3.msra.mxu1 %v25240_v60  ;;  %18919 = vmatpush3.msra.mxu0 %v25013_v31 }
 0x4e3   : > { %20690 = vmatprep.subr.mxu1 %v25252_v24  ;;  %18920 = vmatprep.subr.mxu0 %v25018_v37 }
 0x4e4   : > { %20691 = vmatpush3.msra.mxu1 %v25252_v24  ;;  %18921 = vmatpush3.msra.mxu0 %v25025_v47 }
 0x4e5   : > { %20670 = vmatprep.mubr.msk.f32.mxu1 %vm11192_vm1, %v11158_v43  ;;  %20692 = vmatprep.subr.mxu1 %v25269_v10  ;;  %v17410_v43 = vld [vmem:[%s27154_s3 + $0x308] sm:$0xff] }
 0x4e6   : > { %18922 = vmatprep.subr.mxu0 %v25032_v51  ;;  %20671 = vmatmul.mubr.msk.f32.gmra.mxu1 %vm11192_vm1, %v11161_v63  ;;  %v17481_v63 = vld [vmem:[%s27154_s3 + $0x4d0] sm:$0xff] }
 0x4e7   : > { %20693 = vmatpush3.msra.mxu1 %v25269_v10  ;;  %18923 = vmatpush3.msra.mxu0 %v25039_v34 }
 0x4e8   : > { %20694 = vmatprep.subr.mxu1 %v25277_v14  ;;  %18924 = vmatprep.subr.mxu0 %v25047_v2 }
 0x4e9   : > { %20695 = vmatpush3.msra.mxu1 %v25277_v14  ;;  %18925 = vmatpush3.msra.mxu0 %v25055_v30 }
 0x4ea   : > { %20673 = vmatprep.mubr.msk.f32.mxu1 %vm11192_vm1, %v11164_v41  ;;  %18826 = vmatprep.subr.mxu1 %v25007_v56  ;;  %v11176_v56 = vld [vmem:[%s27154_s3 + $0xd0] sm:$0xff]  ;;  %v17409_v41 = vld [vmem:[%s27154_s3 + $0x300] sm:$0xff] }
 0x4eb   : > { %18926 = vmatprep.subr.mxu0 %v25062_v53  ;;  %20674 = vmatmul.mubr.msk.f32.gmra.mxu1 %vm11192_vm1, %v11167_v61  ;;  %v17413_v61 = vld [vmem:[%s27154_s3 + $0x320] sm:$0xff] }
 0x4ec   : > { %18927 = vmatpush3.msra.mxu0 %v25071_v1  ;;  %20676 = vmatprep.mubr.msk.f32.mxu1 %vm11192_vm1, %v11170_v32  ;;  %v17480_v32 = vld [vmem:[%s27154_s3 + $0x4c8] sm:$0xff] }
 0x4ed   : > { %18928 = vmatprep.subr.mxu0 %v25081_v33  ;;  %20728 = vmatprep.mubr.msk.f32.mxu0 %vm11192_vm1, %v17405_v7  ;;  %v17484_v7 = vld [vmem:[%s27154_s3 + $0x4e8] sm:$0xff] }
 0x4ee   : > { %18929 = vmatpush3.msra.mxu0 %v25089_v57 }
 0x4ef   : > { %18930 = vmatprep.subr.mxu0 %v25096_v19  ;;  %20677 = vmatmul.mubr.msk.f32.gmra.mxu1 %vm11192_vm1, %v11173_v9  ;;  %v17412_v9 = vld [vmem:[%s27154_s3 + $0x318] sm:$0xff] }
 0x4f0   : > { %18931 = vmatpush3.msra.mxu0 %v25107_v5  ;;  %20679 = vmatprep.mubr.msk.f32.mxu1 %vm11192_vm1, %v11176_v56  ;;  %v17416_v56 = vld [vmem:[%s27154_s3 + $0x338] sm:$0xff] }
 0x4f1   : > { %18932 = vmatprep.subr.mxu0 %v25117_v23  ;;  %20729 = vmatmul.mubr.msk.f32.gmra.mxu0 %vm11192_vm1, %v17408_v39  ;;  %v17483_v39 = vld [vmem:[%s27154_s3 + $0x4e0] sm:$0xff] }
 0x4f2   : > { %18933 = vmatpush3.msra.mxu0 %v25125_v25  ;;  %20731 = vmatprep.mubr.msk.f32.mxu0 %vm11192_vm1, %v17411_v49  ;;  %v17487_v49 = vld [vmem:[%s27154_s3 + $0x500] sm:$0xff] }
 0x4f3   : > { %18934 = vmatprep.subr.mxu0 %v25132_v42  ;;  %20680 = vmatmul.mubr.msk.f32.gmra.mxu1 %vm11192_vm1, %v11179_v54  ;;  %v17415_v54 = vld [vmem:[%s27154_s3 + $0x330] sm:$0xff] }
 0x4f4   : > { %18935 = vmatpush3.msra.mxu0 %v25143_v38  ;;  %20682 = vmatprep.mubr.msk.f32.mxu1 %vm11192_vm1, %v11182_v48  ;;  %v17419_v48 = vld [vmem:[%s27154_s3 + $0x350] sm:$0xff] }
 0x4f5   : > { %18936 = vmatprep.subr.mxu0 %v25151_v35  ;;  %20732 = vmatmul.mubr.msk.f32.gmra.mxu0 %vm11192_vm1, %v17414_v28  ;;  %v17486_v28 = vld [vmem:[%s27154_s3 + $0x4f8] sm:$0xff] }
 0x4f6   : > { %18937 = vmatpush3.msra.mxu0 %v25159_v55  ;;  %20734 = vmatprep.mubr.msk.f32.mxu0 %vm11192_vm1, %v17417_v3  ;;  %v17490_v3 = vld [vmem:[%s27154_s3 + $0x518] sm:$0xff] }
 0x4f7   : > { %18938 = vmatprep.subr.mxu0 %v25166_v17  ;;  %20683 = vmatmul.mubr.msk.f32.gmra.mxu1 %vm11192_vm1, %v11185_v45  ;;  %v17418_v45 = vld [vmem:[%s27154_s3 + $0x348] sm:$0xff] }
 0x4f8   : > { %18939 = vmatpush3.msra.mxu0 %v25174_v62  ;;  %20685 = vmatprep.mubr.msk.f32.mxu1 %vm11192_vm1, %v11188_v6  ;;  %v17422_v6 = vld [vmem:[%s27154_s3 + $0x368] sm:$0xff] }
 0x4f9   : > { %18940 = vmatprep.subr.mxu0 %v25181_v40  ;;  %20735 = vmatmul.mubr.msk.f32.gmra.mxu0 %vm11192_vm1, %v17420_v26  ;;  %v17489_v26 = vld [vmem:[%s27154_s3 + $0x510] sm:$0xff] }
 0x4fa   : > { %18941 = vmatpush3.msra.mxu0 %v25187_v13  ;;  %20737 = vmatprep.mubr.msk.f32.mxu0 %vm11192_vm1, %v17423_v36  ;;  %v17493_v36 = vld [vmem:[%s27154_s3 + $0x530] sm:$0xff] }
 0x4fb   : > { %18942 = vmatprep.subr.mxu0 %v25192_v21  ;;  %20686 = vmatmul.mubr.msk.f32.gmra.mxu1 %vm11192_vm1, %v11191_v59  ;;  %v17421_v59 = vld [vmem:[%s27154_s3 + $0x360] sm:$0xff] }
 0x4fc   : > { %18943 = vmatpush3.msra.mxu0 %v25200_v18  ;;  %20696 = vmatprep.mubr.msk.f32.mxu1 %vm11192_vm1, %v17343_v11  ;;  %v17425_v11 = vld [vmem:[%s27154_s3 + $0x380] sm:$0xff] }
 0x4fd   : > { %18944 = vmatprep.subr.mxu0 %v25205_v27  ;;  %20738 = vmatmul.mubr.msk.f32.gmra.mxu0 %vm11192_vm1, %v17426_v0  ;;  %v17492_v0 = vld [vmem:[%s27154_s3 + $0x528] sm:$0xff] }
 0x4fe   : > { %18945 = vmatpush3.msra.mxu0 %v25211_v58  ;;  %20740 = vmatprep.mubr.msk.f32.mxu0 %vm11192_vm1, %v17429_v16  ;;  %v17424_v16 = vld [vmem:[%s27154_s3 + $0x378] sm:$0xff] }
 0x4ff   : > { %18946 = vmatprep.subr.mxu0 %v25217_v46  ;;  %20697 = vmatmul.mubr.msk.f32.vlgmr.msra.gmra.mxu1 %vm11192_vm1, %v17346_v8  ;;  %v17428_v8 = vld [vmem:[%s27154_s3 + $0x398] sm:$0xff] }
 0x500   : > { %18827 = vmatpush3.msra.mxu1 %v25013_v31  ;;  %18947 = vmatpush3.msra.mxu0 %v25222_v50  ;;  %v17355_v31 = vld [vmem:[%s27154_s3 + $0x1c0] sm:$0xff] }
 0x501   : > { %18828 = vmatprep.subr.mxu1 %v25018_v37  ;;  %18948 = vmatprep.subr.mxu0 %v25226_v15  ;;  %v17435_v37 = vld [vmem:[%s27154_s3 + $0x3d0] sm:$0xff] }
 0x502   : > { %18829 = vmatpush3.msra.mxu1 %v25025_v47  ;;  %18949 = vmatpush3.msra.mxu0 %v25232_v22  ;;  %v17358_v47 = vld [vmem:[%s27154_s3 + $0x1d8] sm:$0xff] }
 0x503   : > { %20699 = vmatprep.mubr.msk.f32.mxu1 %vm11192_vm1, %v17349_v44  ;;  %18830 = vmatprep.subr.mxu1 %v25032_v51  ;;  %v17361_v51 = vld [vmem:[%s27154_s3 + $0x1f0] sm:$0xff] }
 0x504   : > { %20700 = vmatmul.mubr.msk.f32.gmra.mxu1 %vm11192_vm1, %v17352_v29  ;;  %20741 = vmatmul.mubr.msk.f32.gmra.mxu0 %vm11192_vm1, %v17432_v12  ;;  %v17427_v44 = vld [vmem:[%s27154_s3 + $0x390] sm:$0xff]  ;;  %v17430_v12 = vld [vmem:[%s27154_s3 + $0x3a8] sm:$0xff] }
 0x505   : > { %18831 = vmatpush3.msra.mxu1 %v25039_v34  ;;  %20702 = vmatprep.mubr.msk.f32.mxu1 %vm11192_vm1, %v17355_v31  ;;  %v17438_v34 = vld [vmem:[%s27154_s3 + $0x3e8] sm:$0xff]  ;;  %v17431_v29 = vld [vmem:[%s27154_s3 + $0x3b0] sm:$0xff] }
 0x506   : > { %18832 = vmatprep.subr.mxu1 %v25047_v2  ;;  %20743 = vmatprep.mubr.msk.f32.mxu0 %vm11192_vm1, %v17435_v37  ;;  %v17454_v2 = vld [vmem:[%s27154_s3 + $0x3f8] sm:$0xff]  ;;  %v17434_v31 = vld [vmem:[%s27154_s3 + $0x3c8] sm:$0xff]  ;;  %v17433_v37 = vld [vmem:[%s27154_s3 + $0x3c0] sm:$0xff] }
 0x507   : > { %18833 = vmatpush3.msra.mxu1 %v25055_v30  ;;  %v17364_v30 = vld [vmem:[%s27154_s3 + $0x208] sm:$0xff] }
 0x508   : > { %18834 = vmatprep.subr.mxu1 %v25062_v53  ;;  %20703 = vmatmul.mubr.msk.f32.gmra.mxu1 %vm11192_vm1, %v17358_v47  ;;  %v17367_v53 = vld [vmem:[%s27154_s3 + $0x220] sm:$0xff] }
 0x509   : > { %18835 = vmatpush3.msra.mxu1 %v25071_v1  ;;  %20705 = vmatprep.mubr.msk.f32.mxu1 %vm11192_vm1, %v17361_v51  ;;  %v17453_v1 = vld [vmem:[%s27154_s3 + $0x3f0] sm:$0xff]  ;;  %v17437_v47 = vld [vmem:[%s27154_s3 + $0x3e0] sm:$0xff]  ;;  %v17436_v51 = vld [vmem:[%s27154_s3 + $0x3d8] sm:$0xff] }
 0x50a   : > { %18836 = vmatprep.subr.mxu1 %v25081_v33  ;;  %20744 = vmatmul.mubr.msk.f32.gmra.mxu0 %vm11192_vm1, %v17438_v34  ;;  %v17457_v33 = vld [vmem:[%s27154_s3 + $0x410] sm:$0xff]  ;;  %v17455_v34 = vld [vmem:[%s27154_s3 + $0x400] sm:$0xff] }
 0x50b   : > { %18837 = vmatpush3.msra.mxu1 %v25089_v57  ;;  %12364 = vmatprep.mubr.f32.mxu0 %v17454_v2  ;;  %v17370_v57 = vld [vmem:[%s27154_s3 + $0x238] sm:$0xff] }
 0x50c   : > { %18838 = vmatprep.subr.mxu1 %v25096_v19  ;;  %20706 = vmatmul.mubr.msk.f32.gmra.mxu1 %vm11192_vm1, %v17364_v30  ;;  %v17373_v19 = vld [vmem:[%s27154_s3 + $0x250] sm:$0xff]  ;;  %v17458_v2 = vld [vmem:[%s27154_s3 + $0x418] sm:$0xff] }
 0x50d   : > { %18839 = vmatpush3.msra.mxu1 %v25107_v5  ;;  %20708 = vmatprep.mubr.msk.f32.mxu1 %vm11192_vm1, %v17367_v53  ;;  %v17456_v5 = vld [vmem:[%s27154_s3 + $0x408] sm:$0xff]  ;;  %v17461_v30 = vld [vmem:[%s27154_s3 + $0x430] sm:$0xff] }
 0x50e   : > { %18840 = vmatprep.subr.mxu1 %v25117_v23  ;;  %12365 = vmatmul.mubr.f32.vlgmr.msra.gmra.mxu0 %v17453_v1  ;;  %v17460_v23 = vld [vmem:[%s27154_s3 + $0x428] sm:$0xff]  ;;  %v17467_v1 = vld [vmem:[%s27154_s3 + $0x460] sm:$0xff] }
 0x50f   : > { %18841 = vmatpush3.msra.mxu1 %v25125_v25  ;;  %12369 = vmatprep.mubr.f32.mxu0 %v17457_v33  ;;  %v17376_v25 = vld [vmem:[%s27154_s3 + $0x268] sm:$0xff]  ;;  %v17470_v33 = vld [vmem:[%s27154_s3 + $0x478] sm:$0xff] }
 0x510   : > { %18842 = vmatprep.subr.mxu1 %v25132_v42  ;;  %20709 = vmatmul.mubr.msk.f32.gmra.mxu1 %vm11192_vm1, %v17370_v57  ;;  %v17379_v42 = vld [vmem:[%s27154_s3 + $0x280] sm:$0xff]  ;;  %v17464_v53 = vld [vmem:[%s27154_s3 + $0x448] sm:$0xff]  ;;  %v17473_v57 = vld [vmem:[%s27154_s3 + $0x490] sm:$0xff] }
 0x511   : > { %18843 = vmatpush3.msra.mxu1 %v25143_v38  ;;  %20711 = vmatprep.mubr.msk.f32.mxu1 %vm11192_vm1, %v17373_v19  ;;  %v17459_v38 = vld [vmem:[%s27154_s3 + $0x420] sm:$0xff]  ;;  %v17476_v19 = vld [vmem:[%s27154_s3 + $0x4a8] sm:$0xff] }
 0x512   : > { %18844 = vmatprep.subr.mxu1 %v25151_v35  ;;  %12370 = vmatmul.mubr.f32.gmra.mxu0 %v17456_v5  ;;  %v17463_v35 = vld [vmem:[%s27154_s3 + $0x440] sm:$0xff] }
 0x513   : > { %18845 = vmatpush3.msra.mxu1 %v25159_v55  ;;  %12374 = vmatprep.mubr.f32.mxu0 %v17460_v23  ;;  %v17382_v55 = vld [vmem:[%s27154_s3 + $0x298] sm:$0xff]  ;;  %v17479_v5 = vld [vmem:[%s27154_s3 + $0x4c0] sm:$0xff] }
 0x514   : > { %18846 = vmatprep.subr.mxu1 %v25166_v17  ;;  %20712 = vmatmul.mubr.msk.f32.gmra.mxu1 %vm11192_vm1, %v17376_v25  ;;  %v17398_v17 = vld [vmem:[%s27154_s3 + $0x2a8] sm:$0xff]  ;;  %v17482_v23 = vld [vmem:[%s27154_s3 + $0x4d8] sm:$0xff] }
 0x515   : > { %18847 = vmatpush3.msra.mxu1 %v25174_v62  ;;  %20714 = vmatprep.mubr.msk.f32.mxu1 %vm11192_vm1, %v17379_v42  ;;  %v17462_v62 = vld [vmem:[%s27154_s3 + $0x438] sm:$0xff]  ;;  %v17485_v42 = vld [vmem:[%s27154_s3 + $0x4f0] sm:$0xff] }
 0x516   : > { %18848 = vmatprep.subr.mxu1 %v25181_v40  ;;  %12375 = vmatmul.mubr.f32.gmra.mxu0 %v17459_v38  ;;  %v17466_v40 = vld [vmem:[%s27154_s3 + $0x458] sm:$0xff] }
 0x517   : > { %18849 = vmatpush3.msra.mxu1 %v25187_v13  ;;  %12379 = vmatprep.mubr.f32.mxu0 %v17463_v35  ;;  %v17465_v13 = vld [vmem:[%s27154_s3 + $0x450] sm:$0xff] }
 0x518   : > { %18850 = vmatprep.subr.mxu1 %v25192_v21  ;;  %20715 = vmatmul.mubr.msk.f32.gmra.mxu1 %vm11192_vm1, %v17382_v55  ;;  %v17469_v21 = vld [vmem:[%s27154_s3 + $0x470] sm:$0xff] }
 0x519   : > { %18851 = vmatpush3.msra.mxu1 %v25200_v18  ;;  %12009 = vmatprep.mubr.f32.mxu1 %v17398_v17  ;;  %v17397_v18 = vld [vmem:[%s27154_s3 + $0x2a0] sm:$0xff]  ;;  %v17488_v17 = vld [vmem:[%s27154_s3 + $0x508] sm:$0xff] }
 0x51a   : > { %18852 = vmatprep.subr.mxu1 %v25205_v27  ;;  %12380 = vmatmul.mubr.f32.gmra.mxu0 %v17462_v62  ;;  %v17401_v27 = vld [vmem:[%s27154_s3 + $0x2c0] sm:$0xff] }
 0x51b   : > { %18853 = vmatpush3.msra.mxu1 %v25211_v58  ;;  %12384 = vmatprep.mubr.f32.mxu0 %v17466_v40  ;;  %v17468_v58 = vld [vmem:[%s27154_s3 + $0x468] sm:$0xff]  ;;  %v17491_v62 = vld [vmem:[%s27154_s3 + $0x520] sm:$0xff] }
 0x51c   : > { %18854 = vmatprep.subr.mxu1 %v25217_v46  ;;  %v17472_v46 = vld [vmem:[%s27154_s3 + $0x488] sm:$0xff] }
 0x51d   : > { %18855 = vmatpush3.msra.mxu1 %v25222_v50  ;;  %v17400_v50 = vld [vmem:[%s27154_s3 + $0x2b8] sm:$0xff] }
 0x51e   : > { %18856 = vmatprep.subr.mxu1 %v25226_v15  ;;  %12385 = vmatmul.mubr.f32.gmra.mxu0 %v17465_v13  ;;  %v17404_v15 = vld [vmem:[%s27154_s3 + $0x2d8] sm:$0xff] }
 0x51f   : > { %18857 = vmatpush3.msra.mxu1 %v25232_v22  ;;  %12389 = vmatprep.mubr.f32.mxu0 %v17469_v21  ;;  %v17471_v22 = vld [vmem:[%s27154_s3 + $0x480] sm:$0xff]  ;;  %v17494_v21 = vld [vmem:[%s27154_s3 + $0x538] sm:$0xff] }
 0x520   : > { %12010 = vmatmul.mubr.f32.vlgmr.msra.gmra.mxu1 %v17397_v18  ;;  %20746 = vmatprep.subr.mxu1 %v25240_v60 }
 0x521   : > { %20747 = vmatpush3.msra.mxu1 %v25240_v60  ;;  %12014 = vmatprep.mubr.f32.mxu1 %v17401_v27  ;;  %v17475_v60 = vld [vmem:[%s27154_s3 + $0x4a0] sm:$0xff] }
 0x522   : > { %20748 = vmatprep.subr.mxu1 %v25252_v24  ;;  %12390 = vmatmul.mubr.f32.gmra.mxu0 %v17468_v58 }
 0x523   : > { %20749 = vmatpush3.msra.mxu1 %v25252_v24  ;;  %12394 = vmatprep.mubr.f32.mxu0 %v17472_v46  ;;  %v17407_v24 = vld [vmem:[%s27154_s3 + $0x2f0] sm:$0xff] }
 0x524   : > { %12015 = vmatmul.mubr.f32.gmra.mxu1 %v17400_v50  ;;  %20750 = vmatprep.subr.mxu1 %v25269_v10 }
 0x525   : > { %20751 = vmatpush3.msra.mxu1 %v25269_v10  ;;  %12019 = vmatprep.mubr.f32.mxu1 %v17404_v15  ;;  %v17478_v10 = vld [vmem:[%s27154_s3 + $0x4b8] sm:$0xff] }
 0x526   : > { %20752 = vmatprep.subr.mxu1 %v25277_v14  ;;  %12395 = vmatmul.mubr.f32.gmra.mxu0 %v17471_v22 }
 0x527   : > { %20753 = vmatpush3.msra.mxu1 %v25277_v14  ;;  %12399 = vmatprep.mubr.f32.mxu0 %v17475_v60  ;;  %v17477_v14 = vld [vmem:[%s27154_s3 + $0x4b0] sm:$0xff] }
 0x528   : > { %12020 = vmatmul.mubr.f32.gmra.mxu1 %v17403_v4 }
 0x529   : > { %12024 = vmatprep.mubr.f32.mxu1 %v17407_v24 }
 0x52a   : > { %12400 = vmatmul.mubr.f32.gmra.mxu0 %v17474_v52 }
 0x52b   : > { %12404 = vmatprep.mubr.f32.mxu0 %v17478_v10 }
 0x52c   : > { %12025 = vmatmul.mubr.f32.gmra.mxu1 %v17406_v20 }
 0x52d   : > { %12029 = vmatprep.mubr.f32.mxu1 %v17410_v43 }
 0x52e   : > { %12405 = vmatmul.mubr.f32.gmra.mxu0 %v17477_v14 }
 0x52f   : > { %12409 = vmatprep.mubr.f32.mxu0 %v17481_v63 }
 0x530   : > { %12030 = vmatmul.mubr.f32.gmra.mxu1 %v17409_v41 }
 0x531   : > { %12034 = vmatprep.mubr.f32.mxu1 %v17413_v61 }
 0x532   : > { %12410 = vmatmul.mubr.f32.gmra.mxu0 %v17480_v32 }
 0x533   : > { %12414 = vmatprep.mubr.f32.mxu0 %v17484_v7 }
 0x534   : > { %12035 = vmatmul.mubr.f32.gmra.mxu1 %v17412_v9 }
 0x535   : > { %12039 = vmatprep.mubr.f32.mxu1 %v17416_v56 }
 0x536   : > { %12415 = vmatmul.mubr.f32.gmra.mxu0 %v17483_v39 }
 0x537   : > { %12419 = vmatprep.mubr.f32.mxu0 %v17487_v49 }
 0x538   : > { %12040 = vmatmul.mubr.f32.gmra.mxu1 %v17415_v54 }
 0x539   : > { %12044 = vmatprep.mubr.f32.mxu1 %v17419_v48 }
 0x53a   : > { %12420 = vmatmul.mubr.f32.gmra.mxu0 %v17486_v28 }
 0x53b   : > { %12424 = vmatprep.mubr.f32.mxu0 %v17490_v3 }
 0x53c   : > { %12045 = vmatmul.mubr.f32.gmra.mxu1 %v17418_v45 }
 0x53d   : > { %12049 = vmatprep.mubr.f32.mxu1 %v17422_v6 }
 0x53e   : > { %12425 = vmatmul.mubr.f32.gmra.mxu0 %v17489_v26 }
 0x53f   : > { %12429 = vmatprep.mubr.f32.mxu0 %v17493_v36 }
 0x540   : > { %12050 = vmatmul.mubr.f32.gmra.mxu1 %v17421_v59 }
 0x541   : > { %12054 = vmatprep.mubr.f32.mxu1 %v17425_v11 }
 0x542   : > { %12430 = vmatmul.mubr.f32.gmra.mxu0 %v17492_v0 }
 0x544   : > { %12055 = vmatmul.mubr.f32.gmra.mxu1 %v17424_v16 }
 0x545   : > { %12059 = vmatprep.mubr.f32.mxu1 %v17428_v8 }
 0x548   : > { %12060 = vmatmul.mubr.f32.gmra.mxu1 %v17427_v44 }
 0x549   : > { %12064 = vmatprep.mubr.f32.mxu1 %v17431_v29 }
 0x54c   : > { %12065 = vmatmul.mubr.f32.gmra.mxu1 %v17430_v12 }
 0x54d   : > { %12069 = vmatprep.mubr.f32.mxu1 %v17434_v31 }
 0x550   : > { %12070 = vmatmul.mubr.f32.gmra.mxu1 %v17433_v37 }
 0x551   : > { %12074 = vmatprep.mubr.f32.mxu1 %v17437_v47 }
 0x554   : > { %12075 = vmatmul.mubr.f32.gmra.mxu1 %v17436_v51 }
 0x555   : > { %20754 = vmatprep.mubr.msk.f32.mxu1 %vm11192_vm1, %v17455_v34 }
 0x558   : > { %20755 = vmatmul.mubr.msk.f32.vlgmr.msra.gmra.mxu1 %vm11192_vm1, %v17458_v2 }
 0x559   : > { %20757 = vmatprep.mubr.msk.f32.mxu1 %vm11192_vm1, %v17461_v30 }
 0x55c   : > { %20758 = vmatmul.mubr.msk.f32.gmra.mxu1 %vm11192_vm1, %v17464_v53 }
 0x55d   : > { %20760 = vmatprep.mubr.msk.f32.mxu1 %vm11192_vm1, %v17467_v1 }
 0x560   : > { %20761 = vmatmul.mubr.msk.f32.gmra.mxu1 %vm11192_vm1, %v17470_v33 }
 0x561   : > { %20763 = vmatprep.mubr.msk.f32.mxu1 %vm11192_vm1, %v17473_v57 }
 0x564   : > { %20764 = vmatmul.mubr.msk.f32.gmra.mxu1 %vm11192_vm1, %v17476_v19 }
 0x565   : > { %20766 = vmatprep.mubr.msk.f32.mxu1 %vm11192_vm1, %v17479_v5  ;;  %v25885_v25 = vpop.f32.mrf.mxu1 }
 0x566   : > { %v25890_v38 = vpop.f32.mrf.mxu0 }
 0x567   : > { %v25892_v35 = vpop.f32.mrf.mxu1 }
 0x568   : > { %20767 = vmatmul.mubr.msk.f32.gmra.mxu1 %vm11192_vm1, %v17482_v23  ;;  %v25895_v55 = vpop.f32.mrf.mxu0 }
 0x569   : > { %20769 = vmatprep.mubr.msk.f32.mxu1 %vm11192_vm1, %v17485_v42  ;;  %v12638_v42 = vld [vmem:[%s27155_s4 + $0x8] sm:$0xff] }
 0x56a   : > { %20794 = vmatprep.subr.mxu0 %v12638_v42 }
 0x56b   : > { %v18677_v40 = vpop.f32.mrf.mxu1  ;;  %20795 = vmatpush3.msra.mxu0 %v12638_v42 }
 0x56c   : > { %20770 = vmatmul.mubr.msk.f32.gmra.mxu1 %vm11192_vm1, %v17488_v17  ;;  %v25905_v13 = vpop.f32.mrf.mxu0 }
 0x56d   : > { %20772 = vmatprep.mubr.msk.f32.mxu1 %vm11192_vm1, %v17491_v62  ;;  %v18678_v18 = vpop.f32.mrf.mxu1 }
 0x56e   : > { %v25911_v27 = vpop.f32.mrf.mxu0  ;;  %v18679_v1 = vadd.f32 %v18678_v18, %v18677_v40  ;;  %v12637_v40 = vld [vmem:[%s27155_s4] sm:$0xff] }
 0x56f   : > { %20796 = vmatprep.subr.mxu0 %v12637_v40 }
 0x570   : > { %20773 = vmatmul.mubr.msk.f32.gmra.mxu1 %vm11192_vm1, %v17494_v21  ;;  %20797 = vmatpush3.msra.mxu0 %v12637_v40 }
 0x571   : > { %v25914_v58 = vpop.f32.mrf.mxu1  ;;  %v25916_v46 = vpop.f32.mrf.mxu0 }
 0x573   : > { %v25918_v50 = vpop.f32.mrf.mxu1  ;;  %v25920_v15 = vpop.f32.mrf.mxu0 }
 0x575   : > { %v18683_v22 = vpop.f32.mrf.mxu1  ;;  %v25922_v60 = vpop.f32.mrf.mxu0 }
 0x577   : > { %v18684_v4 = vpop.f32.mrf.mxu1  ;;  %v25924_v24 = vpop.f32.mrf.mxu0 }
 0x578   : > { %v18685_v23 = vadd.f32 %v18684_v4, %v18683_v22  ;;  %v17510_v22 = vld [vmem:[%s27155_s4 + $0x18] sm:$0xff] }
 0x579   : > { %v25926_v52 = vpop.f32.mrf.mxu1  ;;  %v25928_v10 = vpop.f32.mrf.mxu0  ;;  %20775 = vmatprep.subr.mxu1 %v17510_v22 }
 0x57a   : > { %20776 = vmatpush3.msra.mxu1 %v17510_v22 }
 0x57b   : > { %v25930_v20 = vpop.f32.mrf.mxu1  ;;  %v25932_v43 = vpop.f32.mrf.mxu0 }
 0x57d   : > { %v18689_v14 = vpop.f32.mrf.mxu1  ;;  %v25934_v63 = vpop.f32.mrf.mxu0 }
 0x57f   : > { %v18690_v41 = vpop.f32.mrf.mxu1  ;;  %v25936_v61 = vpop.f32.mrf.mxu0 }
 0x581   : > { %v25938_v32 = vpop.f32.mrf.mxu1  ;;  %v25940_v7 = vpop.f32.mrf.mxu0 }
 0x583   : > { %v25942_v9 = vpop.f32.mrf.mxu1  ;;  %v25944_v56 = vpop.f32.mrf.mxu0 }
 0x585   : > { %v18695_v39 = vpop.f32.mrf.mxu1  ;;  %v25946_v49 = vpop.f32.mrf.mxu0 }
 0x587   : > { %v18696_v54 = vpop.f32.mrf.mxu1  ;;  %v25948_v48 = vpop.f32.mrf.mxu0 }
 0x588   : > { %v18697_v42 = vadd.f32 %v18696_v54, %v18695_v39 }
 0x589   : > { %v25950_v28 = vpop.f32.mrf.mxu1  ;;  %v25952_v3 = vpop.f32.mrf.mxu0 }
 0x58b   : > { %v25954_v45 = vpop.f32.mrf.mxu1  ;;  %v25956_v6 = vpop.f32.mrf.mxu0 }
 0x58d   : > { %v18701_v26 = vpop.f32.mrf.mxu1  ;;  %v25958_v36 = vpop.f32.mrf.mxu0 }
 0x58f   : > { %v18702_v59 = vpop.f32.mrf.mxu1  ;;  %v25960_v11 = vpop.f32.mrf.mxu0 }
 0x591   : > { %v25962_v0 = vpop.f32.mrf.mxu1  ;;  %v25964_v16 = vpop.f32.mrf.mxu0 }
 0x593   : > { %v25966_v8 = vpop.f32.mrf.mxu1  ;;  %v25968_v44 = vpop.f32.mrf.mxu0 }
 0x595   : > { %v18707_v29 = vpop.f32.mrf.mxu1  ;;  %v25970_v12 = vpop.f32.mrf.mxu0 }
 0x597   : > { %v18708_v31 = vpop.f32.mrf.mxu1  ;;  %v25972_v37 = vpop.f32.mrf.mxu0 }
 0x599   : > { %v25974_v47 = vpop.f32.mrf.mxu1  ;;  %v25978_v34 = vpop.f32.mrf.mxu0 }
 0x59b   : > { %v25976_v51 = vpop.f32.mrf.mxu1  ;;  %v25980_v53 = vpop.f32.mrf.mxu0 }
 0x59c   : > { %27399 = vst [vmem:[#allocation13_spill] sm:$0xff] %v25976_v51 }
 0x59d   : > { %v18713_v2 = vpop.f32.mrf.mxu1  ;;  %v18805_v5 = vpop.f32.mrf.mxu0 }
 0x59e   : > { %v18691_v2 = vadd.f32 %v18690_v41, %v18689_v14  ;;  %v18703_v41 = vadd.f32 %v18702_v59, %v18701_v26  ;;  %v26029_v26 = vld [vmem:[%s27155_s4 + $0x38] sm:$0xff] }
 0x59f   : > { %v18714_v30 = vpop.f32.mrf.mxu1  ;;  %v18806_v21 = vpop.f32.mrf.mxu0  ;;  %27408 = vst [vmem:[#allocation23_spill] sm:$0xff] %v26029_v26  ;;  %20832 = vmatprep.subr.mxu0 %v26029_v26  ;;  %v18768_v26 = vadd.f32 %v25895_v55, %v25890_v38  ;;  %v18682_v55 = vadd.f32 %v25918_v50, %v25914_v58  ;;  %v18688_v58 = vadd.f32 %v25930_v20, %v25926_v52 }
 0x5a0   : > { %v17509_v30 = vld [vmem:[%s27155_s4 + $0x10] sm:$0xff]  ;;  %v18694_v52 = vadd.f32 %v25942_v9, %v25938_v32 }
 0x5a1   : > { %v20669_v33 = vpop.f32.mrf.mxu1  ;;  %v25995_v4 = vpop.f32.mrf.mxu0  ;;  %20777 = vmatprep.subr.mxu1 %v17509_v30 }
 0x5a2   : > { %v25982_v57 = vadd.f32 %v20669_v33, %v18679_v1  ;;  %27400 = vst [vmem:[#allocation12_spill] sm:$0xff] %v25995_v4  ;;  %20778 = vmatpush3.msra.mxu1 %v17509_v30 }
 0x5a3   : > { %v11436_v19 = vpop.f32.mrf.mxu1 }
 0x5a6   : > { %v20672_v17 = vpop.f32.mrf.mxu1 }
 0x5a7   : > { %v25987_v62 = vadd.f32 %v20672_v17, %v18685_v23  ;;  %v26002_v23 = vpop.f32.mrf.mxu0 }
 0x5a8   : > { %v11446_v18 = vpop.f32.mrf.mxu1  ;;  %27401 = vst [vmem:[#allocation15_spill] sm:$0xff] %v26002_v23 }
 0x5ab   : > { %v20675_v1 = vpop.f32.mrf.mxu1 }
 0x5ac   : > { %v26000_v33 = vadd.f32 %v20675_v1, %v18691_v2  ;;  %v18709_v1 = vadd.f32 %v18708_v31, %v18707_v29 }
 0x5ad   : > { %v11456_v5 = vpop.f32.mrf.mxu1 }
 0x5af   : > { %v20678_v17 = vpop.f32.mrf.mxu1 }
 0x5b0   : > { %v26004_v21 = vadd.f32 %v20678_v17, %v18697_v42 }
 0x5b1   : > { %v26006_v4 = vpop.f32.mrf.mxu1  ;;  %v26008_v14 = vpop.f32.mrf.mxu0 }
 0x5b2   : > { %27402 = vst [vmem:[#allocation14_spill] sm:$0xff] %v26004_v21 }
 0x5b3   : > { %v20681_v40 = vpop.f32.mrf.mxu1  ;;  %v26010_v22 = vpop.f32.mrf.mxu0 }
 0x5b4   : > { %v26012_v51 = vadd.f32 %v20681_v40, %v18703_v41  ;;  %v18771_v40 = vadd.f32 %v25911_v27, %v25905_v13  ;;  %v18777_v27 = vadd.f32 %v25924_v24, %v25922_v60  ;;  %v18783_v60 = vadd.f32 %v25936_v61, %v25934_v63 }
 0x5b5   : > { %v26014_v2 = vpop.f32.mrf.mxu1  ;;  %v26016_v30 = vpop.f32.mrf.mxu0  ;;  %v26090_v63 = vadd.f32 %v18688_v58, %v11456_v5  ;;  %v18789_v61 = vadd.f32 %v25948_v48, %v25946_v49  ;;  %v18795_v5 = vadd.f32 %v25960_v11, %v25958_v36  ;;  %v18792_v11 = vadd.f32 %v25956_v6, %v25952_v3 }
 0x5b6   : > { %27403 = vst [vmem:[#allocation16_spill] sm:$0xff] %v26012_v51  ;;  %27404 = vst [vmem:[#allocation17_spill] sm:$0xff] %v26016_v30  ;;  %v18706_v3 = vadd.f32 %v25966_v8, %v25962_v0  ;;  %v18804_v0 = vadd.f32 %v25980_v53, %v25978_v34 }
 0x5b7   : > { %v20684_v23 = vpop.f32.mrf.mxu1  ;;  %v26018_v39 = vpop.f32.mrf.mxu0  ;;  %27415 = vst [vmem:[#allocation37_spill] sm:$0xff] %v26090_v63 }
 0x5b8   : > { %27405 = vst [vmem:[#allocation31_spill] sm:$0xff] %v26018_v39  ;;  %v26020_v54 = vadd.f32 %v20684_v23, %v18709_v1  ;;  %v26041_v23 = vld [vmem:[%s27155_s4 + $0x28] sm:$0xff] }
 0x5b9   : > { %v26022_v42 = vpop.f32.mrf.mxu1  ;;  %v26024_v17 = vpop.f32.mrf.mxu0  ;;  %27411 = vst [vmem:[#allocation27_spill] sm:$0xff] %v26041_v23  ;;  %20813 = vmatprep.subr.mxu1 %v26041_v23 }
 0x5ba   : > { %27406 = vst [vmem:[#allocation19_spill] sm:$0xff] %v26020_v54  ;;  %27407 = vst [vmem:[#allocation21_spill] sm:$0xff] %v26024_v17 }
 0x5bb   : > { %v20687_v59 = vpop.f32.mrf.mxu1  ;;  %v26032_v41 = vpop.f32.mrf.mxu0 }
 0x5bc   : > { %27409 = vst [vmem:[#allocation25_spill] sm:$0xff] %v26032_v41  ;;  %v18676_v59 = vadd.f32 %v25892_v35, %v25885_v25 }
 0x5bd   : > { %v26034_v29 = vpop.f32.mrf.mxu1  ;;  %v26036_v31 = vpop.f32.mrf.mxu0 }
 0x5be   : > { %27410 = vst [vmem:[#allocation18_spill] sm:$0xff] %v26036_v31  ;;  %v26054_v39 = vadd.f32 %v18676_v59, %v11436_v19  ;;  %v18774_v19 = vadd.f32 %v25920_v15, %v25916_v46  ;;  %v18780_v46 = vadd.f32 %v25932_v43, %v25928_v10  ;;  %v18786_v43 = vadd.f32 %v25944_v56, %v25940_v7 }
 0x5bf   : > { %v20698_v1 = vpop.f32.mrf.mxu1  ;;  %v26052_v31 = vpop.f32.mrf.mxu0  ;;  %v18700_v7 = vadd.f32 %v25954_v45, %v25950_v28 }
 0x5c0   : > { %v26050_v41 = vadd.f32 %v20698_v1, %v18771_v40  ;;  %27412 = vst [vmem:[#allocation29_spill] sm:$0xff] %v26052_v31 }
 0x5c1   : > { %v11791_v17 = vpop.f32.mrf.mxu1 }
 0x5c2   : > { %v26058_v13 = vadd.f32 %v18768_v26, %v11791_v17  ;;  %v26074_v26 = vadd.f32 %v18682_v55, %v11446_v18 }
 0x5c4   : > { %v20701_v35 = vpop.f32.mrf.mxu1  ;;  %v26064_v38 = vpop.f32.mrf.mxu0 }
 0x5c5   : > { %27413 = vst [vmem:[#allocation33_spill] sm:$0xff] %v26064_v38  ;;  %v26070_v40 = vadd.f32 %v20701_v35, %v18777_v27 }
 0x5c6   : > { %v11801_v1 = vpop.f32.mrf.mxu1  ;;  %v26072_v17 = vpop.f32.mrf.mxu0 }
 0x5c7   : > { %27414 = vst [vmem:[#allocation35_spill] sm:$0xff] %v26072_v17  ;;  %v26080_v59 = vadd.f32 %v18774_v19, %v11801_v1  ;;  %v26113_v1 = vadd.f32 %v18694_v52, %v26006_v4 }
 0x5c8   : > { %v20704_v25 = vpop.f32.mrf.mxu1 }
 0x5c9   : > { %v26088_v15 = vadd.f32 %v20704_v25, %v18783_v60  ;;  %27419 = vst [vmem:[#allocation39_spill] sm:$0xff] %v26113_v1  ;;  %v18801_v60 = vadd.f32 %v25972_v37, %v25970_v12  ;;  %v18798_v37 = vadd.f32 %v25968_v44, %v25964_v16 }
 0x5ca   : > { %v11811_v18 = vpop.f32.mrf.mxu1  ;;  %v20745_v27 = vpop.f32.mrf.mxu0 }
 0x5cb   : > { %v26096_v55 = vadd.f32 %v18780_v46, %v11811_v18  ;;  %v26134_v27 = vadd.f32 %v18700_v7, %v26014_v2 }
 0x5cc   : > { %v20707_v10 = vpop.f32.mrf.mxu1  ;;  %v26100_v20 = vpop.f32.mrf.mxu0 }
 0x5cd   : > { %27416 = vst [vmem:[#allocation45_spill] sm:$0xff] %v26096_v55  ;;  %27417 = vst [vmem:[#allocation47_spill] sm:$0xff] %v26100_v20  ;;  %v26108_v48 = vadd.f32 %v20707_v10, %v18789_v61  ;;  %v27442_v55 = vld [vmem:[#allocation12_spill] sm:$0xff] }
 0x5ce   : > { %v11821_v25 = vpop.f32.mrf.mxu1  ;;  %v26110_v19 = vpop.f32.mrf.mxu0  ;;  %27422 = vst [vmem:[#allocation20_spill] sm:$0xff] %v26134_v27 }
 0x5cf   : > { %27418 = vst [vmem:[#allocation32_spill] sm:$0xff] %v26108_v48  ;;  %v26117_v9 = vadd.f32 %v18786_v43, %v11821_v25  ;;  %v26153_v43 = vadd.f32 %v18706_v3, %v26022_v42  ;;  %v27427_v25 = vld [vmem:[#allocation13_spill] sm:$0xff] }
 0x5d0   : > { %v20710_v56 = vpop.f32.mrf.mxu1  ;;  %v26121_v36 = vpop.f32.mrf.mxu0  ;;  %v18712_v7 = vadd.f32 %v27427_v25, %v25974_v47 }
 0x5d1   : > { %27420 = vst [vmem:[#allocation41_spill] sm:$0xff] %v26117_v9  ;;  %v26129_v58 = vadd.f32 %v20710_v56, %v18795_v5  ;;  %27425 = vst [vmem:[#allocation26_spill] sm:$0xff] %v26153_v43 }
 0x5d2   : > { %v11831_v46 = vpop.f32.mrf.mxu1  ;;  %v26131_v18 = vpop.f32.mrf.mxu0 }
 0x5d3   : > { %27421 = vst [vmem:[#allocation43_spill] sm:$0xff] %v26129_v58  ;;  %v26138_v45 = vadd.f32 %v18792_v11, %v11831_v46 }
 0x5d4   : > { %v20713_v6 = vpop.f32.mrf.mxu1  ;;  %v26142_v12 = vpop.f32.mrf.mxu0 }
 0x5d5   : > { %27423 = vst [vmem:[#allocation22_spill] sm:$0xff] %v26138_v45  ;;  %v26148_v52 = vadd.f32 %v20713_v6, %v18801_v60  ;;  %v26168_v60 = vadd.f32 %v18712_v7, %v26034_v29 }
 0x5d6   : > { %v11841_v2 = vpop.f32.mrf.mxu1  ;;  %v26150_v10 = vpop.f32.mrf.mxu0 }
 0x5d7   : > { %27424 = vst [vmem:[#allocation24_spill] sm:$0xff] %v26148_v52  ;;  %v26159_v5 = vadd.f32 %v18798_v37, %v11841_v2  ;;  %27428 = vst [vmem:[#allocation30_spill] sm:$0xff] %v26168_v60 }
 0x5d8   : > { %v20716_v16 = vpop.f32.mrf.mxu1  ;;  %v26161_v44 = vpop.f32.mrf.mxu0 }
 0x5d9   : > { %27426 = vst [vmem:[#allocation28_spill] sm:$0xff] %v26159_v5 }
 0x5da   : > { %v11851_v11 = vpop.f32.mrf.mxu1  ;;  %v18959_v42 = vpop.f32.mrf.mxu0 }
 0x5db   : > { %v26170_v34 = vadd.f32 %v18804_v0, %v11851_v11 }
 0x5dc   : > { %v18960_v53 = vpop.f32.mrf.mxu0 }
 0x5dd   : > { %27429 = vst [vmem:[#allocation34_spill] sm:$0xff] %v26170_v34 }
 0x5de   : > { %v26174_v3 = vpop.f32.mrf.mxu0 }
 0x5e0   : > { %v18858_v6 = vpop.f32.mrf.mxu1  ;;  %v26176_v37 = vpop.f32.mrf.mxu0 }
 0x5e2   : > { %v18859_v47 = vpop.f32.mrf.mxu1  ;;  %v26178_v16 = vpop.f32.mrf.mxu0 }
 0x5e4   : > { %v18861_v2 = vpop.f32.mrf.mxu1  ;;  %v18966_v8 = vpop.f32.mrf.mxu0 }
 0x5e6   : > { %v18862_v25 = vpop.f32.mrf.mxu1  ;;  %v26180_v0 = vpop.f32.mrf.mxu0 }
 0x5e7   : > { %v18863_v21 = vadd.f32 %v18862_v25, %v18861_v2  ;;  %v18961_v25 = vadd.f32 %v18960_v53, %v18959_v42 }
 0x5e8   : > { %v18864_v56 = vpop.f32.mrf.mxu1  ;;  %v26182_v28 = vpop.f32.mrf.mxu0 }
 0x5ea   : > { %v18865_v29 = vpop.f32.mrf.mxu1  ;;  %v26184_v32 = vpop.f32.mrf.mxu0 }
 0x5ec   : > { %v18867_v7 = vpop.f32.mrf.mxu1  ;;  %v26188_v50 = vpop.f32.mrf.mxu0 }
 0x5ee   : > { %v18868_v11 = vpop.f32.mrf.mxu1  ;;  %v26192_v34 = vpop.f32.mrf.mxu0 }
 0x5ef   : > { %27430 = vst [vmem:[#allocation36_spill] sm:$0xff] %v26192_v34  ;;  %v18860_v34 = vadd.f32 %v18859_v47, %v18858_v6  ;;  %v18869_v63 = vadd.f32 %v18868_v11, %v18867_v7 }
 0x5f0   : > { %v18870_v61 = vpop.f32.mrf.mxu1  ;;  %v26196_v43 = vpop.f32.mrf.mxu0 }
 0x5f1   : > { %27431 = vst [vmem:[#allocation38_spill] sm:$0xff] %v26196_v43 }
 0x5f2   : > { %v18871_v46 = vpop.f32.mrf.mxu1  ;;  %v26202_v54 = vpop.f32.mrf.mxu0 }
 0x5f4   : > { %v18873_v4 = vpop.f32.mrf.mxu1  ;;  %v18978_v27 = vpop.f32.mrf.mxu0 }
 0x5f6   : > { %v18874_v49 = vpop.f32.mrf.mxu1  ;;  %v26210_v51 = vpop.f32.mrf.mxu0 }
 0x5f7   : > { %27436 = vst [vmem:[#allocation44_spill] sm:$0xff] %v26210_v51  ;;  %v12152_v51 = vadd.f32 %v27442_v55, %v18863_v21  ;;  %v18875_v6 = vadd.f32 %v18874_v49, %v18873_v4  ;;  %v12162_v21 = vadd.f32 %v26008_v14, %v18869_v63  ;;  %v27444_v55 = vmax.f32 %v25982_v57, %v26050_v41  ;;  %v27446_v57 = vld [vmem:[#allocation17_spill] sm:$0xff] }
 0x5f8   : > { %v26186_v35 = vpop.f32.mrf.mxu1  ;;  %v26216_v1 = vpop.f32.mrf.mxu0  ;;  %v27445_v49 = vmax.f32 %v26054_v39, %v26058_v13  ;;  %v18964_v4 = vadd.f32 %v26176_v37, %v26174_v3  ;;  %v18973_v13 = vadd.f32 %v26188_v50, %v26184_v32  ;;  %v18970_v3 = vadd.f32 %v26182_v28, %v26180_v0  ;;  %v27450_v50 = vld [vmem:[#allocation21_spill] sm:$0xff] }
 0x5f9   : > { %27439 = vst [vmem:[#allocation75_spill] sm:$0xff] %v26216_v1  ;;  %v12172_v41 = vadd.f32 %v27446_v57, %v18875_v6  ;;  %v27451_v37 = vmax.f32 %v26000_v33, %v26088_v15 }
 0x5fa   : > { %v26190_v24 = vpop.f32.mrf.mxu1  ;;  %v26220_v43 = vpop.f32.mrf.mxu0 }
 0x5fb   : > { %27441 = vst [vmem:[#allocation69_spill] sm:$0xff] %v26220_v43  ;;  %v18878_v39 = vadd.f32 %v26190_v24, %v26186_v35  ;;  %v18979_v24 = vadd.f32 %v18978_v27, %v26202_v54  ;;  %v27454_v54 = vld [vmem:[#allocation37_spill] sm:$0xff] }
 0x5fc   : > { %v18879_v30 = vpop.f32.mrf.mxu1  ;;  %v18984_v1 = vpop.f32.mrf.mxu0  ;;  %v27455_v27 = vld [vmem:[#allocation45_spill] sm:$0xff] }
 0x5fd   : > { %v27456_v0 = vmax.f32 %v27454_v54, %v27455_v27 }
 0x5fe   : > { %v18880_v60 = vpop.f32.mrf.mxu1 }
 0x600   : > { %v26194_v5 = vpop.f32.mrf.mxu1 }
 0x602   : > { %v26198_v20 = vpop.f32.mrf.mxu1 }
 0x603   : > { %27432 = vst [vmem:[#allocation46_spill] sm:$0xff] %v26198_v20  ;;  %v18866_v20 = vadd.f32 %v18865_v29, %v18864_v56  ;;  %v27452_v29 = vld [vmem:[#allocation25_spill] sm:$0xff] }
 0x604   : > { %v26200_v52 = vpop.f32.mrf.mxu1  ;;  %v12177_v7 = vadd.f32 %v18878_v39, %v27452_v29  ;;  %v17531_v29 = vld [vmem:[%s27155_s4 + $0x20] sm:$0xff] }
 0x605   : > { %v12157_v56 = vadd.f32 %v18866_v20, %v26010_v22  ;;  %v27447_v22 = vmax.f32 %v25987_v62, %v26070_v40 }
 0x606   : > { %v18886_v23 = vpop.f32.mrf.mxu1 }
 0x608   : > { %v26204_v45 = vpop.f32.mrf.mxu1 }
 0x609   : > { %27433 = vst [vmem:[#allocation48_spill] sm:$0xff] %v26204_v45 }
 0x60a   : > { %v26206_v17 = vpop.f32.mrf.mxu1 }
 0x60b   : > { %27434 = vst [vmem:[#allocation40_spill] sm:$0xff] %v26206_v17  ;;  %v18955_v17 = vadd.f32 %v26142_v12, %v26131_v18  ;;  %v18958_v18 = vadd.f32 %v26161_v44, %v26150_v10 }
 0x60c   : > { %v26208_v58 = vpop.f32.mrf.mxu1 }
 0x60d   : > { %27435 = vst [vmem:[#allocation42_spill] sm:$0xff] %v26208_v58 }
 0x60e   : > { %v26212_v38 = vpop.f32.mrf.mxu1 }
 0x60f   : > { %27437 = vst [vmem:[#allocation49_spill] sm:$0xff] %v26212_v38 }
 0x610   : > { %v26214_v9 = vpop.f32.mrf.mxu1  ;;  %v27466_v57 = vld [vmem:[#allocation48_spill] sm:$0xff] }
 0x611   : > { %27438 = vst [vmem:[#allocation51_spill] sm:$0xff] %v26214_v9  ;;  %v18952_v9 = vadd.f32 %v26121_v36, %v26110_v19 }
 0x612   : > { %v26218_v31 = vpop.f32.mrf.mxu1 }
 0x613   : > { %27440 = vst [vmem:[#allocation59_spill] sm:$0xff] %v26218_v31 }
 0x614   : > { %v18897_v48 = vpop.f32.mrf.mxu1  ;;  %v27458_v15 = vld [vmem:[#allocation42_spill] sm:$0xff] }
 0x615   : > { %v27443_v48 = vld [vmem:[#allocation15_spill] sm:$0xff] }
 0x616   : > { %v18898_v45 = vpop.f32.mrf.mxu1  ;;  %v12147_v2 = vadd.f32 %v18860_v34, %v27443_v48  ;;  %v27448_v34 = vld [vmem:[#allocation31_spill] sm:$0xff] }
 0x618   : > { %v20756_v58 = vpop.f32.mrf.mxu1 }
 0x619   : > { %v12507_v38 = vadd.f32 %v20756_v58, %v18955_v17  ;;  %v26234_v58 = vpop.f32.mrf.mxu0 }
 0x61a   : > { %v12501_v31 = vpop.f32.mrf.mxu1  ;;  %v27481_v54 = vld [vmem:[#allocation59_spill] sm:$0xff] }
 0x61b   : > { %v12585_v43 = vmax.f32 %v12152_v51, %v12507_v38  ;;  %v12502_v45 = vadd.f32 %v18952_v9, %v12501_v31  ;;  %v18967_v51 = vadd.f32 %v18966_v8, %v26178_v16  ;;  %v18872_v38 = vadd.f32 %v18871_v46, %v18870_v61  ;;  %v26249_v44 = vpop.f32.mrf.mxu0 }
 0x61c   : > { %v20759_v12 = vpop.f32.mrf.mxu1  ;;  %v18887_v46 = vadd.f32 %v18886_v23, %v26200_v52  ;;  %v27453_v52 = vld [vmem:[#allocation46_spill] sm:$0xff] }
 0x61d   : > { %v12599_v17 = vmax.f32 %v27444_v55, %v12585_v43  ;;  %v12584_v19 = vmax.f32 %v12147_v2, %v12502_v45  ;;  %v12517_v36 = vadd.f32 %v20759_v12, %v18961_v25  ;;  %v18881_v43 = vadd.f32 %v18880_v60, %v18879_v30  ;;  %v18989_v16 = vpop.f32.mrf.mxu0  ;;  %v27457_v25 = vld [vmem:[#allocation18_spill] sm:$0xff]  ;;  %v27459_v45 = vld [vmem:[#allocation49_spill] sm:$0xff] }
 0x61e   : > { %v12511_v31 = vpop.f32.mrf.mxu1  ;;  %v12167_v53 = vadd.f32 %v18872_v38, %v27448_v34  ;;  %v27449_v30 = vmax.f32 %v26074_v26, %v26080_v59  ;;  %v18884_v28 = vadd.f32 %v27453_v52, %v26194_v5  ;;  %v12192_v33 = vadd.f32 %v27457_v25, %v18887_v46  ;;  %v27461_v12 = vld [vmem:[#allocation38_spill] sm:$0xff]  ;;  %v27462_v55 = vld [vmem:[#allocation69_spill] sm:$0xff]  ;;  %v27472_v34 = vld [vmem:[#allocation23_spill] sm:$0xff] }
 0x61f   : > { %12614 = vst.msk [vmem:[#allocation2 + $0x8] sm:$0xff] %vm12612_vm2, %v12599_v17  ;;  %v12598_v14 = vmax.f32 %v27445_v49, %v12584_v19  ;;  %v12587_v63 = vmax.f32 %v12162_v21, %v12517_v36  ;;  %v12512_v9 = vadd.f32 %v18958_v18, %v12511_v31  ;;  %v12182_v32 = vadd.f32 %v27450_v50, %v18881_v43  ;;  %v27460_v18 = vld [vmem:[#allocation36_spill] sm:$0xff]  ;;  %v27468_v43 = vld [vmem:[#allocation29_spill] sm:$0xff] }
 0x620   : > { %v20762_v10 = vpop.f32.mrf.mxu1  ;;  %v18893_v6 = vadd.f32 %v27459_v45, %v27458_v15  ;;  %v18976_v21 = vadd.f32 %v27461_v12, %v27460_v18  ;;  %v18985_v17 = vadd.f32 %v18984_v1, %v27462_v55  ;;  %v17543_v1 = vld [vmem:[%s27155_s4 + $0x30] sm:$0xff] }
 0x621   : > { %12613 = vst.msk [vmem:[#allocation2] sm:$0xff] %vm12612_vm2, %v12598_v14  ;;  %v12601_v20 = vmax.f32 %v27447_v22, %v12587_v63  ;;  %v12586_v61 = vmax.f32 %v12157_v56, %v12512_v9  ;;  %v12527_v8 = vadd.f32 %v20762_v10, %v18967_v51  ;;  %v27463_v56 = vld [vmem:[#allocation14_spill] sm:$0xff]  ;;  %v27464_v51 = vld [vmem:[#allocation32_spill] sm:$0xff]  ;;  %v18990_v9 = vpop.f32.mrf.mxu0  ;;  %v12187_v22 = vadd.f32 %v18884_v28, %v27468_v43  ;;  %v27480_v28 = vld [vmem:[#allocation51_spill] sm:$0xff] }
 0x622   : > { %v12521_v42 = vpop.f32.mrf.mxu1  ;;  %v27465_v31 = vmax.f32 %v27463_v56, %v27464_v51  ;;  %v27476_v50 = vld [vmem:[#allocation16_spill] sm:$0xff]  ;;  %v18896_v27 = vadd.f32 %v27481_v54, %v27480_v28  ;;  %v17556_v56 = vld [vmem:[%s27155_s4 + $0x48] sm:$0xff] }
 0x623   : > { %12616 = vst.msk [vmem:[#allocation2 + $0x18] sm:$0xff] %vm12612_vm2, %v12601_v20  ;;  %v12600_v62 = vmax.f32 %v27449_v30, %v12586_v61  ;;  %v12589_v40 = vmax.f32 %v12172_v41, %v12527_v8  ;;  %v12522_v60 = vadd.f32 %v18964_v4, %v12521_v42  ;;  %v27467_v41 = vld [vmem:[#allocation40_spill] sm:$0xff]  ;;  %v27469_v20 = vld [vmem:[#allocation39_spill] sm:$0xff]  ;;  %v27470_v61 = vld [vmem:[#allocation41_spill] sm:$0xff] }
 0x624   : > { %v20765_v35 = vpop.f32.mrf.mxu1  ;;  %v18890_v4 = vadd.f32 %v27467_v41, %v27466_v57  ;;  %v27471_v8 = vmax.f32 %v27469_v20, %v27470_v61  ;;  %v27487_v55 = vld [vmem:[#allocation24_spill] sm:$0xff]  ;;  %v27494_v20 = vld [vmem:[#allocation34_spill] sm:$0xff] }
 0x625   : > { %12615 = vst.msk [vmem:[#allocation2 + $0x10] sm:$0xff] %vm12612_vm2, %v12600_v62  ;;  %v12603_v47 = vmax.f32 %v27451_v37, %v12589_v40  ;;  %v12588_v26 = vmax.f32 %v12167_v53, %v12522_v60  ;;  %v12537_v59 = vadd.f32 %v20765_v35, %v18973_v13  ;;  %v27473_v53 = vld [vmem:[#allocation33_spill] sm:$0xff]  ;;  %v27474_v62 = vld [vmem:[#allocation44_spill] sm:$0xff]  ;;  %v27475_v40 = vld [vmem:[#allocation75_spill] sm:$0xff] }
 0x626   : > { %v12531_v23 = vpop.f32.mrf.mxu1  ;;  %v12628_v63 = vld [vmem:[#allocation2 + $0x8] sm:$0xff]  ;;  %v12202_v30 = vadd.f32 %v27473_v53, %v18893_v6  ;;  %v18982_v60 = vadd.f32 %v27475_v40, %v27474_v62 }
 0x627   : > { %12618 = vst.msk [vmem:[#allocation2 + $0x28] sm:$0xff] %vm12612_vm2, %v12603_v47  ;;  %v12602_v11 = vmax.f32 %v27456_v0, %v12588_v26  ;;  %v12591_v48 = vmax.f32 %v12182_v32, %v12537_v59  ;;  %v12532_v2 = vadd.f32 %v18970_v3, %v12531_v23  ;;  %v27477_v32 = vld [vmem:[#allocation43_spill] sm:$0xff]  ;;  %v18988_v0 = vadd.f32 %v26249_v44, %v26234_v58 }
 0x628   : > { %v20768_v19 = vpop.f32.mrf.mxu1  ;;  %v12639_v5 = vld [vmem:[#allocation2 + $0x1] sm:$0xff]  ;;  %v27478_v37 = vmax.f32 %v27476_v50, %v27477_v32  ;;  %v27479_v23 = vld [vmem:[#allocation35_spill] sm:$0xff] }
 0x629   : > { %v12627_v36 = vld [vmem:[#allocation2] sm:$0xff]  ;;  %12617 = vst.msk [vmem:[#allocation2 + $0x20] sm:$0xff] %vm12612_vm2, %v12602_v11  ;;  %v12605_v38 = vmax.f32 %v27465_v31, %v12591_v48  ;;  %v12590_v49 = vmax.f32 %v12177_v7, %v12532_v2  ;;  %v12547_v14 = vadd.f32 %v20768_v19, %v18979_v24  ;;  %20779 = vmatprep.mubr.msk.f32.mxu1 %vm12612_vm2, %v12639_v5  ;;  %v26315_v7 = vld [vmem:[%s27155_s4 + $0x58] sm:$0xff]  ;;  %v27485_v6 = vld [vmem:[#allocation27_spill] sm:$0xff] }
 0x62a   : > { %20798 = vmatprep.mubr.msk.f32.mxu0 %vm12612_vm2, %v12627_v36  ;;  %v12541_v10 = vpop.f32.mrf.mxu1  ;;  %v12630_v16 = vld [vmem:[#allocation2 + $0x18] sm:$0xff]  ;;  %v12197_v52 = vadd.f32 %v18890_v4, %v27479_v23  ;;  %v27483_v2 = vld [vmem:[#allocation22_spill] sm:$0xff]  ;;  %v27486_v44 = vld [vmem:[#allocation19_spill] sm:$0xff] }
 0x62b   : > { %20799 = vmatmul.mubr.msk.f32.vlgmr.msra.gmra.mxu0 %vm12612_vm2, %v12628_v63  ;;  %12620 = vst.msk [vmem:[#allocation2 + $0x38] sm:$0xff] %vm12612_vm2, %v12605_v38  ;;  %v12604_v39 = vmax.f32 %v27471_v8, %v12590_v49  ;;  %v12593_v13 = vmax.f32 %v12192_v33, %v12547_v14  ;;  %v12542_v42 = vadd.f32 %v18976_v21, %v12541_v10  ;;  %v27482_v48 = vld [vmem:[#allocation20_spill] sm:$0xff]  ;;  %v27489_v31 = vld [vmem:[#allocation47_spill] sm:$0xff]  ;;  %v27490_v49 = vld [vmem:[#allocation26_spill] sm:$0xff] }
 0x62c   : > { %20833 = vmatpush3.msra.mxu0 %v27472_v34  ;;  %v20771_v46 = vpop.f32.mrf.mxu1  ;;  %v12640_v3 = vld [vmem:[#allocation2 + $0x9] sm:$0xff]  ;;  %v12641_v35 = vld [vmem:[#allocation2 + $0x11] sm:$0xff]  ;;  %v27484_v25 = vmax.f32 %v27482_v48, %v27483_v2  ;;  %v12207_v38 = vadd.f32 %v18896_v27, %v27489_v31 }
 0x62d   : > { %v12629_v24 = vld [vmem:[#allocation2 + $0x10] sm:$0xff]  ;;  %20834 = vmatprep.subr.mxu0 %v17543_v1  ;;  %12619 = vst.msk [vmem:[#allocation2 + $0x30] sm:$0xff] %vm12612_vm2, %v12604_v39  ;;  %v12607_v47 = vmax.f32 %v27478_v37, %v12593_v13  ;;  %v12592_v26 = vmax.f32 %v12187_v22, %v12542_v42  ;;  %v12557_v59 = vadd.f32 %v20771_v46, %v18985_v17  ;;  %v27493_v22 = vld [vmem:[#allocation30_spill] sm:$0xff] }
 0x62e   : > { %20780 = vmatmul.mubr.msk.f32.vlgmr.msra.gmra.mxu1 %vm12612_vm2, %v12640_v3  ;;  %20801 = vmatprep.mubr.msk.f32.mxu0 %vm12612_vm2, %v12629_v24  ;;  %v12551_v11 = vpop.f32.mrf.mxu1  ;;  %v27488_v17 = vmax.f32 %v27486_v44, %v27487_v55  ;;  %v12632_v36 = vld [vmem:[#allocation2 + $0x28] sm:$0xff]  ;;  %v27491_v14 = vld [vmem:[#allocation28_spill] sm:$0xff]  ;;  %v27495_v61 = vmax.f32 %v27493_v22, %v27494_v20  ;;  %v17555_v24 = vld [vmem:[%s27155_s4 + $0x40] sm:$0xff] }
 0x62f   : > { %20782 = vmatprep.mubr.msk.f32.mxu1 %vm12612_vm2, %v12641_v35  ;;  %20802 = vmatmul.mubr.msk.f32.gmra.mxu0 %vm12612_vm2, %v12630_v16  ;;  %12622 = vst.msk [vmem:[#allocation2 + $0x48] sm:$0xff] %vm12612_vm2, %v12607_v47  ;;  %v12606_v33 = vmax.f32 %v27484_v25, %v12592_v26  ;;  %v12595_v15 = vmax.f32 %v12202_v30, %v12557_v59  ;;  %v13110_v53 = vld [vmem:[#allocation2 + $0xa] sm:$0xff]  ;;  %v12942_v62 = vld [vmem:[#allocation2 + $0x2] sm:$0xff]  ;;  %v13111_v40 = vld [vmem:[#allocation2 + $0x12] sm:$0xff] }
 0x630   : > { %v12552_v45 = vadd.f32 %v18982_v60, %v12551_v11  ;;  %20835 = vmatpush3.msra.mxu0 %v17543_v1  ;;  %20814 = vmatpush3.msra.mxu1 %v27485_v6  ;;  %v20774_v18 = vpop.f32.mrf.mxu1  ;;  %v12642_v12 = vld [vmem:[#allocation2 + $0x19] sm:$0xff]  ;;  %v12643_v58 = vld [vmem:[#allocation2 + $0x21] sm:$0xff]  ;;  %v27492_v63 = vmax.f32 %v27490_v49, %v27491_v14  ;;  %v17567_v60 = vld [vmem:[%s27155_s4 + $0x50] sm:$0xff] }
 0x631   : > { %v12631_v21 = vld [vmem:[#allocation2 + $0x20] sm:$0xff]  ;;  %20815 = vmatprep.subr.mxu1 %v17531_v29  ;;  %20870 = vmatprep.subr.mxu0 %v26315_v7  ;;  %12621 = vst.msk [vmem:[#allocation2 + $0x40] sm:$0xff] %vm12612_vm2, %v12606_v33  ;;  %v12609_v19 = vmax.f32 %v27488_v17, %v12595_v15  ;;  %v17592_v35 = vld [vmem:[%s27155_s4 + $0x78] sm:$0xff]  ;;  %v17580_v37 = vld [vmem:[%s27155_s4 + $0x68] sm:$0xff] }
 0x632   : > { %v12594_v5 = vmax.f32 %v12197_v52, %v12552_v45  ;;  %20783 = vmatmul.mubr.msk.f32.gmra.mxu1 %vm12612_vm2, %v12642_v12  ;;  %20804 = vmatprep.mubr.msk.f32.mxu0 %vm12612_vm2, %v12631_v21  ;;  %v12561_v51 = vpop.f32.mrf.mxu1  ;;  %v12634_v43 = vld [vmem:[#allocation2 + $0x38] sm:$0xff]  ;;  %v13113_v3 = vld [vmem:[#allocation2 + $0x22] sm:$0xff]  ;;  %v17591_v52 = vld [vmem:[%s27155_s4 + $0x70] sm:$0xff] }
 0x633   : > { %20785 = vmatprep.mubr.msk.f32.mxu1 %vm12612_vm2, %v12643_v58  ;;  %20805 = vmatmul.mubr.msk.f32.gmra.mxu0 %vm12612_vm2, %v12632_v36  ;;  %12624 = vst.msk [vmem:[#allocation2 + $0x58] sm:$0xff] %vm12612_vm2, %v12609_v19  ;;  %v12562_v1 = vadd.f32 %v18988_v0, %v12561_v51  ;;  %v13112_v46 = vld [vmem:[#allocation2 + $0x1a] sm:$0xff]  ;;  %v13449_v0 = vld [vmem:[#allocation2 + $0x24] sm:$0xff] }
 0x634   : > { %v12608_v9 = vmax.f32 %v27492_v63, %v12594_v5  ;;  %20816 = vmatpush3.msra.mxu1 %v17531_v29  ;;  %v12644_v57 = vld [vmem:[#allocation2 + $0x29] sm:$0xff]  ;;  %v12645_v4 = vld [vmem:[#allocation2 + $0x31] sm:$0xff]  ;;  %v13448_v28 = vld [vmem:[#allocation2 + $0x1c] sm:$0xff] }
 0x635   : > { %v12633_v41 = vld [vmem:[#allocation2 + $0x30] sm:$0xff]  ;;  %20851 = vmatprep.subr.mxu1 %v17556_v56  ;;  %v12596_v10 = vmax.f32 %v12207_v38, %v12562_v1  ;;  %v13280_v27 = vld [vmem:[#allocation2 + $0x1b] sm:$0xff]  ;;  %v13281_v2 = vld [vmem:[#allocation2 + $0x23] sm:$0xff] }
 0x636   : > { %12623 = vst.msk [vmem:[#allocation2 + $0x50] sm:$0xff] %vm12612_vm2, %v12608_v9  ;;  %20786 = vmatmul.mubr.msk.f32.gmra.mxu1 %vm12612_vm2, %v12644_v57  ;;  %20807 = vmatprep.mubr.msk.f32.mxu0 %vm12612_vm2, %v12633_v41  ;;  %v12636_v34 = vld [vmem:[#allocation2 + $0x48] sm:$0xff]  ;;  %v13115_v32 = vld [vmem:[#allocation2 + $0x32] sm:$0xff]  ;;  %v17579_v11 = vld [vmem:[%s27155_s4 + $0x60] sm:$0xff] }
 0x637   : > { %20788 = vmatprep.mubr.msk.f32.mxu1 %vm12612_vm2, %v12645_v4  ;;  %20808 = vmatmul.mubr.msk.f32.gmra.mxu0 %vm12612_vm2, %v12634_v43  ;;  %v12610_v8 = vmax.f32 %v27495_v61, %v12596_v10  ;;  %v13114_v50 = vld [vmem:[#allocation2 + $0x2a] sm:$0xff]  ;;  %v13447_v23 = vld [vmem:[#allocation2 + $0x14] sm:$0xff]  ;;  %v13783_v5 = vld [vmem:[#allocation2 + $0x1d] sm:$0xff] }
 0x638   : > { %v12646_v39 = vld [vmem:[#allocation2 + $0x39] sm:$0xff]  ;;  %v12647_v42 = vld [vmem:[#allocation2 + $0x41] sm:$0xff]  ;;  %v13446_v29 = vld [vmem:[#allocation2 + $0xc] sm:$0xff] }
 0x639   : > { %v12635_v13 = vld [vmem:[#allocation2 + $0x40] sm:$0xff]  ;;  %12625 = vst.msk [vmem:[#allocation2 + $0x60] sm:$0xff] %vm12612_vm2, %v12610_v8  ;;  %v13279_v54 = vld [vmem:[#allocation2 + $0x13] sm:$0xff]  ;;  %v13282_v25 = vld [vmem:[#allocation2 + $0x2b] sm:$0xff] }
 0x63a   : > { %20789 = vmatmul.mubr.msk.f32.gmra.mxu1 %vm12612_vm2, %v12646_v39  ;;  %20810 = vmatprep.mubr.msk.f32.mxu0 %vm12612_vm2, %v12635_v13  ;;  %v13116_v47 = vld [vmem:[#allocation2 + $0x3a] sm:$0xff]  ;;  %v13117_v26 = vld [vmem:[#allocation2 + $0x42] sm:$0xff]  ;;  %v13450_v48 = vld [vmem:[#allocation2 + $0x2c] sm:$0xff]  ;;  %v27185_v13 = vmov 0.0  }
 0x63b   : > { %20791 = vmatprep.mubr.msk.f32.mxu1 %vm12612_vm2, %v12647_v42  ;;  %20811 = vmatmul.mubr.msk.f32.gmra.mxu0 %vm12612_vm2, %v12636_v34  ;;  %v13451_v33 = vld [vmem:[#allocation2 + $0x34] sm:$0xff]  ;;  %v17604_v15 = vld [vmem:[%s27155_s4 + $0x88] sm:$0xff]  ;;  %v13452_v45 = vld [vmem:[#allocation2 + $0x3c] sm:$0xff] }
 0x63c   : > { %20836 = vmatprep.mubr.msk.f32.mxu0 %vm12612_vm2, %v13110_v53  ;;  %v13283_v6 = vld [vmem:[#allocation2 + $0x33] sm:$0xff]  ;;  %v13284_v18 = vld [vmem:[#allocation2 + $0x3b] sm:$0xff]  ;;  %v13453_v12 = vld [vmem:[#allocation2 + $0x44] sm:$0xff] }
 0x63d   : > { %v12648_v30 = vld [vmem:[#allocation2 + $0x49] sm:$0xff]  ;;  %v13119_v16 = vld [vmem:[#allocation2 + $0x52] sm:$0xff]  ;;  %v17603_v51 = vld [vmem:[%s27155_s4 + $0x80] sm:$0xff] }
 0x63e   : > { %20792 = vmatmul.mubr.msk.f32.gmra.mxu1 %vm12612_vm2, %v12648_v30  ;;  %v13118_v59 = vld [vmem:[#allocation2 + $0x4a] sm:$0xff]  ;;  %v13455_v55 = vld [vmem:[#allocation2 + $0x54] sm:$0xff]  ;;  %v13787_v38 = vld [vmem:[#allocation2 + $0x3d] sm:$0xff] }
 0x63f   : > { %20817 = vmatprep.mubr.msk.f32.mxu1 %vm12612_vm2, %v12942_v62  ;;  %20837 = vmatmul.mubr.msk.f32.vlgmr.msra.gmra.mxu0 %vm12612_vm2, %v13111_v40  ;;  %v13454_v21 = vld [vmem:[#allocation2 + $0x4c] sm:$0xff]  ;;  %v13285_v58 = vld [vmem:[#allocation2 + $0x43] sm:$0xff]  ;;  %v13782_v17 = vld [vmem:[#allocation2 + $0x15] sm:$0xff] }
 0x640   : > { %20839 = vmatprep.mubr.msk.f32.mxu0 %vm12612_vm2, %v13112_v46  ;;  %20871 = vmatpush3.msra.mxu0 %v26315_v7  ;;  %v13278_v7 = vld [vmem:[#allocation2 + $0xb] sm:$0xff]  ;;  %v13287_v19 = vld [vmem:[#allocation2 + $0x53] sm:$0xff]  ;;  %v13791_v9 = vld [vmem:[#allocation2 + $0x5d] sm:$0xff] }
 0x641   : > { %20872 = vmatprep.subr.mxu0 %v17567_v60  ;;  %v13286_v44 = vld [vmem:[#allocation2 + $0x4b] sm:$0xff]  ;;  %v13786_v31 = vld [vmem:[#allocation2 + $0x35] sm:$0xff]  ;;  %v13951_v41 = vld [vmem:[#allocation2 + $0x1e] sm:$0xff] }
 0x642   : > { %20818 = vmatmul.mubr.msk.f32.vlgmr.msra.gmra.mxu1 %vm12612_vm2, %v13110_v53  ;;  %20873 = vmatpush3.msra.mxu0 %v17567_v60  ;;  %v13784_v36 = vld [vmem:[#allocation2 + $0x25] sm:$0xff]  ;;  %v13789_v14 = vld [vmem:[#allocation2 + $0x4d] sm:$0xff]  ;;  %v13790_v63 = vld [vmem:[#allocation2 + $0x55] sm:$0xff] }
 0x643   : > { %20820 = vmatprep.mubr.msk.f32.mxu1 %vm12612_vm2, %v13111_v40  ;;  %20840 = vmatmul.mubr.msk.f32.gmra.mxu0 %vm12612_vm2, %v13113_v3  ;;  %v13788_v49 = vld [vmem:[#allocation2 + $0x45] sm:$0xff]  ;;  %v13623_v1 = vld [vmem:[#allocation2 + $0x5c] sm:$0xff]  ;;  %v13953_v10 = vld [vmem:[#allocation2 + $0x2e] sm:$0xff] }
 0x644   : > { %20842 = vmatprep.mubr.msk.f32.mxu0 %vm12612_vm2, %v13114_v50  ;;  %20852 = vmatpush3.msra.mxu1 %v17556_v56  ;;  %v13785_v56 = vld [vmem:[#allocation2 + $0x2d] sm:$0xff]  ;;  %v13950_v57 = vld [vmem:[#allocation2 + $0x16] sm:$0xff]  ;;  %v13955_v22 = vld [vmem:[#allocation2 + $0x3e] sm:$0xff] }
 0x645   : > { %20853 = vmatprep.subr.mxu1 %v17555_v24  ;;  %20908 = vmatprep.subr.mxu0 %v17592_v35  ;;  %v13952_v4 = vld [vmem:[#allocation2 + $0x26] sm:$0xff]  ;;  %v13954_v43 = vld [vmem:[#allocation2 + $0x36] sm:$0xff]  ;;  %v13957_v61 = vld [vmem:[#allocation2 + $0x4e] sm:$0xff] }
 0x646   : > { %20821 = vmatmul.mubr.msk.f32.gmra.mxu1 %vm12612_vm2, %v13112_v46  ;;  %v13956_v20 = vld [vmem:[#allocation2 + $0x46] sm:$0xff]  ;;  %v13958_v8 = vld [vmem:[#allocation2 + $0x56] sm:$0xff]  ;;  %v13959_v39 = vld [vmem:[#allocation2 + $0x5e] sm:$0xff] }
 0x647   : > { %20823 = vmatprep.mubr.msk.f32.mxu1 %vm12612_vm2, %v13113_v3  ;;  %20843 = vmatmul.mubr.msk.f32.gmra.mxu0 %vm12612_vm2, %v13115_v32 }
 0x648   : > { %20845 = vmatprep.mubr.msk.f32.mxu0 %vm12612_vm2, %v13116_v47  ;;  %20854 = vmatpush3.msra.mxu1 %v17555_v24 }
 0x649   : > { %20889 = vmatprep.subr.mxu1 %v17580_v37 }
 0x64a   : > { %20824 = vmatmul.mubr.msk.f32.gmra.mxu1 %vm12612_vm2, %v13114_v50 }
 0x64b   : > { %20826 = vmatprep.mubr.msk.f32.mxu1 %vm12612_vm2, %v13115_v32  ;;  %20846 = vmatmul.mubr.msk.f32.gmra.mxu0 %vm12612_vm2, %v13117_v26 }
 0x64c   : > { %20848 = vmatprep.mubr.msk.f32.mxu0 %vm12612_vm2, %v13118_v59 }
 0x64e   : > { %20827 = vmatmul.mubr.msk.f32.gmra.mxu1 %vm12612_vm2, %v13116_v47 }
 0x64f   : > { %20829 = vmatprep.mubr.msk.f32.mxu1 %vm12612_vm2, %v13117_v26  ;;  %20849 = vmatmul.mubr.msk.f32.gmra.mxu0 %vm12612_vm2, %v13119_v16 }
 0x650   : > { %20874 = vmatprep.mubr.msk.f32.mxu0 %vm12612_vm2, %v13446_v29 }
 0x652   : > { %20830 = vmatmul.mubr.msk.f32.gmra.mxu1 %vm12612_vm2, %v13118_v59 }
 0x653   : > { %20855 = vmatprep.mubr.msk.f32.mxu1 %vm12612_vm2, %v13278_v7  ;;  %20875 = vmatmul.mubr.msk.f32.vlgmr.msra.gmra.mxu0 %vm12612_vm2, %v13447_v23 }
 0x654   : > { %20877 = vmatprep.mubr.msk.f32.mxu0 %vm12612_vm2, %v13448_v28  ;;  %20909 = vmatpush3.msra.mxu0 %v17592_v35 }
 0x655   : > { %20910 = vmatprep.subr.mxu0 %v17591_v52 }
 0x656   : > { %20856 = vmatmul.mubr.msk.f32.vlgmr.msra.gmra.mxu1 %vm12612_vm2, %v13279_v54  ;;  %20911 = vmatpush3.msra.mxu0 %v17591_v52 }
 0x657   : > { %20858 = vmatprep.mubr.msk.f32.mxu1 %vm12612_vm2, %v13280_v27  ;;  %20878 = vmatmul.mubr.msk.f32.gmra.mxu0 %vm12612_vm2, %v13449_v0 }
 0x658   : > { %20880 = vmatprep.mubr.msk.f32.mxu0 %vm12612_vm2, %v13450_v48  ;;  %20890 = vmatpush3.msra.mxu1 %v17580_v37 }
 0x659   : > { %20891 = vmatprep.subr.mxu1 %v17579_v11  ;;  %20946 = vmatprep.subr.mxu0 %v27185_v13 }
 0x65a   : > { %20859 = vmatmul.mubr.msk.f32.gmra.mxu1 %vm12612_vm2, %v13281_v2 }
 0x65b   : > { %20861 = vmatprep.mubr.msk.f32.mxu1 %vm12612_vm2, %v13282_v25  ;;  %20881 = vmatmul.mubr.msk.f32.gmra.mxu0 %vm12612_vm2, %v13451_v33 }
 0x65c   : > { %20883 = vmatprep.mubr.msk.f32.mxu0 %vm12612_vm2, %v13452_v45  ;;  %20892 = vmatpush3.msra.mxu1 %v17579_v11 }
 0x65d   : > { %20927 = vmatprep.subr.mxu1 %v17604_v15 }
 0x65e   : > { %20862 = vmatmul.mubr.msk.f32.gmra.mxu1 %vm12612_vm2, %v13283_v6 }
 0x65f   : > { %20864 = vmatprep.mubr.msk.f32.mxu1 %vm12612_vm2, %v13284_v18  ;;  %20884 = vmatmul.mubr.msk.f32.gmra.mxu0 %vm12612_vm2, %v13453_v12 }
 0x660   : > { %20886 = vmatprep.mubr.msk.f32.mxu0 %vm12612_vm2, %v13454_v21 }
 0x662   : > { %20865 = vmatmul.mubr.msk.f32.gmra.mxu1 %vm12612_vm2, %v13285_v58 }
 0x663   : > { %20867 = vmatprep.mubr.msk.f32.mxu1 %vm12612_vm2, %v13286_v44  ;;  %20887 = vmatmul.mubr.msk.f32.gmra.mxu0 %vm12612_vm2, %v13455_v55 }
 0x664   : > { %20912 = vmatprep.mubr.msk.f32.mxu0 %vm12612_vm2, %v13782_v17 }
 0x666   : > { %20868 = vmatmul.mubr.msk.f32.gmra.mxu1 %vm12612_vm2, %v13287_v19 }
 0x667   : > { %20893 = vmatprep.mubr.msk.f32.mxu1 %vm12612_vm2, %v13447_v23  ;;  %20913 = vmatmul.mubr.msk.f32.vlgmr.msra.gmra.mxu0 %vm12612_vm2, %v13783_v5 }
 0x668   : > { %20915 = vmatprep.mubr.msk.f32.mxu0 %vm12612_vm2, %v13784_v36 }
 0x66a   : > { %20894 = vmatmul.mubr.msk.f32.vlgmr.msra.gmra.mxu1 %vm12612_vm2, %v13448_v28 }
 0x66b   : > { %20896 = vmatprep.mubr.msk.f32.mxu1 %vm12612_vm2, %v13449_v0  ;;  %20916 = vmatmul.mubr.msk.f32.gmra.mxu0 %vm12612_vm2, %v13785_v56 }
 0x66c   : > { %20918 = vmatprep.mubr.msk.f32.mxu0 %vm12612_vm2, %v13786_v31  ;;  %20928 = vmatpush3.msra.mxu1 %v17604_v15 }
 0x66d   : > { %20929 = vmatprep.subr.mxu1 %v17603_v51 }
 0x66e   : > { %20897 = vmatmul.mubr.msk.f32.gmra.mxu1 %vm12612_vm2, %v13450_v48 }
 0x66f   : > { %20899 = vmatprep.mubr.msk.f32.mxu1 %vm12612_vm2, %v13451_v33  ;;  %20919 = vmatmul.mubr.msk.f32.gmra.mxu0 %vm12612_vm2, %v13787_v38 }
 0x670   : > { %20921 = vmatprep.mubr.msk.f32.mxu0 %vm12612_vm2, %v13788_v49  ;;  %20930 = vmatpush3.msra.mxu1 %v17603_v51 }
 0x671   : > { %20981 = vmatprep.subr.mxu1 %v27185_v13 }
 0x672   : > { %20900 = vmatmul.mubr.msk.f32.gmra.mxu1 %vm12612_vm2, %v13452_v45 }
 0x673   : > { %20902 = vmatprep.mubr.msk.f32.mxu1 %vm12612_vm2, %v13453_v12  ;;  %20922 = vmatmul.mubr.msk.f32.gmra.mxu0 %vm12612_vm2, %v13789_v14 }
 0x674   : > { %20924 = vmatprep.mubr.msk.f32.mxu0 %vm12612_vm2, %v13790_v63 }
 0x676   : > { %20903 = vmatmul.mubr.msk.f32.gmra.mxu1 %vm12612_vm2, %v13454_v21 }
 0x677   : > { %20905 = vmatprep.mubr.msk.f32.mxu1 %vm12612_vm2, %v13455_v55  ;;  %20925 = vmatmul.mubr.msk.f32.gmra.mxu0 %vm12612_vm2, %v13791_v9 }
 0x678   : > { %20966 = vmatprep.mubr.msk.f32.mxu0 %vm21383_vm3, %v27185_v13 }
 0x67a   : > { %20906 = vmatmul.mubr.msk.f32.gmra.mxu1 %vm12612_vm2, %v13623_v1 }
 0x67b   : > { %20931 = vmatprep.mubr.msk.f32.mxu1 %vm12612_vm2, %v13950_v57 }
 0x67e   : > { %20932 = vmatmul.mubr.msk.f32.vlgmr.msra.gmra.mxu1 %vm12612_vm2, %v13951_v41 }
 0x67f   : > { %20934 = vmatprep.mubr.msk.f32.mxu1 %vm12612_vm2, %v13952_v4 }
 0x682   : > { %20935 = vmatmul.mubr.msk.f32.gmra.mxu1 %vm12612_vm2, %v13953_v10 }
 0x683   : > { %20937 = vmatprep.mubr.msk.f32.mxu1 %vm12612_vm2, %v13954_v43 }
 0x686   : > { %20938 = vmatmul.mubr.msk.f32.gmra.mxu1 %vm12612_vm2, %v13955_v22 }
 0x687   : > { %20940 = vmatprep.mubr.msk.f32.mxu1 %vm12612_vm2, %v13956_v20 }
 0x68a   : > { %20941 = vmatmul.mubr.msk.f32.gmra.mxu1 %vm12612_vm2, %v13957_v61 }
 0x68b   : > { %20943 = vmatprep.mubr.msk.f32.mxu1 %vm12612_vm2, %v13958_v8 }
 0x68e   : > { %20944 = vmatmul.mubr.msk.f32.gmra.mxu1 %vm12612_vm2, %v13959_v39 }
 0x68f   : > { %21001 = vmatprep.mubr.msk.f32.mxu1 %vm21383_vm3, %v27185_v13 }
 0x6eb   : > { %v20800_v42 = vpop.f32.mrf.mxu0 }
 0x6ed   : > { %v12893_v34 = vpop.f32.mrf.mxu0 }
 0x6ee   : > { %v20781_v53 = vpop.f32.mrf.mxu1 }
 0x6ef   : > { %v12899_v30 = vadd.f32 %v20800_v42, %v20781_v53  ;;  %v20803_v62 = vpop.f32.mrf.mxu0 }
 0x6f0   : > { %v12748_v40 = vpop.f32.mrf.mxu1 }
 0x6f1   : > { %v12894_v60 = vadd.f32 %v12893_v34, %v12748_v40  ;;  %v12903_v46 = vpop.f32.mrf.mxu0 }
 0x6f2   : > { %v20784_v3 = vpop.f32.mrf.mxu1 }
 0x6f3   : > { %v12909_v24 = vadd.f32 %v20803_v62, %v20784_v3  ;;  %v20806_v35 = vpop.f32.mrf.mxu0 }
 0x6f4   : > { %v12758_v50 = vpop.f32.mrf.mxu1 }
 0x6f5   : > { %v12904_v32 = vadd.f32 %v12903_v46, %v12758_v50  ;;  %v12913_v37 = vpop.f32.mrf.mxu0 }
 0x6f6   : > { %v20787_v47 = vpop.f32.mrf.mxu1 }
 0x6f7   : > { %v12919_v26 = vadd.f32 %v20806_v35, %v20787_v47  ;;  %v26461_v59 = vpop.f32.mrf.mxu0 }
 0x6f8   : > { %v12768_v16 = vpop.f32.mrf.mxu1 }
 0x6f9   : > { %v12914_v29 = vadd.f32 %v12913_v37, %v12768_v16  ;;  %v26463_v7 = vpop.f32.mrf.mxu0 }
 0x6fa   : > { %v26465_v23 = vpop.f32.mrf.mxu1 }
 0x6fb   : > { %v26467_v52 = vpop.f32.mrf.mxu0 }
 0x6fc   : > { %v26469_v28 = vpop.f32.mrf.mxu1 }
 0x6fd   : > { %v26471_v54 = vpop.f32.mrf.mxu0 }
 0x6fe   : > { %v26473_v27 = vpop.f32.mrf.mxu1 }
 0x6ff   : > { %v20838_v0 = vpop.f32.mrf.mxu0 }
 0x700   : > { %v26475_v11 = vpop.f32.mrf.mxu1 }
 0x701   : > { %v13219_v48 = vpop.f32.mrf.mxu0 }
 0x702   : > { %v20819_v2 = vpop.f32.mrf.mxu1 }
 0x703   : > { %v13101_v25 = vadd.f32 %v20819_v2, %v12899_v30  ;;  %v26477_v33 = vpop.f32.mrf.mxu0 }
 0x704   : > { %v13051_v15 = vpop.f32.mrf.mxu1 }
 0x705   : > { %v13100_v45 = vadd.f32 %v13051_v15, %v12894_v60  ;;  %v26479_v6 = vpop.f32.mrf.mxu0  ;;  %v13269_v18 = vadd.f32 %v20838_v0, %v13101_v25 }
 0x706   : > { %v20822_v12 = vpop.f32.mrf.mxu1 }
 0x707   : > { %v26481_v21 = vadd.f32 %v20822_v12, %v12909_v24  ;;  %v26483_v58 = vpop.f32.mrf.mxu0  ;;  %v13268_v44 = vadd.f32 %v13219_v48, %v13100_v45 }
 0x708   : > { %v13061_v55 = vpop.f32.mrf.mxu1 }
 0x709   : > { %v26485_v17 = vadd.f32 %v13061_v55, %v12904_v32  ;;  %v26487_v19 = vpop.f32.mrf.mxu0  ;;  %v12929_v55 = vadd.f32 %v26461_v59, %v26465_v23 }
 0x70a   : > { %v20825_v5 = vpop.f32.mrf.mxu1 }
 0x70b   : > { %v26489_v36 = vadd.f32 %v20825_v5, %v12919_v26  ;;  %v20847_v56 = vpop.f32.mrf.mxu0  ;;  %v12939_v5 = vadd.f32 %v26467_v52, %v26473_v27 }
 0x70c   : > { %v13071_v51 = vpop.f32.mrf.mxu1 }
 0x70d   : > { %v26491_v31 = vadd.f32 %v13071_v51, %v12914_v29  ;;  %v13249_v38 = vpop.f32.mrf.mxu0 }
 0x70e   : > { %v20828_v49 = vpop.f32.mrf.mxu1 }
 0x70f   : > { %v20850_v14 = vpop.f32.mrf.mxu0  ;;  %v13107_v13 = vadd.f32 %v20828_v49, %v12929_v55 }
 0x710   : > { %v13081_v63 = vpop.f32.mrf.mxu1 }
 0x711   : > { %v13259_v9 = vpop.f32.mrf.mxu0  ;;  %v13275_v59 = vadd.f32 %v20847_v56, %v13107_v13 }
 0x712   : > { %v20831_v1 = vpop.f32.mrf.mxu1 }
 0x713   : > { %v26493_v57 = vpop.f32.mrf.mxu0 }
 0x714   : > { %v13091_v41 = vpop.f32.mrf.mxu1 }
 0x715   : > { %v26495_v4 = vpop.f32.mrf.mxu0 }
 0x716   : > { %27496 = vst [vmem:[#allocation76_spill] sm:$0xff] %v26495_v4  ;;  %v20857_v10 = vpop.f32.mrf.mxu1 }
 0x717   : > { %v26497_v43 = vadd.f32 %v20857_v10, %v13269_v18  ;;  %v26499_v22 = vpop.f32.mrf.mxu0  ;;  %v12924_v10 = vadd.f32 %v26463_v7, %v26469_v28 }
 0x718   : > { %v13387_v20 = vpop.f32.mrf.mxu1 }
 0x719   : > { %v26501_v61 = vadd.f32 %v13387_v20, %v13268_v44  ;;  %v26503_v8 = vpop.f32.mrf.mxu0  ;;  %v12934_v20 = vadd.f32 %v26471_v54, %v26475_v11  ;;  %v13273_v54 = vadd.f32 %v26483_v58, %v26489_v36  ;;  %v13270_v36 = vadd.f32 %v26479_v6, %v26485_v17 }
 0x71a   : > { %v26505_v39 = vpop.f32.mrf.mxu1 }
 0x71b   : > { %27497 = vst [vmem:[#allocation74_spill] sm:$0xff] %v26501_v61  ;;  %v26507_v42 = vpop.f32.mrf.mxu0 }
 0x71c   : > { %v26509_v34 = vpop.f32.mrf.mxu1 }
 0x71d   : > { %v26511_v53 = vpop.f32.mrf.mxu0 }
 0x71e   : > { %v20863_v30 = vpop.f32.mrf.mxu1 }
 0x71f   : > { %v20885_v62 = vpop.f32.mrf.mxu0  ;;  %v13441_v56 = vadd.f32 %v20863_v30, %v13273_v54  ;;  %v27508_v54 = vld [vmem:[#allocation76_spill] sm:$0xff] }
 0x720   : > { %v13407_v40 = vpop.f32.mrf.mxu1 }
 0x721   : > { %v13585_v60 = vpop.f32.mrf.mxu0  ;;  %v13609_v30 = vadd.f32 %v26507_v42, %v13441_v56 }
 0x722   : > { %v20866_v46 = vpop.f32.mrf.mxu1 }
 0x723   : > { %v20888_v3 = vpop.f32.mrf.mxu0  ;;  %v13443_v27 = vadd.f32 %v20866_v46, %v13275_v59 }
 0x724   : > { %v13417_v24 = vpop.f32.mrf.mxu1 }
 0x725   : > { %v13595_v35 = vpop.f32.mrf.mxu0 }
 0x726   : > { %v20869_v50 = vpop.f32.mrf.mxu1 }
 0x727   : > { %v26513_v37 = vpop.f32.mrf.mxu0 }
 0x728   : > { %v13427_v32 = vpop.f32.mrf.mxu1  ;;  %27498 = vst [vmem:[#allocation73_spill] sm:$0xff] %v26513_v37 }
 0x729   : > { %v26519_v16 = vpop.f32.mrf.mxu0 }
 0x72a   : > { %v26515_v47 = vpop.f32.mrf.mxu1  ;;  %27501 = vst [vmem:[#allocation70_spill] sm:$0xff] %v26519_v16  ;;  %v13109_v16 = vadd.f32 %v20831_v1, %v12939_v5  ;;  %v13605_v5 = vadd.f32 %v26493_v57, %v26497_v43 }
 0x72b   : > { %27499 = vst [vmem:[#allocation72_spill] sm:$0xff] %v26515_v47  ;;  %v26525_v48 = vpop.f32.mrf.mxu0 }
 0x72c   : > { %v26517_v26 = vpop.f32.mrf.mxu1  ;;  %27503 = vst [vmem:[#allocation9_spill] sm:$0xff] %v26525_v48  ;;  %v13108_v48 = vadd.f32 %v13091_v41, %v12934_v20  ;;  %v13277_v23 = vadd.f32 %v20850_v14, %v13109_v16  ;;  %v13611_v14 = vadd.f32 %v20885_v62, %v13443_v27 }
 0x72d   : > { %27500 = vst [vmem:[#allocation71_spill] sm:$0xff] %v26517_v26  ;;  %v26527_v15 = vpop.f32.mrf.mxu0  ;;  %v13106_v26 = vadd.f32 %v13081_v63, %v12924_v10  ;;  %v13272_v63 = vadd.f32 %v26487_v19, %v26491_v31 }
 0x72e   : > { %v26521_v29 = vpop.f32.mrf.mxu1  ;;  %27504 = vst [vmem:[#allocation66_spill] sm:$0xff] %v26527_v15  ;;  %v13445_v7 = vadd.f32 %v20869_v50, %v13277_v23  ;;  %v13276_v28 = vadd.f32 %v13259_v9, %v13108_v48 }
 0x72f   : > { %v26529_v12 = vpop.f32.mrf.mxu0  ;;  %v13274_v47 = vadd.f32 %v13249_v38, %v13106_v26  ;;  %v13271_v38 = vadd.f32 %v26477_v33, %v26481_v21  ;;  %v13440_v46 = vadd.f32 %v13407_v40, %v13272_v63 }
 0x730   : > { %v26523_v0 = vpop.f32.mrf.mxu1  ;;  %v13444_v49 = vadd.f32 %v13427_v32, %v13276_v28  ;;  %v13613_v41 = vadd.f32 %v20888_v3, %v13445_v7  ;;  %v27507_v28 = vld [vmem:[#allocation74_spill] sm:$0xff] }
 0x731   : > { %27502 = vst [vmem:[#allocation98_spill] sm:$0xff] %v26523_v0  ;;  %v13911_v37 = vpop.f32.mrf.mxu0  ;;  %v13442_v11 = vadd.f32 %v13417_v24, %v13274_v47  ;;  %v13439_v58 = vadd.f32 %v26505_v39, %v13271_v38  ;;  %v13438_v24 = vadd.f32 %v26509_v34, %v13270_v36  ;;  %v13608_v33 = vadd.f32 %v26511_v53, %v13440_v46  ;;  %v17615_v34 = vld [vmem:[%s27156_s5] ss:$0 sm:$0xff] }
 0x732   : > { %v20901_v2 = vpop.f32.mrf.mxu1  ;;  %v13612_v48 = vadd.f32 %v13595_v35, %v13444_v49  ;;  %v27506_v27 = vld [vmem:[#allocation72_spill] sm:$0xff] }
 0x733   : > { %v20923_v61 = vpop.f32.mrf.mxu0  ;;  %v13610_v26 = vadd.f32 %v13585_v60, %v13442_v11  ;;  %v13777_v40 = vadd.f32 %v20901_v2, %v13609_v30  ;;  %v13607_v35 = vadd.f32 %v26499_v22, %v13439_v58  ;;  %v13773_v7 = vadd.f32 %v27506_v27, %v13605_v5  ;;  %v27514_v58 = vld [vmem:[#allocation70_spill] sm:$0xff]  ;;  %v17645_v5 = vld [vmem:[%s27157_s6 + $0x98] sm:$0xff] }
 0x734   : > { %v13743_v25 = vpop.f32.mrf.mxu1  ;;  %v13604_v11 = vadd.f32 %v27508_v54, %v27507_v28  ;;  %v27510_v57 = vld [vmem:[#allocation71_spill] sm:$0xff]  ;;  %v17651_v27 = vld [vmem:[%s27158_s7 + $0x20] sm:$0xff] }
 0x735   : > { %v13921_v1 = vpop.f32.mrf.mxu0  ;;  %v13776_v39 = vadd.f32 %v13743_v25, %v13608_v33  ;;  %v13775_v42 = vadd.f32 %v26521_v29, %v13607_v35  ;;  %v17622_v35 = vld [vmem:[%s27157_s6 + $0x30] sm:$0xff] }
 0x736   : > { %v20904_v45 = vpop.f32.mrf.mxu1  ;;  %v13772_v43 = vadd.f32 %v27510_v57, %v13604_v11 }
 0x737   : > { %v13779_v50 = vadd.f32 %v20904_v45, %v13611_v14  ;;  %v20926_v19 = vpop.f32.mrf.mxu0  ;;  %v13944_v20 = vadd.f32 %v13911_v37, %v13776_v39  ;;  %v27511_v37 = vmov 0.0   ;;  %v27512_v14 = vld [vmem:[#allocation66_spill] sm:$0xff]  ;;  %v14147_v39 = vld [vmem:[%s27157_s6 + $0x10] sm:$0xff] }
 0x738   : > { %v13753_v18 = vpop.f32.mrf.mxu1  ;;  %v13940_v36 = vadd.f32 %v27514_v58, %v13772_v43 }
 0x739   : > { %v13778_v62 = vadd.f32 %v13753_v18, %v13610_v26  ;;  %v13947_v60 = vadd.f32 %v20923_v61, %v13779_v50  ;;  %v13931_v47 = vpop.f32.mrf.mxu0  ;;  %v13606_v18 = vadd.f32 %v26503_v8, %v13438_v24  ;;  %v13945_v61 = vadd.f32 %v26529_v12, %v13777_v40  ;;  %v27509_v12 = vld [vmem:[#allocation9_spill] sm:$0xff] }
 0x73a   : > { %v20907_v44 = vpop.f32.mrf.mxu1  ;;  %v13943_v49 = vadd.f32 %v27509_v12, %v13775_v42  ;;  %v14145_v40 = vld [vmem:[%s27157_s6] sm:$0xff]  ;;  %v17641_v42 = vld [vmem:[%s27157_s6 + $0x78] sm:$0xff] }
 0x73b   : > { %v13781_v16 = vadd.f32 %v20907_v44, %v13613_v41  ;;  %v13946_v17 = vadd.f32 %v13921_v1, %v13778_v62 }
 0x73c   : > { %v13763_v51 = vpop.f32.mrf.mxu1 }
 0x73d   : > { %v13780_v3 = vadd.f32 %v13763_v51, %v13612_v48  ;;  %v13949_v32 = vadd.f32 %v20926_v19, %v13781_v16  ;;  %v27505_v51 = vld [vmem:[#allocation98_spill] sm:$0xff] }
 0x73e   : > { %v26539_v15 = vpop.f32.mrf.mxu1  ;;  %v13774_v10 = vadd.f32 %v27505_v51, %v13606_v18  ;;  %v17632_v18 = vld [vmem:[%s27157_s6 + $0x58] sm:$0xff] }
 0x73f   : > { %v13948_v55 = vadd.f32 %v13931_v47, %v13780_v3  ;;  %v17623_v47 = vld [vmem:[%s27157_s6 + $0x38] sm:$0xff] }
 0x740   : > { %v26541_v4 = vpop.f32.mrf.mxu1  ;;  %v13942_v41 = vadd.f32 %v27512_v14, %v13774_v10  ;;  %v14615_v51 = vld [vmem:[%s27158_s7 + $0x18] sm:$0xff]  ;;  %v14614_v10 = vld [vmem:[%s27158_s7 + $0x10] sm:$0xff] }
 0x742   : > { %v26543_v52 = vpop.f32.mrf.mxu1 }
 0x744   : > { %v26545_v0 = vpop.f32.mrf.mxu1 }
 0x745   : > { %v14110_v26 = vadd.f32 %v26545_v0, %v13942_v41  ;;  %v14108_v0 = vadd.f32 %v26541_v4, %v13940_v36 }
 0x746   : > { %v20939_v13 = vpop.f32.mrf.mxu1 }
 0x747   : > { %v14113_v59 = vadd.f32 %v20939_v13, %v13945_v61  ;;  %v14111_v13 = vadd.f32 %v26543_v52, %v13943_v49  ;;  %v14127_v30 = vadd.f32 %v17615_v34, %v14110_v26  ;;  %v14125_v4 = vadd.f32 %v17615_v34, %v14108_v0  ;;  %v17643_v61 = vld [vmem:[%s27157_s6 + $0x88] sm:$0xff] }
 0x748   : > { %v14079_v9 = vpop.f32.mrf.mxu1 }
 0x749   : > { %v14112_v63 = vadd.f32 %v14079_v9, %v13944_v20  ;;  %v14130_v38 = vadd.f32 %v17615_v34, %v14113_v59  ;;  %v27513_v9 = vld [vmem:[#allocation73_spill] sm:$0xff]  ;;  %v14128_v19 = vadd.f32 %v17615_v34, %v14111_v13  ;;  %v26619_v24 = vmax.f32 %v14127_v30, 0.0  ;;  %v14613_v59 = vld [vmem:[%s27158_s7 + $0x8] sm:$0xff] }
 0x74a   : > { %v20942_v31 = vpop.f32.mrf.mxu1  ;;  %v13941_v50 = vadd.f32 %v27513_v9, %v13773_v7  ;;  %v17654_v20 = vld [vmem:[%s27158_s7 + $0x38] sm:$0xff] }
 0x74b   : > { %v14115_v6 = vadd.f32 %v20942_v31, %v13947_v60  ;;  %v14129_v16 = vadd.f32 %v17615_v34, %v14112_v63  ;;  %v26600_v31 = vmax.f32 %v14130_v38, 0.0  ;;  %v26613_v3 = vmax.f32 %v14128_v19, 0.0  ;;  %v17621_v60 = vld [vmem:[%s27157_s6 + $0x28] sm:$0xff] }
 0x74c   : > { %v14089_v21 = vpop.f32.mrf.mxu1  ;;  %v14109_v52 = vadd.f32 %v26539_v15, %v13941_v50 }
 0x74d   : > { %v14114_v2 = vadd.f32 %v14089_v21, %v13946_v17  ;;  %v14132_v29 = vadd.f32 %v17615_v34, %v14115_v6  ;;  %v26607_v62 = vmax.f32 %v14129_v16, 0.0  ;;  %v26631_v21 = vmax.f32 %v14125_v4, 0.0  ;;  %v17624_v6 = vld [vmem:[%s27157_s6 + $0x40] sm:$0xff] }
 0x74e   : > { %v20945_v45 = vpop.f32.mrf.mxu1  ;;  %v14126_v15 = vadd.f32 %v17615_v34, %v14109_v52  ;;  %v14149_v17 = vld [vmem:[%s27157_s6 + $0x20] sm:$0xff] }
 0x74f   : > { %v14117_v44 = vadd.f32 %v20945_v45, %v13949_v32  ;;  %v14131_v1 = vadd.f32 %v17615_v34, %v14114_v2  ;;  %v26584_v46 = vmax.f32 %v14132_v29, 0.0  ;;  %v14146_v32 = vld [vmem:[%s27157_s6 + $0x8] sm:$0xff]  ;;  %v14148_v45 = vld [vmem:[%s27157_s6 + $0x18] sm:$0xff]  ;;  %v17653_v29 = vld [vmem:[%s27158_s7 + $0x30] sm:$0xff] }
 0x750   : > { %v14099_v53 = vpop.f32.mrf.mxu1  ;;  %v26625_v33 = vmax.f32 %v14126_v15, 0.0  ;;  %v17634_v2 = vld [vmem:[%s27157_s6 + $0x68] sm:$0xff] }
 0x751   : > { %v14134_v22 = vadd.f32 %v17615_v34, %v14117_v44  ;;  %v14116_v25 = vadd.f32 %v14099_v53, %v13948_v55  ;;  %v26592_v48 = vmax.f32 %v14131_v1, 0.0  ;;  %v17625_v44 = vld [vmem:[%s27157_s6 + $0x48] sm:$0xff]  ;;  %v17631_v55 = vld [vmem:[%s27157_s6 + $0x50] sm:$0xff]  ;;  %v17633_v53 = vld [vmem:[%s27157_s6 + $0x60] sm:$0xff] }
 0x753   : > { %v26569_v23 = vmax.f32 %v14134_v22, 0.0  ;;  %v14133_v8 = vadd.f32 %v17615_v34, %v14116_v25  ;;  %v17642_v34 = vld [vmem:[%s27157_s6 + $0x80] sm:$0xff]  ;;  %v17644_v22 = vld [vmem:[%s27157_s6 + $0x90] sm:$0xff] }
 0x754   : > { %v17635_v25 = vld [vmem:[%s27157_s6 + $0x70] sm:$0xff] }
 0x755   : > { %v26575_v56 = vmax.f32 %v14133_v8, 0.0  ;;  %20947 = vmatpush3.msra.mxu0 %v26569_v23  ;;  %20982 = vmatpush3.msra.mxu1 %v26569_v23  ;;  %v17652_v8 = vld [vmem:[%s27158_s7 + $0x28] sm:$0xff] }
 0x756   : > { %20948 = vmatprep.subr.mxu0 %v27511_v37  ;;  %20983 = vmatprep.subr.mxu1 %v27511_v37 }
 0x757   : > { %20949 = vmatpush3.msra.mxu0 %v26575_v56  ;;  %20984 = vmatpush3.msra.mxu1 %v26575_v56 }
 0x758   : > { %20950 = vmatprep.subr.mxu0 %v27511_v37  ;;  %20985 = vmatprep.subr.mxu1 %v27511_v37 }
 0x759   : > { %20951 = vmatpush3.msra.mxu0 %v26584_v46  ;;  %20986 = vmatpush3.msra.mxu1 %v26584_v46 }
 0x75a   : > { %20952 = vmatprep.subr.mxu0 %v27511_v37  ;;  %20987 = vmatprep.subr.mxu1 %v27511_v37 }
 0x75b   : > { %20953 = vmatpush3.msra.mxu0 %v26592_v48  ;;  %20988 = vmatpush3.msra.mxu1 %v26592_v48 }
 0x75c   : > { %20954 = vmatprep.subr.mxu0 %v27511_v37  ;;  %20989 = vmatprep.subr.mxu1 %v27511_v37 }
 0x75d   : > { %20955 = vmatpush3.msra.mxu0 %v26600_v31  ;;  %20990 = vmatpush3.msra.mxu1 %v26600_v31 }
 0x75e   : > { %20956 = vmatprep.subr.mxu0 %v27511_v37  ;;  %20991 = vmatprep.subr.mxu1 %v27511_v37 }
 0x75f   : > { %20957 = vmatpush3.msra.mxu0 %v26607_v62  ;;  %20992 = vmatpush3.msra.mxu1 %v26607_v62 }
 0x760   : > { %20958 = vmatprep.subr.mxu0 %v27511_v37  ;;  %20993 = vmatprep.subr.mxu1 %v27511_v37 }
 0x761   : > { %20959 = vmatpush3.msra.mxu0 %v26613_v3  ;;  %20994 = vmatpush3.msra.mxu1 %v26613_v3 }
 0x762   : > { %20960 = vmatprep.subr.mxu0 %v27511_v37  ;;  %20995 = vmatprep.subr.mxu1 %v27511_v37 }
 0x763   : > { %20961 = vmatpush3.msra.mxu0 %v26619_v24  ;;  %20996 = vmatpush3.msra.mxu1 %v26619_v24 }
 0x764   : > { %20962 = vmatprep.subr.mxu0 %v27511_v37  ;;  %20997 = vmatprep.subr.mxu1 %v27511_v37 }
 0x765   : > { %20963 = vmatpush3.msra.mxu0 %v26625_v33  ;;  %20998 = vmatpush3.msra.mxu1 %v26625_v33 }
 0x766   : > { %20964 = vmatprep.subr.mxu0 %v27511_v37  ;;  %20999 = vmatprep.subr.mxu1 %v27511_v37 }
 0x767   : > { %20965 = vmatpush3.msra.mxu0 %v26631_v21  ;;  %21000 = vmatpush3.msra.mxu1 %v26631_v21 }
 0x768   : > { %20967 = vmatmul.mubr.msk.f32.vlgmr.msra.gmra.mxu0 %vm14150_vm4, %v14145_v40  ;;  %21002 = vmatmul.mubr.msk.f32.vlgmr.msra.gmra.mxu1 %vm14150_vm4, %v17621_v60 }
 0x769   : > { %21016 = vmatprep.subr.mxu0 %v27511_v37  ;;  %21051 = vmatprep.subr.mxu1 %v27511_v37 }
 0x76a   : > { %21017 = vmatpush3.msra.mxu0 %v26569_v23  ;;  %21052 = vmatpush3.msra.mxu1 %v26569_v23  ;;  %v14612_v23 = vld [vmem:[%s27158_s7] sm:$0xff] }
 0x76b   : > { %21018 = vmatprep.subr.mxu0 %v27511_v37  ;;  %21053 = vmatprep.subr.mxu1 %v27511_v37 }
 0x76c   : > { %20969 = vmatprep.mubr.msk.f32.mxu0 %vm21383_vm3, %v27511_v37  ;;  %21004 = vmatprep.mubr.msk.f32.mxu1 %vm21383_vm3, %v27511_v37 }
 0x76d   : > { %21019 = vmatpush3.msra.mxu0 %v26575_v56  ;;  %21054 = vmatpush3.msra.mxu1 %v26575_v56 }
 0x76e   : > { %20970 = vmatmul.mubr.msk.f32.gmra.mxu0 %vm14150_vm4, %v14146_v32  ;;  %21005 = vmatmul.mubr.msk.f32.gmra.mxu1 %vm14150_vm4, %v17622_v35 }
 0x76f   : > { %21020 = vmatprep.subr.mxu0 %v27511_v37  ;;  %21055 = vmatprep.subr.mxu1 %v27511_v37 }
 0x770   : > { %21021 = vmatpush3.msra.mxu0 %v26584_v46  ;;  %21056 = vmatpush3.msra.mxu1 %v26584_v46 }
 0x771   : > { %21022 = vmatprep.subr.mxu0 %v27511_v37  ;;  %21057 = vmatprep.subr.mxu1 %v27511_v37 }
 0x772   : > { %20972 = vmatprep.mubr.msk.f32.mxu0 %vm21383_vm3, %v27511_v37  ;;  %21007 = vmatprep.mubr.msk.f32.mxu1 %vm21383_vm3, %v27511_v37 }
 0x773   : > { %21023 = vmatpush3.msra.mxu0 %v26592_v48  ;;  %21058 = vmatpush3.msra.mxu1 %v26592_v48 }
 0x774   : > { %20973 = vmatmul.mubr.msk.f32.gmra.mxu0 %vm14150_vm4, %v14147_v39  ;;  %21008 = vmatmul.mubr.msk.f32.gmra.mxu1 %vm14150_vm4, %v17623_v47 }
 0x775   : > { %21024 = vmatprep.subr.mxu0 %v27511_v37  ;;  %21059 = vmatprep.subr.mxu1 %v27511_v37 }
 0x776   : > { %21025 = vmatpush3.msra.mxu0 %v26600_v31  ;;  %21060 = vmatpush3.msra.mxu1 %v26600_v31 }
 0x777   : > { %21026 = vmatprep.subr.mxu0 %v27511_v37  ;;  %21061 = vmatprep.subr.mxu1 %v27511_v37 }
 0x778   : > { %20975 = vmatprep.mubr.msk.f32.mxu0 %vm21383_vm3, %v27511_v37  ;;  %21010 = vmatprep.mubr.msk.f32.mxu1 %vm21383_vm3, %v27511_v37 }
 0x779   : > { %21027 = vmatpush3.msra.mxu0 %v26607_v62  ;;  %21062 = vmatpush3.msra.mxu1 %v26607_v62 }
 0x77a   : > { %20976 = vmatmul.mubr.msk.f32.gmra.mxu0 %vm14150_vm4, %v14148_v45  ;;  %21011 = vmatmul.mubr.msk.f32.gmra.mxu1 %vm14150_vm4, %v17624_v6  ;;  %v17671_v45 = vld [vmem:[%s27158_s7 + $0x78] sm:$0xff] }
 0x77b   : > { %21028 = vmatprep.subr.mxu0 %v27511_v37  ;;  %21063 = vmatprep.subr.mxu1 %v27511_v37 }
 0x77c   : > { %21029 = vmatpush3.msra.mxu0 %v26613_v3  ;;  %21064 = vmatpush3.msra.mxu1 %v26613_v3 }
 0x77d   : > { %21030 = vmatprep.subr.mxu0 %v27511_v37  ;;  %21065 = vmatprep.subr.mxu1 %v27511_v37 }
 0x77e   : > { %20978 = vmatprep.mubr.msk.f32.mxu0 %vm21383_vm3, %v27511_v37  ;;  %21013 = vmatprep.mubr.msk.f32.mxu1 %vm21383_vm3, %v27511_v37 }
 0x77f   : > { %21031 = vmatpush3.msra.mxu0 %v26619_v24  ;;  %21066 = vmatpush3.msra.mxu1 %v26619_v24 }
 0x780   : > { %20979 = vmatmul.mubr.msk.f32.gmra.mxu0 %vm14150_vm4, %v14149_v17  ;;  %21014 = vmatmul.mubr.msk.f32.gmra.mxu1 %vm14150_vm4, %v17625_v44 }
 0x781   : > { %21032 = vmatprep.subr.mxu0 %v27511_v37  ;;  %21067 = vmatprep.subr.mxu1 %v27511_v37 }
 0x782   : > { %21033 = vmatpush3.msra.mxu0 %v26625_v33  ;;  %21068 = vmatpush3.msra.mxu1 %v26625_v33 }
 0x783   : > { %21034 = vmatprep.subr.mxu0 %v27511_v37  ;;  %21069 = vmatprep.subr.mxu1 %v27511_v37 }
 0x784   : > { %21035 = vmatpush3.msra.mxu0 %v26631_v21  ;;  %21036 = vmatprep.mubr.msk.f32.mxu0 %vm21383_vm3, %v27511_v37 }
 0x785   : > { %21070 = vmatpush3.msra.mxu1 %v26631_v21  ;;  %21071 = vmatprep.mubr.msk.f32.mxu1 %vm21383_vm3, %v27511_v37 }
 0x786   : > { %21037 = vmatmul.mubr.msk.f32.vlgmr.msra.gmra.mxu0 %vm14150_vm4, %v17631_v55  ;;  %21072 = vmatmul.mubr.msk.f32.vlgmr.msra.gmra.mxu1 %vm14150_vm4, %v17641_v42 }
 0x787   : > { %21039 = vmatprep.mubr.msk.f32.mxu0 %vm21383_vm3, %v27511_v37  ;;  %21074 = vmatprep.mubr.msk.f32.mxu1 %vm21383_vm3, %v27511_v37 }
 0x788   : > { %21103 = vmatprep.subr.mxu1 %v27511_v37  ;;  %21086 = vmatprep.subr.mxu0 %v27511_v37 }
 0x789   : > { %21104 = vmatpush3.msra.mxu1 %v14615_v51  ;;  %21087 = vmatpush3.msra.mxu0 %v17654_v20  ;;  %v17669_v20 = vld [vmem:[%s27158_s7 + $0x68] sm:$0xff] }
 0x78a   : > { %21040 = vmatmul.mubr.msk.f32.gmra.mxu0 %vm14150_vm4, %v17632_v18  ;;  %21075 = vmatmul.mubr.msk.f32.gmra.mxu1 %vm14150_vm4, %v17642_v34  ;;  %v17670_v18 = vld [vmem:[%s27158_s7 + $0x70] sm:$0xff] }
 0x78b   : > { %21042 = vmatprep.mubr.msk.f32.mxu0 %vm21383_vm3, %v27511_v37  ;;  %21077 = vmatprep.mubr.msk.f32.mxu1 %vm21383_vm3, %v27511_v37 }
 0x78c   : > { %21105 = vmatprep.subr.mxu1 %v27511_v37  ;;  %21088 = vmatprep.subr.mxu0 %v27511_v37 }
 0x78d   : > { %21106 = vmatpush3.msra.mxu1 %v14614_v10  ;;  %21089 = vmatpush3.msra.mxu0 %v17653_v29 }
 0x78e   : > { %21043 = vmatmul.mubr.msk.f32.gmra.mxu0 %vm14150_vm4, %v17633_v53  ;;  %21078 = vmatmul.mubr.msk.f32.gmra.mxu1 %vm14150_vm4, %v17643_v61 }
 0x78f   : > { %21045 = vmatprep.mubr.msk.f32.mxu0 %vm21383_vm3, %v27511_v37  ;;  %21080 = vmatprep.mubr.msk.f32.mxu1 %vm21383_vm3, %v27511_v37 }
 0x790   : > { %21107 = vmatprep.subr.mxu1 %v27511_v37  ;;  %21090 = vmatprep.subr.mxu0 %v27511_v37 }
 0x791   : > { %21108 = vmatpush3.msra.mxu1 %v14613_v59  ;;  %21091 = vmatpush3.msra.mxu0 %v17652_v8  ;;  %v17663_v8 = vld [vmem:[%s27158_s7 + $0x50] sm:$0xff] }
 0x792   : > { %21046 = vmatmul.mubr.msk.f32.gmra.mxu0 %vm14150_vm4, %v17634_v2  ;;  %21081 = vmatmul.mubr.msk.f32.gmra.mxu1 %vm14150_vm4, %v17644_v22 }
 0x793   : > { %21048 = vmatprep.mubr.msk.f32.mxu0 %vm21383_vm3, %v27511_v37  ;;  %21083 = vmatprep.mubr.msk.f32.mxu1 %vm21383_vm3, %v27511_v37 }
 0x794   : > { %21109 = vmatprep.subr.mxu1 %v27511_v37  ;;  %21092 = vmatprep.subr.mxu0 %v27511_v37 }
 0x795   : > { %21110 = vmatpush3.msra.mxu1 %v14612_v23  ;;  %21093 = vmatpush3.msra.mxu0 %v17651_v27 }
 0x796   : > { %21049 = vmatmul.mubr.msk.f32.gmra.mxu0 %vm14150_vm4, %v17635_v25  ;;  %21084 = vmatmul.mubr.msk.f32.gmra.mxu1 %vm14150_vm4, %v17645_v5  ;;  %v17664_v25 = vld [vmem:[%s27158_s7 + $0x58] sm:$0xff] }
 0x797   : > { %21111 = vmatprep.mubr.msk.f32.mxu1 %vm21383_vm3, %v27511_v37  ;;  %21094 = vmatprep.mubr.msk.f32.mxu0 %vm21383_vm3, %v27511_v37 }
 0x798   : > { %21137 = vmatprep.subr.mxu1 %v27511_v37  ;;  %21120 = vmatprep.subr.mxu0 %v27511_v37 }
 0x828   : > { %v14232_v7 = vpop.f32.mrf.mxu0  ;;  %v14343_v28 = vpop.f32.mrf.mxu1 }
 0x829   : > { %v14589_v58 = vmax.f32 %v14232_v7, %v14343_v28 }
 0x82a   : > { %v20968_v54 = vpop.f32.mrf.mxu0  ;;  %v21003_v11 = vpop.f32.mrf.mxu1 }
 0x82b   : > { %v17668_v54 = vld [vmem:[%s27158_s7 + $0x60] sm:$0xff]  ;;  %v17662_v11 = vld [vmem:[%s27158_s7 + $0x48] sm:$0xff] }
 0x82e   : > { %v14237_v12 = vpop.f32.mrf.mxu0  ;;  %v14348_v49 = vpop.f32.mrf.mxu1 }
 0x82f   : > { %v14590_v15 = vmax.f32 %v14237_v12, %v14348_v49 }
 0x830   : > { %v20971_v63 = vpop.f32.mrf.mxu0  ;;  %v21006_v1 = vpop.f32.mrf.mxu1 }
 0x831   : > { %v17661_v63 = vld [vmem:[%s27158_s7 + $0x40] sm:$0xff]  ;;  %v17685_v1 = vld [vmem:[%s27158_s7 + $0xb8] sm:$0xff] }
 0x834   : > { %v14242_v56 = vpop.f32.mrf.mxu0  ;;  %v14353_v57 = vpop.f32.mrf.mxu1 }
 0x835   : > { %v14591_v60 = vmax.f32 %v14242_v56, %v14353_v57 }
 0x836   : > { %v20974_v43 = vpop.f32.mrf.mxu0  ;;  %v21009_v13 = vpop.f32.mrf.mxu1 }
 0x837   : > { %v17684_v43 = vld [vmem:[%s27158_s7 + $0xb0] sm:$0xff]  ;;  %v17678_v13 = vld [vmem:[%s27158_s7 + $0x98] sm:$0xff] }
 0x83a   : > { %v14247_v14 = vpop.f32.mrf.mxu0  ;;  %v14358_v41 = vpop.f32.mrf.mxu1 }
 0x83b   : > { %v14592_v55 = vmax.f32 %v14247_v14, %v14358_v41 }
 0x83c   : > { %v20977_v38 = vpop.f32.mrf.mxu0  ;;  %v21012_v46 = vpop.f32.mrf.mxu1 }
 0x83d   : > { %v17683_v38 = vld [vmem:[%s27158_s7 + $0xa8] sm:$0xff]  ;;  %v17677_v46 = vld [vmem:[%s27158_s7 + $0x90] sm:$0xff] }
 0x840   : > { %v14252_v9 = vpop.f32.mrf.mxu0  ;;  %v14363_v50 = vpop.f32.mrf.mxu1 }
 0x841   : > { %v14593_v10 = vmax.f32 %v14252_v9, %v14363_v50  ;;  %v17682_v9 = vld [vmem:[%s27158_s7 + $0xa0] sm:$0xff] }
 0x842   : > { %v20980_v26 = vpop.f32.mrf.mxu0  ;;  %v21015_v16 = vpop.f32.mrf.mxu1 }
 0x843   : > { %v17676_v26 = vld [vmem:[%s27158_s7 + $0x88] sm:$0xff]  ;;  %v17675_v16 = vld [vmem:[%s27158_s7 + $0x80] sm:$0xff] }
 0x846   : > { %v14454_v48 = vpop.f32.mrf.mxu0  ;;  %v14565_v52 = vpop.f32.mrf.mxu1 }
 0x847   : > { %v14594_v36 = vmax.f32 %v14454_v48, %v14565_v52  ;;  %v17699_v48 = vld [vmem:[%s27158_s7 + $0xf8] sm:$0xff] }
 0x848   : > { %v21038_v19 = vpop.f32.mrf.mxu0  ;;  %v21073_v31 = vpop.f32.mrf.mxu1 }
 0x849   : > { %v14599_v0 = vmax.f32 %v14589_v58, %v14594_v36  ;;  %v17698_v58 = vld [vmem:[%s27158_s7 + $0xf0] sm:$0xff]  ;;  %v17692_v36 = vld [vmem:[%s27158_s7 + $0xd8] sm:$0xff] }
 0x84a   : > { %v14459_v30 = vpop.f32.mrf.mxu0  ;;  %v14570_v62 = vpop.f32.mrf.mxu1 }
 0x84b   : > { %14604 = vst.msk [vmem:[#allocation3] sm:$0xff] %vm11192_vm1, %v14599_v0  ;;  %v14595_v3 = vmax.f32 %v14459_v30, %v14570_v62  ;;  %v17697_v0 = vld [vmem:[%s27158_s7 + $0xe8] sm:$0xff]  ;;  %v17691_v30 = vld [vmem:[%s27158_s7 + $0xd0] sm:$0xff]  ;;  %v17696_v62 = vld [vmem:[%s27158_s7 + $0xe0] sm:$0xff] }
 0x84c   : > { %v21041_v4 = vpop.f32.mrf.mxu0  ;;  %v21076_v24 = vpop.f32.mrf.mxu1 }
 0x84d   : > { %v14600_v33 = vmax.f32 %v14590_v15, %v14595_v3  ;;  %v17690_v3 = vld [vmem:[%s27158_s7 + $0xc8] sm:$0xff]  ;;  %v17689_v24 = vld [vmem:[%s27158_s7 + $0xc0] sm:$0xff] }
 0x84e   : > { %v14464_v21 = vpop.f32.mrf.mxu0  ;;  %v14575_v40 = vpop.f32.mrf.mxu1 }
 0x84f   : > { %14605 = vst.msk [vmem:[#allocation3 + $0x8] sm:$0xff] %vm11192_vm1, %v14600_v33  ;;  %v14596_v32 = vmax.f32 %v14464_v21, %v14575_v40  ;;  %v17706_v40 = vld [vmem:[%s27158_s7 + $0x118] sm:$0xff] }
 0x850   : > { %v21044_v35 = vpop.f32.mrf.mxu0  ;;  %v21079_v39 = vpop.f32.mrf.mxu1 }
 0x851   : > { %v14601_v47 = vmax.f32 %v14591_v60, %v14596_v32  ;;  %v17705_v35 = vld [vmem:[%s27158_s7 + $0x110] sm:$0xff]  ;;  %v17704_v39 = vld [vmem:[%s27158_s7 + $0x108] sm:$0xff] }
 0x852   : > { %v14469_v6 = vpop.f32.mrf.mxu0  ;;  %v14580_v17 = vpop.f32.mrf.mxu1  ;;  %v14609_v44 = vld [vmem:[#allocation3] sm:$0xff] }
 0x853   : > { %14606 = vst.msk [vmem:[#allocation3 + $0x10] sm:$0xff] %vm11192_vm1, %v14601_v47  ;;  %v14597_v42 = vmax.f32 %v14469_v6, %v14580_v17  ;;  %21112 = vmatmul.mubr.msk.f32.vlgmr.msra.gmra.mxu1 %vm11192_vm1, %v14609_v44  ;;  %v15597_v17 = vld [vmem:[%s27161_s10 + $0x38] sm:$0xff]  ;;  %v15596_v44 = vld [vmem:[%s27161_s10 + $0x30] sm:$0xff] }
 0x854   : > { %21114 = vmatprep.mubr.msk.f32.mxu1 %vm21383_vm3, %v27511_v37  ;;  %21138 = vmatpush3.msra.mxu1 %v17671_v45  ;;  %v21047_v34 = vpop.f32.mrf.mxu0  ;;  %v21082_v53 = vpop.f32.mrf.mxu1  ;;  %v17703_v45 = vld [vmem:[%s27158_s7 + $0x100] sm:$0xff] }
 0x855   : > { %v14602_v61 = vmax.f32 %v14592_v55, %v14597_v42  ;;  %21139 = vmatprep.subr.mxu1 %v27511_v37  ;;  %v15595_v55 = vld [vmem:[%s27161_s10 + $0x28] sm:$0xff]  ;;  %v15594_v42 = vld [vmem:[%s27161_s10 + $0x20] sm:$0xff]  ;;  %v15592_v34 = vld [vmem:[%s27161_s10 + $0x10] sm:$0xff] }
 0x856   : > { %v14616_v2 = vld [vmem:[#allocation3 + $0x1] sm:$0xff]  ;;  %21140 = vmatpush3.msra.mxu1 %v17670_v18  ;;  %v14474_v5 = vpop.f32.mrf.mxu0  ;;  %v14585_v51 = vpop.f32.mrf.mxu1  ;;  %v15591_v53 = vld [vmem:[%s27161_s10 + $0x8] sm:$0xff] }
 0x857   : > { %v26846_v22 = vld [vmem:[#allocation3 + $0x8] sm:$0xff]  ;;  %14607 = vst.msk [vmem:[#allocation3 + $0x18] sm:$0xff] %vm11192_vm1, %v14602_v61  ;;  %21095 = vmatmul.mubr.msk.f32.vlgmr.msra.gmra.mxu0 %vm11192_vm1, %v14616_v2  ;;  %v14598_v59 = vmax.f32 %v14474_v5, %v14585_v51  ;;  %21141 = vmatprep.subr.mxu1 %v27511_v37 }
 0x858   : > { %21115 = vmatmul.mubr.msk.f32.gmra.mxu1 %vm11192_vm1, %v26846_v22  ;;  %21097 = vmatprep.mubr.msk.f32.mxu0 %vm21383_vm3, %v27511_v37  ;;  %v21050_v29 = vpop.f32.mrf.mxu0  ;;  %v21085_v23 = vpop.f32.mrf.mxu1  ;;  %v14902_v49 = vld [vmem:[#allocation3 + $0x6] sm:$0xff] }
 0x859   : > { %21117 = vmatprep.mubr.msk.f32.mxu1 %vm21383_vm3, %v27511_v37  ;;  %21121 = vmatpush3.msra.mxu0 %v17664_v25  ;;  %v14603_v27 = vmax.f32 %v14593_v10, %v14598_v59  ;;  %v14802_v56 = vld [vmem:[#allocation3 + $0x2] sm:$0xff] }
 0x85a   : > { %v14617_v7 = vld [vmem:[#allocation3 + $0x9] sm:$0xff]  ;;  %21142 = vmatpush3.msra.mxu1 %v17669_v20  ;;  %21122 = vmatprep.subr.mxu0 %v27511_v37 }
 0x85b   : > { %v26866_v28 = vld [vmem:[#allocation3 + $0x10] sm:$0xff]  ;;  %21098 = vmatmul.mubr.msk.f32.gmra.mxu0 %vm11192_vm1, %v14617_v7  ;;  %14608 = vst.msk [vmem:[#allocation3 + $0x20] sm:$0xff] %vm11192_vm1, %v14603_v27  ;;  %21143 = vmatprep.subr.mxu1 %v27511_v37  ;;  %v15002_v52 = vld [vmem:[#allocation3 + $0x7] sm:$0xff] }
 0x85c   : > { %21118 = vmatmul.mubr.msk.f32.gmra.mxu1 %vm11192_vm1, %v26866_v28  ;;  %21100 = vmatprep.mubr.msk.f32.mxu0 %vm21383_vm3, %v27511_v37  ;;  %v26898_v57 = vld [vmem:[#allocation3 + $0xe] sm:$0xff] }
 0x85d   : > { %21123 = vmatpush3.msra.mxu0 %v17663_v8  ;;  %21144 = vmatpush3.msra.mxu1 %v17668_v54  ;;  %v14803_v14 = vld [vmem:[#allocation3 + $0xa] sm:$0xff] }
 0x85e   : > { %21145 = vmatprep.mubr.msk.f32.mxu1 %vm21383_vm3, %v27511_v37  ;;  %v14618_v12 = vld [vmem:[#allocation3 + $0x11] sm:$0xff]  ;;  %21124 = vmatprep.subr.mxu0 %v27511_v37  ;;  %v15593_v18 = vld [vmem:[%s27161_s10 + $0x18] sm:$0xff] }
 0x85f   : > { %21101 = vmatmul.mubr.msk.f32.gmra.mxu0 %vm11192_vm1, %v14618_v12  ;;  %21171 = vmatprep.subr.mxu1 %v27511_v37  ;;  %v26915_v41 = vld [vmem:[#allocation3 + $0x16] sm:$0xff]  ;;  %v15302_v4 = vld [vmem:[#allocation3 + $0xd] sm:$0xff] }
 0x860   : > { %21146 = vmatmul.mubr.msk.f32.vlgmr.msra.gmra.mxu1 %vm11192_vm1, %v14902_v49  ;;  %21125 = vmatpush3.msra.mxu0 %v17662_v11  ;;  %v14804_v50 = vld [vmem:[#allocation3 + $0x12] sm:$0xff] }
 0x861   : > { %21128 = vmatprep.mubr.msk.f32.mxu0 %vm21383_vm3, %v27511_v37  ;;  %21126 = vmatprep.subr.mxu0 %v27511_v37  ;;  %v15003_v19 = vld [vmem:[#allocation3 + $0xf] sm:$0xff]  ;;  %v15104_v31 = vld [vmem:[#allocation3 + $0x18] sm:$0xff] }
 0x862   : > { %21148 = vmatprep.mubr.msk.f32.mxu1 %vm21383_vm3, %v27511_v37  ;;  %21127 = vmatpush3.msra.mxu0 %v17661_v63  ;;  %v15004_v15 = vld [vmem:[#allocation3 + $0x17] sm:$0xff]  ;;  %v15202_v33 = vld [vmem:[#allocation3 + $0xc] sm:$0xff] }
 0x863   : > { %21129 = vmatmul.mubr.msk.f32.vlgmr.msra.gmra.mxu0 %vm11192_vm1, %v14802_v56  ;;  %21172 = vmatpush3.msra.mxu1 %v17685_v1  ;;  %v15303_v21 = vld [vmem:[#allocation3 + $0x15] sm:$0xff]  ;;  %v15304_v32 = vld [vmem:[#allocation3 + $0x1d] sm:$0xff] }
 0x864   : > { %21149 = vmatmul.mubr.msk.f32.gmra.mxu1 %vm11192_vm1, %v26898_v57  ;;  %21131 = vmatprep.mubr.msk.f32.mxu0 %vm21383_vm3, %v27511_v37  ;;  %v15203_v60 = vld [vmem:[#allocation3 + $0x14] sm:$0xff]  ;;  %v15204_v47 = vld [vmem:[#allocation3 + $0x1c] sm:$0xff] }
 0x865   : > { %21173 = vmatprep.subr.mxu1 %v27511_v37  ;;  %21151 = vmatprep.mubr.msk.f32.mxu1 %vm21383_vm3, %v27511_v37  ;;  %v15404_v6 = vld [vmem:[#allocation3 + $0x1e] sm:$0xff] }
 0x866   : > { %21174 = vmatpush3.msra.mxu1 %v17684_v43  ;;  %21154 = vmatprep.subr.mxu0 %v27511_v37 }
 0x867   : > { %21132 = vmatmul.mubr.msk.f32.gmra.mxu0 %vm11192_vm1, %v14803_v14  ;;  %21175 = vmatprep.subr.mxu1 %v27511_v37 }
 0x868   : > { %21152 = vmatmul.mubr.msk.f32.gmra.mxu1 %vm11192_vm1, %v26915_v41  ;;  %21155 = vmatpush3.msra.mxu0 %v17678_v13 }
 0x869   : > { %21176 = vmatpush3.msra.mxu1 %v17683_v38  ;;  %21156 = vmatprep.subr.mxu0 %v27511_v37 }
 0x86a   : > { %21177 = vmatprep.subr.mxu1 %v27511_v37  ;;  %21134 = vmatprep.mubr.msk.f32.mxu0 %vm21383_vm3, %v27511_v37 }
 0x86b   : > { %21157 = vmatpush3.msra.mxu0 %v17677_v46  ;;  %21178 = vmatpush3.msra.mxu1 %v17682_v9 }
 0x86c   : > { %21179 = vmatprep.mubr.msk.f32.mxu1 %vm21383_vm3, %v27511_v37  ;;  %21135 = vmatmul.mubr.msk.f32.gmra.mxu0 %vm11192_vm1, %v14804_v50 }
 0x86d   : > { %21158 = vmatprep.subr.mxu0 %v27511_v37  ;;  %21180 = vmatmul.mubr.msk.f32.vlgmr.msra.gmra.mxu1 %vm11192_vm1, %v26846_v22 }
 0x86e   : > { %21159 = vmatpush3.msra.mxu0 %v17676_v26  ;;  %21162 = vmatprep.mubr.msk.f32.mxu0 %vm21383_vm3, %v27511_v37 }
 0x86f   : > { %21160 = vmatprep.subr.mxu0 %v27511_v37  ;;  %21182 = vmatprep.mubr.msk.f32.mxu1 %vm21383_vm3, %v27511_v37 }
 0x870   : > { %21161 = vmatpush3.msra.mxu0 %v17675_v16  ;;  %21205 = vmatprep.subr.mxu1 %v27511_v37 }
 0x871   : > { %21163 = vmatmul.mubr.msk.f32.vlgmr.msra.gmra.mxu0 %vm11192_vm1, %v15002_v52  ;;  %21183 = vmatmul.mubr.msk.f32.gmra.mxu1 %vm11192_vm1, %v26866_v28 }
 0x872   : > { %21206 = vmatpush3.msra.mxu1 %v17699_v48  ;;  %21165 = vmatprep.mubr.msk.f32.mxu0 %vm21383_vm3, %v27511_v37 }
 0x873   : > { %21207 = vmatprep.subr.mxu1 %v27511_v37  ;;  %21185 = vmatprep.mubr.msk.f32.mxu1 %vm21383_vm3, %v27511_v37 }
 0x874   : > { %21208 = vmatpush3.msra.mxu1 %v17698_v58  ;;  %21188 = vmatprep.subr.mxu0 %v27511_v37 }
 0x875   : > { %21166 = vmatmul.mubr.msk.f32.gmra.mxu0 %vm11192_vm1, %v15003_v19  ;;  %21186 = vmatmul.mubr.msk.f32.gmra.mxu1 %vm11192_vm1, %v15104_v31 }
 0x876   : > { %21209 = vmatprep.subr.mxu1 %v27511_v37  ;;  %21189 = vmatpush3.msra.mxu0 %v17692_v36 }
 0x877   : > { %21210 = vmatpush3.msra.mxu1 %v17697_v0  ;;  %21190 = vmatprep.subr.mxu0 %v27511_v37 }
 0x878   : > { %21211 = vmatprep.subr.mxu1 %v27511_v37  ;;  %21168 = vmatprep.mubr.msk.f32.mxu0 %vm21383_vm3, %v27511_v37 }
 0x879   : > { %21191 = vmatpush3.msra.mxu0 %v17691_v30  ;;  %21212 = vmatpush3.msra.mxu1 %v17696_v62 }
 0x87a   : > { %21213 = vmatprep.mubr.msk.f32.mxu1 %vm21383_vm3, %v27511_v37  ;;  %21169 = vmatmul.mubr.msk.f32.gmra.mxu0 %vm11192_vm1, %v15004_v15 }
 0x87b   : > { %21192 = vmatprep.subr.mxu0 %v27511_v37  ;;  %21214 = vmatmul.mubr.msk.f32.vlgmr.msra.gmra.mxu1 %vm11192_vm1, %v15302_v4 }
 0x87c   : > { %21193 = vmatpush3.msra.mxu0 %v17690_v3  ;;  %21196 = vmatprep.mubr.msk.f32.mxu0 %vm21383_vm3, %v27511_v37 }
 0x87d   : > { %21194 = vmatprep.subr.mxu0 %v27511_v37  ;;  %21216 = vmatprep.mubr.msk.f32.mxu1 %vm21383_vm3, %v27511_v37 }
 0x87e   : > { %21195 = vmatpush3.msra.mxu0 %v17689_v24  ;;  %21239 = vmatprep.subr.mxu1 %v27511_v37 }
 0x87f   : > { %21197 = vmatmul.mubr.msk.f32.vlgmr.msra.gmra.mxu0 %vm11192_vm1, %v15202_v33  ;;  %21217 = vmatmul.mubr.msk.f32.gmra.mxu1 %vm11192_vm1, %v15303_v21 }
 0x880   : > { %21199 = vmatprep.mubr.msk.f32.mxu0 %vm21383_vm3, %v27511_v37  ;;  %21219 = vmatprep.mubr.msk.f32.mxu1 %vm21383_vm3, %v27511_v37 }
 0x881   : > { %21222 = vmatprep.subr.mxu0 %v27511_v37 }
 0x882   : > { %21223 = vmatpush3.msra.mxu0 %v17706_v40 }
 0x883   : > { %21200 = vmatmul.mubr.msk.f32.gmra.mxu0 %vm11192_vm1, %v15203_v60  ;;  %21220 = vmatmul.mubr.msk.f32.gmra.mxu1 %vm11192_vm1, %v15304_v32 }
 0x884   : > { %21224 = vmatprep.subr.mxu0 %v27511_v37  ;;  %21202 = vmatprep.mubr.msk.f32.mxu0 %vm21383_vm3, %v27511_v37 }
 0x885   : > { %21225 = vmatpush3.msra.mxu0 %v17705_v35  ;;  %21245 = vmatprep.mubr.msk.f32.mxu1 %vm21383_vm3, %v27511_v37 }
 0x886   : > { %21226 = vmatprep.subr.mxu0 %v27511_v37 }
 0x887   : > { %21203 = vmatmul.mubr.msk.f32.gmra.mxu0 %vm11192_vm1, %v15204_v47 }
 0x888   : > { %21227 = vmatpush3.msra.mxu0 %v17704_v39  ;;  %21230 = vmatprep.mubr.msk.f32.mxu0 %vm21383_vm3, %v27511_v37 }
 0x889   : > { %21228 = vmatprep.subr.mxu0 %v27511_v37 }
 0x88a   : > { %21229 = vmatpush3.msra.mxu0 %v17703_v45 }
 0x88b   : > { %21231 = vmatmul.mubr.msk.f32.vlgmr.msra.gmra.mxu0 %vm11192_vm1, %v26898_v57  ;;  %21248 = vmatprep.subr.mxu0 %v27511_v37 }
 0x88c   : > { %21233 = vmatprep.mubr.msk.f32.mxu0 %vm21383_vm3, %v27511_v37  ;;  %21249 = vmatpush3.msra.mxu0 %v15597_v17 }
 0x88d   : > { %21250 = vmatprep.subr.mxu0 %v27511_v37 }
 0x88e   : > { %21251 = vmatpush3.msra.mxu0 %v15596_v44 }
 0x88f   : > { %21234 = vmatmul.mubr.msk.f32.gmra.mxu0 %vm11192_vm1, %v26915_v41  ;;  %21252 = vmatprep.subr.mxu0 %v27511_v37 }
 0x890   : > { %21236 = vmatprep.mubr.msk.f32.mxu0 %vm21383_vm3, %v27511_v37  ;;  %21253 = vmatpush3.msra.mxu0 %v15595_v55 }
 0x891   : > { %21254 = vmatprep.subr.mxu0 %v27511_v37 }
 0x892   : > { %21255 = vmatpush3.msra.mxu0 %v15594_v42 }
 0x893   : > { %21237 = vmatmul.mubr.msk.f32.gmra.mxu0 %vm11192_vm1, %v15404_v6  ;;  %21256 = vmatprep.subr.mxu0 %v27511_v37 }
 0x894   : > { %21264 = vmatprep.mubr.msk.f32.mxu0 %vm21383_vm3, %v27511_v37  ;;  %21257 = vmatpush3.msra.mxu0 %v15593_v18 }
 0x895   : > { %21258 = vmatprep.subr.mxu0 %v27511_v37 }
 0x896   : > { %21259 = vmatpush3.msra.mxu0 %v15592_v34 }
 0x897   : > { %21260 = vmatprep.subr.mxu0 %v27511_v37 }
 0x898   : > { %21261 = vmatpush3.msra.mxu0 %v15591_v53 }
 0x899   : > { %21262 = vmatprep.subr.mxu0 %v27511_v37 }
 0x913   : > { %v14788_v61 = vpop.f32.mrf.mxu1 }
 0x915   : > { %v21113_v2 = vpop.f32.mrf.mxu1 }
 0x917   : > { %v14699_v22 = vpop.f32.mrf.mxu0 }
 0x918   : > { %v14793_v25 = vpop.f32.mrf.mxu1  ;;  %v14789_v62 = vadd.f32 %v14788_v61, %v14699_v22 }
 0x919   : > { %v21096_v5 = vpop.f32.mrf.mxu0 }
 0x91a   : > { %v21116_v51 = vpop.f32.mrf.mxu1 }
 0x91b   : > { %v14704_v10 = vpop.f32.mrf.mxu0 }
 0x91c   : > { %v14798_v20 = vpop.f32.mrf.mxu1  ;;  %v14794_v31 = vadd.f32 %v14793_v25, %v14704_v10 }
 0x91d   : > { %v21099_v59 = vpop.f32.mrf.mxu0 }
 0x91e   : > { %v21119_v29 = vpop.f32.mrf.mxu1 }
 0x91f   : > { %v14709_v23 = vpop.f32.mrf.mxu0 }
 0x920   : > { %v14985_v8 = vpop.f32.mrf.mxu1  ;;  %v14799_v15 = vadd.f32 %v14798_v20, %v14709_v23 }
 0x921   : > { %v21102_v27 = vpop.f32.mrf.mxu0 }
 0x922   : > { %v21147_v7 = vpop.f32.mrf.mxu1 }
 0x923   : > { %v14885_v28 = vpop.f32.mrf.mxu0 }
 0x924   : > { %v14990_v54 = vpop.f32.mrf.mxu1  ;;  %v14899_v33 = vadd.f32 %v14885_v28, %v14789_v62  ;;  %v17710_v28 = vld [vmem:[%s27159_s8] ss:$0 sm:$0xff] }
 0x925   : > { %v21130_v11 = vpop.f32.mrf.mxu0 }
 0x926   : > { %v21150_v12 = vpop.f32.mrf.mxu1  ;;  %v14999_v47 = vadd.f32 %v14985_v8, %v14899_v33 }
 0x927   : > { %v14890_v49 = vpop.f32.mrf.mxu0 }
 0x928   : > { %v14995_v63 = vpop.f32.mrf.mxu1  ;;  %v14900_v3 = vadd.f32 %v14890_v49, %v14794_v31 }
 0x929   : > { %v21133_v1 = vpop.f32.mrf.mxu0 }
 0x92a   : > { %v21153_v56 = vpop.f32.mrf.mxu1  ;;  %v15000_v32 = vadd.f32 %v14990_v54, %v14900_v3 }
 0x92c   : > { %v14895_v57 = vpop.f32.mrf.mxu0 }
 0x92d   : > { %v15185_v43 = vpop.f32.mrf.mxu1  ;;  %v14901_v21 = vadd.f32 %v14895_v57, %v14799_v15  ;;  %v15515_v57 = vld [vmem:[%s27160_s9] sm:$0x1] }
 0x92e   : > { %v21136_v13 = vpop.f32.mrf.mxu0 }
 0x92f   : > { %v21181_v14 = vpop.f32.mrf.mxu1  ;;  %v15001_v6 = vadd.f32 %v14995_v63, %v14901_v21  ;;  %v15677_v13 = vld [vmem:[%s27163_s12 + $0x18] sm:$0xff] }
 0x931   : > { %v15085_v41 = vpop.f32.mrf.mxu0  ;;  %v15190_v38 = vpop.f32.mrf.mxu1 }
 0x932   : > { %v15099_v44 = vadd.f32 %v15085_v41, %v14999_v47 }
 0x933   : > { %v21164_v46 = vpop.f32.mrf.mxu0  ;;  %v21184_v9 = vpop.f32.mrf.mxu1 }
 0x934   : > { %v15199_v53 = vadd.f32 %v15185_v43, %v15099_v44  ;;  %v15590_v43 = vld [vmem:[%s27161_s10] sm:$0xff]  ;;  %v15675_v46 = vld [vmem:[%s27163_s12 + $0x8] sm:$0xff] }
 0x935   : > { %v15090_v50 = vpop.f32.mrf.mxu0  ;;  %v15195_v26 = vpop.f32.mrf.mxu1  ;;  %21263 = vmatpush3.msra.mxu0 %v15590_v43  ;;  %v15674_v9 = vld [vmem:[%s27163_s12] sm:$0xff] }
 0x936   : > { %v15100_v45 = vadd.f32 %v15090_v50, %v15000_v32  ;;  %v15598_v50 = vld [vmem:[%s27162_s11] sm:$0x1] }
 0x937   : > { %v21167_v16 = vpop.f32.mrf.mxu0  ;;  %v21187_v48 = vpop.f32.mrf.mxu1 }
 0x938   : > { %v15200_v18 = vadd.f32 %v15190_v38, %v15100_v45  ;;  %v15676_v38 = vld [vmem:[%s27163_s12 + $0x10] sm:$0xff] }
 0x93a   : > { %v15095_v52 = vpop.f32.mrf.mxu0 }
 0x93b   : > { %v15385_v58 = vpop.f32.mrf.mxu1  ;;  %v15101_v55 = vadd.f32 %v15095_v52, %v15001_v6 }
 0x93c   : > { %v21170_v36 = vpop.f32.mrf.mxu0 }
 0x93d   : > { %v21215_v19 = vpop.f32.mrf.mxu1  ;;  %v15201_v2 = vadd.f32 %v15195_v26, %v15101_v55 }
 0x93f   : > { %v15285_v0 = vpop.f32.mrf.mxu0  ;;  %v15390_v30 = vpop.f32.mrf.mxu1 }
 0x940   : > { %v15299_v25 = vadd.f32 %v15285_v0, %v15199_v53 }
 0x941   : > { %v21198_v4 = vpop.f32.mrf.mxu0  ;;  %v21218_v24 = vpop.f32.mrf.mxu1 }
 0x942   : > { %v15399_v59 = vadd.f32 %v15385_v58, %v15299_v25  ;;  %v15678_v58 = vld [vmem:[%s27164_s13] sm:$0x1] }
 0x943   : > { %v15290_v40 = vpop.f32.mrf.mxu0  ;;  %v15395_v60 = vpop.f32.mrf.mxu1 }
 0x944   : > { %v15300_v61 = vadd.f32 %v15290_v40, %v15200_v18 }
 0x945   : > { %v21201_v35 = vpop.f32.mrf.mxu0  ;;  %v21221_v39 = vpop.f32.mrf.mxu1 }
 0x946   : > { %v15400_v10 = vadd.f32 %v15390_v30, %v15300_v61 }
 0x947   : > { %v15295_v17 = vpop.f32.mrf.mxu0 }
 0x948   : > { %v15301_v5 = vadd.f32 %v15295_v17, %v15201_v2 }
 0x949   : > { %v21204_v42 = vpop.f32.mrf.mxu0 }
 0x94a   : > { %v15401_v23 = vadd.f32 %v15395_v60, %v15301_v5 }
 0x94b   : > { %v15485_v34 = vpop.f32.mrf.mxu0 }
 0x94c   : > { %v15499_v27 = vadd.f32 %v15485_v34, %v15399_v59 }
 0x94d   : > { %v21232_v22 = vpop.f32.mrf.mxu0 }
 0x94e   : > { %v15509_v49 = vadd.f32 %v17710_v28, %v15499_v27 }
 0x94f   : > { %v15490_v51 = vpop.f32.mrf.mxu0 }
 0x950   : > { %v15500_v29 = vadd.f32 %v15490_v51, %v15400_v10  ;;  %v15512_v56 = vmax.f32 %v15509_v49, 0.0 }
 0x951   : > { %v21235_v20 = vpop.f32.mrf.mxu0 }
 0x952   : > { %v15510_v11 = vadd.f32 %v17710_v28, %v15500_v29 }
 0x953   : > { %v15495_v8 = vpop.f32.mrf.mxu0 }
 0x954   : > { %v15501_v7 = vadd.f32 %v15495_v8, %v15401_v23  ;;  %v15513_v1 = vmax.f32 %v15510_v11, 0.0 }
 0x955   : > { %v21238_v54 = vpop.f32.mrf.mxu0 }
 0x956   : > { %v15511_v12 = vadd.f32 %v17710_v28, %v15501_v7 }
 0x958   : > { %v15514_v63 = vmax.f32 %v15511_v12, 0.0 }
 0x95a   : > { %21240 = vmatpush3.msra.mxu1 %v15514_v63 }
 0x95b   : > { %21241 = vmatprep.subr.mxu1 %v27511_v37 }
 0x95c   : > { %21242 = vmatpush3.msra.mxu1 %v15513_v1 }
 0x95d   : > { %21243 = vmatprep.subr.mxu1 %v27511_v37 }
 0x95e   : > { %21244 = vmatpush3.msra.mxu1 %v15512_v56 }
 0x95f   : > { %21246 = vmatmul.mubr.msk.f32.vlgmr.msra.gmra.mxu1 %vm15516_vm5, %v15515_v57  ;;  %21267 = vmatprep.subr.mxu1 %v27511_v37 }
 0x960   : > { %21275 = vmatprep.mubr.msk.f32.mxu1 %vm21383_vm3, %v27511_v37  ;;  %21268 = vmatpush3.msra.mxu1 %v15677_v13 }
 0x961   : > { %21269 = vmatprep.subr.mxu1 %v27511_v37 }
 0x962   : > { %21270 = vmatpush3.msra.mxu1 %v15676_v38 }
 0x963   : > { %21271 = vmatprep.subr.mxu1 %v27511_v37 }
 0x964   : > { %21272 = vmatpush3.msra.mxu1 %v15675_v46 }
 0x965   : > { %21273 = vmatprep.subr.mxu1 %v27511_v37 }
 0x966   : > { %21274 = vmatpush3.msra.mxu1 %v15674_v9 }
 0xa1f   : > { %v15586_v14 = vpop.f32.mrf.mxu1 }
 0xa20   : > { %21265 = vmatmul.mubr.msk.f32.vlgmr.msra.gmra.mxu0 %vm15599_vm6, %v15586_v14 }
 0xa21   : > { %v21247_v41 = vpop.f32.mrf.mxu1 }
 0xae0   : > { %v15669_v26 = vpop.f32.mrf.mxu0 }
 0xae1   : > { %v15670_v16 = vadd.f32 %v15669_v26, %v15598_v50 }
 0xae2   : > { %v21266_v48 = vpop.f32.mrf.mxu0 }
 0xae3   : > { %v15673_v52 = vmax.f32 %v15670_v16, 0.0 }
 0xae5   : > { %21276 = vmatmul.mubr.msk.f32.vlgmr.msra.gmra.mxu1 %vm11192_vm1, %v15673_v52 }
 0xba5   : > { %v15748_v37 = vpop.f32.mrf.mxu1 }
 0xba6   : > { %v15749_v36 = vadd.f32 %v15748_v37, %v15678_v58 }
 0xba7   : > { %v21277_v19 = vpop.f32.mrf.mxu1 }
 0xba8   : > { %15752 = vst [vmem:[%s459_s0] sm:$0x1] %v15749_v36 }
 0xba9   : > { %21333 = shalt.err (!%p21330_p3)
}
 0xbaa   : > { %s21334_s27 = scalar_lea.hbm %s27116_s15, 16  ;;  %s21338_s22 = scalar_lea.hbm %s27165_s14, 32 }
 0xbab   : > { %p21335_p4 = scmp.ne.s32.totalorder %s27116_s15, %s21334_s27  ;;  %p21339_p9 = scmp.lt.s32.totalorder %s27116_s15, %s27165_s14 }
 0xbac   : > { %p21340_p10 = scmp.lt.s32.totalorder %s21338_s22, %s21334_s27 }
 0xbad   : > { %p21336_p7 = pnand %p21335_p4, %p21498_p5 }
 0xbae   : > { %p21341_p11 = por %p21340_p10, %p21339_p9 }
 0xbaf   : > { %p21337_p8 = pneg %p21336_p7 }
 0xbb1   : > { %p21342_p12 = pnand %p21341_p11, %p21337_p8 }
 0xbb3   : > { %21345 = shalt.err (!%p21342_p12)
}
 0xbb4   : > { %21279 = dma.vmem_to_hbm [thread:$0]  (%p21498_p5), %s15767_s28, 16, %s27116_s15, %s15754_s20  }
 0xbb5 PF: > { %p21285_p13 = scmp.ge.s32.totalorder %s21380_s16, 2  ;;  %s15778_s1 = sand.u32 1, %s21368_s29  }
 0xbb6   : > { %s15779_s17 = scalar_lea.sflag [#allocation5], %s15778_s1 }
 0xbb7   : > { %p21282_p0 = pnand %p21285_p13, %p21502_p6 }
 0xbb9   : > { %p21283_p1 = pneg %p21282_p0 }
 0xbbb   : > { %21363 = dma.done.wait (%p21283_p1), %s15779_s17, 16  }
 0xbbc   : > { %21365 = vsyncadd (%p21283_p1), %s15779_s17, 4294967280  ;;  %s27515_s26 = sld [smem:[#allocation7_spill]]  ;;  %p24_p2 = scmp.ge.s32.totalorder %s21485_s19, 4  }
 0xbbd   : > { %s27516_s15 = sld [smem:[#allocation8_spill]]  ;;  %s27517_s29 = smov %s21372_s30 }
 0xbbe   : > { %s27519_s16 = smov %s21485_s19  ;;  %26 = sbr.rel (!%p24_p2) target bundleno = 6 (0x6), region = 160 }
 0xbc2   : > { %s27518_s30 = smov %s27515_s26 }
 0xbc3   :  { %15783 = vsyncpa [#allocation5], 1 }
 0xbc4   :  { %15785 = vsyncpa [#allocation5 + $0x1], 1 }

</bundles_post_ra>
